<compile_context>
chip_gen: v7x
topology: tpu7x:2x2x1
jax: 0.10.0
libtpu: 0.0.40
codegen_flags: <defaults>
</compile_context>

<pallas_src>
import functools
import numpy as np

import jax
import jax.numpy as jnp
from jax.experimental import pallas as pl
from jax.experimental.pallas import tpu as pltpu


# ----------------------------------------------------------------------------
# Model configuration (small, deterministic synthetic DiT)
# ----------------------------------------------------------------------------

BATCH = 2
IN_CHANNELS = 4          # latent channels
INPUT_SIZE = 16          # latent spatial size
PATCH = 2
HIDDEN = 32
HEADS = 4
HEAD_DIM = HIDDEN // HEADS
DEPTH = 2
MLP_RATIO = 4
NUM_CLASSES = 10
LEARN_SIGMA = True
OUT_CHANNELS = IN_CHANNELS * 2 if LEARN_SIGMA else IN_CHANNELS
FREQ_DIM = 256           # DiT TimestepEmbedder frequency_embedding_size
TOKENS = (INPUT_SIZE // PATCH) ** 2
PATCH_DIM = IN_CHANNELS * PATCH * PATCH
OUT_DIM = PATCH * PATCH * OUT_CHANNELS


# ----------------------------------------------------------------------------
# In-kernel helpers
# ----------------------------------------------------------------------------

def _ln_modulate(x, shift, scale):
    """LayerNorm(no affine, eps=1e-6) then adaLN modulate; all fp32."""
    mu = jnp.mean(x, axis=-1, keepdims=True)
    xc = x - mu
    var = jnp.mean(xc * xc, axis=-1, keepdims=True)
    xn = xc * jax.lax.rsqrt(var + 1e-6)
    return xn * (1.0 + scale) + shift


def _gelu_tanh(y):
    """PyTorch GELU(approximate='tanh')."""
    return 0.5 * y * (1.0 + jnp.tanh(0.7978845608028654 *
                                     (y + 0.044715 * y * y * y)))


# ----------------------------------------------------------------------------
# Fused DiT forward kernel (one grid step per batch element)
# ----------------------------------------------------------------------------

def _dit_fused_kernel(xp_ref, pos_ref, mod_ref, fmod_ref,
                      pw_ref, pb_ref,
                      qw_ref, qb_ref, kw_ref, kb_ref, vw_ref, vb_ref,
                      ow_ref, ob_ref,
                      w1_ref, b1_ref, w2_ref, b2_ref,
                      fw_ref, fb_ref,
                      out_ref,
                      *, depth, heads):
    # ---- patch embed + positional embedding ----
    xp = xp_ref[0].astype(jnp.bfloat16)                       # (T, C*P*P)
    tok = jnp.dot(xp, pw_ref[...], preferred_element_type=jnp.float32)
    tok = tok + pb_ref[...] + pos_ref[...]                     # (T, D) fp32

    mod = mod_ref[0]                                           # (depth*6, D) fp32

    for i in range(depth):                                     # static unroll
        shift_msa = mod[6 * i + 0:6 * i + 1, :]
        scale_msa = mod[6 * i + 1:6 * i + 2, :]
        gate_msa  = mod[6 * i + 2:6 * i + 3, :]
        shift_mlp = mod[6 * i + 3:6 * i + 4, :]
        scale_mlp = mod[6 * i + 4:6 * i + 5, :]
        gate_mlp  = mod[6 * i + 5:6 * i + 6, :]

        # ---- attention branch: LN + modulate + per-head qkv/attn, with the
        #      output projection fused (accumulated per head), gate + residual
        xm = _ln_modulate(tok, shift_msa, scale_msa).astype(jnp.bfloat16)
        acc = jnp.zeros_like(tok)                              # (T, D) fp32
        for h in range(heads):                                 # static unroll
            # q weight/bias pre-scaled by head_dim**-0.5 at init (exact).
            q = jnp.dot(xm, qw_ref[i, h],
                        preferred_element_type=jnp.float32) + qb_ref[i, h]
            k = jnp.dot(xm, kw_ref[i, h],
                        preferred_element_type=jnp.float32) + kb_ref[i, h]
            v = jnp.dot(xm, vw_ref[i, h],
                        preferred_element_type=jnp.float32) + vb_ref[i, h]
            s = jax.lax.dot_general(q.astype(jnp.bfloat16), k.astype(jnp.bfloat16),
                                    (((1,), (1,)), ((), ())),
                                    preferred_element_type=jnp.float32)  # (T, T)
            s = s - jnp.max(s, axis=-1, keepdims=True)
            p = jnp.exp(s)
            p = p * pl.reciprocal(jnp.sum(p, axis=-1, keepdims=True), approx=True)
            o = jnp.dot(p.astype(jnp.bfloat16), v.astype(jnp.bfloat16),
                        preferred_element_type=jnp.float32)              # (T, hd)
            acc = acc + jnp.dot(o.astype(jnp.bfloat16), ow_ref[i, h],
                                preferred_element_type=jnp.float32)      # (T, D)
        tok = tok + gate_msa * (acc + ob_ref[i])

        # ---- MLP branch: LN + modulate + fc1(+tanh-GELU) + fc2 + gate + res
        xm = _ln_modulate(tok, shift_mlp, scale_mlp).astype(jnp.bfloat16)
        h1 = jnp.dot(xm, w1_ref[i], preferred_element_type=jnp.float32) + b1_ref[i]
        h1 = _gelu_tanh(h1).astype(jnp.bfloat16)
        y = jnp.dot(h1, w2_ref[i], preferred_element_type=jnp.float32) + b2_ref[i]
        tok = tok + gate_mlp * y

    # ---- final layer: LN + modulate + projection ----
    fmod = fmod_ref[0]                                         # (2, D)
    xm = _ln_modulate(tok, fmod[0:1, :], fmod[1:2, :]).astype(jnp.bfloat16)
    out = jnp.dot(xm, fw_ref[...], preferred_element_type=jnp.float32) + fb_ref[...]
    out_ref[0] = out.astype(out_ref.dtype)


def dit_fused_call(xp, pos, mod, fmod, kp):
    """xp: (B, T, C*P*P) f32 -> (B, T, P*P*OC) f32. One grid step per batch."""
    B, T, _ = xp.shape

    def batch_spec(arr):
        nd = arr.ndim
        return pl.BlockSpec((1,) + arr.shape[1:],
                            lambda b, _nd=nd: (b,) + (0,) * (_nd - 1))

    def const_spec(arr):
        nd = arr.ndim
        return pl.BlockSpec(arr.shape, lambda b, _nd=nd: (0,) * _nd)

    weights = (kp["patch_w"], kp["patch_b"],
               kp["q_w"], kp["q_b"], kp["k_w"], kp["k_b"], kp["v_w"], kp["v_b"],
               kp["proj_w"], kp["proj_b"],
               kp["mlp_w1"], kp["mlp_b1"], kp["mlp_w2"], kp["mlp_b2"],
               kp["final_w"], kp["final_b"])

    in_specs = ([batch_spec(xp), const_spec(pos), batch_spec(mod), batch_spec(fmod)]
                + [const_spec(w) for w in weights])

    kernel = functools.partial(_dit_fused_kernel, depth=DEPTH, heads=HEADS)
    # TODO(synk): at B=2 on v7x each of the 2 TensorCores gets exactly one grid
    # step; a further parallel axis would require splitting T, which conflicts
    # with the fully fused attention at this tiny size.
    return pl.pallas_call(
        kernel,
        out_shape=jax.ShapeDtypeStruct((B, T, OUT_DIM), jnp.float32),
        grid=(B,),
        in_specs=in_specs,
        out_specs=pl.BlockSpec((1, T, OUT_DIM), lambda b: (b, 0, 0)),
        compiler_params=pltpu.CompilerParams(
            dimension_semantics=("parallel",)),
    )(xp, pos, mod, fmod, *weights)


# ----------------------------------------------------------------------------
# Embedding helpers (plain JAX / numpy)
# ----------------------------------------------------------------------------

def timestep_embedding(t, dim, max_period=10000.0):
    half = dim // 2
    freqs = jnp.exp(-np.log(max_period) * jnp.arange(half, dtype=jnp.float32) / half)
    args = t.astype(jnp.float32)[:, None] * freqs[None, :]
    return jnp.concatenate([jnp.cos(args), jnp.sin(args)], axis=-1)


def _get_1d_sincos(embed_dim, pos):
    omega = np.arange(embed_dim // 2, dtype=np.float64) / (embed_dim / 2.0)
    omega = 1.0 / (10000.0 ** omega)
    out = np.einsum("m,d->md", pos.reshape(-1), omega)
    return np.concatenate([np.sin(out), np.cos(out)], axis=1)


def get_2d_sincos_pos_embed(embed_dim, grid_size):
    grid_h = np.arange(grid_size, dtype=np.float64)
    grid_w = np.arange(grid_size, dtype=np.float64)
    grid = np.meshgrid(grid_w, grid_h)          # w goes first (DiT convention)
    grid = np.stack(grid, axis=0).reshape(2, 1, grid_size, grid_size)
    emb_h = _get_1d_sincos(embed_dim // 2, grid[0])
    emb_w = _get_1d_sincos(embed_dim // 2, grid[1])
    return np.concatenate([emb_h, emb_w], axis=1).astype(np.float32)


# ----------------------------------------------------------------------------
# Parameters (synthetic, fp32 "torch-like") and one-time kernel-layout prep
# ----------------------------------------------------------------------------

def init_params(key):
    def dense(k, fan_in, fan_out, scale=0.02):
        return (jax.random.normal(k, (fan_in, fan_out), jnp.float32) * scale,
                jnp.zeros((fan_out,), jnp.float32))

    keys = iter(jax.random.split(key, 64))
    p = {}
    p["patch_w"], p["patch_b"] = dense(next(keys), PATCH_DIM, HIDDEN)
    p["pos_embed"] = jnp.asarray(get_2d_sincos_pos_embed(HIDDEN, INPUT_SIZE // PATCH))
    p["t_w1"], p["t_b1"] = dense(next(keys), FREQ_DIM, HIDDEN)
    p["t_w2"], p["t_b2"] = dense(next(keys), HIDDEN, HIDDEN)
    p["label_table"] = jax.random.normal(next(keys), (NUM_CLASSES + 1, HIDDEN),
                                         jnp.float32) * 0.02
    blocks = []
    for _ in range(DEPTH):
        blk = {}
        blk["ada_w"], blk["ada_b"] = dense(next(keys), HIDDEN, 6 * HIDDEN)
        blk["qkv_w"], blk["qkv_b"] = dense(next(keys), HIDDEN, 3 * HIDDEN)
        blk["proj_w"], blk["proj_b"] = dense(next(keys), HIDDEN, HIDDEN)
        blk["mlp_w1"], blk["mlp_b1"] = dense(next(keys), HIDDEN, MLP_RATIO * HIDDEN)
        blk["mlp_w2"], blk["mlp_b2"] = dense(next(keys), MLP_RATIO * HIDDEN, HIDDEN)
        blocks.append(blk)
    p["blocks"] = blocks
    p["final_ada_w"], p["final_ada_b"] = dense(next(keys), HIDDEN, 2 * HIDDEN)
    p["final_w"], p["final_b"] = dense(next(keys), HIDDEN, OUT_DIM)
    return p


def prepare_kernel_params(p):
    """One-time: cast to bf16, reshape weights to head-major / stacked-depth
    layouts, and fold the attention scale into the q weight/bias."""
    D, H, HD = HIDDEN, HEADS, HEAD_DIM
    scale = 1.0 / np.sqrt(HD)

    def head_major_w(w):   # (D, D) -> (H, D, HD)
        return jnp.transpose(w.reshape(D, H, HD), (1, 0, 2))

    def head_major_b(b):   # (D,) -> (H, 1, HD)
        return b.reshape(H, 1, HD)

    qw, qb, kw, kb, vw, vb = [], [], [], [], [], []
    ow, ob, w1, b1, w2, b2 = [], [], [], [], [], []
    for blk in p["blocks"]:
        wq, wk, wv = jnp.split(blk["qkv_w"], 3, axis=1)     # each (D, D)
        bq, bk, bv = jnp.split(blk["qkv_b"], 3, axis=0)     # each (D,)
        qw.append(head_major_w(wq) * scale)                 # fold 1/sqrt(hd)
        qb.append(head_major_b(bq) * scale)
        kw.append(head_major_w(wk)); kb.append(head_major_b(bk))
        vw.append(head_major_w(wv)); vb.append(head_major_b(bv))
        ow.append(blk["proj_w"].reshape(H, HD, D))          # head-major rows
        ob.append(blk["proj_b"].reshape(1, D))
        w1.append(blk["mlp_w1"]); b1.append(blk["mlp_b1"].reshape(1, -1))
        w2.append(blk["mlp_w2"]); b2.append(blk["mlp_b2"].reshape(1, -1))

    kp = {
        # fused-kernel weights (bf16) / biases (fp32)
        "patch_w": p["patch_w"].astype(jnp.bfloat16),
        "patch_b": p["patch_b"].reshape(1, D).astype(jnp.float32),
        "pos": p["pos_embed"].astype(jnp.float32),
        "q_w": jnp.stack(qw).astype(jnp.bfloat16),
        "q_b": jnp.stack(qb).astype(jnp.float32),
        "k_w": jnp.stack(kw).astype(jnp.bfloat16),
        "k_b": jnp.stack(kb).astype(jnp.float32),
        "v_w": jnp.stack(vw).astype(jnp.bfloat16),
        "v_b": jnp.stack(vb).astype(jnp.float32),
        "proj_w": jnp.stack(ow).astype(jnp.bfloat16),
        "proj_b": jnp.stack(ob).astype(jnp.float32),
        "mlp_w1": jnp.stack(w1).astype(jnp.bfloat16),
        "mlp_b1": jnp.stack(b1).astype(jnp.float32),
        "mlp_w2": jnp.stack(w2).astype(jnp.bfloat16),
        "mlp_b2": jnp.stack(b2).astype(jnp.float32),
        "final_w": p["final_w"].astype(jnp.bfloat16),
        "final_b": p["final_b"].reshape(1, OUT_DIM).astype(jnp.float32),
        # conditioning path (tiny, stays in XLA, fp32)
        "t_w1": p["t_w1"], "t_b1": p["t_b1"],
        "t_w2": p["t_w2"], "t_b2": p["t_b2"],
        "label_table": p["label_table"],
        "ada_w": jnp.concatenate([blk["ada_w"] for blk in p["blocks"]], axis=1),
        "ada_b": jnp.concatenate([blk["ada_b"] for blk in p["blocks"]], axis=0),
        "final_ada_w": p["final_ada_w"], "final_ada_b": p["final_ada_b"],
    }
    return kp


# ----------------------------------------------------------------------------
# DiT forward (semantics of DiT.forward(x, t, y))
# ----------------------------------------------------------------------------

def dit_forward(kp, x, t, y):
    B, C, Hs, Ws = x.shape
    ph, pw = Hs // PATCH, Ws // PATCH
    T = ph * pw
    D = HIDDEN

    # ----- patchify (Conv2d k=s=PATCH becomes a matmul inside the kernel) -----
    xp = x.reshape(B, C, ph, PATCH, pw, PATCH)
    xp = jnp.transpose(xp, (0, 2, 4, 1, 3, 5)).reshape(B, T, C * PATCH * PATCH)

    # ----- conditioning (tiny M=B matmuls: leave to XLA) -----
    freq = timestep_embedding(t, FREQ_DIM)                                  # (B, 256)
    temb = jax.nn.silu(freq @ kp["t_w1"] + kp["t_b1"])
    temb = temb @ kp["t_w2"] + kp["t_b2"]                                   # (B, D)
    c = temb + kp["label_table"][y]
    c_act = jax.nn.silu(c)                                                  # adaLN: SiLU then Linear
    mod = (c_act @ kp["ada_w"] + kp["ada_b"]).reshape(B, DEPTH * 6, D)      # per-block shift/scale/gate
    fmod = (c_act @ kp["final_ada_w"] + kp["final_ada_b"]).reshape(B, 2, D)

    # ----- whole transformer stack in ONE fused Pallas kernel -----
    out = dit_fused_call(xp, kp["pos"], mod, fmod, kp)                      # (B, T, P*P*OC)

    # ----- unpatchify -----
    out = out.reshape(B, ph, pw, PATCH, PATCH, OUT_CHANNELS)
    out = jnp.transpose(out, (0, 5, 1, 3, 2, 4)).reshape(B, OUT_CHANNELS, Hs, Ws)
    return out


# ----------------------------------------------------------------------------
# Driver
# ----------------------------------------------------------------------------

if __name__ == "__main__":
    key = jax.random.PRNGKey(0)
    k_param, k_x, k_t, k_y = jax.random.split(key, 4)

    params = init_params(k_param)
    kparams = prepare_kernel_params(params)   # one-time bf16 cast / re-layout

    x = jax.random.normal(k_x, (BATCH, IN_CHANNELS, INPUT_SIZE, INPUT_SIZE), jnp.float32)
    t = jax.random.uniform(k_t, (BATCH,), jnp.float32, 0.0, 1000.0)
    y = jax.random.randint(k_y, (BATCH,), 0, NUM_CLASSES)

    fwd = jax.jit(dit_forward)
    out = fwd(kparams, x, t, y)
    out = jax.block_until_ready(out)

    assert out.shape == (BATCH, OUT_CHANNELS, INPUT_SIZE, INPUT_SIZE), out.shape
    assert jnp.all(jnp.isfinite(out))
    print("KERNEL_OK")
</pallas_src>

<mosaic_0001>
module attributes {stable_mosaic.version = 11 : i64} {
  func.func @_dit_fused_kernel(%arg0: i32, %arg1: memref<1x64x16xf32, #tpu.memory_space<vmem>>, %arg2: memref<64x32xf32, #tpu.memory_space<vmem>>, %arg3: memref<1x12x32xf32, #tpu.memory_space<vmem>>, %arg4: memref<1x2x32xf32, #tpu.memory_space<vmem>>, %arg5: memref<16x32xbf16, #tpu.memory_space<vmem>>, %arg6: memref<1x32xf32, #tpu.memory_space<vmem>>, %arg7: memref<2x4x32x8xbf16, #tpu.memory_space<vmem>>, %arg8: memref<2x4x1x8xf32, #tpu.memory_space<vmem>>, %arg9: memref<2x4x32x8xbf16, #tpu.memory_space<vmem>>, %arg10: memref<2x4x1x8xf32, #tpu.memory_space<vmem>>, %arg11: memref<2x4x32x8xbf16, #tpu.memory_space<vmem>>, %arg12: memref<2x4x1x8xf32, #tpu.memory_space<vmem>>, %arg13: memref<2x4x8x32xbf16, #tpu.memory_space<vmem>>, %arg14: memref<2x1x32xf32, #tpu.memory_space<vmem>>, %arg15: memref<2x32x128xbf16, #tpu.memory_space<vmem>>, %arg16: memref<2x1x128xf32, #tpu.memory_space<vmem>>, %arg17: memref<2x128x32xbf16, #tpu.memory_space<vmem>>, %arg18: memref<2x1x32xf32, #tpu.memory_space<vmem>>, %arg19: memref<32x32xbf16, #tpu.memory_space<vmem>>, %arg20: memref<1x32xf32, #tpu.memory_space<vmem>>, %arg21: memref<1x64x32xf32, #tpu.memory_space<vmem>>) attributes {dimension_semantics = [#tpu.dimension_semantics<parallel>], iteration_bounds = array<i64: 2>, scalar_prefetch = 0 : i64, scratch_operands = 0 : i64, tpu.core_type = #tpu.core_type<tc>, window_params = [{transform_indices = @transform_0, window_bounds = array<i64: 1, 64, 16>}, {pipeline_mode = #tpu.pipeline_mode<synchronous>, transform_indices = @transform_1, window_bounds = array<i64: 64, 32>}, {transform_indices = @transform_2, window_bounds = array<i64: 1, 12, 32>}, {transform_indices = @transform_3, window_bounds = array<i64: 1, 2, 32>}, {pipeline_mode = #tpu.pipeline_mode<synchronous>, transform_indices = @transform_4, window_bounds = array<i64: 16, 32>}, {pipeline_mode = #tpu.pipeline_mode<synchronous>, transform_indices = @transform_5, window_bounds = array<i64: 1, 32>}, {pipeline_mode = #tpu.pipeline_mode<synchronous>, transform_indices = @transform_6, window_bounds = array<i64: 2, 4, 32, 8>}, {pipeline_mode = #tpu.pipeline_mode<synchronous>, transform_indices = @transform_7, window_bounds = array<i64: 2, 4, 1, 8>}, {pipeline_mode = #tpu.pipeline_mode<synchronous>, transform_indices = @transform_8, window_bounds = array<i64: 2, 4, 32, 8>}, {pipeline_mode = #tpu.pipeline_mode<synchronous>, transform_indices = @transform_9, window_bounds = array<i64: 2, 4, 1, 8>}, {pipeline_mode = #tpu.pipeline_mode<synchronous>, transform_indices = @transform_10, window_bounds = array<i64: 2, 4, 32, 8>}, {pipeline_mode = #tpu.pipeline_mode<synchronous>, transform_indices = @transform_11, window_bounds = array<i64: 2, 4, 1, 8>}, {pipeline_mode = #tpu.pipeline_mode<synchronous>, transform_indices = @transform_12, window_bounds = array<i64: 2, 4, 8, 32>}, {pipeline_mode = #tpu.pipeline_mode<synchronous>, transform_indices = @transform_13, window_bounds = array<i64: 2, 1, 32>}, {pipeline_mode = #tpu.pipeline_mode<synchronous>, transform_indices = @transform_14, window_bounds = array<i64: 2, 32, 128>}, {pipeline_mode = #tpu.pipeline_mode<synchronous>, transform_indices = @transform_15, window_bounds = array<i64: 2, 1, 128>}, {pipeline_mode = #tpu.pipeline_mode<synchronous>, transform_indices = @transform_16, window_bounds = array<i64: 2, 128, 32>}, {pipeline_mode = #tpu.pipeline_mode<synchronous>, transform_indices = @transform_17, window_bounds = array<i64: 2, 1, 32>}, {pipeline_mode = #tpu.pipeline_mode<synchronous>, transform_indices = @transform_18, window_bounds = array<i64: 32, 32>}, {pipeline_mode = #tpu.pipeline_mode<synchronous>, transform_indices = @transform_19, window_bounds = array<i64: 1, 32>}, {transform_indices = @transform_20, window_bounds = array<i64: 1, 64, 32>}]} {
    %c0 = arith.constant 0 : index
    %c0_0 = arith.constant 0 : index
    %c0_1 = arith.constant 0 : index
    %0 = vector.load %arg1[%c0, %c0_0, %c0_1] : memref<1x64x16xf32, #tpu.memory_space<vmem>>, vector<1x64x16xf32>
    %1 = vector.shape_cast %0 : vector<1x64x16xf32> to vector<64x16xf32>
    %2 = arith.truncf %1 : vector<64x16xf32> to vector<64x16xbf16>
    %c0_2 = arith.constant 0 : index
    %c0_3 = arith.constant 0 : index
    %3 = vector.load %arg5[%c0_2, %c0_3] : memref<16x32xbf16, #tpu.memory_space<vmem>>, vector<16x32xbf16>
    %cst = arith.constant dense<0.000000e+00> : vector<64x32xf32>
    %4 = tpu.matmul %2, %3, %cst {dimension_numbers = #tpu.dot_dimension_numbers<[1], [0], [0], [1], [0, 0, 1, 1], [], []>} : vector<64x16xbf16>, vector<16x32xbf16>, vector<64x32xf32> -> vector<64x32xf32>
    %c0_4 = arith.constant 0 : index
    %c0_5 = arith.constant 0 : index
    %5 = vector.load %arg6[%c0_4, %c0_5] : memref<1x32xf32, #tpu.memory_space<vmem>>, vector<1x32xf32>
    %6 = vector.broadcast %5 : vector<1x32xf32> to vector<64x32xf32>
    %7 = arith.addf %4, %6 : vector<64x32xf32>
    %c0_6 = arith.constant 0 : index
    %c0_7 = arith.constant 0 : index
    %8 = vector.load %arg2[%c0_6, %c0_7] : memref<64x32xf32, #tpu.memory_space<vmem>>, vector<64x32xf32>
    %9 = arith.addf %7, %8 : vector<64x32xf32>
    %c0_8 = arith.constant 0 : index
    %c0_9 = arith.constant 0 : index
    %c0_10 = arith.constant 0 : index
    %10 = vector.load %arg3[%c0_8, %c0_9, %c0_10] : memref<1x12x32xf32, #tpu.memory_space<vmem>>, vector<1x12x32xf32>
    %11 = vector.shape_cast %10 : vector<1x12x32xf32> to vector<12x32xf32>
    %12 = vector.extract_strided_slice %11 {offsets = [0, 0], sizes = [1, 32], strides = [1, 1]} : vector<12x32xf32> to vector<1x32xf32>
    %13 = vector.extract_strided_slice %11 {offsets = [1, 0], sizes = [1, 32], strides = [1, 1]} : vector<12x32xf32> to vector<1x32xf32>
    %14 = vector.extract_strided_slice %11 {offsets = [2, 0], sizes = [1, 32], strides = [1, 1]} : vector<12x32xf32> to vector<1x32xf32>
    %15 = vector.extract_strided_slice %11 {offsets = [3, 0], sizes = [1, 32], strides = [1, 1]} : vector<12x32xf32> to vector<1x32xf32>
    %16 = vector.extract_strided_slice %11 {offsets = [4, 0], sizes = [1, 32], strides = [1, 1]} : vector<12x32xf32> to vector<1x32xf32>
    %17 = vector.extract_strided_slice %11 {offsets = [5, 0], sizes = [1, 32], strides = [1, 1]} : vector<12x32xf32> to vector<1x32xf32>
    %cst_11 = arith.constant dense<0.000000e+00> : vector<64xf32>
    %18 = vector.multi_reduction <add>, %9, %cst_11 [1] : vector<64x32xf32> to vector<64xf32>
    %19 = vector.shape_cast %18 : vector<64xf32> to vector<64x1xf32>
    %cst_12 = arith.constant 3.200000e+01 : f32
    %20 = vector.broadcast %cst_12 : f32 to vector<64x1xf32>
    %21 = arith.divf %19, %20 : vector<64x1xf32>
    %22 = vector.broadcast %21 : vector<64x1xf32> to vector<64x32xf32>
    %23 = arith.subf %9, %22 : vector<64x32xf32>
    %24 = arith.mulf %23, %23 : vector<64x32xf32>
    %cst_13 = arith.constant dense<0.000000e+00> : vector<64xf32>
    %25 = vector.multi_reduction <add>, %24, %cst_13 [1] : vector<64x32xf32> to vector<64xf32>
    %26 = vector.shape_cast %25 : vector<64xf32> to vector<64x1xf32>
    %cst_14 = arith.constant 3.200000e+01 : f32
    %27 = vector.broadcast %cst_14 : f32 to vector<64x1xf32>
    %28 = arith.divf %26, %27 : vector<64x1xf32>
    %cst_15 = arith.constant 9.99999997E-7 : f32
    %29 = vector.broadcast %cst_15 : f32 to vector<64x1xf32>
    %30 = arith.addf %28, %29 : vector<64x1xf32>
    %31 = math.rsqrt %30 : vector<64x1xf32>
    %32 = vector.broadcast %31 : vector<64x1xf32> to vector<64x32xf32>
    %33 = arith.mulf %23, %32 : vector<64x32xf32>
    %cst_16 = arith.constant 1.000000e+00 : f32
    %34 = vector.broadcast %cst_16 : f32 to vector<1x32xf32>
    %35 = arith.addf %34, %13 : vector<1x32xf32>
    %36 = vector.broadcast %35 : vector<1x32xf32> to vector<64x32xf32>
    %37 = arith.mulf %33, %36 : vector<64x32xf32>
    %38 = vector.broadcast %12 : vector<1x32xf32> to vector<64x32xf32>
    %39 = arith.addf %37, %38 : vector<64x32xf32>
    %40 = arith.truncf %39 : vector<64x32xf32> to vector<64x32xbf16>
    %cst_17 = arith.constant 0.000000e+00 : f32
    %41 = vector.broadcast %cst_17 : f32 to vector<64x32xf32>
    %c0_18 = arith.constant 0 : index
    %c0_19 = arith.constant 0 : index
    %c0_20 = arith.constant 0 : index
    %c0_21 = arith.constant 0 : index
    %42 = vector.load %arg7[%c0_18, %c0_19, %c0_20, %c0_21] : memref<2x4x32x8xbf16, #tpu.memory_space<vmem>>, vector<1x1x32x8xbf16>
    %43 = vector.shape_cast %42 : vector<1x1x32x8xbf16> to vector<32x8xbf16>
    %cst_22 = arith.constant dense<0.000000e+00> : vector<64x8xf32>
    %44 = tpu.matmul %40, %43, %cst_22 {dimension_numbers = #tpu.dot_dimension_numbers<[1], [0], [0], [1], [0, 0, 1, 1], [], []>} : vector<64x32xbf16>, vector<32x8xbf16>, vector<64x8xf32> -> vector<64x8xf32>
    %c0_23 = arith.constant 0 : index
    %c0_24 = arith.constant 0 : index
    %c0_25 = arith.constant 0 : index
    %c0_26 = arith.constant 0 : index
    %45 = vector.load %arg8[%c0_23, %c0_24, %c0_25, %c0_26] : memref<2x4x1x8xf32, #tpu.memory_space<vmem>>, vector<1x1x1x8xf32>
    %46 = vector.shape_cast %45 : vector<1x1x1x8xf32> to vector<1x8xf32>
    %47 = vector.broadcast %46 : vector<1x8xf32> to vector<64x8xf32>
    %48 = arith.addf %44, %47 : vector<64x8xf32>
    %c0_27 = arith.constant 0 : index
    %c0_28 = arith.constant 0 : index
    %c0_29 = arith.constant 0 : index
    %c0_30 = arith.constant 0 : index
    %49 = vector.load %arg9[%c0_27, %c0_28, %c0_29, %c0_30] : memref<2x4x32x8xbf16, #tpu.memory_space<vmem>>, vector<1x1x32x8xbf16>
    %50 = vector.shape_cast %49 : vector<1x1x32x8xbf16> to vector<32x8xbf16>
    %cst_31 = arith.constant dense<0.000000e+00> : vector<64x8xf32>
    %51 = tpu.matmul %40, %50, %cst_31 {dimension_numbers = #tpu.dot_dimension_numbers<[1], [0], [0], [1], [0, 0, 1, 1], [], []>} : vector<64x32xbf16>, vector<32x8xbf16>, vector<64x8xf32> -> vector<64x8xf32>
    %c0_32 = arith.constant 0 : index
    %c0_33 = arith.constant 0 : index
    %c0_34 = arith.constant 0 : index
    %c0_35 = arith.constant 0 : index
    %52 = vector.load %arg10[%c0_32, %c0_33, %c0_34, %c0_35] : memref<2x4x1x8xf32, #tpu.memory_space<vmem>>, vector<1x1x1x8xf32>
    %53 = vector.shape_cast %52 : vector<1x1x1x8xf32> to vector<1x8xf32>
    %54 = vector.broadcast %53 : vector<1x8xf32> to vector<64x8xf32>
    %55 = arith.addf %51, %54 : vector<64x8xf32>
    %c0_36 = arith.constant 0 : index
    %c0_37 = arith.constant 0 : index
    %c0_38 = arith.constant 0 : index
    %c0_39 = arith.constant 0 : index
    %56 = vector.load %arg11[%c0_36, %c0_37, %c0_38, %c0_39] : memref<2x4x32x8xbf16, #tpu.memory_space<vmem>>, vector<1x1x32x8xbf16>
    %57 = vector.shape_cast %56 : vector<1x1x32x8xbf16> to vector<32x8xbf16>
    %cst_40 = arith.constant dense<0.000000e+00> : vector<64x8xf32>
    %58 = tpu.matmul %40, %57, %cst_40 {dimension_numbers = #tpu.dot_dimension_numbers<[1], [0], [0], [1], [0, 0, 1, 1], [], []>} : vector<64x32xbf16>, vector<32x8xbf16>, vector<64x8xf32> -> vector<64x8xf32>
    %c0_41 = arith.constant 0 : index
    %c0_42 = arith.constant 0 : index
    %c0_43 = arith.constant 0 : index
    %c0_44 = arith.constant 0 : index
    %59 = vector.load %arg12[%c0_41, %c0_42, %c0_43, %c0_44] : memref<2x4x1x8xf32, #tpu.memory_space<vmem>>, vector<1x1x1x8xf32>
    %60 = vector.shape_cast %59 : vector<1x1x1x8xf32> to vector<1x8xf32>
    %61 = vector.broadcast %60 : vector<1x8xf32> to vector<64x8xf32>
    %62 = arith.addf %58, %61 : vector<64x8xf32>
    %63 = arith.truncf %48 : vector<64x8xf32> to vector<64x8xbf16>
    %64 = arith.truncf %55 : vector<64x8xf32> to vector<64x8xbf16>
    %cst_45 = arith.constant dense<0.000000e+00> : vector<64x64xf32>
    %65 = tpu.matmul %63, %64, %cst_45 {dimension_numbers = #tpu.dot_dimension_numbers<[1], [1], [0], [0], [0, 0, 1, 0], [], []>} : vector<64x8xbf16>, vector<64x8xbf16>, vector<64x64xf32> -> vector<64x64xf32>
    %cst_46 = arith.constant dense<0xFF800000> : vector<64xf32>
    %66 = vector.multi_reduction <maximumf>, %65, %cst_46 [1] : vector<64x64xf32> to vector<64xf32>
    %67 = vector.shape_cast %66 : vector<64xf32> to vector<64x1xf32>
    %68 = vector.broadcast %67 : vector<64x1xf32> to vector<64x64xf32>
    %69 = arith.subf %65, %68 : vector<64x64xf32>
    %70 = math.exp %69 : vector<64x64xf32>
    %cst_47 = arith.constant dense<0.000000e+00> : vector<64xf32>
    %71 = vector.multi_reduction <add>, %70, %cst_47 [1] : vector<64x64xf32> to vector<64xf32>
    %72 = vector.shape_cast %71 : vector<64xf32> to vector<64x1xf32>
    %73 = tpu.reciprocal %72 {approx = true} : vector<64x1xf32> -> vector<64x1xf32>
    %74 = vector.broadcast %73 : vector<64x1xf32> to vector<64x64xf32>
    %75 = arith.mulf %70, %74 : vector<64x64xf32>
    %76 = arith.truncf %75 : vector<64x64xf32> to vector<64x64xbf16>
    %77 = arith.truncf %62 : vector<64x8xf32> to vector<64x8xbf16>
    %cst_48 = arith.constant dense<0.000000e+00> : vector<64x8xf32>
    %78 = tpu.matmul %76, %77, %cst_48 {dimension_numbers = #tpu.dot_dimension_numbers<[1], [0], [0], [1], [0, 0, 1, 1], [], []>} : vector<64x64xbf16>, vector<64x8xbf16>, vector<64x8xf32> -> vector<64x8xf32>
    %79 = arith.truncf %78 : vector<64x8xf32> to vector<64x8xbf16>
    %c0_49 = arith.constant 0 : index
    %c0_50 = arith.constant 0 : index
    %c0_51 = arith.constant 0 : index
    %c0_52 = arith.constant 0 : index
    %80 = vector.load %arg13[%c0_49, %c0_50, %c0_51, %c0_52] : memref<2x4x8x32xbf16, #tpu.memory_space<vmem>>, vector<1x1x8x32xbf16>
    %81 = vector.shape_cast %80 : vector<1x1x8x32xbf16> to vector<8x32xbf16>
    %cst_53 = arith.constant dense<0.000000e+00> : vector<64x32xf32>
    %82 = tpu.matmul %79, %81, %cst_53 {dimension_numbers = #tpu.dot_dimension_numbers<[1], [0], [0], [1], [0, 0, 1, 1], [], []>} : vector<64x8xbf16>, vector<8x32xbf16>, vector<64x32xf32> -> vector<64x32xf32>
    %83 = arith.addf %41, %82 : vector<64x32xf32>
    %c0_54 = arith.constant 0 : index
    %c1 = arith.constant 1 : index
    %c0_55 = arith.constant 0 : index
    %c0_56 = arith.constant 0 : index
    %84 = vector.load %arg7[%c0_54, %c1, %c0_55, %c0_56] : memref<2x4x32x8xbf16, #tpu.memory_space<vmem>>, vector<1x1x32x8xbf16>
    %85 = vector.shape_cast %84 : vector<1x1x32x8xbf16> to vector<32x8xbf16>
    %cst_57 = arith.constant dense<0.000000e+00> : vector<64x8xf32>
    %86 = tpu.matmul %40, %85, %cst_57 {dimension_numbers = #tpu.dot_dimension_numbers<[1], [0], [0], [1], [0, 0, 1, 1], [], []>} : vector<64x32xbf16>, vector<32x8xbf16>, vector<64x8xf32> -> vector<64x8xf32>
    %c0_58 = arith.constant 0 : index
    %c1_59 = arith.constant 1 : index
    %c0_60 = arith.constant 0 : index
    %c0_61 = arith.constant 0 : index
    %87 = vector.load %arg8[%c0_58, %c1_59, %c0_60, %c0_61] : memref<2x4x1x8xf32, #tpu.memory_space<vmem>>, vector<1x1x1x8xf32>
    %88 = vector.shape_cast %87 : vector<1x1x1x8xf32> to vector<1x8xf32>
    %89 = vector.broadcast %88 : vector<1x8xf32> to vector<64x8xf32>
    %90 = arith.addf %86, %89 : vector<64x8xf32>
    %c0_62 = arith.constant 0 : index
    %c1_63 = arith.constant 1 : index
    %c0_64 = arith.constant 0 : index
    %c0_65 = arith.constant 0 : index
    %91 = vector.load %arg9[%c0_62, %c1_63, %c0_64, %c0_65] : memref<2x4x32x8xbf16, #tpu.memory_space<vmem>>, vector<1x1x32x8xbf16>
    %92 = vector.shape_cast %91 : vector<1x1x32x8xbf16> to vector<32x8xbf16>
    %cst_66 = arith.constant dense<0.000000e+00> : vector<64x8xf32>
    %93 = tpu.matmul %40, %92, %cst_66 {dimension_numbers = #tpu.dot_dimension_numbers<[1], [0], [0], [1], [0, 0, 1, 1], [], []>} : vector<64x32xbf16>, vector<32x8xbf16>, vector<64x8xf32> -> vector<64x8xf32>
    %c0_67 = arith.constant 0 : index
    %c1_68 = arith.constant 1 : index
    %c0_69 = arith.constant 0 : index
    %c0_70 = arith.constant 0 : index
    %94 = vector.load %arg10[%c0_67, %c1_68, %c0_69, %c0_70] : memref<2x4x1x8xf32, #tpu.memory_space<vmem>>, vector<1x1x1x8xf32>
    %95 = vector.shape_cast %94 : vector<1x1x1x8xf32> to vector<1x8xf32>
    %96 = vector.broadcast %95 : vector<1x8xf32> to vector<64x8xf32>
    %97 = arith.addf %93, %96 : vector<64x8xf32>
    %c0_71 = arith.constant 0 : index
    %c1_72 = arith.constant 1 : index
    %c0_73 = arith.constant 0 : index
    %c0_74 = arith.constant 0 : index
    %98 = vector.load %arg11[%c0_71, %c1_72, %c0_73, %c0_74] : memref<2x4x32x8xbf16, #tpu.memory_space<vmem>>, vector<1x1x32x8xbf16>
    %99 = vector.shape_cast %98 : vector<1x1x32x8xbf16> to vector<32x8xbf16>
    %cst_75 = arith.constant dense<0.000000e+00> : vector<64x8xf32>
    %100 = tpu.matmul %40, %99, %cst_75 {dimension_numbers = #tpu.dot_dimension_numbers<[1], [0], [0], [1], [0, 0, 1, 1], [], []>} : vector<64x32xbf16>, vector<32x8xbf16>, vector<64x8xf32> -> vector<64x8xf32>
    %c0_76 = arith.constant 0 : index
    %c1_77 = arith.constant 1 : index
    %c0_78 = arith.constant 0 : index
    %c0_79 = arith.constant 0 : index
    %101 = vector.load %arg12[%c0_76, %c1_77, %c0_78, %c0_79] : memref<2x4x1x8xf32, #tpu.memory_space<vmem>>, vector<1x1x1x8xf32>
    %102 = vector.shape_cast %101 : vector<1x1x1x8xf32> to vector<1x8xf32>
    %103 = vector.broadcast %102 : vector<1x8xf32> to vector<64x8xf32>
    %104 = arith.addf %100, %103 : vector<64x8xf32>
    %105 = arith.truncf %90 : vector<64x8xf32> to vector<64x8xbf16>
    %106 = arith.truncf %97 : vector<64x8xf32> to vector<64x8xbf16>
    %cst_80 = arith.constant dense<0.000000e+00> : vector<64x64xf32>
    %107 = tpu.matmul %105, %106, %cst_80 {dimension_numbers = #tpu.dot_dimension_numbers<[1], [1], [0], [0], [0, 0, 1, 0], [], []>} : vector<64x8xbf16>, vector<64x8xbf16>, vector<64x64xf32> -> vector<64x64xf32>
    %cst_81 = arith.constant dense<0xFF800000> : vector<64xf32>
    %108 = vector.multi_reduction <maximumf>, %107, %cst_81 [1] : vector<64x64xf32> to vector<64xf32>
    %109 = vector.shape_cast %108 : vector<64xf32> to vector<64x1xf32>
    %110 = vector.broadcast %109 : vector<64x1xf32> to vector<64x64xf32>
    %111 = arith.subf %107, %110 : vector<64x64xf32>
    %112 = math.exp %111 : vector<64x64xf32>
    %cst_82 = arith.constant dense<0.000000e+00> : vector<64xf32>
    %113 = vector.multi_reduction <add>, %112, %cst_82 [1] : vector<64x64xf32> to vector<64xf32>
    %114 = vector.shape_cast %113 : vector<64xf32> to vector<64x1xf32>
    %115 = tpu.reciprocal %114 {approx = true} : vector<64x1xf32> -> vector<64x1xf32>
    %116 = vector.broadcast %115 : vector<64x1xf32> to vector<64x64xf32>
    %117 = arith.mulf %112, %116 : vector<64x64xf32>
    %118 = arith.truncf %117 : vector<64x64xf32> to vector<64x64xbf16>
    %119 = arith.truncf %104 : vector<64x8xf32> to vector<64x8xbf16>
    %cst_83 = arith.constant dense<0.000000e+00> : vector<64x8xf32>
    %120 = tpu.matmul %118, %119, %cst_83 {dimension_numbers = #tpu.dot_dimension_numbers<[1], [0], [0], [1], [0, 0, 1, 1], [], []>} : vector<64x64xbf16>, vector<64x8xbf16>, vector<64x8xf32> -> vector<64x8xf32>
    %121 = arith.truncf %120 : vector<64x8xf32> to vector<64x8xbf16>
    %c0_84 = arith.constant 0 : index
    %c1_85 = arith.constant 1 : index
    %c0_86 = arith.constant 0 : index
    %c0_87 = arith.constant 0 : index
    %122 = vector.load %arg13[%c0_84, %c1_85, %c0_86, %c0_87] : memref<2x4x8x32xbf16, #tpu.memory_space<vmem>>, vector<1x1x8x32xbf16>
    %123 = vector.shape_cast %122 : vector<1x1x8x32xbf16> to vector<8x32xbf16>
    %cst_88 = arith.constant dense<0.000000e+00> : vector<64x32xf32>
    %124 = tpu.matmul %121, %123, %cst_88 {dimension_numbers = #tpu.dot_dimension_numbers<[1], [0], [0], [1], [0, 0, 1, 1], [], []>} : vector<64x8xbf16>, vector<8x32xbf16>, vector<64x32xf32> -> vector<64x32xf32>
    %125 = arith.addf %83, %124 : vector<64x32xf32>
    %c0_89 = arith.constant 0 : index
    %c2 = arith.constant 2 : index
    %c0_90 = arith.constant 0 : index
    %c0_91 = arith.constant 0 : index
    %126 = vector.load %arg7[%c0_89, %c2, %c0_90, %c0_91] : memref<2x4x32x8xbf16, #tpu.memory_space<vmem>>, vector<1x1x32x8xbf16>
    %127 = vector.shape_cast %126 : vector<1x1x32x8xbf16> to vector<32x8xbf16>
    %cst_92 = arith.constant dense<0.000000e+00> : vector<64x8xf32>
    %128 = tpu.matmul %40, %127, %cst_92 {dimension_numbers = #tpu.dot_dimension_numbers<[1], [0], [0], [1], [0, 0, 1, 1], [], []>} : vector<64x32xbf16>, vector<32x8xbf16>, vector<64x8xf32> -> vector<64x8xf32>
    %c0_93 = arith.constant 0 : index
    %c2_94 = arith.constant 2 : index
    %c0_95 = arith.constant 0 : index
    %c0_96 = arith.constant 0 : index
    %129 = vector.load %arg8[%c0_93, %c2_94, %c0_95, %c0_96] : memref<2x4x1x8xf32, #tpu.memory_space<vmem>>, vector<1x1x1x8xf32>
    %130 = vector.shape_cast %129 : vector<1x1x1x8xf32> to vector<1x8xf32>
    %131 = vector.broadcast %130 : vector<1x8xf32> to vector<64x8xf32>
    %132 = arith.addf %128, %131 : vector<64x8xf32>
    %c0_97 = arith.constant 0 : index
    %c2_98 = arith.constant 2 : index
    %c0_99 = arith.constant 0 : index
    %c0_100 = arith.constant 0 : index
    %133 = vector.load %arg9[%c0_97, %c2_98, %c0_99, %c0_100] : memref<2x4x32x8xbf16, #tpu.memory_space<vmem>>, vector<1x1x32x8xbf16>
    %134 = vector.shape_cast %133 : vector<1x1x32x8xbf16> to vector<32x8xbf16>
    %cst_101 = arith.constant dense<0.000000e+00> : vector<64x8xf32>
    %135 = tpu.matmul %40, %134, %cst_101 {dimension_numbers = #tpu.dot_dimension_numbers<[1], [0], [0], [1], [0, 0, 1, 1], [], []>} : vector<64x32xbf16>, vector<32x8xbf16>, vector<64x8xf32> -> vector<64x8xf32>
    %c0_102 = arith.constant 0 : index
    %c2_103 = arith.constant 2 : index
    %c0_104 = arith.constant 0 : index
    %c0_105 = arith.constant 0 : index
    %136 = vector.load %arg10[%c0_102, %c2_103, %c0_104, %c0_105] : memref<2x4x1x8xf32, #tpu.memory_space<vmem>>, vector<1x1x1x8xf32>
    %137 = vector.shape_cast %136 : vector<1x1x1x8xf32> to vector<1x8xf32>
    %138 = vector.broadcast %137 : vector<1x8xf32> to vector<64x8xf32>
    %139 = arith.addf %135, %138 : vector<64x8xf32>
    %c0_106 = arith.constant 0 : index
    %c2_107 = arith.constant 2 : index
    %c0_108 = arith.constant 0 : index
    %c0_109 = arith.constant 0 : index
    %140 = vector.load %arg11[%c0_106, %c2_107, %c0_108, %c0_109] : memref<2x4x32x8xbf16, #tpu.memory_space<vmem>>, vector<1x1x32x8xbf16>
    %141 = vector.shape_cast %140 : vector<1x1x32x8xbf16> to vector<32x8xbf16>
    %cst_110 = arith.constant dense<0.000000e+00> : vector<64x8xf32>
    %142 = tpu.matmul %40, %141, %cst_110 {dimension_numbers = #tpu.dot_dimension_numbers<[1], [0], [0], [1], [0, 0, 1, 1], [], []>} : vector<64x32xbf16>, vector<32x8xbf16>, vector<64x8xf32> -> vector<64x8xf32>
    %c0_111 = arith.constant 0 : index
    %c2_112 = arith.constant 2 : index
    %c0_113 = arith.constant 0 : index
    %c0_114 = arith.constant 0 : index
    %143 = vector.load %arg12[%c0_111, %c2_112, %c0_113, %c0_114] : memref<2x4x1x8xf32, #tpu.memory_space<vmem>>, vector<1x1x1x8xf32>
    %144 = vector.shape_cast %143 : vector<1x1x1x8xf32> to vector<1x8xf32>
    %145 = vector.broadcast %144 : vector<1x8xf32> to vector<64x8xf32>
    %146 = arith.addf %142, %145 : vector<64x8xf32>
    %147 = arith.truncf %132 : vector<64x8xf32> to vector<64x8xbf16>
    %148 = arith.truncf %139 : vector<64x8xf32> to vector<64x8xbf16>
    %cst_115 = arith.constant dense<0.000000e+00> : vector<64x64xf32>
    %149 = tpu.matmul %147, %148, %cst_115 {dimension_numbers = #tpu.dot_dimension_numbers<[1], [1], [0], [0], [0, 0, 1, 0], [], []>} : vector<64x8xbf16>, vector<64x8xbf16>, vector<64x64xf32> -> vector<64x64xf32>
    %cst_116 = arith.constant dense<0xFF800000> : vector<64xf32>
    %150 = vector.multi_reduction <maximumf>, %149, %cst_116 [1] : vector<64x64xf32> to vector<64xf32>
    %151 = vector.shape_cast %150 : vector<64xf32> to vector<64x1xf32>
    %152 = vector.broadcast %151 : vector<64x1xf32> to vector<64x64xf32>
    %153 = arith.subf %149, %152 : vector<64x64xf32>
    %154 = math.exp %153 : vector<64x64xf32>
    %cst_117 = arith.constant dense<0.000000e+00> : vector<64xf32>
    %155 = vector.multi_reduction <add>, %154, %cst_117 [1] : vector<64x64xf32> to vector<64xf32>
    %156 = vector.shape_cast %155 : vector<64xf32> to vector<64x1xf32>
    %157 = tpu.reciprocal %156 {approx = true} : vector<64x1xf32> -> vector<64x1xf32>
    %158 = vector.broadcast %157 : vector<64x1xf32> to vector<64x64xf32>
    %159 = arith.mulf %154, %158 : vector<64x64xf32>
    %160 = arith.truncf %159 : vector<64x64xf32> to vector<64x64xbf16>
    %161 = arith.truncf %146 : vector<64x8xf32> to vector<64x8xbf16>
    %cst_118 = arith.constant dense<0.000000e+00> : vector<64x8xf32>
    %162 = tpu.matmul %160, %161, %cst_118 {dimension_numbers = #tpu.dot_dimension_numbers<[1], [0], [0], [1], [0, 0, 1, 1], [], []>} : vector<64x64xbf16>, vector<64x8xbf16>, vector<64x8xf32> -> vector<64x8xf32>
    %163 = arith.truncf %162 : vector<64x8xf32> to vector<64x8xbf16>
    %c0_119 = arith.constant 0 : index
    %c2_120 = arith.constant 2 : index
    %c0_121 = arith.constant 0 : index
    %c0_122 = arith.constant 0 : index
    %164 = vector.load %arg13[%c0_119, %c2_120, %c0_121, %c0_122] : memref<2x4x8x32xbf16, #tpu.memory_space<vmem>>, vector<1x1x8x32xbf16>
    %165 = vector.shape_cast %164 : vector<1x1x8x32xbf16> to vector<8x32xbf16>
    %cst_123 = arith.constant dense<0.000000e+00> : vector<64x32xf32>
    %166 = tpu.matmul %163, %165, %cst_123 {dimension_numbers = #tpu.dot_dimension_numbers<[1], [0], [0], [1], [0, 0, 1, 1], [], []>} : vector<64x8xbf16>, vector<8x32xbf16>, vector<64x32xf32> -> vector<64x32xf32>
    %167 = arith.addf %125, %166 : vector<64x32xf32>
    %c0_124 = arith.constant 0 : index
    %c3 = arith.constant 3 : index
    %c0_125 = arith.constant 0 : index
    %c0_126 = arith.constant 0 : index
    %168 = vector.load %arg7[%c0_124, %c3, %c0_125, %c0_126] : memref<2x4x32x8xbf16, #tpu.memory_space<vmem>>, vector<1x1x32x8xbf16>
    %169 = vector.shape_cast %168 : vector<1x1x32x8xbf16> to vector<32x8xbf16>
    %cst_127 = arith.constant dense<0.000000e+00> : vector<64x8xf32>
    %170 = tpu.matmul %40, %169, %cst_127 {dimension_numbers = #tpu.dot_dimension_numbers<[1], [0], [0], [1], [0, 0, 1, 1], [], []>} : vector<64x32xbf16>, vector<32x8xbf16>, vector<64x8xf32> -> vector<64x8xf32>
    %c0_128 = arith.constant 0 : index
    %c3_129 = arith.constant 3 : index
    %c0_130 = arith.constant 0 : index
    %c0_131 = arith.constant 0 : index
    %171 = vector.load %arg8[%c0_128, %c3_129, %c0_130, %c0_131] : memref<2x4x1x8xf32, #tpu.memory_space<vmem>>, vector<1x1x1x8xf32>
    %172 = vector.shape_cast %171 : vector<1x1x1x8xf32> to vector<1x8xf32>
    %173 = vector.broadcast %172 : vector<1x8xf32> to vector<64x8xf32>
    %174 = arith.addf %170, %173 : vector<64x8xf32>
    %c0_132 = arith.constant 0 : index
    %c3_133 = arith.constant 3 : index
    %c0_134 = arith.constant 0 : index
    %c0_135 = arith.constant 0 : index
    %175 = vector.load %arg9[%c0_132, %c3_133, %c0_134, %c0_135] : memref<2x4x32x8xbf16, #tpu.memory_space<vmem>>, vector<1x1x32x8xbf16>
    %176 = vector.shape_cast %175 : vector<1x1x32x8xbf16> to vector<32x8xbf16>
    %cst_136 = arith.constant dense<0.000000e+00> : vector<64x8xf32>
    %177 = tpu.matmul %40, %176, %cst_136 {dimension_numbers = #tpu.dot_dimension_numbers<[1], [0], [0], [1], [0, 0, 1, 1], [], []>} : vector<64x32xbf16>, vector<32x8xbf16>, vector<64x8xf32> -> vector<64x8xf32>
    %c0_137 = arith.constant 0 : index
    %c3_138 = arith.constant 3 : index
    %c0_139 = arith.constant 0 : index
    %c0_140 = arith.constant 0 : index
    %178 = vector.load %arg10[%c0_137, %c3_138, %c0_139, %c0_140] : memref<2x4x1x8xf32, #tpu.memory_space<vmem>>, vector<1x1x1x8xf32>
    %179 = vector.shape_cast %178 : vector<1x1x1x8xf32> to vector<1x8xf32>
    %180 = vector.broadcast %179 : vector<1x8xf32> to vector<64x8xf32>
    %181 = arith.addf %177, %180 : vector<64x8xf32>
    %c0_141 = arith.constant 0 : index
    %c3_142 = arith.constant 3 : index
    %c0_143 = arith.constant 0 : index
    %c0_144 = arith.constant 0 : index
    %182 = vector.load %arg11[%c0_141, %c3_142, %c0_143, %c0_144] : memref<2x4x32x8xbf16, #tpu.memory_space<vmem>>, vector<1x1x32x8xbf16>
    %183 = vector.shape_cast %182 : vector<1x1x32x8xbf16> to vector<32x8xbf16>
    %cst_145 = arith.constant dense<0.000000e+00> : vector<64x8xf32>
    %184 = tpu.matmul %40, %183, %cst_145 {dimension_numbers = #tpu.dot_dimension_numbers<[1], [0], [0], [1], [0, 0, 1, 1], [], []>} : vector<64x32xbf16>, vector<32x8xbf16>, vector<64x8xf32> -> vector<64x8xf32>
    %c0_146 = arith.constant 0 : index
    %c3_147 = arith.constant 3 : index
    %c0_148 = arith.constant 0 : index
    %c0_149 = arith.constant 0 : index
    %185 = vector.load %arg12[%c0_146, %c3_147, %c0_148, %c0_149] : memref<2x4x1x8xf32, #tpu.memory_space<vmem>>, vector<1x1x1x8xf32>
    %186 = vector.shape_cast %185 : vector<1x1x1x8xf32> to vector<1x8xf32>
    %187 = vector.broadcast %186 : vector<1x8xf32> to vector<64x8xf32>
    %188 = arith.addf %184, %187 : vector<64x8xf32>
    %189 = arith.truncf %174 : vector<64x8xf32> to vector<64x8xbf16>
    %190 = arith.truncf %181 : vector<64x8xf32> to vector<64x8xbf16>
    %cst_150 = arith.constant dense<0.000000e+00> : vector<64x64xf32>
    %191 = tpu.matmul %189, %190, %cst_150 {dimension_numbers = #tpu.dot_dimension_numbers<[1], [1], [0], [0], [0, 0, 1, 0], [], []>} : vector<64x8xbf16>, vector<64x8xbf16>, vector<64x64xf32> -> vector<64x64xf32>
    %cst_151 = arith.constant dense<0xFF800000> : vector<64xf32>
    %192 = vector.multi_reduction <maximumf>, %191, %cst_151 [1] : vector<64x64xf32> to vector<64xf32>
    %193 = vector.shape_cast %192 : vector<64xf32> to vector<64x1xf32>
    %194 = vector.broadcast %193 : vector<64x1xf32> to vector<64x64xf32>
    %195 = arith.subf %191, %194 : vector<64x64xf32>
    %196 = math.exp %195 : vector<64x64xf32>
    %cst_152 = arith.constant dense<0.000000e+00> : vector<64xf32>
    %197 = vector.multi_reduction <add>, %196, %cst_152 [1] : vector<64x64xf32> to vector<64xf32>
    %198 = vector.shape_cast %197 : vector<64xf32> to vector<64x1xf32>
    %199 = tpu.reciprocal %198 {approx = true} : vector<64x1xf32> -> vector<64x1xf32>
    %200 = vector.broadcast %199 : vector<64x1xf32> to vector<64x64xf32>
    %201 = arith.mulf %196, %200 : vector<64x64xf32>
    %202 = arith.truncf %201 : vector<64x64xf32> to vector<64x64xbf16>
    %203 = arith.truncf %188 : vector<64x8xf32> to vector<64x8xbf16>
    %cst_153 = arith.constant dense<0.000000e+00> : vector<64x8xf32>
    %204 = tpu.matmul %202, %203, %cst_153 {dimension_numbers = #tpu.dot_dimension_numbers<[1], [0], [0], [1], [0, 0, 1, 1], [], []>} : vector<64x64xbf16>, vector<64x8xbf16>, vector<64x8xf32> -> vector<64x8xf32>
    %205 = arith.truncf %204 : vector<64x8xf32> to vector<64x8xbf16>
    %c0_154 = arith.constant 0 : index
    %c3_155 = arith.constant 3 : index
    %c0_156 = arith.constant 0 : index
    %c0_157 = arith.constant 0 : index
    %206 = vector.load %arg13[%c0_154, %c3_155, %c0_156, %c0_157] : memref<2x4x8x32xbf16, #tpu.memory_space<vmem>>, vector<1x1x8x32xbf16>
    %207 = vector.shape_cast %206 : vector<1x1x8x32xbf16> to vector<8x32xbf16>
    %cst_158 = arith.constant dense<0.000000e+00> : vector<64x32xf32>
    %208 = tpu.matmul %205, %207, %cst_158 {dimension_numbers = #tpu.dot_dimension_numbers<[1], [0], [0], [1], [0, 0, 1, 1], [], []>} : vector<64x8xbf16>, vector<8x32xbf16>, vector<64x32xf32> -> vector<64x32xf32>
    %209 = arith.addf %167, %208 : vector<64x32xf32>
    %c0_159 = arith.constant 0 : index
    %c0_160 = arith.constant 0 : index
    %c0_161 = arith.constant 0 : index
    %210 = vector.load %arg14[%c0_159, %c0_160, %c0_161] : memref<2x1x32xf32, #tpu.memory_space<vmem>>, vector<1x1x32xf32>
    %211 = vector.shape_cast %210 : vector<1x1x32xf32> to vector<1x32xf32>
    %212 = vector.broadcast %211 : vector<1x32xf32> to vector<64x32xf32>
    %213 = arith.addf %209, %212 : vector<64x32xf32>
    %214 = vector.broadcast %14 : vector<1x32xf32> to vector<64x32xf32>
    %215 = arith.mulf %214, %213 : vector<64x32xf32>
    %216 = arith.addf %9, %215 : vector<64x32xf32>
    %cst_162 = arith.constant dense<0.000000e+00> : vector<64xf32>
    %217 = vector.multi_reduction <add>, %216, %cst_162 [1] : vector<64x32xf32> to vector<64xf32>
    %218 = vector.shape_cast %217 : vector<64xf32> to vector<64x1xf32>
    %cst_163 = arith.constant 3.200000e+01 : f32
    %219 = vector.broadcast %cst_163 : f32 to vector<64x1xf32>
    %220 = arith.divf %218, %219 : vector<64x1xf32>
    %221 = vector.broadcast %220 : vector<64x1xf32> to vector<64x32xf32>
    %222 = arith.subf %216, %221 : vector<64x32xf32>
    %223 = arith.mulf %222, %222 : vector<64x32xf32>
    %cst_164 = arith.constant dense<0.000000e+00> : vector<64xf32>
    %224 = vector.multi_reduction <add>, %223, %cst_164 [1] : vector<64x32xf32> to vector<64xf32>
    %225 = vector.shape_cast %224 : vector<64xf32> to vector<64x1xf32>
    %cst_165 = arith.constant 3.200000e+01 : f32
    %226 = vector.broadcast %cst_165 : f32 to vector<64x1xf32>
    %227 = arith.divf %225, %226 : vector<64x1xf32>
    %cst_166 = arith.constant 9.99999997E-7 : f32
    %228 = vector.broadcast %cst_166 : f32 to vector<64x1xf32>
    %229 = arith.addf %227, %228 : vector<64x1xf32>
    %230 = math.rsqrt %229 : vector<64x1xf32>
    %231 = vector.broadcast %230 : vector<64x1xf32> to vector<64x32xf32>
    %232 = arith.mulf %222, %231 : vector<64x32xf32>
    %cst_167 = arith.constant 1.000000e+00 : f32
    %233 = vector.broadcast %cst_167 : f32 to vector<1x32xf32>
    %234 = arith.addf %233, %16 : vector<1x32xf32>
    %235 = vector.broadcast %234 : vector<1x32xf32> to vector<64x32xf32>
    %236 = arith.mulf %232, %235 : vector<64x32xf32>
    %237 = vector.broadcast %15 : vector<1x32xf32> to vector<64x32xf32>
    %238 = arith.addf %236, %237 : vector<64x32xf32>
    %239 = arith.truncf %238 : vector<64x32xf32> to vector<64x32xbf16>
    %c0_168 = arith.constant 0 : index
    %c0_169 = arith.constant 0 : index
    %c0_170 = arith.constant 0 : index
    %240 = vector.load %arg15[%c0_168, %c0_169, %c0_170] : memref<2x32x128xbf16, #tpu.memory_space<vmem>>, vector<1x32x128xbf16>
    %241 = vector.shape_cast %240 : vector<1x32x128xbf16> to vector<32x128xbf16>
    %cst_171 = arith.constant dense<0.000000e+00> : vector<64x128xf32>
    %242 = tpu.matmul %239, %241, %cst_171 {dimension_numbers = #tpu.dot_dimension_numbers<[1], [0], [0], [1], [0, 0, 1, 1], [], []>} : vector<64x32xbf16>, vector<32x128xbf16>, vector<64x128xf32> -> vector<64x128xf32>
    %c0_172 = arith.constant 0 : index
    %c0_173 = arith.constant 0 : index
    %c0_174 = arith.constant 0 : index
    %243 = vector.load %arg16[%c0_172, %c0_173, %c0_174] : memref<2x1x128xf32, #tpu.memory_space<vmem>>, vector<1x1x128xf32>
    %244 = vector.shape_cast %243 : vector<1x1x128xf32> to vector<1x128xf32>
    %245 = vector.broadcast %244 : vector<1x128xf32> to vector<64x128xf32>
    %246 = arith.addf %242, %245 : vector<64x128xf32>
    %cst_175 = arith.constant 5.000000e-01 : f32
    %247 = vector.broadcast %cst_175 : f32 to vector<64x128xf32>
    %248 = arith.mulf %247, %246 : vector<64x128xf32>
    %cst_176 = arith.constant 4.471500e-02 : f32
    %249 = vector.broadcast %cst_176 : f32 to vector<64x128xf32>
    %250 = arith.mulf %249, %246 : vector<64x128xf32>
    %251 = arith.mulf %250, %246 : vector<64x128xf32>
    %252 = arith.mulf %251, %246 : vector<64x128xf32>
    %253 = arith.addf %246, %252 : vector<64x128xf32>
    %cst_177 = arith.constant 0.797884583 : f32
    %254 = vector.broadcast %cst_177 : f32 to vector<64x128xf32>
    %255 = arith.mulf %254, %253 : vector<64x128xf32>
    %256 = math.tanh %255 : vector<64x128xf32>
    %cst_178 = arith.constant 1.000000e+00 : f32
    %257 = vector.broadcast %cst_178 : f32 to vector<64x128xf32>
    %258 = arith.addf %257, %256 : vector<64x128xf32>
    %259 = arith.mulf %248, %258 : vector<64x128xf32>
    %260 = arith.truncf %259 : vector<64x128xf32> to vector<64x128xbf16>
    %c0_179 = arith.constant 0 : index
    %c0_180 = arith.constant 0 : index
    %c0_181 = arith.constant 0 : index
    %261 = vector.load %arg17[%c0_179, %c0_180, %c0_181] : memref<2x128x32xbf16, #tpu.memory_space<vmem>>, vector<1x128x32xbf16>
    %262 = vector.shape_cast %261 : vector<1x128x32xbf16> to vector<128x32xbf16>
    %cst_182 = arith.constant dense<0.000000e+00> : vector<64x32xf32>
    %263 = tpu.matmul %260, %262, %cst_182 {dimension_numbers = #tpu.dot_dimension_numbers<[1], [0], [0], [1], [0, 0, 1, 1], [], []>} : vector<64x128xbf16>, vector<128x32xbf16>, vector<64x32xf32> -> vector<64x32xf32>
    %c0_183 = arith.constant 0 : index
    %c0_184 = arith.constant 0 : index
    %c0_185 = arith.constant 0 : index
    %264 = vector.load %arg18[%c0_183, %c0_184, %c0_185] : memref<2x1x32xf32, #tpu.memory_space<vmem>>, vector<1x1x32xf32>
    %265 = vector.shape_cast %264 : vector<1x1x32xf32> to vector<1x32xf32>
    %266 = vector.broadcast %265 : vector<1x32xf32> to vector<64x32xf32>
    %267 = arith.addf %263, %266 : vector<64x32xf32>
    %268 = vector.broadcast %17 : vector<1x32xf32> to vector<64x32xf32>
    %269 = arith.mulf %268, %267 : vector<64x32xf32>
    %270 = arith.addf %216, %269 : vector<64x32xf32>
    %271 = vector.extract_strided_slice %11 {offsets = [6, 0], sizes = [1, 32], strides = [1, 1]} : vector<12x32xf32> to vector<1x32xf32>
    %272 = vector.extract_strided_slice %11 {offsets = [7, 0], sizes = [1, 32], strides = [1, 1]} : vector<12x32xf32> to vector<1x32xf32>
    %273 = vector.extract_strided_slice %11 {offsets = [8, 0], sizes = [1, 32], strides = [1, 1]} : vector<12x32xf32> to vector<1x32xf32>
    %274 = vector.extract_strided_slice %11 {offsets = [9, 0], sizes = [1, 32], strides = [1, 1]} : vector<12x32xf32> to vector<1x32xf32>
    %275 = vector.extract_strided_slice %11 {offsets = [10, 0], sizes = [1, 32], strides = [1, 1]} : vector<12x32xf32> to vector<1x32xf32>
    %276 = vector.extract_strided_slice %11 {offsets = [11, 0], sizes = [1, 32], strides = [1, 1]} : vector<12x32xf32> to vector<1x32xf32>
    %cst_186 = arith.constant dense<0.000000e+00> : vector<64xf32>
    %277 = vector.multi_reduction <add>, %270, %cst_186 [1] : vector<64x32xf32> to vector<64xf32>
    %278 = vector.shape_cast %277 : vector<64xf32> to vector<64x1xf32>
    %cst_187 = arith.constant 3.200000e+01 : f32
    %279 = vector.broadcast %cst_187 : f32 to vector<64x1xf32>
    %280 = arith.divf %278, %279 : vector<64x1xf32>
    %281 = vector.broadcast %280 : vector<64x1xf32> to vector<64x32xf32>
    %282 = arith.subf %270, %281 : vector<64x32xf32>
    %283 = arith.mulf %282, %282 : vector<64x32xf32>
    %cst_188 = arith.constant dense<0.000000e+00> : vector<64xf32>
    %284 = vector.multi_reduction <add>, %283, %cst_188 [1] : vector<64x32xf32> to vector<64xf32>
    %285 = vector.shape_cast %284 : vector<64xf32> to vector<64x1xf32>
    %cst_189 = arith.constant 3.200000e+01 : f32
    %286 = vector.broadcast %cst_189 : f32 to vector<64x1xf32>
    %287 = arith.divf %285, %286 : vector<64x1xf32>
    %cst_190 = arith.constant 9.99999997E-7 : f32
    %288 = vector.broadcast %cst_190 : f32 to vector<64x1xf32>
    %289 = arith.addf %287, %288 : vector<64x1xf32>
    %290 = math.rsqrt %289 : vector<64x1xf32>
    %291 = vector.broadcast %290 : vector<64x1xf32> to vector<64x32xf32>
    %292 = arith.mulf %282, %291 : vector<64x32xf32>
    %cst_191 = arith.constant 1.000000e+00 : f32
    %293 = vector.broadcast %cst_191 : f32 to vector<1x32xf32>
    %294 = arith.addf %293, %272 : vector<1x32xf32>
    %295 = vector.broadcast %294 : vector<1x32xf32> to vector<64x32xf32>
    %296 = arith.mulf %292, %295 : vector<64x32xf32>
    %297 = vector.broadcast %271 : vector<1x32xf32> to vector<64x32xf32>
    %298 = arith.addf %296, %297 : vector<64x32xf32>
    %299 = arith.truncf %298 : vector<64x32xf32> to vector<64x32xbf16>
    %cst_192 = arith.constant 0.000000e+00 : f32
    %300 = vector.broadcast %cst_192 : f32 to vector<64x32xf32>
    %c1_193 = arith.constant 1 : index
    %c0_194 = arith.constant 0 : index
    %c0_195 = arith.constant 0 : index
    %c0_196 = arith.constant 0 : index
    %301 = vector.load %arg7[%c1_193, %c0_194, %c0_195, %c0_196] : memref<2x4x32x8xbf16, #tpu.memory_space<vmem>>, vector<1x1x32x8xbf16>
    %302 = vector.shape_cast %301 : vector<1x1x32x8xbf16> to vector<32x8xbf16>
    %cst_197 = arith.constant dense<0.000000e+00> : vector<64x8xf32>
    %303 = tpu.matmul %299, %302, %cst_197 {dimension_numbers = #tpu.dot_dimension_numbers<[1], [0], [0], [1], [0, 0, 1, 1], [], []>} : vector<64x32xbf16>, vector<32x8xbf16>, vector<64x8xf32> -> vector<64x8xf32>
    %c1_198 = arith.constant 1 : index
    %c0_199 = arith.constant 0 : index
    %c0_200 = arith.constant 0 : index
    %c0_201 = arith.constant 0 : index
    %304 = vector.load %arg8[%c1_198, %c0_199, %c0_200, %c0_201] : memref<2x4x1x8xf32, #tpu.memory_space<vmem>>, vector<1x1x1x8xf32>
    %305 = vector.shape_cast %304 : vector<1x1x1x8xf32> to vector<1x8xf32>
    %306 = vector.broadcast %305 : vector<1x8xf32> to vector<64x8xf32>
    %307 = arith.addf %303, %306 : vector<64x8xf32>
    %c1_202 = arith.constant 1 : index
    %c0_203 = arith.constant 0 : index
    %c0_204 = arith.constant 0 : index
    %c0_205 = arith.constant 0 : index
    %308 = vector.load %arg9[%c1_202, %c0_203, %c0_204, %c0_205] : memref<2x4x32x8xbf16, #tpu.memory_space<vmem>>, vector<1x1x32x8xbf16>
    %309 = vector.shape_cast %308 : vector<1x1x32x8xbf16> to vector<32x8xbf16>
    %cst_206 = arith.constant dense<0.000000e+00> : vector<64x8xf32>
    %310 = tpu.matmul %299, %309, %cst_206 {dimension_numbers = #tpu.dot_dimension_numbers<[1], [0], [0], [1], [0, 0, 1, 1], [], []>} : vector<64x32xbf16>, vector<32x8xbf16>, vector<64x8xf32> -> vector<64x8xf32>
    %c1_207 = arith.constant 1 : index
    %c0_208 = arith.constant 0 : index
    %c0_209 = arith.constant 0 : index
    %c0_210 = arith.constant 0 : index
    %311 = vector.load %arg10[%c1_207, %c0_208, %c0_209, %c0_210] : memref<2x4x1x8xf32, #tpu.memory_space<vmem>>, vector<1x1x1x8xf32>
    %312 = vector.shape_cast %311 : vector<1x1x1x8xf32> to vector<1x8xf32>
    %313 = vector.broadcast %312 : vector<1x8xf32> to vector<64x8xf32>
    %314 = arith.addf %310, %313 : vector<64x8xf32>
    %c1_211 = arith.constant 1 : index
    %c0_212 = arith.constant 0 : index
    %c0_213 = arith.constant 0 : index
    %c0_214 = arith.constant 0 : index
    %315 = vector.load %arg11[%c1_211, %c0_212, %c0_213, %c0_214] : memref<2x4x32x8xbf16, #tpu.memory_space<vmem>>, vector<1x1x32x8xbf16>
    %316 = vector.shape_cast %315 : vector<1x1x32x8xbf16> to vector<32x8xbf16>
    %cst_215 = arith.constant dense<0.000000e+00> : vector<64x8xf32>
    %317 = tpu.matmul %299, %316, %cst_215 {dimension_numbers = #tpu.dot_dimension_numbers<[1], [0], [0], [1], [0, 0, 1, 1], [], []>} : vector<64x32xbf16>, vector<32x8xbf16>, vector<64x8xf32> -> vector<64x8xf32>
    %c1_216 = arith.constant 1 : index
    %c0_217 = arith.constant 0 : index
    %c0_218 = arith.constant 0 : index
    %c0_219 = arith.constant 0 : index
    %318 = vector.load %arg12[%c1_216, %c0_217, %c0_218, %c0_219] : memref<2x4x1x8xf32, #tpu.memory_space<vmem>>, vector<1x1x1x8xf32>
    %319 = vector.shape_cast %318 : vector<1x1x1x8xf32> to vector<1x8xf32>
    %320 = vector.broadcast %319 : vector<1x8xf32> to vector<64x8xf32>
    %321 = arith.addf %317, %320 : vector<64x8xf32>
    %322 = arith.truncf %307 : vector<64x8xf32> to vector<64x8xbf16>
    %323 = arith.truncf %314 : vector<64x8xf32> to vector<64x8xbf16>
    %cst_220 = arith.constant dense<0.000000e+00> : vector<64x64xf32>
    %324 = tpu.matmul %322, %323, %cst_220 {dimension_numbers = #tpu.dot_dimension_numbers<[1], [1], [0], [0], [0, 0, 1, 0], [], []>} : vector<64x8xbf16>, vector<64x8xbf16>, vector<64x64xf32> -> vector<64x64xf32>
    %cst_221 = arith.constant dense<0xFF800000> : vector<64xf32>
    %325 = vector.multi_reduction <maximumf>, %324, %cst_221 [1] : vector<64x64xf32> to vector<64xf32>
    %326 = vector.shape_cast %325 : vector<64xf32> to vector<64x1xf32>
    %327 = vector.broadcast %326 : vector<64x1xf32> to vector<64x64xf32>
    %328 = arith.subf %324, %327 : vector<64x64xf32>
    %329 = math.exp %328 : vector<64x64xf32>
    %cst_222 = arith.constant dense<0.000000e+00> : vector<64xf32>
    %330 = vector.multi_reduction <add>, %329, %cst_222 [1] : vector<64x64xf32> to vector<64xf32>
    %331 = vector.shape_cast %330 : vector<64xf32> to vector<64x1xf32>
    %332 = tpu.reciprocal %331 {approx = true} : vector<64x1xf32> -> vector<64x1xf32>
    %333 = vector.broadcast %332 : vector<64x1xf32> to vector<64x64xf32>
    %334 = arith.mulf %329, %333 : vector<64x64xf32>
    %335 = arith.truncf %334 : vector<64x64xf32> to vector<64x64xbf16>
    %336 = arith.truncf %321 : vector<64x8xf32> to vector<64x8xbf16>
    %cst_223 = arith.constant dense<0.000000e+00> : vector<64x8xf32>
    %337 = tpu.matmul %335, %336, %cst_223 {dimension_numbers = #tpu.dot_dimension_numbers<[1], [0], [0], [1], [0, 0, 1, 1], [], []>} : vector<64x64xbf16>, vector<64x8xbf16>, vector<64x8xf32> -> vector<64x8xf32>
    %338 = arith.truncf %337 : vector<64x8xf32> to vector<64x8xbf16>
    %c1_224 = arith.constant 1 : index
    %c0_225 = arith.constant 0 : index
    %c0_226 = arith.constant 0 : index
    %c0_227 = arith.constant 0 : index
    %339 = vector.load %arg13[%c1_224, %c0_225, %c0_226, %c0_227] : memref<2x4x8x32xbf16, #tpu.memory_space<vmem>>, vector<1x1x8x32xbf16>
    %340 = vector.shape_cast %339 : vector<1x1x8x32xbf16> to vector<8x32xbf16>
    %cst_228 = arith.constant dense<0.000000e+00> : vector<64x32xf32>
    %341 = tpu.matmul %338, %340, %cst_228 {dimension_numbers = #tpu.dot_dimension_numbers<[1], [0], [0], [1], [0, 0, 1, 1], [], []>} : vector<64x8xbf16>, vector<8x32xbf16>, vector<64x32xf32> -> vector<64x32xf32>
    %342 = arith.addf %300, %341 : vector<64x32xf32>
    %c1_229 = arith.constant 1 : index
    %c1_230 = arith.constant 1 : index
    %c0_231 = arith.constant 0 : index
    %c0_232 = arith.constant 0 : index
    %343 = vector.load %arg7[%c1_229, %c1_230, %c0_231, %c0_232] : memref<2x4x32x8xbf16, #tpu.memory_space<vmem>>, vector<1x1x32x8xbf16>
    %344 = vector.shape_cast %343 : vector<1x1x32x8xbf16> to vector<32x8xbf16>
    %cst_233 = arith.constant dense<0.000000e+00> : vector<64x8xf32>
    %345 = tpu.matmul %299, %344, %cst_233 {dimension_numbers = #tpu.dot_dimension_numbers<[1], [0], [0], [1], [0, 0, 1, 1], [], []>} : vector<64x32xbf16>, vector<32x8xbf16>, vector<64x8xf32> -> vector<64x8xf32>
    %c1_234 = arith.constant 1 : index
    %c1_235 = arith.constant 1 : index
    %c0_236 = arith.constant 0 : index
    %c0_237 = arith.constant 0 : index
    %346 = vector.load %arg8[%c1_234, %c1_235, %c0_236, %c0_237] : memref<2x4x1x8xf32, #tpu.memory_space<vmem>>, vector<1x1x1x8xf32>
    %347 = vector.shape_cast %346 : vector<1x1x1x8xf32> to vector<1x8xf32>
    %348 = vector.broadcast %347 : vector<1x8xf32> to vector<64x8xf32>
    %349 = arith.addf %345, %348 : vector<64x8xf32>
    %c1_238 = arith.constant 1 : index
    %c1_239 = arith.constant 1 : index
    %c0_240 = arith.constant 0 : index
    %c0_241 = arith.constant 0 : index
    %350 = vector.load %arg9[%c1_238, %c1_239, %c0_240, %c0_241] : memref<2x4x32x8xbf16, #tpu.memory_space<vmem>>, vector<1x1x32x8xbf16>
    %351 = vector.shape_cast %350 : vector<1x1x32x8xbf16> to vector<32x8xbf16>
    %cst_242 = arith.constant dense<0.000000e+00> : vector<64x8xf32>
    %352 = tpu.matmul %299, %351, %cst_242 {dimension_numbers = #tpu.dot_dimension_numbers<[1], [0], [0], [1], [0, 0, 1, 1], [], []>} : vector<64x32xbf16>, vector<32x8xbf16>, vector<64x8xf32> -> vector<64x8xf32>
    %c1_243 = arith.constant 1 : index
    %c1_244 = arith.constant 1 : index
    %c0_245 = arith.constant 0 : index
    %c0_246 = arith.constant 0 : index
    %353 = vector.load %arg10[%c1_243, %c1_244, %c0_245, %c0_246] : memref<2x4x1x8xf32, #tpu.memory_space<vmem>>, vector<1x1x1x8xf32>
    %354 = vector.shape_cast %353 : vector<1x1x1x8xf32> to vector<1x8xf32>
    %355 = vector.broadcast %354 : vector<1x8xf32> to vector<64x8xf32>
    %356 = arith.addf %352, %355 : vector<64x8xf32>
    %c1_247 = arith.constant 1 : index
    %c1_248 = arith.constant 1 : index
    %c0_249 = arith.constant 0 : index
    %c0_250 = arith.constant 0 : index
    %357 = vector.load %arg11[%c1_247, %c1_248, %c0_249, %c0_250] : memref<2x4x32x8xbf16, #tpu.memory_space<vmem>>, vector<1x1x32x8xbf16>
    %358 = vector.shape_cast %357 : vector<1x1x32x8xbf16> to vector<32x8xbf16>
    %cst_251 = arith.constant dense<0.000000e+00> : vector<64x8xf32>
    %359 = tpu.matmul %299, %358, %cst_251 {dimension_numbers = #tpu.dot_dimension_numbers<[1], [0], [0], [1], [0, 0, 1, 1], [], []>} : vector<64x32xbf16>, vector<32x8xbf16>, vector<64x8xf32> -> vector<64x8xf32>
    %c1_252 = arith.constant 1 : index
    %c1_253 = arith.constant 1 : index
    %c0_254 = arith.constant 0 : index
    %c0_255 = arith.constant 0 : index
    %360 = vector.load %arg12[%c1_252, %c1_253, %c0_254, %c0_255] : memref<2x4x1x8xf32, #tpu.memory_space<vmem>>, vector<1x1x1x8xf32>
    %361 = vector.shape_cast %360 : vector<1x1x1x8xf32> to vector<1x8xf32>
    %362 = vector.broadcast %361 : vector<1x8xf32> to vector<64x8xf32>
    %363 = arith.addf %359, %362 : vector<64x8xf32>
    %364 = arith.truncf %349 : vector<64x8xf32> to vector<64x8xbf16>
    %365 = arith.truncf %356 : vector<64x8xf32> to vector<64x8xbf16>
    %cst_256 = arith.constant dense<0.000000e+00> : vector<64x64xf32>
    %366 = tpu.matmul %364, %365, %cst_256 {dimension_numbers = #tpu.dot_dimension_numbers<[1], [1], [0], [0], [0, 0, 1, 0], [], []>} : vector<64x8xbf16>, vector<64x8xbf16>, vector<64x64xf32> -> vector<64x64xf32>
    %cst_257 = arith.constant dense<0xFF800000> : vector<64xf32>
    %367 = vector.multi_reduction <maximumf>, %366, %cst_257 [1] : vector<64x64xf32> to vector<64xf32>
    %368 = vector.shape_cast %367 : vector<64xf32> to vector<64x1xf32>
    %369 = vector.broadcast %368 : vector<64x1xf32> to vector<64x64xf32>
    %370 = arith.subf %366, %369 : vector<64x64xf32>
    %371 = math.exp %370 : vector<64x64xf32>
    %cst_258 = arith.constant dense<0.000000e+00> : vector<64xf32>
    %372 = vector.multi_reduction <add>, %371, %cst_258 [1] : vector<64x64xf32> to vector<64xf32>
    %373 = vector.shape_cast %372 : vector<64xf32> to vector<64x1xf32>
    %374 = tpu.reciprocal %373 {approx = true} : vector<64x1xf32> -> vector<64x1xf32>
    %375 = vector.broadcast %374 : vector<64x1xf32> to vector<64x64xf32>
    %376 = arith.mulf %371, %375 : vector<64x64xf32>
    %377 = arith.truncf %376 : vector<64x64xf32> to vector<64x64xbf16>
    %378 = arith.truncf %363 : vector<64x8xf32> to vector<64x8xbf16>
    %cst_259 = arith.constant dense<0.000000e+00> : vector<64x8xf32>
    %379 = tpu.matmul %377, %378, %cst_259 {dimension_numbers = #tpu.dot_dimension_numbers<[1], [0], [0], [1], [0, 0, 1, 1], [], []>} : vector<64x64xbf16>, vector<64x8xbf16>, vector<64x8xf32> -> vector<64x8xf32>
    %380 = arith.truncf %379 : vector<64x8xf32> to vector<64x8xbf16>
    %c1_260 = arith.constant 1 : index
    %c1_261 = arith.constant 1 : index
    %c0_262 = arith.constant 0 : index
    %c0_263 = arith.constant 0 : index
    %381 = vector.load %arg13[%c1_260, %c1_261, %c0_262, %c0_263] : memref<2x4x8x32xbf16, #tpu.memory_space<vmem>>, vector<1x1x8x32xbf16>
    %382 = vector.shape_cast %381 : vector<1x1x8x32xbf16> to vector<8x32xbf16>
    %cst_264 = arith.constant dense<0.000000e+00> : vector<64x32xf32>
    %383 = tpu.matmul %380, %382, %cst_264 {dimension_numbers = #tpu.dot_dimension_numbers<[1], [0], [0], [1], [0, 0, 1, 1], [], []>} : vector<64x8xbf16>, vector<8x32xbf16>, vector<64x32xf32> -> vector<64x32xf32>
    %384 = arith.addf %342, %383 : vector<64x32xf32>
    %c1_265 = arith.constant 1 : index
    %c2_266 = arith.constant 2 : index
    %c0_267 = arith.constant 0 : index
    %c0_268 = arith.constant 0 : index
    %385 = vector.load %arg7[%c1_265, %c2_266, %c0_267, %c0_268] : memref<2x4x32x8xbf16, #tpu.memory_space<vmem>>, vector<1x1x32x8xbf16>
    %386 = vector.shape_cast %385 : vector<1x1x32x8xbf16> to vector<32x8xbf16>
    %cst_269 = arith.constant dense<0.000000e+00> : vector<64x8xf32>
    %387 = tpu.matmul %299, %386, %cst_269 {dimension_numbers = #tpu.dot_dimension_numbers<[1], [0], [0], [1], [0, 0, 1, 1], [], []>} : vector<64x32xbf16>, vector<32x8xbf16>, vector<64x8xf32> -> vector<64x8xf32>
    %c1_270 = arith.constant 1 : index
    %c2_271 = arith.constant 2 : index
    %c0_272 = arith.constant 0 : index
    %c0_273 = arith.constant 0 : index
    %388 = vector.load %arg8[%c1_270, %c2_271, %c0_272, %c0_273] : memref<2x4x1x8xf32, #tpu.memory_space<vmem>>, vector<1x1x1x8xf32>
    %389 = vector.shape_cast %388 : vector<1x1x1x8xf32> to vector<1x8xf32>
    %390 = vector.broadcast %389 : vector<1x8xf32> to vector<64x8xf32>
    %391 = arith.addf %387, %390 : vector<64x8xf32>
    %c1_274 = arith.constant 1 : index
    %c2_275 = arith.constant 2 : index
    %c0_276 = arith.constant 0 : index
    %c0_277 = arith.constant 0 : index
    %392 = vector.load %arg9[%c1_274, %c2_275, %c0_276, %c0_277] : memref<2x4x32x8xbf16, #tpu.memory_space<vmem>>, vector<1x1x32x8xbf16>
    %393 = vector.shape_cast %392 : vector<1x1x32x8xbf16> to vector<32x8xbf16>
    %cst_278 = arith.constant dense<0.000000e+00> : vector<64x8xf32>
    %394 = tpu.matmul %299, %393, %cst_278 {dimension_numbers = #tpu.dot_dimension_numbers<[1], [0], [0], [1], [0, 0, 1, 1], [], []>} : vector<64x32xbf16>, vector<32x8xbf16>, vector<64x8xf32> -> vector<64x8xf32>
    %c1_279 = arith.constant 1 : index
    %c2_280 = arith.constant 2 : index
    %c0_281 = arith.constant 0 : index
    %c0_282 = arith.constant 0 : index
    %395 = vector.load %arg10[%c1_279, %c2_280, %c0_281, %c0_282] : memref<2x4x1x8xf32, #tpu.memory_space<vmem>>, vector<1x1x1x8xf32>
    %396 = vector.shape_cast %395 : vector<1x1x1x8xf32> to vector<1x8xf32>
    %397 = vector.broadcast %396 : vector<1x8xf32> to vector<64x8xf32>
    %398 = arith.addf %394, %397 : vector<64x8xf32>
    %c1_283 = arith.constant 1 : index
    %c2_284 = arith.constant 2 : index
    %c0_285 = arith.constant 0 : index
    %c0_286 = arith.constant 0 : index
    %399 = vector.load %arg11[%c1_283, %c2_284, %c0_285, %c0_286] : memref<2x4x32x8xbf16, #tpu.memory_space<vmem>>, vector<1x1x32x8xbf16>
    %400 = vector.shape_cast %399 : vector<1x1x32x8xbf16> to vector<32x8xbf16>
    %cst_287 = arith.constant dense<0.000000e+00> : vector<64x8xf32>
    %401 = tpu.matmul %299, %400, %cst_287 {dimension_numbers = #tpu.dot_dimension_numbers<[1], [0], [0], [1], [0, 0, 1, 1], [], []>} : vector<64x32xbf16>, vector<32x8xbf16>, vector<64x8xf32> -> vector<64x8xf32>
    %c1_288 = arith.constant 1 : index
    %c2_289 = arith.constant 2 : index
    %c0_290 = arith.constant 0 : index
    %c0_291 = arith.constant 0 : index
    %402 = vector.load %arg12[%c1_288, %c2_289, %c0_290, %c0_291] : memref<2x4x1x8xf32, #tpu.memory_space<vmem>>, vector<1x1x1x8xf32>
    %403 = vector.shape_cast %402 : vector<1x1x1x8xf32> to vector<1x8xf32>
    %404 = vector.broadcast %403 : vector<1x8xf32> to vector<64x8xf32>
    %405 = arith.addf %401, %404 : vector<64x8xf32>
    %406 = arith.truncf %391 : vector<64x8xf32> to vector<64x8xbf16>
    %407 = arith.truncf %398 : vector<64x8xf32> to vector<64x8xbf16>
    %cst_292 = arith.constant dense<0.000000e+00> : vector<64x64xf32>
    %408 = tpu.matmul %406, %407, %cst_292 {dimension_numbers = #tpu.dot_dimension_numbers<[1], [1], [0], [0], [0, 0, 1, 0], [], []>} : vector<64x8xbf16>, vector<64x8xbf16>, vector<64x64xf32> -> vector<64x64xf32>
    %cst_293 = arith.constant dense<0xFF800000> : vector<64xf32>
    %409 = vector.multi_reduction <maximumf>, %408, %cst_293 [1] : vector<64x64xf32> to vector<64xf32>
    %410 = vector.shape_cast %409 : vector<64xf32> to vector<64x1xf32>
    %411 = vector.broadcast %410 : vector<64x1xf32> to vector<64x64xf32>
    %412 = arith.subf %408, %411 : vector<64x64xf32>
    %413 = math.exp %412 : vector<64x64xf32>
    %cst_294 = arith.constant dense<0.000000e+00> : vector<64xf32>
    %414 = vector.multi_reduction <add>, %413, %cst_294 [1] : vector<64x64xf32> to vector<64xf32>
    %415 = vector.shape_cast %414 : vector<64xf32> to vector<64x1xf32>
    %416 = tpu.reciprocal %415 {approx = true} : vector<64x1xf32> -> vector<64x1xf32>
    %417 = vector.broadcast %416 : vector<64x1xf32> to vector<64x64xf32>
    %418 = arith.mulf %413, %417 : vector<64x64xf32>
    %419 = arith.truncf %418 : vector<64x64xf32> to vector<64x64xbf16>
    %420 = arith.truncf %405 : vector<64x8xf32> to vector<64x8xbf16>
    %cst_295 = arith.constant dense<0.000000e+00> : vector<64x8xf32>
    %421 = tpu.matmul %419, %420, %cst_295 {dimension_numbers = #tpu.dot_dimension_numbers<[1], [0], [0], [1], [0, 0, 1, 1], [], []>} : vector<64x64xbf16>, vector<64x8xbf16>, vector<64x8xf32> -> vector<64x8xf32>
    %422 = arith.truncf %421 : vector<64x8xf32> to vector<64x8xbf16>
    %c1_296 = arith.constant 1 : index
    %c2_297 = arith.constant 2 : index
    %c0_298 = arith.constant 0 : index
    %c0_299 = arith.constant 0 : index
    %423 = vector.load %arg13[%c1_296, %c2_297, %c0_298, %c0_299] : memref<2x4x8x32xbf16, #tpu.memory_space<vmem>>, vector<1x1x8x32xbf16>
    %424 = vector.shape_cast %423 : vector<1x1x8x32xbf16> to vector<8x32xbf16>
    %cst_300 = arith.constant dense<0.000000e+00> : vector<64x32xf32>
    %425 = tpu.matmul %422, %424, %cst_300 {dimension_numbers = #tpu.dot_dimension_numbers<[1], [0], [0], [1], [0, 0, 1, 1], [], []>} : vector<64x8xbf16>, vector<8x32xbf16>, vector<64x32xf32> -> vector<64x32xf32>
    %426 = arith.addf %384, %425 : vector<64x32xf32>
    %c1_301 = arith.constant 1 : index
    %c3_302 = arith.constant 3 : index
    %c0_303 = arith.constant 0 : index
    %c0_304 = arith.constant 0 : index
    %427 = vector.load %arg7[%c1_301, %c3_302, %c0_303, %c0_304] : memref<2x4x32x8xbf16, #tpu.memory_space<vmem>>, vector<1x1x32x8xbf16>
    %428 = vector.shape_cast %427 : vector<1x1x32x8xbf16> to vector<32x8xbf16>
    %cst_305 = arith.constant dense<0.000000e+00> : vector<64x8xf32>
    %429 = tpu.matmul %299, %428, %cst_305 {dimension_numbers = #tpu.dot_dimension_numbers<[1], [0], [0], [1], [0, 0, 1, 1], [], []>} : vector<64x32xbf16>, vector<32x8xbf16>, vector<64x8xf32> -> vector<64x8xf32>
    %c1_306 = arith.constant 1 : index
    %c3_307 = arith.constant 3 : index
    %c0_308 = arith.constant 0 : index
    %c0_309 = arith.constant 0 : index
    %430 = vector.load %arg8[%c1_306, %c3_307, %c0_308, %c0_309] : memref<2x4x1x8xf32, #tpu.memory_space<vmem>>, vector<1x1x1x8xf32>
    %431 = vector.shape_cast %430 : vector<1x1x1x8xf32> to vector<1x8xf32>
    %432 = vector.broadcast %431 : vector<1x8xf32> to vector<64x8xf32>
    %433 = arith.addf %429, %432 : vector<64x8xf32>
    %c1_310 = arith.constant 1 : index
    %c3_311 = arith.constant 3 : index
    %c0_312 = arith.constant 0 : index
    %c0_313 = arith.constant 0 : index
    %434 = vector.load %arg9[%c1_310, %c3_311, %c0_312, %c0_313] : memref<2x4x32x8xbf16, #tpu.memory_space<vmem>>, vector<1x1x32x8xbf16>
    %435 = vector.shape_cast %434 : vector<1x1x32x8xbf16> to vector<32x8xbf16>
    %cst_314 = arith.constant dense<0.000000e+00> : vector<64x8xf32>
    %436 = tpu.matmul %299, %435, %cst_314 {dimension_numbers = #tpu.dot_dimension_numbers<[1], [0], [0], [1], [0, 0, 1, 1], [], []>} : vector<64x32xbf16>, vector<32x8xbf16>, vector<64x8xf32> -> vector<64x8xf32>
    %c1_315 = arith.constant 1 : index
    %c3_316 = arith.constant 3 : index
    %c0_317 = arith.constant 0 : index
    %c0_318 = arith.constant 0 : index
    %437 = vector.load %arg10[%c1_315, %c3_316, %c0_317, %c0_318] : memref<2x4x1x8xf32, #tpu.memory_space<vmem>>, vector<1x1x1x8xf32>
    %438 = vector.shape_cast %437 : vector<1x1x1x8xf32> to vector<1x8xf32>
    %439 = vector.broadcast %438 : vector<1x8xf32> to vector<64x8xf32>
    %440 = arith.addf %436, %439 : vector<64x8xf32>
    %c1_319 = arith.constant 1 : index
    %c3_320 = arith.constant 3 : index
    %c0_321 = arith.constant 0 : index
    %c0_322 = arith.constant 0 : index
    %441 = vector.load %arg11[%c1_319, %c3_320, %c0_321, %c0_322] : memref<2x4x32x8xbf16, #tpu.memory_space<vmem>>, vector<1x1x32x8xbf16>
    %442 = vector.shape_cast %441 : vector<1x1x32x8xbf16> to vector<32x8xbf16>
    %cst_323 = arith.constant dense<0.000000e+00> : vector<64x8xf32>
    %443 = tpu.matmul %299, %442, %cst_323 {dimension_numbers = #tpu.dot_dimension_numbers<[1], [0], [0], [1], [0, 0, 1, 1], [], []>} : vector<64x32xbf16>, vector<32x8xbf16>, vector<64x8xf32> -> vector<64x8xf32>
    %c1_324 = arith.constant 1 : index
    %c3_325 = arith.constant 3 : index
    %c0_326 = arith.constant 0 : index
    %c0_327 = arith.constant 0 : index
    %444 = vector.load %arg12[%c1_324, %c3_325, %c0_326, %c0_327] : memref<2x4x1x8xf32, #tpu.memory_space<vmem>>, vector<1x1x1x8xf32>
    %445 = vector.shape_cast %444 : vector<1x1x1x8xf32> to vector<1x8xf32>
    %446 = vector.broadcast %445 : vector<1x8xf32> to vector<64x8xf32>
    %447 = arith.addf %443, %446 : vector<64x8xf32>
    %448 = arith.truncf %433 : vector<64x8xf32> to vector<64x8xbf16>
    %449 = arith.truncf %440 : vector<64x8xf32> to vector<64x8xbf16>
    %cst_328 = arith.constant dense<0.000000e+00> : vector<64x64xf32>
    %450 = tpu.matmul %448, %449, %cst_328 {dimension_numbers = #tpu.dot_dimension_numbers<[1], [1], [0], [0], [0, 0, 1, 0], [], []>} : vector<64x8xbf16>, vector<64x8xbf16>, vector<64x64xf32> -> vector<64x64xf32>
    %cst_329 = arith.constant dense<0xFF800000> : vector<64xf32>
    %451 = vector.multi_reduction <maximumf>, %450, %cst_329 [1] : vector<64x64xf32> to vector<64xf32>
    %452 = vector.shape_cast %451 : vector<64xf32> to vector<64x1xf32>
    %453 = vector.broadcast %452 : vector<64x1xf32> to vector<64x64xf32>
    %454 = arith.subf %450, %453 : vector<64x64xf32>
    %455 = math.exp %454 : vector<64x64xf32>
    %cst_330 = arith.constant dense<0.000000e+00> : vector<64xf32>
    %456 = vector.multi_reduction <add>, %455, %cst_330 [1] : vector<64x64xf32> to vector<64xf32>
    %457 = vector.shape_cast %456 : vector<64xf32> to vector<64x1xf32>
    %458 = tpu.reciprocal %457 {approx = true} : vector<64x1xf32> -> vector<64x1xf32>
    %459 = vector.broadcast %458 : vector<64x1xf32> to vector<64x64xf32>
    %460 = arith.mulf %455, %459 : vector<64x64xf32>
    %461 = arith.truncf %460 : vector<64x64xf32> to vector<64x64xbf16>
    %462 = arith.truncf %447 : vector<64x8xf32> to vector<64x8xbf16>
    %cst_331 = arith.constant dense<0.000000e+00> : vector<64x8xf32>
    %463 = tpu.matmul %461, %462, %cst_331 {dimension_numbers = #tpu.dot_dimension_numbers<[1], [0], [0], [1], [0, 0, 1, 1], [], []>} : vector<64x64xbf16>, vector<64x8xbf16>, vector<64x8xf32> -> vector<64x8xf32>
    %464 = arith.truncf %463 : vector<64x8xf32> to vector<64x8xbf16>
    %c1_332 = arith.constant 1 : index
    %c3_333 = arith.constant 3 : index
    %c0_334 = arith.constant 0 : index
    %c0_335 = arith.constant 0 : index
    %465 = vector.load %arg13[%c1_332, %c3_333, %c0_334, %c0_335] : memref<2x4x8x32xbf16, #tpu.memory_space<vmem>>, vector<1x1x8x32xbf16>
    %466 = vector.shape_cast %465 : vector<1x1x8x32xbf16> to vector<8x32xbf16>
    %cst_336 = arith.constant dense<0.000000e+00> : vector<64x32xf32>
    %467 = tpu.matmul %464, %466, %cst_336 {dimension_numbers = #tpu.dot_dimension_numbers<[1], [0], [0], [1], [0, 0, 1, 1], [], []>} : vector<64x8xbf16>, vector<8x32xbf16>, vector<64x32xf32> -> vector<64x32xf32>
    %468 = arith.addf %426, %467 : vector<64x32xf32>
    %c1_337 = arith.constant 1 : index
    %c0_338 = arith.constant 0 : index
    %c0_339 = arith.constant 0 : index
    %469 = vector.load %arg14[%c1_337, %c0_338, %c0_339] : memref<2x1x32xf32, #tpu.memory_space<vmem>>, vector<1x1x32xf32>
    %470 = vector.shape_cast %469 : vector<1x1x32xf32> to vector<1x32xf32>
    %471 = vector.broadcast %470 : vector<1x32xf32> to vector<64x32xf32>
    %472 = arith.addf %468, %471 : vector<64x32xf32>
    %473 = vector.broadcast %273 : vector<1x32xf32> to vector<64x32xf32>
    %474 = arith.mulf %473, %472 : vector<64x32xf32>
    %475 = arith.addf %270, %474 : vector<64x32xf32>
    %cst_340 = arith.constant dense<0.000000e+00> : vector<64xf32>
    %476 = vector.multi_reduction <add>, %475, %cst_340 [1] : vector<64x32xf32> to vector<64xf32>
    %477 = vector.shape_cast %476 : vector<64xf32> to vector<64x1xf32>
    %cst_341 = arith.constant 3.200000e+01 : f32
    %478 = vector.broadcast %cst_341 : f32 to vector<64x1xf32>
    %479 = arith.divf %477, %478 : vector<64x1xf32>
    %480 = vector.broadcast %479 : vector<64x1xf32> to vector<64x32xf32>
    %481 = arith.subf %475, %480 : vector<64x32xf32>
    %482 = arith.mulf %481, %481 : vector<64x32xf32>
    %cst_342 = arith.constant dense<0.000000e+00> : vector<64xf32>
    %483 = vector.multi_reduction <add>, %482, %cst_342 [1] : vector<64x32xf32> to vector<64xf32>
    %484 = vector.shape_cast %483 : vector<64xf32> to vector<64x1xf32>
    %cst_343 = arith.constant 3.200000e+01 : f32
    %485 = vector.broadcast %cst_343 : f32 to vector<64x1xf32>
    %486 = arith.divf %484, %485 : vector<64x1xf32>
    %cst_344 = arith.constant 9.99999997E-7 : f32
    %487 = vector.broadcast %cst_344 : f32 to vector<64x1xf32>
    %488 = arith.addf %486, %487 : vector<64x1xf32>
    %489 = math.rsqrt %488 : vector<64x1xf32>
    %490 = vector.broadcast %489 : vector<64x1xf32> to vector<64x32xf32>
    %491 = arith.mulf %481, %490 : vector<64x32xf32>
    %cst_345 = arith.constant 1.000000e+00 : f32
    %492 = vector.broadcast %cst_345 : f32 to vector<1x32xf32>
    %493 = arith.addf %492, %275 : vector<1x32xf32>
    %494 = vector.broadcast %493 : vector<1x32xf32> to vector<64x32xf32>
    %495 = arith.mulf %491, %494 : vector<64x32xf32>
    %496 = vector.broadcast %274 : vector<1x32xf32> to vector<64x32xf32>
    %497 = arith.addf %495, %496 : vector<64x32xf32>
    %498 = arith.truncf %497 : vector<64x32xf32> to vector<64x32xbf16>
    %c1_346 = arith.constant 1 : index
    %c0_347 = arith.constant 0 : index
    %c0_348 = arith.constant 0 : index
    %499 = vector.load %arg15[%c1_346, %c0_347, %c0_348] : memref<2x32x128xbf16, #tpu.memory_space<vmem>>, vector<1x32x128xbf16>
    %500 = vector.shape_cast %499 : vector<1x32x128xbf16> to vector<32x128xbf16>
    %cst_349 = arith.constant dense<0.000000e+00> : vector<64x128xf32>
    %501 = tpu.matmul %498, %500, %cst_349 {dimension_numbers = #tpu.dot_dimension_numbers<[1], [0], [0], [1], [0, 0, 1, 1], [], []>} : vector<64x32xbf16>, vector<32x128xbf16>, vector<64x128xf32> -> vector<64x128xf32>
    %c1_350 = arith.constant 1 : index
    %c0_351 = arith.constant 0 : index
    %c0_352 = arith.constant 0 : index
    %502 = vector.load %arg16[%c1_350, %c0_351, %c0_352] : memref<2x1x128xf32, #tpu.memory_space<vmem>>, vector<1x1x128xf32>
    %503 = vector.shape_cast %502 : vector<1x1x128xf32> to vector<1x128xf32>
    %504 = vector.broadcast %503 : vector<1x128xf32> to vector<64x128xf32>
    %505 = arith.addf %501, %504 : vector<64x128xf32>
    %cst_353 = arith.constant 5.000000e-01 : f32
    %506 = vector.broadcast %cst_353 : f32 to vector<64x128xf32>
    %507 = arith.mulf %506, %505 : vector<64x128xf32>
    %cst_354 = arith.constant 4.471500e-02 : f32
    %508 = vector.broadcast %cst_354 : f32 to vector<64x128xf32>
    %509 = arith.mulf %508, %505 : vector<64x128xf32>
    %510 = arith.mulf %509, %505 : vector<64x128xf32>
    %511 = arith.mulf %510, %505 : vector<64x128xf32>
    %512 = arith.addf %505, %511 : vector<64x128xf32>
    %cst_355 = arith.constant 0.797884583 : f32
    %513 = vector.broadcast %cst_355 : f32 to vector<64x128xf32>
    %514 = arith.mulf %513, %512 : vector<64x128xf32>
    %515 = math.tanh %514 : vector<64x128xf32>
    %cst_356 = arith.constant 1.000000e+00 : f32
    %516 = vector.broadcast %cst_356 : f32 to vector<64x128xf32>
    %517 = arith.addf %516, %515 : vector<64x128xf32>
    %518 = arith.mulf %507, %517 : vector<64x128xf32>
    %519 = arith.truncf %518 : vector<64x128xf32> to vector<64x128xbf16>
    %c1_357 = arith.constant 1 : index
    %c0_358 = arith.constant 0 : index
    %c0_359 = arith.constant 0 : index
    %520 = vector.load %arg17[%c1_357, %c0_358, %c0_359] : memref<2x128x32xbf16, #tpu.memory_space<vmem>>, vector<1x128x32xbf16>
    %521 = vector.shape_cast %520 : vector<1x128x32xbf16> to vector<128x32xbf16>
    %cst_360 = arith.constant dense<0.000000e+00> : vector<64x32xf32>
    %522 = tpu.matmul %519, %521, %cst_360 {dimension_numbers = #tpu.dot_dimension_numbers<[1], [0], [0], [1], [0, 0, 1, 1], [], []>} : vector<64x128xbf16>, vector<128x32xbf16>, vector<64x32xf32> -> vector<64x32xf32>
    %c1_361 = arith.constant 1 : index
    %c0_362 = arith.constant 0 : index
    %c0_363 = arith.constant 0 : index
    %523 = vector.load %arg18[%c1_361, %c0_362, %c0_363] : memref<2x1x32xf32, #tpu.memory_space<vmem>>, vector<1x1x32xf32>
    %524 = vector.shape_cast %523 : vector<1x1x32xf32> to vector<1x32xf32>
    %525 = vector.broadcast %524 : vector<1x32xf32> to vector<64x32xf32>
    %526 = arith.addf %522, %525 : vector<64x32xf32>
    %527 = vector.broadcast %276 : vector<1x32xf32> to vector<64x32xf32>
    %528 = arith.mulf %527, %526 : vector<64x32xf32>
    %529 = arith.addf %475, %528 : vector<64x32xf32>
    %c0_364 = arith.constant 0 : index
    %c0_365 = arith.constant 0 : index
    %c0_366 = arith.constant 0 : index
    %530 = vector.load %arg4[%c0_364, %c0_365, %c0_366] : memref<1x2x32xf32, #tpu.memory_space<vmem>>, vector<1x2x32xf32>
    %531 = vector.shape_cast %530 : vector<1x2x32xf32> to vector<2x32xf32>
    %532 = vector.extract_strided_slice %531 {offsets = [0, 0], sizes = [1, 32], strides = [1, 1]} : vector<2x32xf32> to vector<1x32xf32>
    %533 = vector.extract_strided_slice %531 {offsets = [1, 0], sizes = [1, 32], strides = [1, 1]} : vector<2x32xf32> to vector<1x32xf32>
    %cst_367 = arith.constant dense<0.000000e+00> : vector<64xf32>
    %534 = vector.multi_reduction <add>, %529, %cst_367 [1] : vector<64x32xf32> to vector<64xf32>
    %535 = vector.shape_cast %534 : vector<64xf32> to vector<64x1xf32>
    %cst_368 = arith.constant 3.200000e+01 : f32
    %536 = vector.broadcast %cst_368 : f32 to vector<64x1xf32>
    %537 = arith.divf %535, %536 : vector<64x1xf32>
    %538 = vector.broadcast %537 : vector<64x1xf32> to vector<64x32xf32>
    %539 = arith.subf %529, %538 : vector<64x32xf32>
    %540 = arith.mulf %539, %539 : vector<64x32xf32>
    %cst_369 = arith.constant dense<0.000000e+00> : vector<64xf32>
    %541 = vector.multi_reduction <add>, %540, %cst_369 [1] : vector<64x32xf32> to vector<64xf32>
    %542 = vector.shape_cast %541 : vector<64xf32> to vector<64x1xf32>
    %cst_370 = arith.constant 3.200000e+01 : f32
    %543 = vector.broadcast %cst_370 : f32 to vector<64x1xf32>
    %544 = arith.divf %542, %543 : vector<64x1xf32>
    %cst_371 = arith.constant 9.99999997E-7 : f32
    %545 = vector.broadcast %cst_371 : f32 to vector<64x1xf32>
    %546 = arith.addf %544, %545 : vector<64x1xf32>
    %547 = math.rsqrt %546 : vector<64x1xf32>
    %548 = vector.broadcast %547 : vector<64x1xf32> to vector<64x32xf32>
    %549 = arith.mulf %539, %548 : vector<64x32xf32>
    %cst_372 = arith.constant 1.000000e+00 : f32
    %550 = vector.broadcast %cst_372 : f32 to vector<1x32xf32>
    %551 = arith.addf %550, %533 : vector<1x32xf32>
    %552 = vector.broadcast %551 : vector<1x32xf32> to vector<64x32xf32>
    %553 = arith.mulf %549, %552 : vector<64x32xf32>
    %554 = vector.broadcast %532 : vector<1x32xf32> to vector<64x32xf32>
    %555 = arith.addf %553, %554 : vector<64x32xf32>
    %556 = arith.truncf %555 : vector<64x32xf32> to vector<64x32xbf16>
    %c0_373 = arith.constant 0 : index
    %c0_374 = arith.constant 0 : index
    %557 = vector.load %arg19[%c0_373, %c0_374] : memref<32x32xbf16, #tpu.memory_space<vmem>>, vector<32x32xbf16>
    %cst_375 = arith.constant dense<0.000000e+00> : vector<64x32xf32>
    %558 = tpu.matmul %556, %557, %cst_375 {dimension_numbers = #tpu.dot_dimension_numbers<[1], [0], [0], [1], [0, 0, 1, 1], [], []>} : vector<64x32xbf16>, vector<32x32xbf16>, vector<64x32xf32> -> vector<64x32xf32>
    %c0_376 = arith.constant 0 : index
    %c0_377 = arith.constant 0 : index
    %559 = vector.load %arg20[%c0_376, %c0_377] : memref<1x32xf32, #tpu.memory_space<vmem>>, vector<1x32xf32>
    %560 = vector.broadcast %559 : vector<1x32xf32> to vector<64x32xf32>
    %561 = arith.addf %558, %560 : vector<64x32xf32>
    %c0_378 = arith.constant 0 : index
    %c0_379 = arith.constant 0 : index
    %c0_380 = arith.constant 0 : index
    %562 = vector.load %arg21[%c0_378, %c0_379, %c0_380] : memref<1x64x32xf32, #tpu.memory_space<vmem>>, vector<1x64x32xf32>
    %563 = vector.shape_cast %562 : vector<1x64x32xf32> to vector<64x32xf32>
    %564 = vector.shape_cast %561 : vector<64x32xf32> to vector<1x64x32xf32>
    tpu.vector_store %arg21[%c0_378, %c0_379, %c0_380], %564 {strides = array<i32>} : memref<1x64x32xf32, #tpu.memory_space<vmem>>, vector<1x64x32xf32>,
    return
  }
  func.func @transform_0(%arg0: i32) -> (i32, i32, i32) {
    %c0_i32 = arith.constant 0 : i32
    %c0_i32_0 = arith.constant 0 : i32
    %c0_i32_1 = arith.constant 0 : i32
    return %arg0, %c0_i32, %c0_i32_0 : i32, i32, i32
  }
  func.func @transform_1(%arg0: i32) -> (i32, i32) {
    %c0_i32 = arith.constant 0 : i32
    %c0_i32_0 = arith.constant 0 : i32
    %c0_i32_1 = arith.constant 0 : i32
    return %c0_i32, %c0_i32_0 : i32, i32
  }
  func.func @transform_2(%arg0: i32) -> (i32, i32, i32) {
    %c0_i32 = arith.constant 0 : i32
    %c0_i32_0 = arith.constant 0 : i32
    %c0_i32_1 = arith.constant 0 : i32
    return %arg0, %c0_i32, %c0_i32_0 : i32, i32, i32
  }
  func.func @transform_3(%arg0: i32) -> (i32, i32, i32) {
    %c0_i32 = arith.constant 0 : i32
    %c0_i32_0 = arith.constant 0 : i32
    %c0_i32_1 = arith.constant 0 : i32
    return %arg0, %c0_i32, %c0_i32_0 : i32, i32, i32
  }
  func.func @transform_4(%arg0: i32) -> (i32, i32) {
    %c0_i32 = arith.constant 0 : i32
    %c0_i32_0 = arith.constant 0 : i32
    %c0_i32_1 = arith.constant 0 : i32
    return %c0_i32, %c0_i32_0 : i32, i32
  }
  func.func @transform_5(%arg0: i32) -> (i32, i32) {
    %c0_i32 = arith.constant 0 : i32
    %c0_i32_0 = arith.constant 0 : i32
    %c0_i32_1 = arith.constant 0 : i32
    return %c0_i32, %c0_i32_0 : i32, i32
  }
  func.func @transform_6(%arg0: i32) -> (i32, i32, i32, i32) {
    %c0_i32 = arith.constant 0 : i32
    %c0_i32_0 = arith.constant 0 : i32
    %c0_i32_1 = arith.constant 0 : i32
    %c0_i32_2 = arith.constant 0 : i32
    %c0_i32_3 = arith.constant 0 : i32
    return %c0_i32, %c0_i32_0, %c0_i32_1, %c0_i32_2 : i32, i32, i32, i32
  }
  func.func @transform_7(%arg0: i32) -> (i32, i32, i32, i32) {
    %c0_i32 = arith.constant 0 : i32
    %c0_i32_0 = arith.constant 0 : i32
    %c0_i32_1 = arith.constant 0 : i32
    %c0_i32_2 = arith.constant 0 : i32
    %c0_i32_3 = arith.constant 0 : i32
    return %c0_i32, %c0_i32_0, %c0_i32_1, %c0_i32_2 : i32, i32, i32, i32
  }
  func.func @transform_8(%arg0: i32) -> (i32, i32, i32, i32) {
    %c0_i32 = arith.constant 0 : i32
    %c0_i32_0 = arith.constant 0 : i32
    %c0_i32_1 = arith.constant 0 : i32
    %c0_i32_2 = arith.constant 0 : i32
    %c0_i32_3 = arith.constant 0 : i32
    return %c0_i32, %c0_i32_0, %c0_i32_1, %c0_i32_2 : i32, i32, i32, i32
  }
  func.func @transform_9(%arg0: i32) -> (i32, i32, i32, i32) {
    %c0_i32 = arith.constant 0 : i32
    %c0_i32_0 = arith.constant 0 : i32
    %c0_i32_1 = arith.constant 0 : i32
    %c0_i32_2 = arith.constant 0 : i32
    %c0_i32_3 = arith.constant 0 : i32
    return %c0_i32, %c0_i32_0, %c0_i32_1, %c0_i32_2 : i32, i32, i32, i32
  }
  func.func @transform_10(%arg0: i32) -> (i32, i32, i32, i32) {
    %c0_i32 = arith.constant 0 : i32
    %c0_i32_0 = arith.constant 0 : i32
    %c0_i32_1 = arith.constant 0 : i32
    %c0_i32_2 = arith.constant 0 : i32
    %c0_i32_3 = arith.constant 0 : i32
    return %c0_i32, %c0_i32_0, %c0_i32_1, %c0_i32_2 : i32, i32, i32, i32
  }
  func.func @transform_11(%arg0: i32) -> (i32, i32, i32, i32) {
    %c0_i32 = arith.constant 0 : i32
    %c0_i32_0 = arith.constant 0 : i32
    %c0_i32_1 = arith.constant 0 : i32
    %c0_i32_2 = arith.constant 0 : i32
    %c0_i32_3 = arith.constant 0 : i32
    return %c0_i32, %c0_i32_0, %c0_i32_1, %c0_i32_2 : i32, i32, i32, i32
  }
  func.func @transform_12(%arg0: i32) -> (i32, i32, i32, i32) {
    %c0_i32 = arith.constant 0 : i32
    %c0_i32_0 = arith.constant 0 : i32
    %c0_i32_1 = arith.constant 0 : i32
    %c0_i32_2 = arith.constant 0 : i32
    %c0_i32_3 = arith.constant 0 : i32
    return %c0_i32, %c0_i32_0, %c0_i32_1, %c0_i32_2 : i32, i32, i32, i32
  }
  func.func @transform_13(%arg0: i32) -> (i32, i32, i32) {
    %c0_i32 = arith.constant 0 : i32
    %c0_i32_0 = arith.constant 0 : i32
    %c0_i32_1 = arith.constant 0 : i32
    %c0_i32_2 = arith.constant 0 : i32
    return %c0_i32, %c0_i32_0, %c0_i32_1 : i32, i32, i32
  }
  func.func @transform_14(%arg0: i32) -> (i32, i32, i32) {
    %c0_i32 = arith.constant 0 : i32
    %c0_i32_0 = arith.constant 0 : i32
    %c0_i32_1 = arith.constant 0 : i32
    %c0_i32_2 = arith.constant 0 : i32
    return %c0_i32, %c0_i32_0, %c0_i32_1 : i32, i32, i32
  }
  func.func @transform_15(%arg0: i32) -> (i32, i32, i32) {
    %c0_i32 = arith.constant 0 : i32
    %c0_i32_0 = arith.constant 0 : i32
    %c0_i32_1 = arith.constant 0 : i32
    %c0_i32_2 = arith.constant 0 : i32
    return %c0_i32, %c0_i32_0, %c0_i32_1 : i32, i32, i32
  }
  func.func @transform_16(%arg0: i32) -> (i32, i32, i32) {
    %c0_i32 = arith.constant 0 : i32
    %c0_i32_0 = arith.constant 0 : i32
    %c0_i32_1 = arith.constant 0 : i32
    %c0_i32_2 = arith.constant 0 : i32
    return %c0_i32, %c0_i32_0, %c0_i32_1 : i32, i32, i32
  }
  func.func @transform_17(%arg0: i32) -> (i32, i32, i32) {
    %c0_i32 = arith.constant 0 : i32
    %c0_i32_0 = arith.constant 0 : i32
    %c0_i32_1 = arith.constant 0 : i32
    %c0_i32_2 = arith.constant 0 : i32
    return %c0_i32, %c0_i32_0, %c0_i32_1 : i32, i32, i32
  }
  func.func @transform_18(%arg0: i32) -> (i32, i32) {
    %c0_i32 = arith.constant 0 : i32
    %c0_i32_0 = arith.constant 0 : i32
    %c0_i32_1 = arith.constant 0 : i32
    return %c0_i32, %c0_i32_0 : i32, i32
  }
  func.func @transform_19(%arg0: i32) -> (i32, i32) {
    %c0_i32 = arith.constant 0 : i32
    %c0_i32_0 = arith.constant 0 : i32
    %c0_i32_1 = arith.constant 0 : i32
    return %c0_i32, %c0_i32_0 : i32, i32
  }
  func.func @transform_20(%arg0: i32) -> (i32, i32, i32) {
    %c0_i32 = arith.constant 0 : i32
    %c0_i32_0 = arith.constant 0 : i32
    %c0_i32_1 = arith.constant 0 : i32
    return %arg0, %c0_i32, %c0_i32_0 : i32, i32, i32
  }
}

</mosaic_0001>

<bundles_post_ra>
// kernel: dit_forward.1
= control target key start
LH: loop header
LB: loop body
LE: loop exit
PB: predicated region body
PF: predicated region fallthrough
CT: control target
= control target key end

     0   :  { %s11659_s0 = inlined_call_operand.vmem [shape: f32[2,64,16], index: 0, kind: input, shape index: {}]   ;;  %s11660_s1 = inlined_call_operand.vmem [shape: f32[64,32], index: 1, kind: input, shape index: {}]   ;;  %s11661_s2 = inlined_call_operand.vmem [shape: f32[2,12,32], index: 2, kind: input, shape index: {}]   ;;  %s11662_s3 = inlined_call_operand.vmem [shape: f32[2,2,32], index: 3, kind: input, shape index: {}]   ;;  %s11663_s4 = inlined_call_operand.vmem [shape: bf16[16,32], index: 4, kind: input, shape index: {}]   ;;  %s11664_s5 = inlined_call_operand.vmem [shape: f32[1,32], index: 5, kind: input, shape index: {}]   ;;  %s11665_s6 = inlined_call_operand.vmem [shape: bf16[2,4,32,8], index: 6, kind: input, shape index: {}]   ;;  %s11666_s7 = inlined_call_operand.vmem [shape: f32[2,4,1,8], index: 7, kind: input, shape index: {}]   ;;  %s11667_s8 = inlined_call_operand.vmem [shape: bf16[2,4,32,8], index: 8, kind: input, shape index: {}]   ;;  %s11668_s9 = inlined_call_operand.vmem [shape: f32[2,4,1,8], index: 9, kind: input, shape index: {}]   ;;  %s11669_s10 = inlined_call_operand.vmem [shape: bf16[2,4,32,8], index: 10, kind: input, shape index: {}]   ;;  %s11670_s11 = inlined_call_operand.vmem [shape: f32[2,4,1,8], index: 11, kind: input, shape index: {}]   ;;  %s11671_s12 = inlined_call_operand.vmem [shape: bf16[2,4,8,32], index: 12, kind: input, shape index: {}]   ;;  %s11672_s13 = inlined_call_operand.vmem [shape: f32[2,1,32], index: 13, kind: input, shape index: {}]   ;;  %s11673_s14 = inlined_call_operand.vmem [shape: bf16[2,32,128], index: 14, kind: input, shape index: {}]   ;;  %s11674_s15 = inlined_call_operand.vmem [shape: f32[2,1,128], index: 15, kind: input, shape index: {}]   ;;  %s11675_s16 = inlined_call_operand.vmem [shape: bf16[2,128,32], index: 16, kind: input, shape index: {}]   ;;  %s11676_s17 = inlined_call_operand.vmem [shape: f32[2,1,32], index: 17, kind: input, shape index: {}]   ;;  %s11677_s18 = inlined_call_operand.vmem [shape: bf16[32,32], index: 18, kind: input, shape index: {}]   ;;  %s11678_s19 = inlined_call_operand.vmem [shape: f32[1,32], index: 19, kind: input, shape index: {}]   ;;  %s11679_s20 = inlined_call_operand.vmem [shape: f32[2,64,32], index: 20, kind: output, shape index: {}]  }
   0x1   :  { %11692 = sst [smem:[#allocation10_spill]] %s11659_s0 }
   0x2   :  { %11693 = sst [smem:[#allocation11_spill]] %s11660_s1  ;;  %s9633_s1 = smov 0  }
   0x3   :  { %11694 = sst [smem:[#allocation12_spill]] %s11661_s2 }
   0x4   :  { %11695 = sst [smem:[#allocation13_spill]] %s11662_s3 }
   0x5   :  { %11696 = sst [smem:[#allocation14_spill]] %s11663_s4 }
   0x6 LB: > { %s7443_s22 = sadd.s32 4294967295, %s9526_s1   ;;  %p7447_p0 = scmp.ge.s32.totalorder %s9526_s1, 1  ;;  %s9526_s1 = sphi %s9633_s1, %s30_s1  }
   0x7   : > { %p581_p1 = scmp.lt.s32.totalorder %s9526_s1, 3 }
   0x9   : > { %p582_p2 = pnand %p7447_p0, %p581_p1 }
   0xb   : > { %585 = sbr.rel (%p582_p2) target bundleno = 10023 (0x2727), region = 100 }
  0x12   : > { %s11697_s2 = sld [smem:[#allocation14_spill]]  ;;  %p648_p3 = scmp.lt.s32.totalorder %s7443_s22, 1  ;;  %v898_v1 = vlaneseq  ;;  %vm695_vm0 = vcmask 130048   ;;  %v7455_v26 = vld [vmem:[%s11664_s5] ss:$0 sm:$0xff]  ;;  %vm791_vm1 = vcmask 261120  }
  0x13   : > { %s11699_s28 = sld [smem:[#allocation10_spill]]  ;;  %s11700_s0 = sld [smem:[#allocation12_spill]]  ;;  %vm1210_vm2 = vcmask 64512   ;;  %vm1300_vm3 = vcmask 523264   ;;  %vm2037_vm4 = vcmask 1043456  }
  0x14   : > { %s11737_s22 = smov (!%p648_p3, %s7443_s22), 1  ;;  %v9646_v2 = vshrl.u32 %v898_v1, 7  ;;  %s11701_s26 = sld [smem:[#allocation13_spill]] }
  0x15   : > { %s7903_s25 = sshll.u32 %s11737_s22, 6  ;;  %s7904_s3 = sshll.u32 %s11737_s22, 4 }
  0x16   : > { %11698 = vst [vmem:[#allocation2_spill] sm:$0xff] %v9646_v2  ;;  %s7452_s23 = sshll.u32 %s11737_s22, 1  ;;  %v9662_v5 = vsub.s32 1, %v9646_v2  ;;  %v9665_v6 = vsub.s32 0, %v9646_v2  ;;  %v11681_v7 = vsub.s32 3, %v9646_v2 }
  0x18   : > { %v9079_v0 = vld [vmem:[%s11697_s2] sm:$0xff]  }
  0x19   : > { %8265 = vmatprep.subr.bf16.mxu0 %v9079_v0  ;;  %s652_s4 = scalar_lea.vmem %s11699_s28, %s7903_s25  ;;  %s9658_s21 = scalar_lea.vmem %s11700_s0, %s7904_s3 }
  0x1a   : > { %8266 = vmatpush3.bf16.msra.mxu0 %v9079_v0  ;;  %v668_v3 = vld [vmem:[%s652_s4] sm:$0xff]  ;;  %v669_v4 = vld [vmem:[%s652_s4 + $0x8] sm:$0xff]  ;;  %s661_s27 = scalar_lea.vmem %s11701_s26, %s7452_s23  ;;  %v670_v10 = vld [vmem:[%s652_s4 + $0x10] sm:$0xff]  ;;  %s11707_s0 = sld [smem:[#allocation11_spill]] }
  0x1b   : > { %v676_v8 = vpack.c.bf16 %v669_v4, %v668_v3  ;;  %v790_v9 = vld [vmem:[%s9658_s21 + $0x8] sm:$0xf]  ;;  %v671_v11 = vld [vmem:[%s652_s4 + $0x18] sm:$0xff]  ;;  %v7122_v15 = vld [vmem:[%s661_s27] sm:$0x3]  ;;  %s666_s23 = scalar_lea.vmem %s11679_s20, %s7903_s25 }
  0x1c   : > { %v9673_v12 = vrot.slane %v790_v9, %v9665_v6  ;;  %v9676_v13 = vrot.slane %v790_v9, %v9662_v5  ;;  %v9680_v14 = vrot.slane %v790_v9, %v11681_v7  ;;  %v672_v16 = vld [vmem:[%s652_s4 + $0x20] sm:$0xff]  ;;  %v673_v17 = vld [vmem:[%s652_s4 + $0x28] sm:$0xff]  ;;  %v7227_v18 = vadd.f32 1.0, %v7122_v15  ;;  %v674_v22 = vld [vmem:[%s652_s4 + $0x30] sm:$0xff] }
  0x1d   : > { %8267 = vmatprep.mubr.msk.bf16.mxu0 %vm695_vm0, %v676_v8  ;;  %v9684_v19 = vrot.slane %v7122_v15, %v9665_v6  ;;  %v677_v20 = vpack.c.bf16 %v671_v11, %v670_v10  ;;  %v678_v21 = vpack.c.bf16 %v673_v17, %v672_v16  ;;  %v675_v23 = vld [vmem:[%s652_s4 + $0x38] sm:$0xff] }
  0x1e   : > { %11702 = vst [vmem:[#allocation3_spill] sm:$0xff] %v9673_v12  ;;  %11703 = vst [vmem:[#allocation4_spill] sm:$0xff] %v9676_v13  ;;  %v9687_v24 = vrot.slane %v7227_v18, %v9662_v5  ;;  %v679_v25 = vpack.c.bf16 %v675_v23, %v674_v22 }
  0x1f   : > { %11704 = vst [vmem:[#allocation5_spill] sm:$0xff] %v9680_v14  ;;  %11705 = vst [vmem:[#allocation6_spill] sm:$0xff] %v9684_v19  ;;  %8268 = vmatmul.mubr.msk.bf16.vlgmr.msra.gmra.mrb[0].mxu0 %vm695_vm0, %v677_v20 }
  0x20   : > { %11706 = vst [vmem:[#allocation7_spill] sm:$0xff] %v9687_v24  ;;  %8271 = vmatprep.mubr.msk.bf16.mxu0 %vm695_vm0, %v678_v21  ;;  %v775_v28 = vld [vmem:[%s11707_s0 + $0x10] sm:$0xff]  ;;  %v773_v31 = vld [vmem:[%s11707_s0] sm:$0xff]  ;;  %v776_v34 = vld [vmem:[%s11707_s0 + $0x18] sm:$0xff] }
  0x21   : > { %v774_v38 = vld [vmem:[%s11707_s0 + $0x8] sm:$0xff]  ;;  %v779_v47 = vld [vmem:[%s11707_s0 + $0x30] sm:$0xff]  ;;  %v777_v49 = vld [vmem:[%s11707_s0 + $0x20] sm:$0xff] }
  0x22   : > { %v780_v55 = vld [vmem:[%s11707_s0 + $0x38] sm:$0xff]  ;;  %v778_v57 = vld [vmem:[%s11707_s0 + $0x28] sm:$0xff] }
  0x27   : > { %8272 = vmatmul.mubr.msk.bf16.gmra.mrb[4].mxu0 %vm695_vm0, %v679_v25 }
  0xf2   : > { %v8269_v27 = vpop.f32.mrb[0].mxu0 }
  0xf3   : > { %v751_v29 = vadd.f32 %v8269_v27, %v7455_v26  ;;  %v742_v30 = vpop.f32.mrb[1].mxu0 }
  0xf4   : > { %v743_v32 = vadd.f32 %v7455_v26, %v742_v30  ;;  %v8270_v33 = vpop.f32.mrb[2].mxu0 }
  0xf5   : > { %v9704_v35 = vadd.f32 %v775_v28, %v751_v29  ;;  %v754_v36 = vadd.f32 %v8270_v33, %v7455_v26  ;;  %v745_v37 = vpop.f32.mrb[3].mxu0 }
  0xf6   : > { %v9709_v39 = vadd.f32 %v773_v31, %v743_v32  ;;  %v746_v40 = vadd.f32 %v7455_v26, %v745_v37 }
  0xf7   : > { %v9711_v41 = vadd.f32 %v776_v34, %v754_v36  ;;  %v798_v42 = vsel %vm791_vm1, %v9704_v35, 0.0 }
  0xf8   : > { %v9715_v43 = vadd.f32 %v774_v38, %v746_v40  ;;  %799 = vadd.xlane.f32.xlu1 %v798_v42  ;;  %v792_v44 = vsel %vm791_vm1, %v9709_v39, 0.0 }
  0xf9   : > { %793 = vadd.xlane.f32.xlu0 %v792_v44  ;;  %v801_v50 = vsel %vm791_vm1, %v9711_v41, 0.0 }
  0xfa   : > { %v8273_v45 = vpop.f32.mrb[4].mxu0  ;;  %v795_v53 = vsel %vm791_vm1, %v9715_v43, 0.0 }
  0xfb   : > { %v767_v46 = vadd.f32 %v8273_v45, %v7455_v26  ;;  %v758_v48 = vpop.f32.mrb[5].mxu0 }
  0xfc   : > { %v759_v51 = vadd.f32 %v7455_v26, %v758_v48  ;;  %802 = vadd.xlane.f32.xlu1 %v801_v50  ;;  %v8274_v52 = vpop.f32.mrb[6].mxu0 }
  0xfd   : > { %v770_v54 = vadd.f32 %v8274_v52, %v7455_v26  ;;  %v761_v56 = vpop.f32.mrb[7].mxu0  ;;  %796 = vadd.xlane.f32.xlu0 %v795_v53  ;;  %v9735_v58 = vadd.f32 %v779_v47, %v767_v46 }
  0xfe   : > { %v9737_v59 = vadd.f32 %v777_v49, %v759_v51  ;;  %v762_v60 = vadd.f32 %v7455_v26, %v761_v56  ;;  %v9080_v56 = vld [vmem:[%s11667_s8] sm:$0xff]  }
  0xff   : > { %v9739_v61 = vadd.f32 %v780_v55, %v770_v54  ;;  %v810_v1 = vsel %vm791_vm1, %v9735_v58, 0.0  ;;  %8287 = vmatprep.subr.bf16.mxu0 %v9080_v56 }
 0x100   : > { %v9741_v62 = vadd.f32 %v778_v57, %v762_v60  ;;  %v804_v63 = vsel %vm791_vm1, %v9737_v59, 0.0  ;;  %v9081_v57 = vld [vmem:[%s11665_s6] sm:$0xff]   ;;  %8288 = vmatpush3.bf16.msra.mxu0 %v9080_v56  ;;  %v9082_v60 = vld [vmem:[%s11667_s8 + $0x8] sm:$0xff]  }
 0x101   : > { %11708 = vst [vmem:[#allocation8_spill] sm:$0xff] %v9739_v61  ;;  %805 = vadd.xlane.f32.xlu0 %v804_v63  ;;  %v813_v3 = vsel %vm791_vm1, %v9739_v61, 0.0  ;;  %8275 = vmatprep.subr.bf16.mxu1 %v9081_v57  ;;  %v9083_v63 = vld [vmem:[%s11665_s6 + $0x8] sm:$0xff]  }
 0x102   : > { %v807_v0 = vsel %vm791_vm1, %v9741_v62, 0.0  ;;  %8276 = vmatpush3.bf16.msra.mxu1 %v9081_v57  ;;  %8289 = vmatprep.subr.bf16.mxu0 %v9082_v60 }
 0x103   : > { %808 = vadd.xlane.f32.xlu1 %v807_v0  ;;  %8277 = vmatprep.subr.bf16.mxu1 %v9083_v63  ;;  %v9814_v0 = vld [vmem:[%s11669_s10] sm:$0xff]  }
 0x104   : > { %8290 = vmatpush3.bf16.msra.mxu0 %v9082_v60 }
 0x105   : > { %811 = vadd.xlane.f32.xlu0 %v810_v1 }
 0x106   : > { %8278 = vmatpush3.bf16.msra.mxu1 %v9083_v63 }
 0x107   : > { %814 = vadd.xlane.f32.xlu1 %v813_v3  ;;  %8299 = vmatprep.subr.bf16.mxu1 %v9814_v0 }
 0x185   : > { %v800_v4 = vpop.xlane.xlu1 %799 }
 0x186   : > { %v819_v8 = vmul.f32 0.03125, %v800_v4  ;;  %v794_v9 = vpop.xlane.xlu0 %793 }
 0x187   : > { %v817_v10 = vmul.f32 0.03125, %v794_v9 }
 0x188   : > { %v9752_v11 = vsub.f32 %v9704_v35, %v819_v8 }
 0x189   : > { %v9755_v15 = vsub.f32 %v9709_v39, %v817_v10  ;;  %v803_v16 = vpop.xlane.xlu1 %802 }
 0x18a   : > { %v820_v17 = vmul.f32 0.03125, %v803_v16  ;;  %v797_v18 = vpop.xlane.xlu0 %796  ;;  %v835_v26 = vmul.f32 %v9752_v11, %v9752_v11 }
 0x18b   : > { %v818_v20 = vmul.f32 0.03125, %v797_v18  ;;  %v833_v21 = vmul.f32 %v9755_v15, %v9755_v15 }
 0x18c   : > { %v9760_v22 = vsub.f32 %v9711_v41, %v820_v17  ;;  %v847_v34 = vsel %vm791_vm1, %v835_v26, 0.0 }
 0x18d   : > { %v9763_v23 = vsub.f32 %v9715_v43, %v818_v20  ;;  %v841_v25 = vsel %vm791_vm1, %v833_v21, 0.0 }
 0x18e   : > { %842 = vadd.xlane.f32.xlu0 %v841_v25  ;;  %v806_v27 = vpop.xlane.xlu0 %805  ;;  %v836_v31 = vmul.f32 %v9760_v22, %v9760_v22  ;;  %v789_v25 = vld [vmem:[%s9658_s21] sm:$0xff] }
 0x18f   : > { %v821_v28 = vmul.f32 0.03125, %v806_v27  ;;  %v834_v29 = vmul.f32 %v9763_v23, %v9763_v23 }
 0x190   : > { %v809_v30 = vpop.xlane.xlu1 %808  ;;  %v850_v45 = vsel %vm791_vm1, %v836_v31, 0.0 }
 0x191   : > { %v9773_v32 = vsub.f32 %v9737_v59, %v821_v28  ;;  %v822_v33 = vmul.f32 0.03125, %v809_v30  ;;  %v844_v36 = vsel %vm791_vm1, %v834_v29, 0.0  ;;  %v9818_v30 = vadd.f32 1.0, %v789_v25 }
 0x192   : > { %848 = vadd.xlane.f32.xlu0 %v847_v34  ;;  %845 = vadd.xlane.f32.xlu1 %v844_v36  ;;  %v812_v37 = vpop.xlane.xlu0 %811 }
 0x193   : > { %v9778_v38 = vsub.f32 %v9741_v62, %v822_v33  ;;  %v823_v40 = vmul.f32 0.03125, %v812_v37  ;;  %v837_v42 = vmul.f32 %v9773_v32, %v9773_v32  ;;  %11709 = vst [vmem:[#allocation9_spill] sm:$0xff] %v9818_v30 }
 0x194   : > { %v815_v44 = vpop.xlane.xlu1 %814 }
 0x195   : > { %v9784_v46 = vsub.f32 %v9735_v58, %v823_v40  ;;  %v824_v47 = vmul.f32 0.03125, %v815_v44  ;;  %v853_v48 = vsel %vm791_vm1, %v837_v42, 0.0  ;;  %v838_v49 = vmul.f32 %v9778_v38, %v9778_v38 }
 0x196   : > { %851 = vadd.xlane.f32.xlu1 %v850_v45  ;;  %854 = vadd.xlane.f32.xlu0 %v853_v48  ;;  %v901_v44 = vrot.slane %v9818_v30, %v9662_v5 }
 0x197   : > { %v9790_v50 = vsub.f32 %v9739_v61, %v824_v47  ;;  %v839_v51 = vmul.f32 %v9784_v46, %v9784_v46  ;;  %v856_v52 = vsel %vm791_vm1, %v838_v49, 0.0 }
 0x199   : > { %v859_v53 = vsel %vm791_vm1, %v839_v51, 0.0  ;;  %v840_v54 = vmul.f32 %v9790_v50, %v9790_v50 }
 0x19a   : > { %857 = vadd.xlane.f32.xlu1 %v856_v52  ;;  %860 = vadd.xlane.f32.xlu0 %v859_v53  ;;  %v913_v53 = vrot.slane %v789_v25, %v9665_v6 }
 0x19b   : > { %v862_v55 = vsel %vm791_vm1, %v840_v54, 0.0 }
 0x19e   : > { %863 = vadd.xlane.f32.xlu1 %v862_v55 }
 0x21b   : > { %v843_v1 = vpop.xlane.xlu0 %842 }
 0x21c   : > { %v865_v3 = vmul.f32 0.03125, %v843_v1 }
 0x21e   : > { %v873_v4 = vadd.f32 1e-06, %v865_v3 }
 0x21f   : > { %v846_v8 = vpop.xlane.xlu1 %845  ;;  %v849_v9 = vpop.xlane.xlu0 %848 }
 0x220   : > { %9150 = vrsqrt.f32 %v873_v4  ;;  %v866_v10 = vmul.f32 0.03125, %v846_v8  ;;  %v867_v16 = vmul.f32 0.03125, %v849_v9 }
 0x222   : > { %v874_v17 = vadd.f32 1e-06, %v866_v10  ;;  %v875_v18 = vadd.f32 1e-06, %v867_v16 }
 0x223   : > { %v852_v20 = vpop.xlane.xlu1 %851  ;;  %v855_v21 = vpop.xlane.xlu0 %854 }
 0x224   : > { %9152 = vrsqrt.f32 %v874_v17  ;;  %v868_v26 = vmul.f32 0.03125, %v852_v20  ;;  %v869_v27 = vmul.f32 0.03125, %v855_v21  ;;  %v9085_v20 = vld [vmem:[%s11669_s10 + $0x8] sm:$0xff]  }
 0x225   : > { %9154 = vrsqrt.f32 %v875_v18 }
 0x226   : > { %v876_v28 = vadd.f32 1e-06, %v868_v26  ;;  %v877_v29 = vadd.f32 1e-06, %v869_v27 }
 0x227   : > { %v858_v31 = vpop.xlane.xlu1 %857  ;;  %v861_v33 = vpop.xlane.xlu0 %860 }
 0x228   : > { %9156 = vrsqrt.f32 %v876_v28  ;;  %v870_v34 = vmul.f32 0.03125, %v858_v31  ;;  %v871_v36 = vmul.f32 0.03125, %v861_v33  ;;  %v7461_v33 = vld [vmem:[%s11666_s7] ss:$0 sm:$0xff] }
 0x229   : > { %9158 = vrsqrt.f32 %v877_v29 }
 0x22a   : > { %v9151_v37 = vpop.eup %9150  ;;  %v878_v40 = vadd.f32 1e-06, %v870_v34  ;;  %v879_v42 = vadd.f32 1e-06, %v871_v36  ;;  %v7468_v36 = vld [vmem:[%s11668_s9] ss:$0 sm:$0xff] }
 0x22b   : > { %v889_v45 = vmul.f32 %v9151_v37, %v9755_v15  ;;  %v864_v47 = vpop.xlane.xlu1 %863 }
 0x22c   : > { %9160 = vrsqrt.f32 %v878_v40  ;;  %v872_v48 = vmul.f32 0.03125, %v864_v47 }
 0x22d   : > { %9162 = vrsqrt.f32 %v879_v42  ;;  %v902_v54 = vmul.f32 %v901_v44, %v889_v45 }
 0x22e   : > { %v9153_v49 = vpop.eup %9152  ;;  %v880_v51 = vadd.f32 1e-06, %v872_v48 }
 0x22f   : > { %v9155_v52 = vpop.eup %9154  ;;  %v890_v55 = vmul.f32 %v9153_v49, %v9763_v23  ;;  %v914_v63 = vadd.f32 %v913_v53, %v902_v54 }
 0x230   : > { %v891_v56 = vmul.f32 %v9155_v52, %v9752_v11  ;;  %9164 = vrsqrt.f32 %v880_v51 }
 0x231   : > { %v903_v57 = vmul.f32 %v901_v44, %v890_v55 }
 0x232   : > { %v9157_v60 = vpop.eup %9156  ;;  %v904_v1 = vmul.f32 %v901_v44, %v891_v56 }
 0x233   : > { %v9159_v5 = vpop.eup %9158  ;;  %v915_v15 = vadd.f32 %v913_v53, %v903_v57  ;;  %v892_v3 = vmul.f32 %v9157_v60, %v9760_v22 }
 0x234   : > { %v893_v4 = vmul.f32 %v9159_v5, %v9773_v32  ;;  %v916_v23 = vadd.f32 %v913_v53, %v904_v1 }
 0x235   : > { %v9828_v8 = vpack.c.bf16 %v915_v15, %v914_v63  ;;  %v905_v9 = vmul.f32 %v901_v44, %v892_v3 }
 0x236   : > { %v9161_v6 = vpop.eup %9160  ;;  %v906_v10 = vmul.f32 %v901_v44, %v893_v4 }
 0x237   : > { %v9163_v16 = vpop.eup %9162  ;;  %v917_v17 = vadd.f32 %v913_v53, %v905_v9  ;;  %v894_v11 = vmul.f32 %v9161_v6, %v9778_v38  ;;  %8279 = vmatprep.mubr.msk.bf16.mxu1 %vm791_vm1, %v9828_v8  ;;  %8291 = vmatprep.mubr.msk.bf16.mxu0 %vm791_vm1, %v9828_v8 }
 0x238   : > { %v895_v22 = vmul.f32 %v9163_v16, %v9784_v46  ;;  %v918_v25 = vadd.f32 %v913_v53, %v906_v10 }
 0x239   : > { %v9836_v18 = vpack.c.bf16 %v917_v17, %v916_v23  ;;  %v907_v32 = vmul.f32 %v901_v44, %v894_v11 }
 0x23a   : > { %v9165_v21 = vpop.eup %9164  ;;  %v908_v27 = vmul.f32 %v901_v44, %v895_v22 }
 0x23b   : > { %v919_v26 = vadd.f32 %v913_v53, %v907_v32  ;;  %v896_v38 = vmul.f32 %v9165_v21, %v9790_v50  ;;  %8280 = vmatmul.mubr.msk.bf16.vlgmr.msra.gmra.mrb[0].mxu1 %vm791_vm1, %v9836_v18  ;;  %8292 = vmatmul.mubr.msk.bf16.vlgmr.msra.gmra.mrb[8].mxu0 %vm791_vm1, %v9836_v18 }
 0x23c   : > { %8300 = vmatpush3.bf16.msra.mxu1 %v9814_v0  ;;  %v920_v29 = vadd.f32 %v913_v53, %v908_v27 }
 0x23d   : > { %v9847_v46 = vpack.c.bf16 %v919_v26, %v918_v25  ;;  %v909_v28 = vmul.f32 %v901_v44, %v896_v38  ;;  %8301 = vmatprep.subr.bf16.mxu1 %v9085_v20 }
 0x23f   : > { %v921_v31 = vadd.f32 %v913_v53, %v909_v28  ;;  %8283 = vmatprep.mubr.msk.bf16.mxu1 %vm791_vm1, %v9847_v46  ;;  %8295 = vmatprep.mubr.msk.bf16.mxu0 %vm791_vm1, %v9847_v46 }
 0x240   : > { %8302 = vmatpush3.bf16.msra.mxu1 %v9085_v20 }
 0x241   : > { %v9853_v50 = vpack.c.bf16 %v921_v31, %v920_v29 }
 0x243   : > { %8284 = vmatmul.mubr.msk.bf16.gmra.mrb[4].mxu1 %vm791_vm1, %v9853_v50  ;;  %8296 = vmatmul.mubr.msk.bf16.gmra.mrb[12].mxu0 %vm791_vm1, %v9853_v50 }
 0x244   : > { %8303 = vmatprep.mubr.msk.bf16.mxu1 %vm791_vm1, %v9828_v8 }
 0x24b   : > { %8304 = vmatmul.mubr.msk.bf16.vlgmr.msra.gmra.mrb[8].mxu1 %vm791_vm1, %v9836_v18 }
 0x24c   : > { %8307 = vmatprep.mubr.msk.bf16.mxu1 %vm791_vm1, %v9847_v46 }
 0x253   : > { %8308 = vmatmul.mubr.msk.bf16.gmra.mrb[12].mxu1 %vm791_vm1, %v9853_v50 }
 0x30e   : > { %v8281_v0 = vpop.f32.mrb[0].mxu1  ;;  %v8293_v34 = vpop.f32.mrb[8].mxu0 }
 0x30f   : > { %v995_v37 = vpop.f32.mrb[1].mxu1  ;;  %v1083_v40 = vpop.f32.mrb[9].mxu0  ;;  %v9873_v45 = vadd.f32 %v8281_v0, %v7461_v33  ;;  %v1092_v47 = vadd.f32 %v8293_v34, %v7468_v36  ;;  %v7475_v0 = vld [vmem:[%s11670_s11] ss:$0 sm:$0xff] }
 0x310   : > { %v8282_v42 = vpop.f32.mrb[2].mxu1  ;;  %v8294_v44 = vpop.f32.mrb[10].mxu0  ;;  %v996_v53 = vadd.f32 %v7461_v33, %v995_v37  ;;  %v1084_v54 = vadd.f32 %v7468_v36, %v1083_v40 }
 0x311   : > { %v9875_v48 = vadd.f32 %v8282_v42, %v7461_v33  ;;  %v1095_v49 = vadd.f32 %v8294_v44, %v7468_v36  ;;  %v998_v51 = vpop.f32.mrb[3].mxu1  ;;  %v1086_v52 = vpop.f32.mrb[11].mxu0 }
 0x312   : > { %v999_v55 = vadd.f32 %v7461_v33, %v998_v51  ;;  %v1087_v56 = vadd.f32 %v7468_v36, %v1086_v52 }
 0x313   : > { %v1203_v57 = vpack.c.bf16 %v9875_v48, %v9873_v45  ;;  %v1207_v60 = vpack.c.bf16 %v1095_v49, %v1092_v47 }
 0x314   : > { %v1202_v5 = vpack.c.bf16 %v999_v55, %v996_v53  ;;  %v1206_v63 = vpack.c.bf16 %v1087_v56, %v1084_v54 }
 0x315   : > { %v1227_v34 = vsel %vm1210_vm2, %v1207_v60, 0 }
 0x316   : > { %v8285_v15 = vpop.f32.mrb[4].mxu1  ;;  %v8297_v1 = vpop.f32.mrb[12].mxu0  ;;  %9031 = vmatprep.subr.msk.bf16.mxu0 %vm1210_vm2, %v1206_v63  ;;  %8319 = vmatprep.mubr.msk.bf16.mxu0 %vm1210_vm2, %v1202_v5  ;;  %v1224_v3 = vsel %vm1210_vm2, %v1206_v63, 0 }
 0x317   : > { %v1011_v4 = vpop.f32.mrb[5].mxu1  ;;  %v1099_v9 = vpop.f32.mrb[13].mxu0  ;;  %8312 = vmatpush3.bf16.xpose.msra.mxu0 %v1224_v3  ;;  %v1020_v16 = vadd.f32 %v8285_v15, %v7461_v33  ;;  %v1108_v23 = vadd.f32 %v8297_v1, %v7468_v36 }
 0x318   : > { %v8286_v6 = vpop.f32.mrb[6].mxu1  ;;  %v8298_v10 = vpop.f32.mrb[14].mxu0  ;;  %9032 = vmatprep.subr.msk.bf16.mxu0 %vm1210_vm2, %v1207_v60  ;;  %v1012_v20 = vadd.f32 %v7461_v33, %v1011_v4  ;;  %v1100_v21 = vadd.f32 %v7468_v36, %v1099_v9  ;;  %v9086_v4 = vld [vmem:[%s11667_s8 + $0x10] sm:$0xff]  }
 0x319   : > { %v1023_v17 = vadd.f32 %v8286_v6, %v7461_v33  ;;  %v1111_v11 = vadd.f32 %v8298_v10, %v7468_v36  ;;  %v1014_v22 = vpop.f32.mrb[7].mxu1  ;;  %v1102_v32 = vpop.f32.mrb[15].mxu0  ;;  %v9087_v6 = vld [vmem:[%s11667_s8 + $0x18] sm:$0xff]  }
 0x31a   : > { %v1015_v25 = vadd.f32 %v7461_v33, %v1014_v22  ;;  %v1103_v26 = vadd.f32 %v7468_v36, %v1102_v32 }
 0x31b   : > { %v1205_v27 = vpack.c.bf16 %v1023_v17, %v1020_v16  ;;  %v1209_v38 = vpack.c.bf16 %v1111_v11, %v1108_v23 }
 0x31c   : > { %v1204_v28 = vpack.c.bf16 %v1015_v25, %v1012_v20  ;;  %v1208_v29 = vpack.c.bf16 %v1103_v26, %v1100_v21 }
 0x31d   : > { %v1233_v9 = vsel %vm1210_vm2, %v1209_v38, 0 }
 0x31e   : > { %v8305_v31 = vpop.f32.mrb[8].mxu1  ;;  %v1230_v53 = vsel %vm1210_vm2, %v1208_v29, 0 }
 0x31f   : > { %v1171_v37 = vpop.f32.mrb[9].mxu1  ;;  %8314 = vmatpush3.bf16.xpose.msra.mxu0 %v1227_v34  ;;  %v1180_v42 = vadd.f32 %v8305_v31, %v7475_v0 }
 0x320   : > { %v8306_v40 = vpop.f32.mrb[10].mxu1  ;;  %9033 = vmatprep.subr.msk.bf16.mxu0 %vm1210_vm2, %v1208_v29  ;;  %v1172_v36 = vadd.f32 %v7475_v0, %v1171_v37 }
 0x321   : > { %v1183_v44 = vadd.f32 %v8306_v40, %v7475_v0  ;;  %v1174_v33 = vpop.f32.mrb[11].mxu1 }
 0x322   : > { %v1175_v47 = vadd.f32 %v7475_v0, %v1174_v33 }
 0x323   : > { %v1394_v49 = vpack.c.bf16 %v1183_v44, %v1180_v42 }
 0x324   : > { %v1393_v51 = vpack.c.bf16 %v1175_v47, %v1172_v36 }
 0x326   : > { %v8309_v52 = vpop.f32.mrb[12].mxu1  ;;  %8327 = vmatprep.subr.bf16.mxu1 %v1393_v51 }
 0x327   : > { %v1187_v54 = vpop.f32.mrb[13].mxu1  ;;  %8316 = vmatpush3.bf16.xpose.msra.mxu0 %v1230_v53  ;;  %8328 = vmatpush3.bf16.msra.mxu1 %v1393_v51  ;;  %v1196_v56 = vadd.f32 %v8309_v52, %v7475_v0 }
 0x328   : > { %v8310_v55 = vpop.f32.mrb[14].mxu1  ;;  %9034 = vmatprep.subr.msk.bf16.mxu0 %vm1210_vm2, %v1209_v38  ;;  %8329 = vmatprep.subr.bf16.mxu1 %v1394_v49  ;;  %v1188_v63 = vadd.f32 %v7475_v0, %v1187_v54 }
 0x329   : > { %v1199_v60 = vadd.f32 %v8310_v55, %v7475_v0  ;;  %v1190_v5 = vpop.f32.mrb[15].mxu1 }
 0x32a   : > { %v1191_v15 = vadd.f32 %v7475_v0, %v1190_v5 }
 0x32b   : > { %v1396_v1 = vpack.c.bf16 %v1199_v60, %v1196_v56  ;;  %8330 = vmatpush3.bf16.msra.mxu1 %v1394_v49 }
 0x32c   : > { %v1395_v3 = vpack.c.bf16 %v1191_v15, %v1188_v63 }
 0x32e   : > { %8331 = vmatprep.subr.bf16.mxu1 %v1395_v3 }
 0x32f   : > { %8318 = vmatpush3.bf16.xpose.msra.mxu0 %v1233_v9  ;;  %8332 = vmatpush3.bf16.msra.mxu1 %v1395_v3 }
 0x330   : > { %8333 = vmatprep.subr.bf16.mxu1 %v1396_v1  ;;  %8355 = vmatprep.subr.bf16.mxu0 %v9086_v4 }
 0x333   : > { %8334 = vmatpush3.bf16.msra.mxu1 %v1396_v1 }
 0x336   : > { %8320 = vmatmul.mubr.msk.bf16.vlgmr.msra.gmra.mrb[16].mxu0 %vm1210_vm2, %v1203_v57 }
 0x337   : > { %8323 = vmatprep.mubr.msk.bf16.mxu0 %vm1210_vm2, %v1204_v28  ;;  %8356 = vmatpush3.bf16.msra.mxu0 %v9086_v4  ;;  %v7507_v28 = vld [vmem:[%s11668_s9 + $0x1] ss:$0 sm:$0xff] }
 0x338   : > { %8357 = vmatprep.subr.bf16.mxu0 %v9087_v6 }
 0x33b   : > { %8358 = vmatpush3.bf16.msra.mxu0 %v9087_v6 }
 0x33e   : > { %8324 = vmatmul.mubr.msk.bf16.gmra.mrb[20].mxu0 %vm1210_vm2, %v1205_v27 }
 0x33f   : > { %8359 = vmatprep.mubr.msk.bf16.mxu0 %vm791_vm1, %v9828_v8 }
 0x346   : > { %8360 = vmatmul.mubr.msk.bf16.vlgmr.msra.gmra.mrb[24].mxu0 %vm791_vm1, %v9836_v18 }
 0x347   : > { %8363 = vmatprep.mubr.msk.bf16.mxu0 %vm791_vm1, %v9847_v46 }
 0x34e   : > { %8364 = vmatmul.mubr.msk.bf16.gmra.mrb[28].mxu0 %vm791_vm1, %v9853_v50 }
 0x409   : > { %v9911_v45 = vpop.f32.mrb[16].mxu0 }
 0x40a   : > { %v1269_v48 = vpop.f32.mrb[17].mxu0  ;;  %v1307_v17 = vsel %vm1300_vm3, %v9911_v45, -inf }
 0x40b   : > { %v9913_v57 = vpop.f32.mrb[18].mxu0  ;;  %v1301_v10 = vsel %vm1300_vm3, %v1269_v48, -inf }
 0x40c   : > { %1302 = vmax.xlane.f32.xlu0 %v1301_v10  ;;  %v1272_v16 = vpop.f32.mrb[19].mxu0  ;;  %v1310_v22 = vsel %vm1300_vm3, %v9913_v57, -inf }
 0x40d   : > { %v1304_v23 = vsel %vm1300_vm3, %v1272_v16, -inf }
 0x40e   : > { %1305 = vmax.xlane.f32.xlu1 %v1304_v23 }
 0x410   : > { %1308 = vmax.xlane.f32.xlu0 %v1307_v17 }
 0x411   : > { %v9919_v11 = vpop.f32.mrb[20].mxu0 }
 0x412   : > { %1311 = vmax.xlane.f32.xlu1 %v1310_v22  ;;  %v9923_v32 = vpop.f32.mrb[21].mxu0  ;;  %v1319_v27 = vsel %vm1300_vm3, %v9919_v11, -inf }
 0x413   : > { %v9925_v20 = vpop.f32.mrb[22].mxu0  ;;  %v1313_v21 = vsel %vm1300_vm3, %v9923_v32, -inf }
 0x414   : > { %1314 = vmax.xlane.f32.xlu0 %v1313_v21  ;;  %v9929_v25 = vpop.f32.mrb[23].mxu0  ;;  %v1322_v29 = vsel %vm1300_vm3, %v9925_v20, -inf }
 0x415   : > { %v1316_v26 = vsel %vm1300_vm3, %v9929_v25, -inf }
 0x416   : > { %1317 = vmax.xlane.f32.xlu1 %v1316_v26 }
 0x418   : > { %1320 = vmax.xlane.f32.xlu0 %v1319_v27 }
 0x419   : > { %v8361_v38 = vpop.f32.mrb[24].mxu0 }
 0x41a   : > { %v1628_v31 = vpop.f32.mrb[25].mxu0  ;;  %1323 = vmax.xlane.f32.xlu1 %v1322_v29  ;;  %v1637_v34 = vadd.f32 %v8361_v38, %v7507_v28 }
 0x41b   : > { %v8362_v0 = vpop.f32.mrb[26].mxu0  ;;  %v1629_v42 = vadd.f32 %v7507_v28, %v1628_v31 }
 0x41c   : > { %v1640_v37 = vadd.f32 %v8362_v0, %v7507_v28  ;;  %v1631_v40 = vpop.f32.mrb[27].mxu0 }
 0x41d   : > { %v1632_v44 = vadd.f32 %v7507_v28, %v1631_v40 }
 0x41e   : > { %v1754_v33 = vpack.c.bf16 %v1640_v37, %v1637_v34 }
 0x41f   : > { %v1753_v36 = vpack.c.bf16 %v1632_v44, %v1629_v42 }
 0x420   : > { %v1773_v15 = vsel %vm1210_vm2, %v1754_v33, 0 }
 0x421   : > { %v8365_v47 = vpop.f32.mrb[28].mxu0  ;;  %9035 = vmatprep.subr.msk.bf16.mxu0 %vm1210_vm2, %v1753_v36  ;;  %v1770_v49 = vsel %vm1210_vm2, %v1753_v36, 0 }
 0x422   : > { %v1644_v51 = vpop.f32.mrb[29].mxu0  ;;  %8380 = vmatpush3.bf16.xpose.msra.mxu0 %v1770_v49  ;;  %v1653_v53 = vadd.f32 %v8365_v47, %v7507_v28 }
 0x423   : > { %v8366_v52 = vpop.f32.mrb[30].mxu0  ;;  %9036 = vmatprep.subr.msk.bf16.mxu0 %vm1210_vm2, %v1754_v33  ;;  %v1645_v56 = vadd.f32 %v7507_v28, %v1644_v51 }
 0x424   : > { %v1656_v54 = vadd.f32 %v8366_v52, %v7507_v28  ;;  %v1647_v55 = vpop.f32.mrb[31].mxu0 }
 0x425   : > { %v1648_v60 = vadd.f32 %v7507_v28, %v1647_v55 }
 0x426   : > { %v1756_v5 = vpack.c.bf16 %v1656_v54, %v1653_v53 }
 0x427   : > { %v1755_v63 = vpack.c.bf16 %v1648_v60, %v1645_v56 }
 0x428   : > { %v1779_v3 = vsel %vm1210_vm2, %v1756_v5, 0 }
 0x429   : > { %v1776_v1 = vsel %vm1210_vm2, %v1755_v63, 0 }
 0x42a   : > { %8382 = vmatpush3.bf16.xpose.msra.mxu0 %v1773_v15 }
 0x42b   : > { %9037 = vmatprep.subr.msk.bf16.mxu0 %vm1210_vm2, %v1755_v63  ;;  %v9088_v63 = vld [vmem:[%s11665_s6 + $0x10] sm:$0xff]  }
 0x42c   : > { %8343 = vmatprep.subr.bf16.mxu1 %v9088_v63 }
 0x432   : > { %8384 = vmatpush3.bf16.xpose.msra.mxu0 %v1776_v1 }
 0x433   : > { %9038 = vmatprep.subr.msk.bf16.mxu0 %vm1210_vm2, %v1756_v5 }
 0x43a   : > { %8386 = vmatpush3.bf16.xpose.msra.mxu0 %v1779_v3 }
 0x499   : > { %v1303_v4 = vpop.xlane.xlu0 %1302 }
 0x49a   : > { %v1325_v9 = vsub.f32 %v1269_v48, %v1303_v4 }
 0x49b   : > { %v1306_v6 = vpop.xlane.xlu1 %1305 }
 0x49c   : > { %v1333_v10 = vmul.f32 1.442695, %v1325_v9  ;;  %v1326_v23 = vsub.f32 %v1272_v16, %v1306_v6 }
 0x49d   : > { %v1309_v17 = vpop.xlane.xlu0 %1308 }
 0x49e   : > { %9166 = vpow2.f32 %v1333_v10  ;;  %v1335_v22 = vmul.f32 1.442695, %v1326_v23  ;;  %v1327_v21 = vsub.f32 %v9911_v45, %v1309_v17 }
 0x49f   : > { %v1312_v26 = vpop.xlane.xlu1 %1311 }
 0x4a0   : > { %9168 = vpow2.f32 %v1335_v22  ;;  %v1337_v27 = vmul.f32 1.442695, %v1327_v21  ;;  %v1328_v38 = vsub.f32 %v9913_v57, %v1312_v26 }
 0x4a1   : > { %v1315_v28 = vpop.xlane.xlu0 %1314 }
 0x4a2   : > { %9170 = vpow2.f32 %v1337_v27  ;;  %v1339_v29 = vmul.f32 1.442695, %v1328_v38  ;;  %v1329_v31 = vsub.f32 %v9923_v32, %v1315_v28 }
 0x4a3   : > { %v1318_v0 = vpop.xlane.xlu1 %1317 }
 0x4a4   : > { %9172 = vpow2.f32 %v1339_v29  ;;  %v1341_v48 = vmul.f32 1.442695, %v1329_v31  ;;  %v1330_v16 = vsub.f32 %v9929_v25, %v1318_v0 }
 0x4a5   : > { %v1321_v34 = vpop.xlane.xlu0 %1320 }
 0x4a6   : > { %9174 = vpow2.f32 %v1341_v48  ;;  %v1343_v37 = vmul.f32 1.442695, %v1330_v16  ;;  %v1331_v45 = vsub.f32 %v9919_v11, %v1321_v34  ;;  %v9089_v16 = vld [vmem:[%s11665_s6 + $0x18] sm:$0xff]  }
 0x4a7   : > { %v1324_v40 = vpop.xlane.xlu1 %1323 }
 0x4a8   : > { %v9167_v42 = vpop.eup %9166  ;;  %9176 = vpow2.f32 %v1343_v37  ;;  %v1345_v44 = vmul.f32 1.442695, %v1331_v45  ;;  %v1332_v57 = vsub.f32 %v9925_v20, %v1324_v40 }
 0x4a9   : > { %v1349_v33 = vsel %vm1300_vm3, %v9167_v42, 0.0 }
 0x4aa   : > { %v9169_v36 = vpop.eup %9168  ;;  %9178 = vpow2.f32 %v1345_v44  ;;  %v1347_v32 = vmul.f32 1.442695, %v1332_v57  ;;  %1350 = vadd.xlane.f32.xlu0 %v1349_v33  ;;  %v9090_v44 = vld [vmem:[%s11669_s10 + $0x10] sm:$0xff]  }
 0x4ab   : > { %v1352_v47 = vsel %vm1300_vm3, %v9169_v36, 0.0 }
 0x4ac   : > { %v9171_v25 = vpop.eup %9170  ;;  %9180 = vpow2.f32 %v1347_v32  ;;  %1353 = vadd.xlane.f32.xlu1 %v1352_v47  ;;  %v9091_v47 = vld [vmem:[%s11669_s10 + $0x18] sm:$0xff]  }
 0x4ad   : > { %v1355_v49 = vsel %vm1300_vm3, %v9171_v25, 0.0 }
 0x4ae   : > { %v9173_v11 = vpop.eup %9172  ;;  %1356 = vadd.xlane.f32.xlu0 %v1355_v49 }
 0x4af   : > { %v1358_v51 = vsel %vm1300_vm3, %v9173_v11, 0.0 }
 0x4b0   : > { %v9175_v52 = vpop.eup %9174  ;;  %1359 = vadd.xlane.f32.xlu1 %v1358_v51 }
 0x4b1   : > { %v1361_v20 = vsel %vm1300_vm3, %v9175_v52, 0.0 }
 0x4b2   : > { %v9177_v53 = vpop.eup %9176  ;;  %1362 = vadd.xlane.f32.xlu0 %v1361_v20 }
 0x4b3   : > { %v1364_v54 = vsel %vm1300_vm3, %v9177_v53, 0.0 }
 0x4b4   : > { %v9179_v55 = vpop.eup %9178  ;;  %1365 = vadd.xlane.f32.xlu1 %v1364_v54 }
 0x4b5   : > { %v1367_v56 = vsel %vm1300_vm3, %v9179_v55, 0.0 }
 0x4b6   : > { %v9181_v60 = vpop.eup %9180  ;;  %1368 = vadd.xlane.f32.xlu0 %v1367_v56 }
 0x4b7   : > { %v1370_v5 = vsel %vm1300_vm3, %v9181_v60, 0.0 }
 0x4b8   : > { %1371 = vadd.xlane.f32.xlu1 %v1370_v5 }
 0x537   : > { %v1351_v15 = vpop.xlane.xlu0 %1350 }
 0x538   : > { %9182 = vrcp.f32 %v1351_v15 }
 0x539   : > { %v1354_v1 = vpop.xlane.xlu1 %1353 }
 0x53a   : > { %9184 = vrcp.f32 %v1354_v1  ;;  %v7495_v1 = vld [vmem:[%s11666_s7 + $0x1] ss:$0 sm:$0xff] }
 0x53b   : > { %v1357_v3 = vpop.xlane.xlu0 %1356 }
 0x53c   : > { %9186 = vrcp.f32 %v1357_v3 }
 0x53d   : > { %v1360_v4 = vpop.xlane.xlu1 %1359 }
 0x53e   : > { %9188 = vrcp.f32 %v1360_v4 }
 0x53f   : > { %v1363_v9 = vpop.xlane.xlu0 %1362 }
 0x540   : > { %9190 = vrcp.f32 %v1363_v9 }
 0x541   : > { %v1366_v6 = vpop.xlane.xlu1 %1365 }
 0x542   : > { %v9183_v10 = vpop.eup %9182  ;;  %9192 = vrcp.f32 %v1366_v6 }
 0x543   : > { %v1369_v23 = vpop.xlane.xlu0 %1368  ;;  %v1381_v21 = vmul.f32 %v9183_v10, %v9167_v42 }
 0x544   : > { %v9185_v17 = vpop.eup %9184  ;;  %9194 = vrcp.f32 %v1369_v23 }
 0x545   : > { %v1372_v22 = vpop.xlane.xlu1 %1371  ;;  %v1382_v26 = vmul.f32 %v9185_v17, %v9169_v36 }
 0x546   : > { %v9187_v27 = vpop.eup %9186  ;;  %9196 = vrcp.f32 %v1372_v22 }
 0x547   : > { %v1389_v38 = vpack.c.bf16 %v1382_v26, %v1381_v21  ;;  %v1383_v29 = vmul.f32 %v9187_v27, %v9171_v25  ;;  %v9092_v25 = vld [vmem:[%s11665_s6 + $0x20] sm:$0xff]   ;;  %v9093_v26 = vld [vmem:[%s11665_s6 + $0x28] sm:$0xff]  }
 0x548   : > { %v9189_v28 = vpop.eup %9188  ;;  %8431 = vmatprep.subr.bf16.mxu0 %v9092_v25 }
 0x549   : > { %v1384_v31 = vmul.f32 %v9189_v28, %v9173_v11  ;;  %8335 = vmatprep.mubr.msk.bf16.mxu1 %vm1300_vm3, %v1389_v38 }
 0x54a   : > { %v9191_v0 = vpop.eup %9190 }
 0x54b   : > { %v1390_v48 = vpack.c.bf16 %v1384_v31, %v1383_v29  ;;  %v1385_v37 = vmul.f32 %v9191_v0, %v9175_v52 }
 0x54c   : > { %v9193_v34 = vpop.eup %9192 }
 0x54d   : > { %8336 = vmatmul.mubr.msk.bf16.vlgmr.msra.gmra.mrb[16].mxu1 %vm1300_vm3, %v1390_v48  ;;  %v1386_v45 = vmul.f32 %v9193_v34, %v9177_v53  ;;  %v9094_v48 = vld [vmem:[%s11667_s8 + $0x20] sm:$0xff]  }
 0x54e   : > { %v9195_v40 = vpop.eup %9194  ;;  %8344 = vmatpush3.bf16.msra.mxu1 %v9088_v63 }
 0x54f   : > { %v1391_v42 = vpack.c.bf16 %v1386_v45, %v1385_v37  ;;  %8345 = vmatprep.subr.bf16.mxu1 %v9089_v16  ;;  %v1387_v33 = vmul.f32 %v9195_v40, %v9179_v55 }
 0x550   : > { %v9197_v57 = vpop.eup %9196 }
 0x551   : > { %8339 = vmatprep.mubr.msk.bf16.mxu1 %vm1300_vm3, %v1391_v42  ;;  %v1388_v36 = vmul.f32 %v9197_v57, %v9181_v60  ;;  %v7519_v42 = vld [vmem:[%s11670_s11 + $0x1] ss:$0 sm:$0xff] }
 0x552   : > { %8346 = vmatpush3.bf16.msra.mxu1 %v9089_v16 }
 0x553   : > { %v1392_v32 = vpack.c.bf16 %v1388_v36, %v1387_v33  ;;  %8367 = vmatprep.subr.bf16.mxu1 %v9090_v44 }
 0x555   : > { %8340 = vmatmul.mubr.msk.bf16.gmra.mrb[20].mxu1 %vm1300_vm3, %v1392_v32 }
 0x556   : > { %8347 = vmatprep.mubr.msk.bf16.mxu1 %vm791_vm1, %v9828_v8 }
 0x55d   : > { %8348 = vmatmul.mubr.msk.bf16.vlgmr.msra.gmra.mrb[24].mxu1 %vm791_vm1, %v9836_v18 }
 0x55e   : > { %8351 = vmatprep.mubr.msk.bf16.mxu1 %vm791_vm1, %v9847_v46  ;;  %8368 = vmatpush3.bf16.msra.mxu1 %v9090_v44 }
 0x55f   : > { %8369 = vmatprep.subr.bf16.mxu1 %v9091_v47 }
 0x562   : > { %8370 = vmatpush3.bf16.msra.mxu1 %v9091_v47 }
 0x565   : > { %8352 = vmatmul.mubr.msk.bf16.gmra.mrb[28].mxu1 %vm791_vm1, %v9853_v50 }
 0x566   : > { %8371 = vmatprep.mubr.msk.bf16.mxu1 %vm791_vm1, %v9828_v8 }
 0x56d   : > { %8372 = vmatmul.mubr.msk.bf16.vlgmr.msra.gmra.mrb[32].mxu1 %vm791_vm1, %v9836_v18 }
 0x56e   : > { %8375 = vmatprep.mubr.msk.bf16.mxu1 %vm791_vm1, %v9847_v46 }
 0x575   : > { %8376 = vmatmul.mubr.msk.bf16.gmra.mrb[36].mxu1 %vm791_vm1, %v9853_v50 }
 0x620   : > { %v9997_v49 = vpop.f32.mrb[16].mxu1 }
 0x621   : > { %v9999_v11 = vpop.f32.mrb[17].mxu1 }
 0x622   : > { %v10001_v51 = vpop.f32.mrb[18].mxu1 }
 0x623   : > { %v10005_v20 = vpop.f32.mrb[19].mxu1 }
 0x628   : > { %v10009_v54 = vpop.f32.mrb[20].mxu1 }
 0x629   : > { %v10011_v55 = vpop.f32.mrb[21].mxu1 }
 0x62a   : > { %v10013_v56 = vpop.f32.mrb[22].mxu1 }
 0x62b   : > { %v10017_v5 = vpop.f32.mrb[23].mxu1 }
 0x630   : > { %v8349_v15 = vpop.f32.mrb[24].mxu1 }
 0x631   : > { %v1538_v3 = vpop.f32.mrb[25].mxu1  ;;  %v1547_v9 = vadd.f32 %v8349_v15, %v7495_v1 }
 0x632   : > { %v8350_v4 = vpop.f32.mrb[26].mxu1  ;;  %v1539_v23 = vadd.f32 %v7495_v1, %v1538_v3 }
 0x633   : > { %v1550_v6 = vadd.f32 %v8350_v4, %v7495_v1  ;;  %v1541_v10 = vpop.f32.mrb[27].mxu1  ;;  %v9095_v4 = vld [vmem:[%s11667_s8 + $0x28] sm:$0xff]  }
 0x634   : > { %v1542_v17 = vadd.f32 %v7495_v1, %v1541_v10 }
 0x635   : > { %v1750_v22 = vpack.c.bf16 %v1550_v6, %v1547_v9 }
 0x636   : > { %v1749_v21 = vpack.c.bf16 %v1542_v17, %v1539_v23 }
 0x638   : > { %v8353_v27 = vpop.f32.mrb[28].mxu1  ;;  %8387 = vmatprep.mubr.msk.bf16.mxu0 %vm1210_vm2, %v1749_v21 }
 0x639   : > { %v1554_v38 = vpop.f32.mrb[29].mxu1  ;;  %8388 = vmatmul.mubr.msk.bf16.vlgmr.msra.gmra.mrb[32].mxu0 %vm1210_vm2, %v1750_v22  ;;  %v1563_v29 = vadd.f32 %v8353_v27, %v7495_v1 }
 0x63a   : > { %v8354_v28 = vpop.f32.mrb[30].mxu1  ;;  %8432 = vmatpush3.bf16.msra.mxu0 %v9092_v25  ;;  %v1555_v16 = vadd.f32 %v7495_v1, %v1554_v38 }
 0x63b   : > { %v1566_v31 = vadd.f32 %v8354_v28, %v7495_v1  ;;  %v1557_v0 = vpop.f32.mrb[31].mxu1  ;;  %8433 = vmatprep.subr.bf16.mxu0 %v9093_v26 }
 0x63c   : > { %v1558_v34 = vadd.f32 %v7495_v1, %v1557_v0 }
 0x63d   : > { %v1752_v37 = vpack.c.bf16 %v1566_v31, %v1563_v29 }
 0x63e   : > { %v1751_v45 = vpack.c.bf16 %v1558_v34, %v1555_v16  ;;  %8434 = vmatpush3.bf16.msra.mxu0 %v9093_v26 }
 0x63f   : > { %8443 = vmatprep.subr.bf16.mxu0 %v9094_v48 }
 0x640   : > { %v8373_v40 = vpop.f32.mrb[32].mxu1  ;;  %8391 = vmatprep.mubr.msk.bf16.mxu0 %vm1210_vm2, %v1751_v45 }
 0x641   : > { %v1718_v44 = vpop.f32.mrb[33].mxu1  ;;  %8392 = vmatmul.mubr.msk.bf16.gmra.mrb[36].mxu0 %vm1210_vm2, %v1752_v37  ;;  %v1727_v33 = vadd.f32 %v8373_v40, %v7519_v42 }
 0x642   : > { %v8374_v57 = vpop.f32.mrb[34].mxu1  ;;  %8435 = vmatprep.mubr.msk.bf16.mxu0 %vm791_vm1, %v9828_v8  ;;  %v1719_v47 = vadd.f32 %v7519_v42, %v1718_v44 }
 0x643   : > { %v1730_v36 = vadd.f32 %v8374_v57, %v7519_v42  ;;  %v1721_v32 = vpop.f32.mrb[35].mxu1 }
 0x644   : > { %v1722_v25 = vadd.f32 %v7519_v42, %v1721_v32  ;;  %v7548_v32 = vld [vmem:[%s11666_s7 + $0x2] ss:$0 sm:$0xff] }
 0x645   : > { %v1939_v15 = vpack.c.bf16 %v1730_v36, %v1727_v33 }
 0x646   : > { %v1938_v1 = vpack.c.bf16 %v1722_v25, %v1719_v47 }
 0x648   : > { %v8377_v3 = vpop.f32.mrb[36].mxu1  ;;  %8395 = vmatprep.subr.bf16.mxu1 %v1938_v1 }
 0x649   : > { %v1734_v9 = vpop.f32.mrb[37].mxu1  ;;  %8396 = vmatpush3.bf16.msra.mxu1 %v1938_v1  ;;  %8436 = vmatmul.mubr.msk.bf16.vlgmr.msra.gmra.mrb[40].mxu0 %vm791_vm1, %v9836_v18  ;;  %v1743_v10 = vadd.f32 %v8377_v3, %v7519_v42 }
 0x64a   : > { %v8378_v6 = vpop.f32.mrb[38].mxu1  ;;  %8397 = vmatprep.subr.bf16.mxu1 %v1939_v15  ;;  %8439 = vmatprep.mubr.msk.bf16.mxu0 %vm791_vm1, %v9847_v46  ;;  %v1735_v22 = vadd.f32 %v7519_v42, %v1734_v9 }
 0x64b   : > { %v1746_v23 = vadd.f32 %v8378_v6, %v7519_v42  ;;  %v1737_v17 = vpop.f32.mrb[39].mxu1  ;;  %8444 = vmatpush3.bf16.msra.mxu0 %v9094_v48 }
 0x64c   : > { %v1738_v21 = vadd.f32 %v7519_v42, %v1737_v17  ;;  %8445 = vmatprep.subr.bf16.mxu0 %v9095_v4 }
 0x64d   : > { %v1941_v26 = vpack.c.bf16 %v1746_v23, %v1743_v10  ;;  %8398 = vmatpush3.bf16.msra.mxu1 %v1939_v15 }
 0x64e   : > { %v1940_v27 = vpack.c.bf16 %v1738_v21, %v1735_v22 }
 0x64f   : > { %8446 = vmatpush3.bf16.msra.mxu0 %v9095_v4 }
 0x650   : > { %8399 = vmatprep.subr.bf16.mxu1 %v1940_v27 }
 0x651   : > { %8400 = vmatpush3.bf16.msra.mxu1 %v1940_v27  ;;  %8440 = vmatmul.mubr.msk.bf16.gmra.mrb[44].mxu0 %vm791_vm1, %v9853_v50 }
 0x652   : > { %8401 = vmatprep.subr.bf16.mxu1 %v1941_v26  ;;  %8447 = vmatprep.mubr.msk.bf16.mxu0 %vm791_vm1, %v9828_v8 }
 0x655   : > { %8402 = vmatpush3.bf16.msra.mxu1 %v1941_v26 }
 0x659   : > { %8448 = vmatmul.mubr.msk.bf16.vlgmr.msra.gmra.mrb[48].mxu0 %vm791_vm1, %v9836_v18 }
 0x65a   : > { %8451 = vmatprep.mubr.msk.bf16.mxu0 %vm791_vm1, %v9847_v46 }
 0x661   : > { %8452 = vmatmul.mubr.msk.bf16.gmra.mrb[52].mxu0 %vm791_vm1, %v9853_v50 }
 0x70c   : > { %v10056_v38 = vpop.f32.mrb[32].mxu0 }
 0x70d   : > { %v10058_v28 = vpop.f32.mrb[33].mxu0  ;;  %v1852_v16 = vsel %vm1300_vm3, %v10056_v38, -inf }
 0x70e   : > { %v10060_v29 = vpop.f32.mrb[34].mxu0  ;;  %v1846_v31 = vsel %vm1300_vm3, %v10058_v28, -inf }
 0x70f   : > { %1847 = vmax.xlane.f32.xlu0 %v1846_v31  ;;  %v10064_v0 = vpop.f32.mrb[35].mxu0  ;;  %v1855_v37 = vsel %vm1300_vm3, %v10060_v29, -inf }
 0x710   : > { %v1849_v48 = vsel %vm1300_vm3, %v10064_v0, -inf }
 0x711   : > { %1850 = vmax.xlane.f32.xlu1 %v1849_v48 }
 0x713   : > { %1853 = vmax.xlane.f32.xlu0 %v1852_v16 }
 0x714   : > { %v10070_v34 = vpop.f32.mrb[36].mxu0 }
 0x715   : > { %1856 = vmax.xlane.f32.xlu1 %v1855_v37  ;;  %v10074_v45 = vpop.f32.mrb[37].mxu0  ;;  %v1864_v33 = vsel %vm1300_vm3, %v10070_v34, -inf }
 0x716   : > { %v10076_v40 = vpop.f32.mrb[38].mxu0  ;;  %v1858_v42 = vsel %vm1300_vm3, %v10074_v45, -inf }
 0x717   : > { %1859 = vmax.xlane.f32.xlu0 %v1858_v42  ;;  %v10080_v44 = vpop.f32.mrb[39].mxu0  ;;  %v1867_v47 = vsel %vm1300_vm3, %v10076_v40, -inf }
 0x718   : > { %v1861_v57 = vsel %vm1300_vm3, %v10080_v44, -inf }
 0x719   : > { %1862 = vmax.xlane.f32.xlu1 %v1861_v57 }
 0x71b   : > { %1865 = vmax.xlane.f32.xlu0 %v1864_v33  ;;  %v7560_v33 = vld [vmem:[%s11668_s9 + $0x2] ss:$0 sm:$0xff] }
 0x71c   : > { %v8437_v36 = vpop.f32.mrb[40].mxu0 }
 0x71d   : > { %v2245_v25 = vpop.f32.mrb[41].mxu0  ;;  %1868 = vmax.xlane.f32.xlu1 %v1867_v47  ;;  %v2254_v1 = vadd.f32 %v8437_v36, %v7548_v32 }
 0x71e   : > { %v8438_v15 = vpop.f32.mrb[42].mxu0  ;;  %v2246_v9 = vadd.f32 %v7548_v32, %v2245_v25 }
 0x71f   : > { %v2257_v3 = vadd.f32 %v8438_v15, %v7548_v32  ;;  %v2248_v4 = vpop.f32.mrb[43].mxu0 }
 0x720   : > { %v2249_v6 = vadd.f32 %v7548_v32, %v2248_v4 }
 0x721   : > { %v2457_v10 = vpack.c.bf16 %v2257_v3, %v2254_v1 }
 0x722   : > { %v2456_v23 = vpack.c.bf16 %v2249_v6, %v2246_v9 }
 0x724   : > { %v8441_v17 = vpop.f32.mrb[44].mxu0  ;;  %8475 = vmatprep.mubr.msk.bf16.mxu0 %vm1210_vm2, %v2456_v23 }
 0x725   : > { %v2261_v22 = vpop.f32.mrb[45].mxu0  ;;  %v2270_v26 = vadd.f32 %v8441_v17, %v7548_v32 }
 0x726   : > { %v8442_v21 = vpop.f32.mrb[46].mxu0  ;;  %v2262_v48 = vadd.f32 %v7548_v32, %v2261_v22 }
 0x727   : > { %v2273_v27 = vadd.f32 %v8442_v21, %v7548_v32  ;;  %v2264_v31 = vpop.f32.mrb[47].mxu0 }
 0x728   : > { %v2265_v16 = vadd.f32 %v7548_v32, %v2264_v31 }
 0x729   : > { %v2459_v37 = vpack.c.bf16 %v2273_v27, %v2270_v26 }
 0x72a   : > { %v2458_v42 = vpack.c.bf16 %v2265_v16, %v2262_v48 }
 0x72c   : > { %v8449_v57 = vpop.f32.mrb[48].mxu0 }
 0x72d   : > { %v2335_v36 = vpop.f32.mrb[49].mxu0  ;;  %v2344_v25 = vadd.f32 %v8449_v57, %v7560_v33 }
 0x72e   : > { %v8450_v47 = vpop.f32.mrb[50].mxu0  ;;  %v2336_v3 = vadd.f32 %v7560_v33, %v2335_v36 }
 0x72f   : > { %v2347_v15 = vadd.f32 %v8450_v47, %v7560_v33  ;;  %v2338_v1 = vpop.f32.mrb[51].mxu0 }
 0x730   : > { %v2339_v4 = vadd.f32 %v7560_v33, %v2338_v1  ;;  %v9098_v1 = vld [vmem:[%s11669_s10 + $0x30] sm:$0xff]  }
 0x731   : > { %v2461_v9 = vpack.c.bf16 %v2347_v15, %v2344_v25  ;;  %v9096_v25 = vld [vmem:[%s11665_s6 + $0x30] sm:$0xff]  }
 0x732   : > { %v2460_v6 = vpack.c.bf16 %v2339_v4, %v2336_v3  ;;  %v9099_v3 = vld [vmem:[%s11669_s10 + $0x38] sm:$0xff]  }
 0x733   : > { %v2480_v36 = vsel %vm1210_vm2, %v2461_v9, 0 }
 0x734   : > { %v8453_v23 = vpop.f32.mrb[52].mxu0  ;;  %9041 = vmatprep.subr.msk.bf16.mxu0 %vm1210_vm2, %v2460_v6  ;;  %v2477_v32 = vsel %vm1210_vm2, %v2460_v6, 0 }
 0x735   : > { %v2351_v17 = vpop.f32.mrb[53].mxu0  ;;  %8468 = vmatpush3.bf16.xpose.msra.mxu0 %v2477_v32  ;;  %v2360_v21 = vadd.f32 %v8453_v23, %v7560_v33 }
 0x736   : > { %v8454_v22 = vpop.f32.mrb[54].mxu0  ;;  %9042 = vmatprep.subr.msk.bf16.mxu0 %vm1210_vm2, %v2461_v9  ;;  %v2352_v31 = vadd.f32 %v7560_v33, %v2351_v17 }
 0x737   : > { %v2363_v26 = vadd.f32 %v8454_v22, %v7560_v33  ;;  %v2354_v27 = vpop.f32.mrb[55].mxu0 }
 0x738   : > { %v2355_v48 = vadd.f32 %v7560_v33, %v2354_v27  ;;  %v9097_v33 = vld [vmem:[%s11665_s6 + $0x38] sm:$0xff]  }
 0x739   : > { %v2463_v16 = vpack.c.bf16 %v2363_v26, %v2360_v21 }
 0x73a   : > { %v2462_v57 = vpack.c.bf16 %v2355_v48, %v2352_v31 }
 0x73b   : > { %v2486_v15 = vsel %vm1210_vm2, %v2463_v16, 0 }
 0x73c   : > { %v2483_v47 = vsel %vm1210_vm2, %v2462_v57, 0 }
 0x73d   : > { %8470 = vmatpush3.bf16.xpose.msra.mxu0 %v2480_v36 }
 0x73e   : > { %9043 = vmatprep.subr.msk.bf16.mxu0 %vm1210_vm2, %v2462_v57 }
 0x745   : > { %8472 = vmatpush3.bf16.xpose.msra.mxu0 %v2483_v47 }
 0x746   : > { %9044 = vmatprep.subr.msk.bf16.mxu0 %vm1210_vm2, %v2463_v16 }
 0x74d   : > { %8474 = vmatpush3.bf16.xpose.msra.mxu0 %v2486_v15 }
 0x74e   : > { %8509 = vmatprep.subr.bf16.mxu0 %v9096_v25 }
 0x754   : > { %8476 = vmatmul.mubr.msk.bf16.vlgmr.msra.gmra.mrb[56].mxu0 %vm1210_vm2, %v2457_v10 }
 0x755   : > { %8479 = vmatprep.mubr.msk.bf16.mxu0 %vm1210_vm2, %v2458_v42  ;;  %8510 = vmatpush3.bf16.msra.mxu0 %v9096_v25 }
 0x756   : > { %8511 = vmatprep.subr.bf16.mxu0 %v9097_v33 }
 0x759   : > { %8512 = vmatpush3.bf16.msra.mxu0 %v9097_v33 }
 0x75a   : > { %8533 = vmatprep.subr.bf16.mxu0 %v9098_v1 }
 0x75c   : > { %8480 = vmatmul.mubr.msk.bf16.gmra.mrb[60].mxu0 %vm1210_vm2, %v2459_v37 }
 0x75d   : > { %8513 = vmatprep.mubr.msk.bf16.mxu0 %vm791_vm1, %v9828_v8 }
 0x764   : > { %8514 = vmatmul.mubr.msk.bf16.vlgmr.msra.gmra.mrb[64].mxu0 %vm791_vm1, %v9836_v18 }
 0x765   : > { %8517 = vmatprep.mubr.msk.bf16.mxu0 %vm791_vm1, %v9847_v46  ;;  %8534 = vmatpush3.bf16.msra.mxu0 %v9098_v1 }
 0x766   : > { %8535 = vmatprep.subr.bf16.mxu0 %v9099_v3 }
 0x769   : > { %8536 = vmatpush3.bf16.msra.mxu0 %v9099_v3 }
 0x76c   : > { %8518 = vmatmul.mubr.msk.bf16.gmra.mrb[68].mxu0 %vm791_vm1, %v9853_v50 }
 0x76d   : > { %8537 = vmatprep.mubr.msk.bf16.mxu0 %vm791_vm1, %v9828_v8 }
 0x774   : > { %8538 = vmatmul.mubr.msk.bf16.vlgmr.msra.gmra.mrb[72].mxu0 %vm791_vm1, %v9836_v18 }
 0x775   : > { %8541 = vmatprep.mubr.msk.bf16.mxu0 %vm791_vm1, %v9847_v46 }
 0x77c   : > { %8542 = vmatmul.mubr.msk.bf16.gmra.mrb[76].mxu0 %vm791_vm1, %v9853_v50 }
 0x79c   : > { %v1848_v10 = vpop.xlane.xlu0 %1847 }
 0x79d   : > { %v1870_v37 = vsub.f32 %v10058_v28, %v1848_v10 }
 0x79e   : > { %v1851_v42 = vpop.xlane.xlu1 %1850 }
 0x79f   : > { %v1878_v4 = vmul.f32 1.442695, %v1870_v37  ;;  %v1871_v9 = vsub.f32 %v10064_v0, %v1851_v42 }
 0x7a0   : > { %v1854_v6 = vpop.xlane.xlu0 %1853 }
 0x7a1   : > { %9198 = vpow2.f32 %v1878_v4  ;;  %v1880_v23 = vmul.f32 1.442695, %v1871_v9  ;;  %v1872_v32 = vsub.f32 %v10056_v38, %v1854_v6 }
 0x7a2   : > { %v1857_v17 = vpop.xlane.xlu1 %1856 }
 0x7a3   : > { %9200 = vpow2.f32 %v1880_v23  ;;  %v1882_v22 = vmul.f32 1.442695, %v1872_v32  ;;  %v1873_v21 = vsub.f32 %v10060_v29, %v1857_v17 }
 0x7a4   : > { %v1860_v26 = vpop.xlane.xlu0 %1859 }
 0x7a5   : > { %9202 = vpow2.f32 %v1882_v22  ;;  %v1884_v27 = vmul.f32 1.442695, %v1873_v21  ;;  %v1874_v31 = vsub.f32 %v10074_v45, %v1860_v26 }
 0x7a6   : > { %v1863_v28 = vpop.xlane.xlu1 %1862 }
 0x7a7   : > { %9204 = vpow2.f32 %v1884_v27  ;;  %v1886_v48 = vmul.f32 1.442695, %v1874_v31  ;;  %v1875_v0 = vsub.f32 %v10080_v44, %v1863_v28 }
 0x7a8   : > { %v1866_v16 = vpop.xlane.xlu0 %1865 }
 0x7a9   : > { %9206 = vpow2.f32 %v1886_v48  ;;  %v1888_v57 = vmul.f32 1.442695, %v1875_v0  ;;  %v1876_v38 = vsub.f32 %v10070_v34, %v1866_v16 }
 0x7aa   : > { %v1869_v36 = vpop.xlane.xlu1 %1868 }
 0x7ab   : > { %v10141_v47 = vpop.eup %9198  ;;  %9208 = vpow2.f32 %v1888_v57  ;;  %v1890_v29 = vmul.f32 1.442695, %v1876_v38  ;;  %v1877_v25 = vsub.f32 %v10076_v40, %v1869_v36 }
 0x7ac   : > { %v1894_v45 = vsel %vm1300_vm3, %v10141_v47, 0.0 }
 0x7ad   : > { %v10146_v15 = vpop.eup %9200  ;;  %9210 = vpow2.f32 %v1890_v29  ;;  %v1892_v33 = vmul.f32 1.442695, %v1877_v25  ;;  %1895 = vadd.xlane.f32.xlu0 %v1894_v45  ;;  %v7597_v45 = vld [vmem:[%s11666_s7 + $0x3] ss:$0 sm:$0xff] }
 0x7ae   : > { %v1897_v44 = vsel %vm1300_vm3, %v10146_v15, 0.0 }
 0x7af   : > { %v10150_v1 = vpop.eup %9202  ;;  %9212 = vpow2.f32 %v1892_v33  ;;  %1898 = vadd.xlane.f32.xlu1 %v1897_v44 }
 0x7b0   : > { %v1900_v34 = vsel %vm1300_vm3, %v10150_v1, 0.0 }
 0x7b1   : > { %v10154_v3 = vpop.eup %9204  ;;  %1901 = vadd.xlane.f32.xlu0 %v1900_v34 }
 0x7b2   : > { %v1903_v40 = vsel %vm1300_vm3, %v10154_v3, 0.0 }
 0x7b3   : > { %v10158_v10 = vpop.eup %9206  ;;  %1904 = vadd.xlane.f32.xlu1 %v1903_v40 }
 0x7b4   : > { %v1906_v37 = vsel %vm1300_vm3, %v10158_v10, 0.0 }
 0x7b5   : > { %v10162_v42 = vpop.eup %9208  ;;  %1907 = vadd.xlane.f32.xlu0 %v1906_v37 }
 0x7b6   : > { %v1909_v4 = vsel %vm1300_vm3, %v10162_v42, 0.0 }
 0x7b7   : > { %v10166_v9 = vpop.eup %9210  ;;  %1910 = vadd.xlane.f32.xlu1 %v1909_v4 }
 0x7b8   : > { %v1912_v6 = vsel %vm1300_vm3, %v10166_v9, 0.0 }
 0x7b9   : > { %v10170_v23 = vpop.eup %9212  ;;  %1913 = vadd.xlane.f32.xlu0 %v1912_v6 }
 0x7ba   : > { %v1915_v32 = vsel %vm1300_vm3, %v10170_v23, 0.0 }
 0x7bb   : > { %1916 = vadd.xlane.f32.xlu1 %v1915_v32 }
 0x827   : > { %v10174_v17 = vpop.f32.mrb[56].mxu0 }
 0x828   : > { %v10176_v22 = vpop.f32.mrb[57].mxu0  ;;  %v2559_v28 = vsel %vm1300_vm3, %v10174_v17, -inf }
 0x829   : > { %v10178_v21 = vpop.f32.mrb[58].mxu0  ;;  %v2553_v26 = vsel %vm1300_vm3, %v10176_v22, -inf }
 0x82a   : > { %2554 = vmax.xlane.f32.xlu0 %v2553_v26  ;;  %v10182_v27 = vpop.f32.mrb[59].mxu0  ;;  %v2562_v0 = vsel %vm1300_vm3, %v10178_v21, -inf }
 0x82b   : > { %v2556_v31 = vsel %vm1300_vm3, %v10182_v27, -inf }
 0x82c   : > { %2557 = vmax.xlane.f32.xlu1 %v2556_v31 }
 0x82e   : > { %2560 = vmax.xlane.f32.xlu0 %v2559_v28 }
 0x82f   : > { %v10188_v48 = vpop.f32.mrb[60].mxu0 }
 0x830   : > { %v10192_v16 = vpop.f32.mrb[61].mxu0  ;;  %2563 = vmax.xlane.f32.xlu1 %v2562_v0  ;;  %v2571_v25 = vsel %vm1300_vm3, %v10188_v48, -inf }
 0x831   : > { %v10194_v57 = vpop.f32.mrb[62].mxu0  ;;  %v2565_v38 = vsel %vm1300_vm3, %v10192_v16, -inf }
 0x832   : > { %2566 = vmax.xlane.f32.xlu0 %v2565_v38  ;;  %v10198_v36 = vpop.f32.mrb[63].mxu0  ;;  %v2574_v44 = vsel %vm1300_vm3, %v10194_v57, -inf }
 0x833   : > { %v2568_v29 = vsel %vm1300_vm3, %v10198_v36, -inf }
 0x834   : > { %2569 = vmax.xlane.f32.xlu1 %v2568_v29 }
 0x836   : > { %2572 = vmax.xlane.f32.xlu0 %v2571_v25 }
 0x837   : > { %v8515_v33 = vpop.f32.mrb[64].mxu0 }
 0x838   : > { %v10209_v34 = vadd.f32 %v8515_v33, %v7597_v45  ;;  %v2879_v40 = vpop.f32.mrb[65].mxu0  ;;  %2575 = vmax.xlane.f32.xlu1 %v2574_v44 }
 0x839   : > { %v8516_v37 = vpop.f32.mrb[66].mxu0  ;;  %v10213_v26 = vadd.f32 %v7597_v45, %v2879_v40 }
 0x83a   : > { %v10211_v4 = vadd.f32 %v8516_v37, %v7597_v45  ;;  %v1896_v6 = vpop.xlane.xlu0 %1895  ;;  %v2882_v32 = vpop.f32.mrb[67].mxu0 }
 0x83b   : > { %9214 = vrcp.f32 %v1896_v6  ;;  %v10215_v31 = vadd.f32 %v7597_v45, %v2882_v32 }
 0x83c   : > { %v1899_v0 = vpop.xlane.xlu1 %1898 }
 0x83d   : > { %9216 = vrcp.f32 %v1899_v0 }
 0x83e   : > { %v1902_v29 = vpop.xlane.xlu0 %1901 }
 0x83f   : > { %9218 = vrcp.f32 %v1902_v29  ;;  %v8519_v25 = vpop.f32.mrb[68].mxu0 }
 0x840   : > { %v10221_v33 = vadd.f32 %v8519_v25, %v7597_v45  ;;  %v2895_v44 = vpop.f32.mrb[69].mxu0  ;;  %v1905_v37 = vpop.xlane.xlu1 %1904 }
 0x841   : > { %v10223_v40 = vadd.f32 %v7597_v45, %v2895_v44  ;;  %9220 = vrcp.f32 %v1905_v37  ;;  %v8520_v6 = vpop.f32.mrb[70].mxu0 }
 0x842   : > { %v10225_v32 = vadd.f32 %v8520_v6, %v7597_v45  ;;  %v1908_v7 = vpop.xlane.xlu0 %1907  ;;  %v2898_v28 = vpop.f32.mrb[71].mxu0  ;;  %v7621_v6 = vld [vmem:[%s11670_s11 + $0x3] ss:$0 sm:$0xff] }
 0x843   : > { %9222 = vrcp.f32 %v1908_v7  ;;  %v10227_v60 = vadd.f32 %v7597_v45, %v2898_v28 }
 0x844   : > { %v1911_v29 = vpop.xlane.xlu1 %1910 }
 0x845   : > { %v9215_v38 = vpop.eup %9214  ;;  %9224 = vrcp.f32 %v1911_v29 }
 0x846   : > { %v1914_v44 = vpop.xlane.xlu0 %1913  ;;  %v1926_v28 = vmul.f32 %v9215_v38, %v10141_v47 }
 0x847   : > { %v9217_v63 = vpop.eup %9216  ;;  %9226 = vrcp.f32 %v1914_v44  ;;  %v8539_v37 = vpop.f32.mrb[72].mxu0 }
 0x848   : > { %v3059_v7 = vpop.f32.mrb[73].mxu0  ;;  %v1917_v45 = vpop.xlane.xlu1 %1916  ;;  %v1927_v0 = vmul.f32 %v9217_v63, %v10146_v15  ;;  %v3068_v19 = vadd.f32 %v8539_v37, %v7621_v6 }
 0x849   : > { %v9219_v52 = vpop.eup %9218  ;;  %9228 = vrcp.f32 %v1917_v45  ;;  %v8540_v53 = vpop.f32.mrb[74].mxu0  ;;  %v3060_v44 = vadd.f32 %v7621_v6, %v3059_v7 }
 0x84a   : > { %v3071_v25 = vadd.f32 %v8540_v53, %v7621_v6  ;;  %v3062_v29 = vpop.f32.mrb[75].mxu0  ;;  %v1934_v24 = vpack.c.bf16 %v1927_v0, %v1926_v28  ;;  %v1928_v12 = vmul.f32 %v9219_v52, %v10150_v1 }
 0x84b   : > { %v9221_v14 = vpop.eup %9220  ;;  %v3063_v13 = vadd.f32 %v7621_v6, %v3062_v29  ;;  %v7534_v29 = vld [vmem:[%s11671_s12 + $0x4] sm:$0xf] }
 0x84c   : > { %v1929_v30 = vmul.f32 %v9221_v14, %v10154_v3  ;;  %v3280_v61 = vpack.c.bf16 %v3071_v25, %v3068_v19  ;;  %8403 = vmatprep.mubr.msk.bf16.mxu1 %vm1300_vm3, %v1934_v24  ;;  %9039 = vmatprep.subr.msk.bf16.mxu1 %vm2037_vm4, %v7534_v29 }
 0x84d   : > { %v9223_v47 = vpop.eup %9222  ;;  %v3279_v38 = vpack.c.bf16 %v3063_v13, %v3060_v44 }
 0x84e   : > { %v1935_v63 = vpack.c.bf16 %v1929_v30, %v1928_v12  ;;  %v1930_v0 = vmul.f32 %v9223_v47, %v10158_v10 }
 0x84f   : > { %v9225_v15 = vpop.eup %9224  ;;  %v8543_v45 = vpop.f32.mrb[76].mxu0  ;;  %8561 = vmatprep.subr.bf16.mxu0 %v3279_v38 }
 0x850   : > { %8404 = vmatmul.mubr.msk.bf16.vlgmr.msra.gmra.mrb[40].mxu1 %vm1300_vm3, %v1935_v63  ;;  %v3075_v53 = vpop.f32.mrb[77].mxu0  ;;  %8562 = vmatpush3.bf16.msra.mxu0 %v3279_v38  ;;  %v1931_v37 = vmul.f32 %v9225_v15, %v10162_v42  ;;  %v3084_v14 = vadd.f32 %v8543_v45, %v7621_v6 }
 0x851   : > { %v9227_v52 = vpop.eup %9226  ;;  %v8544_v1 = vpop.f32.mrb[78].mxu0  ;;  %8563 = vmatprep.subr.bf16.mxu0 %v3280_v61  ;;  %v3076_v12 = vadd.f32 %v7621_v6, %v3075_v53 }
 0x852   : > { %v3087_v19 = vadd.f32 %v8544_v1, %v7621_v6  ;;  %v3078_v24 = vpop.f32.mrb[79].mxu0  ;;  %v1936_v3 = vpack.c.bf16 %v1931_v37, %v1930_v0  ;;  %v1932_v7 = vmul.f32 %v9227_v52, %v10166_v9 }
 0x853   : > { %v9229_v13 = vpop.eup %9228  ;;  %v3079_v30 = vadd.f32 %v7621_v6, %v3078_v24  ;;  %v2039_v6 = vsel %vm2037_vm4, %v7534_v29, 0 }
 0x854   : > { %v3282_v25 = vpack.c.bf16 %v3087_v19, %v3084_v14  ;;  %8407 = vmatprep.mubr.msk.bf16.mxu1 %vm1300_vm3, %v1936_v3  ;;  %8564 = vmatpush3.bf16.msra.mxu0 %v3280_v61  ;;  %v1933_v10 = vmul.f32 %v9229_v13, %v10170_v23  ;;  %v10256_v61 = vld [vmem:[%s11671_s12] sm:$0xf] }
 0x855   : > { %v3281_v28 = vpack.c.bf16 %v3079_v30, %v3076_v12  ;;  %8412 = vmatpush3.bf16.msra.mxu1 %v2039_v6 }
 0x856   : > { %v1937_v42 = vpack.c.bf16 %v1933_v10, %v1932_v7  ;;  %9040 = vmatprep.subr.msk.bf16.mxu1 %vm2037_vm4, %v10256_v61 }
 0x857   : > { %8565 = vmatprep.subr.bf16.mxu0 %v3281_v28 }
 0x858   : > { %8408 = vmatmul.mubr.msk.bf16.gmra.mrb[44].mxu1 %vm1300_vm3, %v1937_v42  ;;  %8566 = vmatpush3.bf16.msra.mxu0 %v3281_v28 }
 0x859   : > { %8567 = vmatprep.subr.bf16.mxu0 %v3282_v25 }
 0x85c   : > { %8568 = vmatpush3.bf16.msra.mxu0 %v3282_v25 }
 0x8b7   : > { %v2555_v9 = vpop.xlane.xlu0 %2554 }
 0x8b8   : > { %v2577_v23 = vsub.f32 %v10176_v22, %v2555_v9 }
 0x8b9   : > { %v2558_v44 = vpop.xlane.xlu1 %2557 }
 0x8ba   : > { %v2585_v47 = vmul.f32 1.442695, %v2577_v23  ;;  %v2578_v38 = vsub.f32 %v10182_v27, %v2558_v44 }
 0x8bb   : > { %v2561_v63 = vpop.xlane.xlu0 %2560 }
 0x8bc   : > { %9230 = vpow2.f32 %v2585_v47  ;;  %v2587_v15 = vmul.f32 1.442695, %v2578_v38  ;;  %v2579_v45 = vsub.f32 %v10174_v17, %v2561_v63 }
 0x8bd   : > { %v2564_v53 = vpop.xlane.xlu1 %2563 }
 0x8be   : > { %9232 = vpow2.f32 %v2587_v15  ;;  %v2589_v0 = vmul.f32 1.442695, %v2579_v45  ;;  %v2580_v37 = vsub.f32 %v10178_v21, %v2564_v53 }
 0x8bf   : > { %v2567_v52 = vpop.xlane.xlu0 %2566 }
 0x8c0   : > { %9234 = vpow2.f32 %v2589_v0  ;;  %v2591_v1 = vmul.f32 1.442695, %v2580_v37  ;;  %v2581_v14 = vsub.f32 %v10192_v16, %v2567_v52  ;;  %v2119_v52 = vsel %vm2037_vm4, %v10256_v61, 0 }
 0x8c1   : > { %v2570_v22 = vpop.xlane.xlu1 %2569  ;;  %v11710_v61 = vpack.c.bf16 %v10005_v20, %v9999_v11  ;;  %v11713_v11 = vpack.c.bf16 %v10013_v56, %v10009_v54 }
 0x8c2   : > { %9236 = vpow2.f32 %v2591_v1  ;;  %v2593_v19 = vmul.f32 1.442695, %v2581_v14  ;;  %v2582_v27 = vsub.f32 %v10198_v36, %v2570_v22  ;;  %v9100_v1 = vld [vmem:[%s11669_s10 + $0x20] sm:$0xff]  }
 0x8c3   : > { %v2573_v24 = vpop.xlane.xlu0 %2572 }
 0x8c4   : > { %9238 = vpow2.f32 %v2593_v19  ;;  %v2595_v3 = vmul.f32 1.442695, %v2582_v27  ;;  %v2583_v17 = vsub.f32 %v10188_v48, %v2573_v24 }
 0x8c5   : > { %v2576_v13 = vpop.xlane.xlu1 %2575 }
 0x8c6   : > { %v10267_v12 = vpop.eup %9230  ;;  %9240 = vpow2.f32 %v2595_v3  ;;  %v2597_v21 = vmul.f32 1.442695, %v2583_v17  ;;  %v2584_v30 = vsub.f32 %v10194_v57, %v2576_v13  ;;  %v9101_v17 = vld [vmem:[%s11669_s10 + $0x28] sm:$0xff]   ;;  %v11711_v13 = vpack.c.bf16 %v10001_v51, %v9997_v49 }
 0x8c7   : > { %v2601_v16 = vsel %vm1300_vm3, %v10267_v12, 0.0 }
 0x8c8   : > { %v10272_v25 = vpop.eup %9232  ;;  %9242 = vpow2.f32 %v2597_v21  ;;  %v2599_v7 = vmul.f32 1.442695, %v2584_v30  ;;  %2602 = vadd.xlane.f32.xlu0 %v2601_v16  ;;  %v11712_v21 = vpack.c.bf16 %v10017_v5, %v10011_v55 }
 0x8c9   : > { %v2604_v36 = vsel %vm1300_vm3, %v10272_v25, 0.0 }
 0x8ca   : > { %v10276_v10 = vpop.eup %9234  ;;  %9244 = vpow2.f32 %v2599_v7  ;;  %2605 = vadd.xlane.f32.xlu1 %v2604_v36  ;;  %v7572_v36 = vld [vmem:[%s11670_s11 + $0x2] ss:$0 sm:$0xff] }
 0x8cb   : > { %v2607_v48 = vsel %vm1300_vm3, %v10276_v10, 0.0 }
 0x8cc   : > { %v10280_v28 = vpop.eup %9236  ;;  %2608 = vadd.xlane.f32.xlu0 %v2607_v48 }
 0x8cd   : > { %v2610_v57 = vsel %vm1300_vm3, %v10280_v28, 0.0 }
 0x8ce   : > { %v10284_v42 = vpop.eup %9238  ;;  %2611 = vadd.xlane.f32.xlu1 %v2610_v57 }
 0x8cf   : > { %v2613_v29 = vsel %vm1300_vm3, %v10284_v42, 0.0 }
 0x8d0   : > { %v10288_v6 = vpop.eup %9240  ;;  %2614 = vadd.xlane.f32.xlu0 %v2613_v29 }
 0x8d1   : > { %v2616_v9 = vsel %vm1300_vm3, %v10288_v6, 0.0 }
 0x8d2   : > { %v10292_v23 = vpop.eup %9242  ;;  %2617 = vadd.xlane.f32.xlu1 %v2616_v9 }
 0x8d3   : > { %v2619_v44 = vsel %vm1300_vm3, %v10292_v23, 0.0 }
 0x8d4   : > { %v10296_v47 = vpop.eup %9244  ;;  %2620 = vadd.xlane.f32.xlu0 %v2619_v44 }
 0x8d5   : > { %v2622_v38 = vsel %vm1300_vm3, %v10296_v47, 0.0 }
 0x8d6   : > { %2623 = vadd.xlane.f32.xlu1 %v2622_v38 }
 0x923   : > { %v8405_v63 = vpop.f32.mrb[40].mxu1 }
 0x924   : > { %v1988_v15 = vpop.f32.mrb[41].mxu1 }
 0x925   : > { %v8406_v45 = vpop.f32.mrb[42].mxu1 }
 0x926   : > { %v2020_v53 = vpack.c.bf16 %v8406_v45, %v8405_v63  ;;  %v1991_v0 = vpop.f32.mrb[43].mxu1 }
 0x927   : > { %v2019_v37 = vpack.c.bf16 %v1991_v0, %v1988_v15 }
 0x929   : > { %8413 = vmatprep.mubr.msk.bf16.mxu1 %vm1210_vm2, %v2019_v37 }
 0x92a   : > { %8414 = vmatmul.mubr.msk.bf16.vlgmr.msra.gmra.mrb[48].mxu1 %vm1210_vm2, %v2020_v53 }
 0x92b   : > { %v8409_v14 = vpop.f32.mrb[44].mxu1  ;;  %8422 = vmatpush3.bf16.msra.mxu1 %v2119_v52 }
 0x92c   : > { %v2004_v22 = vpop.f32.mrb[45].mxu1  ;;  %8455 = vmatprep.subr.bf16.mxu1 %v9100_v1 }
 0x92d   : > { %v8410_v19 = vpop.f32.mrb[46].mxu1 }
 0x92e   : > { %v2022_v27 = vpack.c.bf16 %v8410_v19, %v8409_v14  ;;  %v2007_v24 = vpop.f32.mrb[47].mxu1 }
 0x92f   : > { %v2021_v3 = vpack.c.bf16 %v2007_v24, %v2004_v22 }
 0x931   : > { %8417 = vmatprep.mubr.msk.bf16.mxu1 %vm1210_vm2, %v2021_v3 }
 0x932   : > { %8418 = vmatmul.mubr.msk.bf16.gmra.mrb[52].mxu1 %vm1210_vm2, %v2022_v27 }
 0x933   : > { %8423 = vmatprep.mubr.msk.bf16.mxu1 %vm1210_vm2, %v11710_v61 }
 0x93a   : > { %8424 = vmatmul.mubr.msk.bf16.vlgmr.msra.gmra.mrb[48].mxu1 %vm1210_vm2, %v11711_v13 }
 0x93b   : > { %8427 = vmatprep.mubr.msk.bf16.mxu1 %vm1210_vm2, %v11712_v21  ;;  %8456 = vmatpush3.bf16.msra.mxu1 %v9100_v1 }
 0x93c   : > { %8457 = vmatprep.subr.bf16.mxu1 %v9101_v17 }
 0x93f   : > { %8458 = vmatpush3.bf16.msra.mxu1 %v9101_v17 }
 0x942   : > { %8428 = vmatmul.mubr.msk.bf16.gmra.mrb[52].mxu1 %vm1210_vm2, %v11713_v11 }
 0x943   : > { %8459 = vmatprep.mubr.msk.bf16.mxu1 %vm791_vm1, %v9828_v8 }
 0x94a   : > { %8460 = vmatmul.mubr.msk.bf16.vlgmr.msra.gmra.mrb[56].mxu1 %vm791_vm1, %v9836_v18 }
 0x94b   : > { %8463 = vmatprep.mubr.msk.bf16.mxu1 %vm791_vm1, %v9847_v46 }
 0x952   : > { %8464 = vmatmul.mubr.msk.bf16.gmra.mrb[60].mxu1 %vm791_vm1, %v9853_v50 }
 0x955   : > { %v2603_v49 = vpop.xlane.xlu0 %2602 }
 0x956   : > { %9246 = vrcp.f32 %v2603_v49 }
 0x957   : > { %v2606_v51 = vpop.xlane.xlu1 %2605 }
 0x958   : > { %9248 = vrcp.f32 %v2606_v51 }
 0x959   : > { %v2609_v16 = vpop.xlane.xlu0 %2608 }
 0x95b   : > { %v2612_v30 = vpop.xlane.xlu1 %2611 }
 0x95c   : > { %9250 = vrcp.f32 %v2612_v30 }
 0x95f   : > { %v2618_v29 = vpop.xlane.xlu1 %2617 }
 0x960   : > { %v9247_v20 = vpop.eup %9246  ;;  %9252 = vrcp.f32 %v2618_v29 }
 0x961   : > { %v2633_v55 = vmul.f32 %v9247_v20, %v10267_v12  ;;  %9254 = vrcp.f32 %v2609_v16  ;;  %v7587_v20 = vld [vmem:[%s11671_s12 + $0x8] sm:$0xf] }
 0x962   : > { %v9249_v54 = vpop.eup %9248 }
 0x963   : > { %v2634_v56 = vmul.f32 %v9249_v54, %v10272_v25  ;;  %v2615_v25 = vpop.xlane.xlu0 %2614  ;;  %v2624_v37 = vpop.xlane.xlu1 %2623 }
 0x964   : > { %9256 = vrcp.f32 %v2615_v25 }
 0x965   : > { %v2641_v5 = vpack.c.bf16 %v2634_v56, %v2633_v55  ;;  %9258 = vrcp.f32 %v2624_v37 }
 0x966   : > { %v9251_v17 = vpop.eup %9250 }
 0x967   : > { %8491 = vmatprep.mubr.msk.bf16.mxu1 %vm1300_vm3, %v2641_v5  ;;  %v2621_v19 = vpop.xlane.xlu0 %2620  ;;  %v2636_v49 = vmul.f32 %v9251_v17, %v10280_v28  ;;  %v2745_v5 = vsel %vm2037_vm4, %v7587_v20, 0 }
 0x968   : > { %9260 = vrcp.f32 %v2621_v19 }
 0x96a   : > { %v9253_v13 = vpop.eup %9252 }
 0x96b   : > { %v9255_v21 = vpop.eup %9254  ;;  %v2638_v51 = vmul.f32 %v9253_v13, %v10288_v6 }
 0x96c   : > { %v2635_v54 = vmul.f32 %v9255_v21, %v10276_v10 }
 0x96e   : > { %v9257_v11 = vpop.eup %9256  ;;  %v2642_v56 = vpack.c.bf16 %v2636_v49, %v2635_v54  ;;  %v11715_v54 = vpack.c.bf16 %v10211_v4, %v10209_v34 }
 0x96f   : > { %v2637_v55 = vmul.f32 %v9257_v11, %v10284_v42  ;;  %v9259_v30 = vpop.eup %9258  ;;  %v9102_v42 = vld [vmem:[%s11667_s8 + $0x30] sm:$0xff]  }
 0x970   : > { %v2640_v6 = vmul.f32 %v9259_v30, %v10296_v47  ;;  %v9103_v47 = vld [vmem:[%s11667_s8 + $0x38] sm:$0xff]  }
 0x971   : > { %v2643_v16 = vpack.c.bf16 %v2638_v51, %v2637_v55  ;;  %v11716_v55 = vpack.c.bf16 %v10227_v60, %v10223_v40 }
 0x972   : > { %v9261_v28 = vpop.eup %9260 }
 0x973   : > { %v2639_v10 = vmul.f32 %v9261_v28, %v10292_v23 }
 0xa1d   : > { %v8461_v7 = vpop.f32.mrb[56].mxu1 }
 0xa1e   : > { %v2425_v48 = vpop.f32.mrb[57].mxu1  ;;  %v2434_v9 = vadd.f32 %v8461_v7, %v7572_v36  ;;  %v2644_v7 = vpack.c.bf16 %v2640_v6, %v2639_v10 }
 0xa1f   : > { %v8462_v57 = vpop.f32.mrb[58].mxu1  ;;  %v2426_v63 = vadd.f32 %v7572_v36, %v2425_v48 }
 0xa20   : > { %v2437_v44 = vadd.f32 %v8462_v57, %v7572_v36  ;;  %v2428_v38 = vpop.f32.mrb[59].mxu1 }
 0xa21   : > { %v2429_v12 = vadd.f32 %v7572_v36, %v2428_v38 }
 0xa22   : > { %v2646_v15 = vpack.c.bf16 %v2437_v44, %v2434_v9 }
 0xa23   : > { %v2645_v45 = vpack.c.bf16 %v2429_v12, %v2426_v63 }
 0xa25   : > { %v8465_v53 = vpop.f32.mrb[60].mxu1  ;;  %8483 = vmatprep.subr.bf16.mxu1 %v2645_v45 }
 0xa26   : > { %v2441_v0 = vpop.f32.mrb[61].mxu1  ;;  %8484 = vmatpush3.bf16.msra.mxu1 %v2645_v45  ;;  %v2450_v1 = vadd.f32 %v8465_v53, %v7572_v36  ;;  %v11714_v45 = vpack.c.bf16 %v10215_v31, %v10213_v26 }
 0xa27   : > { %v8466_v52 = vpop.f32.mrb[62].mxu1  ;;  %8485 = vmatprep.subr.bf16.mxu1 %v2646_v15  ;;  %v2442_v27 = vadd.f32 %v7572_v36, %v2441_v0  ;;  %v7609_v0 = vld [vmem:[%s11668_s9 + $0x3] ss:$0 sm:$0xff] }
 0xa28   : > { %v2453_v14 = vadd.f32 %v8466_v52, %v7572_v36  ;;  %v2444_v22 = vpop.f32.mrb[63].mxu1 }
 0xa29   : > { %v2445_v24 = vadd.f32 %v7572_v36, %v2444_v22 }
 0xa2a   : > { %v2648_v3 = vpack.c.bf16 %v2453_v14, %v2450_v1  ;;  %8486 = vmatpush3.bf16.msra.mxu1 %v2646_v15 }
 0xa2b   : > { %v2647_v61 = vpack.c.bf16 %v2445_v24, %v2442_v27 }
 0xa2d   : > { %8487 = vmatprep.subr.bf16.mxu1 %v2647_v61 }
 0xa2e   : > { %8488 = vmatpush3.bf16.msra.mxu1 %v2647_v61 }
 0xa2f   : > { %8489 = vmatprep.subr.bf16.mxu1 %v2648_v3 }
 0xa32   : > { %8490 = vmatpush3.bf16.msra.mxu1 %v2648_v3 }
 0xa33   : > { %9045 = vmatprep.subr.msk.bf16.mxu1 %vm2037_vm4, %v7587_v20 }
 0xa35   : > { %8492 = vmatmul.mubr.msk.bf16.vlgmr.msra.gmra.mrb[64].mxu1 %vm1300_vm3, %v2642_v56  ;;  %v11717_v56 = vpack.c.bf16 %v10225_v32, %v10221_v33 }
 0xa36   : > { %8495 = vmatprep.mubr.msk.bf16.mxu1 %vm1300_vm3, %v2643_v16  ;;  %8500 = vmatpush3.bf16.msra.mxu1 %v2745_v5 }
 0xa37   : > { %8521 = vmatprep.subr.bf16.mxu1 %v9102_v42 }
 0xa3d   : > { %8496 = vmatmul.mubr.msk.bf16.gmra.mrb[68].mxu1 %vm1300_vm3, %v2644_v7 }
 0xb08   : > { %v8493_v36 = vpop.f32.mrb[64].mxu1 }
 0xb09   : > { %v2695_v48 = vpop.f32.mrb[65].mxu1 }
 0xb0a   : > { %v8494_v57 = vpop.f32.mrb[66].mxu1 }
 0xb0b   : > { %v2727_v29 = vpack.c.bf16 %v8494_v57, %v8493_v36  ;;  %v2698_v9 = vpop.f32.mrb[67].mxu1 }
 0xb0c   : > { %v2726_v44 = vpack.c.bf16 %v2698_v9, %v2695_v48 }
 0xb0e   : > { %8501 = vmatprep.mubr.msk.bf16.mxu1 %vm1210_vm2, %v2726_v44 }
 0xb0f   : > { %8502 = vmatmul.mubr.msk.bf16.vlgmr.msra.gmra.mrb[48].mxu1 %vm1210_vm2, %v2727_v29 }
 0xb10   : > { %v8497_v23 = vpop.f32.mrb[68].mxu1  ;;  %8522 = vmatpush3.bf16.msra.mxu1 %v9102_v42 }
 0xb11   : > { %v2711_v38 = vpop.f32.mrb[69].mxu1  ;;  %8523 = vmatprep.subr.bf16.mxu1 %v9103_v47 }
 0xb12   : > { %v8498_v63 = vpop.f32.mrb[70].mxu1 }
 0xb13   : > { %v2729_v12 = vpack.c.bf16 %v8498_v63, %v8497_v23  ;;  %v2714_v25 = vpop.f32.mrb[71].mxu1 }
 0xb14   : > { %v2728_v15 = vpack.c.bf16 %v2714_v25, %v2711_v38  ;;  %8524 = vmatpush3.bf16.msra.mxu1 %v9103_v47 }
 0xb16   : > { %8505 = vmatprep.mubr.msk.bf16.mxu1 %vm1210_vm2, %v2728_v15 }
 0xb17   : > { %8506 = vmatmul.mubr.msk.bf16.gmra.mrb[52].mxu1 %vm1210_vm2, %v2729_v12 }
 0xb18   : > { %8525 = vmatprep.mubr.msk.bf16.mxu1 %vm791_vm1, %v9828_v8 }
 0xb1f   : > { %8526 = vmatmul.mubr.msk.bf16.vlgmr.msra.gmra.mrb[72].mxu1 %vm791_vm1, %v9836_v18 }
 0xb20   : > { %8529 = vmatprep.mubr.msk.bf16.mxu1 %vm791_vm1, %v9847_v46 }
 0xb27   : > { %8530 = vmatmul.mubr.msk.bf16.gmra.mrb[76].mxu1 %vm791_vm1, %v9853_v50 }
 0xb28   : > { %8553 = vmatprep.mubr.msk.bf16.mxu1 %vm1210_vm2, %v11714_v45 }
 0xbf2   : > { %v8527_v53 = vpop.f32.mrb[72].mxu1 }
 0xbf3   : > { %v2969_v8 = vpop.f32.mrb[73].mxu1  ;;  %v2978_v52 = vadd.f32 %v8527_v53, %v7609_v0 }
 0xbf4   : > { %v8528_v37 = vpop.f32.mrb[74].mxu1  ;;  %v2970_v14 = vadd.f32 %v7609_v0, %v2969_v8 }
 0xbf5   : > { %v2981_v18 = vadd.f32 %v8528_v37, %v7609_v0  ;;  %v2972_v1 = vpop.f32.mrb[75].mxu1 }
 0xbf6   : > { %v2973_v46 = vadd.f32 %v7609_v0, %v2972_v1 }
 0xbf7   : > { %v3095_v22 = vpack.c.bf16 %v2981_v18, %v2978_v52 }
 0xbf8   : > { %v3094_v19 = vpack.c.bf16 %v2973_v46, %v2970_v14 }
 0xbf9   : > { %v3114_v49 = vsel %vm1210_vm2, %v3095_v22, 0 }
 0xbfa   : > { %v8531_v50 = vpop.f32.mrb[76].mxu1  ;;  %9046 = vmatprep.subr.msk.bf16.mxu1 %vm1210_vm2, %v3094_v19  ;;  %v3111_v26 = vsel %vm1210_vm2, %v3094_v19, 0 }
 0xbfb   : > { %v2985_v31 = vpop.f32.mrb[77].mxu1  ;;  %8546 = vmatpush3.bf16.xpose.msra.mxu1 %v3111_v26  ;;  %v2994_v24 = vadd.f32 %v8531_v50, %v7609_v0 }
 0xbfc   : > { %v8532_v27 = vpop.f32.mrb[78].mxu1  ;;  %9047 = vmatprep.subr.msk.bf16.mxu1 %vm1210_vm2, %v3095_v22  ;;  %v2986_v17 = vadd.f32 %v7609_v0, %v2985_v31 }
 0xbfd   : > { %v2997_v3 = vadd.f32 %v8532_v27, %v7609_v0  ;;  %v2988_v61 = vpop.f32.mrb[79].mxu1 }
 0xbfe   : > { %v2989_v13 = vadd.f32 %v7609_v0, %v2988_v61 }
 0xbff   : > { %v3097_v21 = vpack.c.bf16 %v2997_v3, %v2994_v24 }
 0xc00   : > { %v3096_v11 = vpack.c.bf16 %v2989_v13, %v2986_v17 }
 0xc01   : > { %v3120_v20 = vsel %vm1210_vm2, %v3097_v21, 0 }
 0xc02   : > { %v3117_v51 = vsel %vm1210_vm2, %v3096_v11, 0 }
 0xc03   : > { %8548 = vmatpush3.bf16.xpose.msra.mxu1 %v3114_v49 }
 0xc04   : > { %9048 = vmatprep.subr.msk.bf16.mxu1 %vm1210_vm2, %v3096_v11 }
 0xc0b   : > { %8550 = vmatpush3.bf16.xpose.msra.mxu1 %v3117_v51 }
 0xc0c   : > { %9049 = vmatprep.subr.msk.bf16.mxu1 %vm1210_vm2, %v3097_v21 }
 0xc13   : > { %8552 = vmatpush3.bf16.xpose.msra.mxu1 %v3120_v20 }
 0xc1a   : > { %8554 = vmatmul.mubr.msk.bf16.vlgmr.msra.gmra.mrb[80].mxu1 %vm1210_vm2, %v11715_v54 }
 0xc1b   : > { %8557 = vmatprep.mubr.msk.bf16.mxu1 %vm1210_vm2, %v11716_v55 }
 0xc22   : > { %8558 = vmatmul.mubr.msk.bf16.gmra.mrb[84].mxu1 %vm1210_vm2, %v11717_v56 }
 0xced   : > { %v8555_v5 = vpop.f32.mrb[80].mxu1 }
 0xcee   : > { %v3156_v30 = vpop.f32.mrb[81].mxu1  ;;  %v3193_v4 = vsel %vm1300_vm3, %v8555_v5, -inf }
 0xcef   : > { %v8556_v16 = vpop.f32.mrb[82].mxu1  ;;  %v3187_v28 = vsel %vm1300_vm3, %v3156_v30, -inf }
 0xcf0   : > { %3188 = vmax.xlane.f32.xlu0 %v3187_v28  ;;  %v3159_v6 = vpop.f32.mrb[83].mxu1  ;;  %v3196_v40 = vsel %vm1300_vm3, %v8556_v16, -inf }
 0xcf1   : > { %v3190_v34 = vsel %vm1300_vm3, %v3159_v6, -inf }
 0xcf2   : > { %3191 = vmax.xlane.f32.xlu1 %v3190_v34 }
 0xcf4   : > { %3194 = vmax.xlane.f32.xlu0 %v3193_v4 }
 0xcf5   : > { %v8559_v60 = vpop.f32.mrb[84].mxu1 }
 0xcf6   : > { %3197 = vmax.xlane.f32.xlu1 %v3196_v40  ;;  %v3172_v33 = vpop.f32.mrb[85].mxu1  ;;  %v3205_v36 = vsel %vm1300_vm3, %v8559_v60, -inf }
 0xcf7   : > { %v8560_v32 = vpop.f32.mrb[86].mxu1  ;;  %v3199_v10 = vsel %vm1300_vm3, %v3172_v33, -inf }
 0xcf8   : > { %3200 = vmax.xlane.f32.xlu0 %v3199_v10  ;;  %v3175_v7 = vpop.f32.mrb[87].mxu1  ;;  %v3208_v48 = vsel %vm1300_vm3, %v8560_v32, -inf }
 0xcf9   : > { %v3202_v42 = vsel %vm1300_vm3, %v3175_v7, -inf }
 0xcfa   : > { %3203 = vmax.xlane.f32.xlu1 %v3202_v42 }
 0xcfc   : > { %3206 = vmax.xlane.f32.xlu0 %v3205_v36 }
 0xcfe   : > { %3209 = vmax.xlane.f32.xlu1 %v3208_v48 }
 0xd7d   : > { %v3189_v57 = vpop.xlane.xlu0 %3188 }
 0xd7e   : > { %v3211_v29 = vsub.f32 %v3156_v30, %v3189_v57 }
 0xd7f   : > { %v3192_v9 = vpop.xlane.xlu1 %3191 }
 0xd80   : > { %v3219_v44 = vmul.f32 1.442695, %v3211_v29  ;;  %v3212_v47 = vsub.f32 %v3159_v6, %v3192_v9 }
 0xd81   : > { %v3195_v23 = vpop.xlane.xlu0 %3194 }
 0xd82   : > { %9262 = vpow2.f32 %v3219_v44  ;;  %v3221_v38 = vmul.f32 1.442695, %v3212_v47  ;;  %v3213_v63 = vsub.f32 %v8555_v5, %v3195_v23  ;;  %v7636_v5 = vld [vmem:[%s11671_s12 + $0xc] sm:$0xf] }
 0xd83   : > { %v3198_v12 = vpop.xlane.xlu1 %3197  ;;  %9050 = vmatprep.subr.msk.bf16.mxu1 %vm2037_vm4, %v7636_v5  ;;  %v3379_v30 = vsel %vm2037_vm4, %v7636_v5, 0 }
 0xd84   : > { %9264 = vpow2.f32 %v3221_v38  ;;  %v3223_v25 = vmul.f32 1.442695, %v3213_v63  ;;  %v3214_v15 = vsub.f32 %v8556_v16, %v3198_v12  ;;  %8578 = vmatpush3.bf16.msra.mxu1 %v3379_v30 }
 0xd85   : > { %v3201_v45 = vpop.xlane.xlu0 %3200 }
 0xd86   : > { %9266 = vpow2.f32 %v3223_v25  ;;  %v3225_v53 = vmul.f32 1.442695, %v3214_v15  ;;  %v3215_v0 = vsub.f32 %v3172_v33, %v3201_v45 }
 0xd87   : > { %v3204_v8 = vpop.xlane.xlu1 %3203 }
 0xd88   : > { %9268 = vpow2.f32 %v3225_v53  ;;  %v3227_v37 = vmul.f32 1.442695, %v3215_v0  ;;  %v3216_v52 = vsub.f32 %v3175_v7, %v3204_v8 }
 0xd89   : > { %v3207_v18 = vpop.xlane.xlu0 %3206 }
 0xd8a   : > { %9270 = vpow2.f32 %v3227_v37  ;;  %v3229_v1 = vmul.f32 1.442695, %v3216_v52  ;;  %v3217_v14 = vsub.f32 %v8559_v60, %v3207_v18 }
 0xd8b   : > { %v3210_v46 = vpop.xlane.xlu1 %3209 }
 0xd8c   : > { %v9263_v22 = vpop.eup %9262  ;;  %9272 = vpow2.f32 %v3229_v1  ;;  %v3231_v19 = vmul.f32 1.442695, %v3217_v14  ;;  %v3218_v50 = vsub.f32 %v8560_v32, %v3210_v46 }
 0xd8d   : > { %v3235_v26 = vsel %vm1300_vm3, %v9263_v22, 0.0 }
 0xd8e   : > { %v9265_v31 = vpop.eup %9264  ;;  %9274 = vpow2.f32 %v3231_v19  ;;  %v3233_v27 = vmul.f32 1.442695, %v3218_v50  ;;  %3236 = vadd.xlane.f32.xlu0 %v3235_v26 }
 0xd8f   : > { %v3238_v24 = vsel %vm1300_vm3, %v9265_v31, 0.0 }
 0xd90   : > { %v9267_v3 = vpop.eup %9266  ;;  %9276 = vpow2.f32 %v3233_v27  ;;  %3239 = vadd.xlane.f32.xlu1 %v3238_v24  ;;  %v11690_v27 = vsub.s32 2, %v9646_v2  ;;  %v7641_v24 = vld [vmem:[%s11672_s13] ss:$0 sm:$0xff] }
 0xd91   : > { %v3241_v61 = vsel %vm1300_vm3, %v9267_v3, 0.0 }
 0xd92   : > { %v9269_v17 = vpop.eup %9268  ;;  %3242 = vadd.xlane.f32.xlu0 %v3241_v61  ;;  %v10435_v61 = vld [vmem:[%s9658_s21] sm:$0xff] }
 0xd93   : > { %v3244_v13 = vsel %vm1300_vm3, %v9269_v17, 0.0 }
 0xd94   : > { %v9271_v21 = vpop.eup %9270  ;;  %3245 = vadd.xlane.f32.xlu1 %v3244_v13 }
 0xd95   : > { %v3247_v11 = vsel %vm1300_vm3, %v9271_v21, 0.0 }
 0xd96   : > { %v9273_v49 = vpop.eup %9272  ;;  %3248 = vadd.xlane.f32.xlu0 %v3247_v11 }
 0xd97   : > { %v3250_v51 = vsel %vm1300_vm3, %v9273_v49, 0.0 }
 0xd98   : > { %v9275_v20 = vpop.eup %9274  ;;  %3251 = vadd.xlane.f32.xlu1 %v3250_v51 }
 0xd99   : > { %v3253_v54 = vsel %vm1300_vm3, %v9275_v20, 0.0 }
 0xd9a   : > { %v9277_v55 = vpop.eup %9276  ;;  %3254 = vadd.xlane.f32.xlu0 %v3253_v54 }
 0xd9b   : > { %v3256_v56 = vsel %vm1300_vm3, %v9277_v55, 0.0 }
 0xd9c   : > { %3257 = vadd.xlane.f32.xlu1 %v3256_v56 }
 0xe1b   : > { %v3237_v16 = vpop.xlane.xlu0 %3236 }
 0xe1c   : > { %9278 = vrcp.f32 %v3237_v16 }
 0xe1d   : > { %v3240_v28 = vpop.xlane.xlu1 %3239 }
 0xe1e   : > { %9280 = vrcp.f32 %v3240_v28 }
 0xe1f   : > { %v3243_v6 = vpop.xlane.xlu0 %3242 }
 0xe20   : > { %9282 = vrcp.f32 %v3243_v6 }
 0xe21   : > { %v3246_v34 = vpop.xlane.xlu1 %3245 }
 0xe22   : > { %9284 = vrcp.f32 %v3246_v34 }
 0xe23   : > { %v3249_v4 = vpop.xlane.xlu0 %3248 }
 0xe24   : > { %9286 = vrcp.f32 %v3249_v4 }
 0xe25   : > { %v3252_v60 = vpop.xlane.xlu1 %3251 }
 0xe26   : > { %v9279_v40 = vpop.eup %9278  ;;  %9288 = vrcp.f32 %v3252_v60 }
 0xe27   : > { %v3255_v33 = vpop.xlane.xlu0 %3254  ;;  %v3267_v7 = vmul.f32 %v9279_v40, %v9263_v22 }
 0xe28   : > { %v9281_v32 = vpop.eup %9280  ;;  %9290 = vrcp.f32 %v3255_v33 }
 0xe29   : > { %v3258_v10 = vpop.xlane.xlu1 %3257  ;;  %v3268_v42 = vmul.f32 %v9281_v32, %v9265_v31 }
 0xe2a   : > { %v9283_v36 = vpop.eup %9282  ;;  %9292 = vrcp.f32 %v3258_v10 }
 0xe2b   : > { %v3275_v48 = vpack.c.bf16 %v3268_v42, %v3267_v7  ;;  %v3269_v29 = vmul.f32 %v9283_v36, %v9267_v3 }
 0xe2c   : > { %v9285_v57 = vpop.eup %9284 }
 0xe2d   : > { %v3270_v9 = vmul.f32 %v9285_v57, %v9269_v17  ;;  %8569 = vmatprep.mubr.msk.bf16.mxu0 %vm1300_vm3, %v3275_v48  ;;  %v3472_v17 = vrot.slane %v10435_v61, %v11690_v27 }
 0xe2e   : > { %v9287_v44 = vpop.eup %9286 }
 0xe2f   : > { %v3276_v47 = vpack.c.bf16 %v3270_v9, %v3269_v29  ;;  %v3271_v38 = vmul.f32 %v9287_v44, %v9271_v21 }
 0xe30   : > { %v9289_v23 = vpop.eup %9288 }
 0xe31   : > { %8570 = vmatmul.mubr.msk.bf16.vlgmr.msra.gmra.mrb[80].mxu0 %vm1300_vm3, %v3276_v47  ;;  %v3272_v63 = vmul.f32 %v9289_v23, %v9273_v49 }
 0xe32   : > { %v9291_v12 = vpop.eup %9290 }
 0xe33   : > { %v3277_v25 = vpack.c.bf16 %v3272_v63, %v3271_v38  ;;  %v3273_v45 = vmul.f32 %v9291_v12, %v9275_v20  ;;  %v11718_v38 = vld [vmem:[#allocation8_spill] sm:$0xff] }
 0xe34   : > { %v9293_v15 = vpop.eup %9292 }
 0xe35   : > { %8573 = vmatprep.mubr.msk.bf16.mxu0 %vm1300_vm3, %v3277_v25  ;;  %v3274_v53 = vmul.f32 %v9293_v15, %v9277_v55 }
 0xe37   : > { %v3278_v0 = vpack.c.bf16 %v3274_v53, %v3273_v45 }
 0xe39   : > { %8574 = vmatmul.mubr.msk.bf16.gmra.mrb[84].mxu0 %vm1300_vm3, %v3278_v0 }
 0xf04   : > { %v8571_v8 = vpop.f32.mrb[80].mxu0 }
 0xf05   : > { %v3329_v37 = vpop.f32.mrb[81].mxu0 }
 0xf06   : > { %v8572_v52 = vpop.f32.mrb[82].mxu0 }
 0xf07   : > { %v3361_v18 = vpack.c.bf16 %v8572_v52, %v8571_v8  ;;  %v3332_v1 = vpop.f32.mrb[83].mxu0 }
 0xf08   : > { %v3360_v14 = vpack.c.bf16 %v3332_v1, %v3329_v37 }
 0xf0a   : > { %8579 = vmatprep.mubr.msk.bf16.mxu1 %vm1210_vm2, %v3360_v14 }
 0xf0b   : > { %8580 = vmatmul.mubr.msk.bf16.vlgmr.msra.gmra.mrb[48].mxu1 %vm1210_vm2, %v3361_v18 }
 0xf0c   : > { %v8575_v46 = vpop.f32.mrb[84].mxu0 }
 0xf0d   : > { %v3345_v22 = vpop.f32.mrb[85].mxu0 }
 0xf0e   : > { %v8576_v19 = vpop.f32.mrb[86].mxu0 }
 0xf0f   : > { %v3363_v50 = vpack.c.bf16 %v8576_v19, %v8575_v46  ;;  %v3348_v26 = vpop.f32.mrb[87].mxu0 }
 0xf10   : > { %v3362_v31 = vpack.c.bf16 %v3348_v26, %v3345_v22 }
 0xf12   : > { %8583 = vmatprep.mubr.msk.bf16.mxu1 %vm1210_vm2, %v3362_v31 }
 0xf13   : > { %8584 = vmatmul.mubr.msk.bf16.gmra.mrb[52].mxu1 %vm1210_vm2, %v3363_v50 }
 0xfde   : > { %v8581_v3 = vpop.f32.mrb[48].mxu1 }
 0xfdf   : > { %v3463_v13 = vadd.f32 %v8581_v3, %v7641_v24  ;;  %v3415_v21 = vpop.f32.mrb[49].mxu1 }
 0xfe0   : > { %v3461_v11 = vadd.f32 %v7641_v24, %v3415_v21  ;;  %v8582_v49 = vpop.f32.mrb[50].mxu1 }
 0xfe1   : > { %v3464_v51 = vadd.f32 %v8582_v49, %v7641_v24  ;;  %v3418_v20 = vpop.f32.mrb[51].mxu1  ;;  %v3475_v54 = vmul.f32 %v3472_v17, %v3463_v13 }
 0xfe2   : > { %v3473_v55 = vmul.f32 %v3472_v17, %v3461_v11  ;;  %v3462_v56 = vadd.f32 %v7641_v24, %v3418_v20 }
 0xfe3   : > { %v3476_v30 = vmul.f32 %v3472_v17, %v3464_v51  ;;  %v10444_v28 = vadd.f32 %v3475_v54, %v9704_v35 }
 0xfe4   : > { %v10441_v5 = vadd.f32 %v3473_v55, %v9709_v39  ;;  %v3474_v16 = vmul.f32 %v3472_v17, %v3462_v56 }
 0xfe5   : > { %v10452_v33 = vadd.f32 %v3476_v30, %v9711_v41  ;;  %v3495_v48 = vsel %vm791_vm1, %v10444_v28, 0.0 }
 0xfe6   : > { %v10447_v6 = vadd.f32 %v3474_v16, %v9715_v43  ;;  %v8585_v34 = vpop.f32.mrb[52].mxu1  ;;  %v3489_v4 = vsel %vm791_vm1, %v10441_v5, 0.0 }
 0xfe7   : > { %v3467_v60 = vadd.f32 %v8585_v34, %v7641_v24  ;;  %3490 = vadd.xlane.f32.xlu0 %v3489_v4  ;;  %v3431_v40 = vpop.f32.mrb[53].mxu1  ;;  %v3498_v9 = vsel %vm791_vm1, %v10452_v33, 0.0 }
 0xfe8   : > { %v3465_v39 = vadd.f32 %v7641_v24, %v3431_v40  ;;  %v8586_v32 = vpop.f32.mrb[54].mxu1  ;;  %v3492_v10 = vsel %vm791_vm1, %v10447_v6, 0.0 }
 0xfe9   : > { %v3468_v35 = vadd.f32 %v8586_v32, %v7641_v24  ;;  %3493 = vadd.xlane.f32.xlu1 %v3492_v10  ;;  %v3434_v7 = vpop.f32.mrb[55].mxu1  ;;  %v3479_v43 = vmul.f32 %v3472_v17, %v3467_v60 }
 0xfea   : > { %v3477_v42 = vmul.f32 %v3472_v17, %v3465_v39  ;;  %v3466_v36 = vadd.f32 %v7641_v24, %v3434_v7  ;;  %v9104_v7 = vld [vmem:[%s11673_s14] sm:$0xff]  }
 0xfeb   : > { %3496 = vadd.xlane.f32.xlu0 %v3495_v48  ;;  %v3480_v41 = vmul.f32 %v3472_v17, %v3468_v35  ;;  %v10464_v44 = vadd.f32 %v3479_v43, %v9735_v58  ;;  %8587 = vmatprep.subr.bf16.mxu0 %v9104_v7  ;;  %v9105_v43 = vld [vmem:[%s11673_s14 + $0x8] sm:$0xff]  }
 0xfec   : > { %v10459_v57 = vadd.f32 %v3477_v42, %v9737_v59  ;;  %v3478_v29 = vmul.f32 %v3472_v17, %v3466_v36  ;;  %8588 = vmatpush3.bf16.msra.mxu0 %v9104_v7 }
 0xfed   : > { %3499 = vadd.xlane.f32.xlu1 %v3498_v9  ;;  %v10472_v63 = vadd.f32 %v3480_v41, %v11718_v38  ;;  %v3507_v12 = vsel %vm791_vm1, %v10464_v44, 0.0  ;;  %8589 = vmatprep.subr.bf16.mxu0 %v9105_v43 }
 0xfee   : > { %v10467_v47 = vadd.f32 %v3478_v29, %v9741_v62  ;;  %v3501_v23 = vsel %vm791_vm1, %v10459_v57, 0.0 }
 0xfef   : > { %3502 = vadd.xlane.f32.xlu0 %v3501_v23  ;;  %v3510_v58 = vsel %vm791_vm1, %v10472_v63, 0.0 }
 0xff0   : > { %v3504_v59 = vsel %vm791_vm1, %v10467_v47, 0.0  ;;  %8590 = vmatpush3.bf16.msra.mxu0 %v9105_v43 }
 0xff1   : > { %3505 = vadd.xlane.f32.xlu1 %v3504_v59 }
 0xff3   : > { %3508 = vadd.xlane.f32.xlu0 %v3507_v12 }
 0xff5   : > { %3511 = vadd.xlane.f32.xlu1 %v3510_v58 }
0x1074   : > { %v3491_v62 = vpop.xlane.xlu0 %3490 }
0x1075   : > { %v3513_v25 = vmul.f32 0.03125, %v3491_v62 }
0x1076   : > { %v3494_v15 = vpop.xlane.xlu1 %3493 }
0x1077   : > { %v10481_v45 = vsub.f32 %v10441_v5, %v3513_v25  ;;  %v3514_v53 = vmul.f32 0.03125, %v3494_v15 }
0x1078   : > { %v3497_v0 = vpop.xlane.xlu0 %3496 }
0x1079   : > { %v10484_v8 = vsub.f32 %v10447_v6, %v3514_v53  ;;  %v3515_v37 = vmul.f32 0.03125, %v3497_v0  ;;  %v3529_v52 = vmul.f32 %v10481_v45, %v10481_v45  ;;  %v3595_v53 = vsub.s32 4, %v9646_v2 }
0x107a   : > { %v3500_v18 = vpop.xlane.xlu1 %3499 }
0x107b   : > { %v10489_v1 = vsub.f32 %v10444_v28, %v3515_v37  ;;  %v3516_v14 = vmul.f32 0.03125, %v3500_v18  ;;  %v3537_v46 = vsel %vm791_vm1, %v3529_v52, 0.0  ;;  %v3530_v22 = vmul.f32 %v10484_v8, %v10484_v8 }
0x107c   : > { %3538 = vadd.xlane.f32.xlu0 %v3537_v46  ;;  %v3503_v19 = vpop.xlane.xlu0 %3502 }
0x107d   : > { %v10495_v50 = vsub.f32 %v10452_v33, %v3516_v14  ;;  %v3517_v26 = vmul.f32 0.03125, %v3503_v19  ;;  %v3540_v31 = vsel %vm791_vm1, %v3530_v22, 0.0  ;;  %v3531_v24 = vmul.f32 %v10489_v1, %v10489_v1  ;;  %v11719_v22 = vld [vmem:[#allocation9_spill] sm:$0xff] }
0x107e   : > { %3541 = vadd.xlane.f32.xlu1 %v3540_v31  ;;  %v3506_v3 = vpop.xlane.xlu1 %3505  ;;  %v3596_v19 = vrot.slane %v11719_v22, %v3595_v53  ;;  %v9108_v53 = vld [vmem:[%s11675_s16 + $0x10] sm:$0xff]  }
0x107f   : > { %v10501_v17 = vsub.f32 %v10459_v57, %v3517_v26  ;;  %v3518_v13 = vmul.f32 0.03125, %v3506_v3  ;;  %v3543_v21 = vsel %vm791_vm1, %v3531_v24, 0.0  ;;  %v3532_v11 = vmul.f32 %v10495_v50, %v10495_v50 }
0x1080   : > { %3544 = vadd.xlane.f32.xlu0 %v3543_v21  ;;  %v3509_v49 = vpop.xlane.xlu0 %3508 }
0x1081   : > { %v10507_v51 = vsub.f32 %v10467_v47, %v3518_v13  ;;  %v3519_v20 = vmul.f32 0.03125, %v3509_v49  ;;  %v3546_v54 = vsel %vm791_vm1, %v3532_v11, 0.0  ;;  %v3533_v55 = vmul.f32 %v10501_v17, %v10501_v17 }
0x1082   : > { %3547 = vadd.xlane.f32.xlu1 %v3546_v54  ;;  %v3512_v56 = vpop.xlane.xlu1 %3511  ;;  %v11720_v49 = vsub.s32 3, %v9646_v2 }
0x1083   : > { %v10513_v30 = vsub.f32 %v10464_v44, %v3519_v20  ;;  %v3520_v16 = vmul.f32 0.03125, %v3512_v56  ;;  %v3549_v34 = vsel %vm791_vm1, %v3533_v55, 0.0  ;;  %v3534_v4 = vmul.f32 %v10507_v51, %v10507_v51 }
0x1084   : > { %3550 = vadd.xlane.f32.xlu0 %v3549_v34  ;;  %v3608_v20 = vrot.slane %v10435_v61, %v11720_v49 }
0x1085   : > { %v10519_v60 = vsub.f32 %v10472_v63, %v3520_v16  ;;  %v3552_v40 = vsel %vm791_vm1, %v3534_v4, 0.0  ;;  %v3535_v39 = vmul.f32 %v10513_v30, %v10513_v30 }
0x1086   : > { %3553 = vadd.xlane.f32.xlu1 %v3552_v40 }
0x1087   : > { %v3555_v32 = vsel %vm791_vm1, %v3535_v39, 0.0  ;;  %v3536_v10 = vmul.f32 %v10519_v60, %v10519_v60 }
0x1088   : > { %3556 = vadd.xlane.f32.xlu0 %v3555_v32 }
0x1089   : > { %v3558_v35 = vsel %vm791_vm1, %v3536_v10, 0.0 }
0x108a   : > { %3559 = vadd.xlane.f32.xlu1 %v3558_v35 }
0x1109   : > { %v3539_v42 = vpop.xlane.xlu0 %3538 }
0x110a   : > { %v3561_v36 = vmul.f32 0.03125, %v3539_v42 }
0x110b   : > { %v3542_v48 = vpop.xlane.xlu1 %3541 }
0x110c   : > { %v3569_v41 = vadd.f32 1e-06, %v3561_v36  ;;  %v3562_v29 = vmul.f32 0.03125, %v3542_v48 }
0x110d   : > { %v3545_v9 = vpop.xlane.xlu0 %3544 }
0x110e   : > { %9294 = vrsqrt.f32 %v3569_v41  ;;  %v3570_v23 = vadd.f32 1e-06, %v3562_v29  ;;  %v3563_v38 = vmul.f32 0.03125, %v3545_v9 }
0x110f   : > { %v3548_v59 = vpop.xlane.xlu1 %3547 }
0x1110   : > { %9296 = vrsqrt.f32 %v3570_v23  ;;  %v3571_v12 = vadd.f32 1e-06, %v3563_v38  ;;  %v3564_v58 = vmul.f32 0.03125, %v3548_v59 }
0x1111   : > { %v3551_v62 = vpop.xlane.xlu0 %3550 }
0x1112   : > { %9298 = vrsqrt.f32 %v3571_v12  ;;  %v3572_v25 = vadd.f32 1e-06, %v3564_v58  ;;  %v3565_v15 = vmul.f32 0.03125, %v3551_v62 }
0x1113   : > { %v3554_v0 = vpop.xlane.xlu1 %3553 }
0x1114   : > { %9300 = vrsqrt.f32 %v3572_v25  ;;  %v3573_v37 = vadd.f32 1e-06, %v3565_v15  ;;  %v3566_v52 = vmul.f32 0.03125, %v3554_v0  ;;  %v9109_v0 = vld [vmem:[%s11675_s16 + $0x18] sm:$0xff]  }
0x1115   : > { %v3557_v18 = vpop.xlane.xlu0 %3556 }
0x1116   : > { %9302 = vrsqrt.f32 %v3573_v37  ;;  %v3574_v14 = vadd.f32 1e-06, %v3566_v52  ;;  %v3567_v46 = vmul.f32 0.03125, %v3557_v18  ;;  %v9110_v37 = vld [vmem:[%s11675_s16 + $0x20] sm:$0xff]   ;;  %v9111_v52 = vld [vmem:[%s11675_s16 + $0x28] sm:$0xff]   ;;  %v9112_v18 = vld [vmem:[%s11675_s16 + $0x30] sm:$0xff]  }
0x1117   : > { %v3560_v26 = vpop.xlane.xlu1 %3559 }
0x1118   : > { %v9295_v31 = vpop.eup %9294  ;;  %9304 = vrsqrt.f32 %v3574_v14  ;;  %v3575_v24 = vadd.f32 1e-06, %v3567_v46  ;;  %v3568_v3 = vmul.f32 0.03125, %v3560_v26  ;;  %v9113_v14 = vld [vmem:[%s11675_s16 + $0x38] sm:$0xff]   ;;  %v7642_v46 = vld [vmem:[%s11674_s15] ss:$0 sm:$0xff] }
0x1119   : > { %v3585_v13 = vmul.f32 %v9295_v31, %v10481_v45 }
0x111a   : > { %v9297_v21 = vpop.eup %9296  ;;  %9306 = vrsqrt.f32 %v3575_v24  ;;  %v3576_v11 = vadd.f32 1e-06, %v3568_v3 }
0x111b   : > { %v3586_v54 = vmul.f32 %v9297_v21, %v10484_v8  ;;  %v3597_v55 = vmul.f32 %v3596_v19, %v3585_v13 }
0x111c   : > { %v9299_v56 = vpop.eup %9298  ;;  %9308 = vrsqrt.f32 %v3576_v11 }
0x111d   : > { %v3587_v16 = vmul.f32 %v9299_v56, %v10489_v1  ;;  %v3598_v34 = vmul.f32 %v3596_v19, %v3586_v54  ;;  %v3609_v45 = vadd.f32 %v3608_v20, %v3597_v55 }
0x111e   : > { %v9301_v4 = vpop.eup %9300 }
0x111f   : > { %v3599_v40 = vmul.f32 %v3596_v19, %v3587_v16  ;;  %v3588_v39 = vmul.f32 %v9301_v4, %v10495_v50  ;;  %v3610_v32 = vadd.f32 %v3608_v20, %v3598_v34 }
0x1120   : > { %v9303_v10 = vpop.eup %9302 }
0x1121   : > { %v3600_v35 = vmul.f32 %v3596_v19, %v3588_v39  ;;  %v3617_v7 = vpack.c.bf16 %v3610_v32, %v3609_v45  ;;  %v3589_v43 = vmul.f32 %v9303_v10, %v10501_v17  ;;  %v3611_v36 = vadd.f32 %v3608_v20, %v3599_v40 }
0x1122   : > { %v9305_v42 = vpop.eup %9304 }
0x1123   : > { %v3612_v8 = vadd.f32 %v3608_v20, %v3600_v35  ;;  %8591 = vmatprep.mubr.msk.bf16.mxu0 %vm791_vm1, %v3617_v7  ;;  %v3590_v48 = vmul.f32 %v9305_v42, %v10507_v51  ;;  %v3601_v1 = vmul.f32 %v3596_v19, %v3589_v43 }
0x1124   : > { %v9307_v41 = vpop.eup %9306 }
0x1125   : > { %v3618_v29 = vpack.c.bf16 %v3612_v8, %v3611_v36  ;;  %v3602_v9 = vmul.f32 %v3596_v19, %v3590_v48  ;;  %v3591_v50 = vmul.f32 %v9307_v41, %v10513_v30  ;;  %v3613_v38 = vadd.f32 %v3608_v20, %v3601_v1  ;;  %v9106_v30 = vld [vmem:[%s11675_s16] sm:$0xff]  }
0x1126   : > { %v9309_v23 = vpop.eup %9308  ;;  %8599 = vmatprep.subr.bf16.mxu0 %v9106_v30 }
0x1127   : > { %8592 = vmatmul.mubr.msk.bf16.vlgmr.msra.gmra.mrb[88].mxu0 %vm791_vm1, %v3618_v29  ;;  %v3614_v59 = vadd.f32 %v3608_v20, %v3602_v9  ;;  %v3592_v17 = vmul.f32 %v9309_v23, %v10519_v60  ;;  %v3603_v12 = vmul.f32 %v3596_v19, %v3591_v50  ;;  %v9107_v60 = vld [vmem:[%s11675_s16 + $0x8] sm:$0xff]  }
0x1128   : > { %8600 = vmatpush3.bf16.msra.mxu0 %v9106_v30 }
0x1129   : > { %v3619_v58 = vpack.c.bf16 %v3614_v59, %v3613_v38  ;;  %v3604_v62 = vmul.f32 %v3596_v19, %v3592_v17  ;;  %v3615_v25 = vadd.f32 %v3608_v20, %v3603_v12  ;;  %8601 = vmatprep.subr.bf16.mxu0 %v9107_v60 }
0x112b   : > { %8595 = vmatprep.mubr.msk.bf16.mxu0 %vm791_vm1, %v3619_v58  ;;  %v3616_v51 = vadd.f32 %v3608_v20, %v3604_v62 }
0x112c   : > { %8602 = vmatpush3.bf16.msra.mxu0 %v9107_v60 }
0x112d   : > { %v3620_v15 = vpack.c.bf16 %v3616_v51, %v3615_v25  ;;  %8603 = vmatprep.subr.bf16.mxu0 %v9108_v53 }
0x112f   : > { %8596 = vmatmul.mubr.msk.bf16.gmra.mrb[92].mxu0 %vm791_vm1, %v3620_v15 }
0x1130   : > { %8604 = vmatpush3.bf16.msra.mxu0 %v9108_v53 }
0x1131   : > { %8605 = vmatprep.subr.bf16.mxu0 %v9109_v0 }
0x1134   : > { %8606 = vmatpush3.bf16.msra.mxu0 %v9109_v0 }
0x1135   : > { %8607 = vmatprep.subr.bf16.mxu0 %v9110_v37 }
0x1138   : > { %8608 = vmatpush3.bf16.msra.mxu0 %v9110_v37 }
0x1139   : > { %8609 = vmatprep.subr.bf16.mxu0 %v9111_v52 }
0x113c   : > { %8610 = vmatpush3.bf16.msra.mxu0 %v9111_v52 }
0x113d   : > { %8611 = vmatprep.subr.bf16.mxu0 %v9112_v18 }
0x1140   : > { %8612 = vmatpush3.bf16.msra.mxu0 %v9112_v18 }
0x1141   : > { %8613 = vmatprep.subr.bf16.mxu0 %v9113_v14 }
0x1144   : > { %8614 = vmatpush3.bf16.msra.mxu0 %v9113_v14 }
0x11fa   : > { %v8593_v19 = vpop.f32.mrb[88].mxu0 }
0x11fb   : > { %v10578_v26 = vadd.f32 %v8593_v19, %v7642_v46  ;;  %v3690_v31 = vpop.f32.mrb[89].mxu0 }
0x11fc   : > { %v10580_v24 = vadd.f32 %v7642_v46, %v3690_v31  ;;  %v8594_v3 = vpop.f32.mrb[90].mxu0 }
0x11fd   : > { %v3731_v13 = vmul.f32 0.044715, %v10578_v26  ;;  %v10583_v21 = vadd.f32 %v8594_v3, %v7642_v46  ;;  %v3693_v11 = vpop.f32.mrb[91].mxu0 }
0x11fe   : > { %v3729_v49 = vmul.f32 0.044715, %v10580_v24  ;;  %v10586_v20 = vadd.f32 %v7642_v46, %v3693_v11 }
0x11ff   : > { %v3739_v54 = vmul.f32 %v3731_v13, %v10578_v26  ;;  %v3732_v55 = vmul.f32 0.044715, %v10583_v21 }
0x1200   : > { %v3737_v56 = vmul.f32 %v3729_v49, %v10580_v24  ;;  %v3730_v16 = vmul.f32 0.044715, %v10586_v20 }
0x1201   : > { %v3747_v34 = vmul.f32 %v3739_v54, %v10578_v26  ;;  %v3740_v4 = vmul.f32 %v3732_v55, %v10583_v21 }
0x1202   : > { %v3745_v40 = vmul.f32 %v3737_v56, %v10580_v24  ;;  %v3738_v39 = vmul.f32 %v3730_v16, %v10586_v20  ;;  %v8597_v45 = vpop.f32.mrb[92].mxu0 }
0x1203   : > { %v3755_v32 = vadd.f32 %v3747_v34, %v10578_v26  ;;  %v3748_v10 = vmul.f32 %v3740_v4, %v10583_v21  ;;  %v10598_v35 = vadd.f32 %v8597_v45, %v7642_v46  ;;  %v3706_v7 = vpop.f32.mrb[93].mxu0  ;;  %v3723_v34 = vmul.f32 0.5, %v10578_v26 }
0x1204   : > { %v3746_v43 = vmul.f32 %v3738_v39, %v10586_v20  ;;  %v10601_v42 = vadd.f32 %v7642_v46, %v3706_v7  ;;  %v8598_v36 = vpop.f32.mrb[94].mxu0  ;;  %v3753_v8 = vadd.f32 %v3745_v40, %v10580_v24  ;;  %v3724_v4 = vmul.f32 0.5, %v10583_v21 }
0x1205   : > { %v3763_v48 = vmul.f32 0.7978846, %v3755_v32  ;;  %v3756_v1 = vadd.f32 %v3748_v10, %v10583_v21  ;;  %v3735_v41 = vmul.f32 0.044715, %v10598_v35  ;;  %v3718_v29 = vadd.f32 %v8598_v36, %v7642_v46  ;;  %v3709_v9 = vpop.f32.mrb[95].mxu0 }
0x1206   : > { %v3733_v50 = vmul.f32 0.044715, %v10601_v42  ;;  %v3710_v23 = vadd.f32 %v7642_v46, %v3709_v9  ;;  %v3754_v38 = vadd.f32 %v3746_v43, %v10586_v20  ;;  %v3761_v59 = vmul.f32 0.7978846, %v3753_v8 }
0x1207   : > { %9310 = vtanh.f32 %v3763_v48  ;;  %v3764_v17 = vmul.f32 0.7978846, %v3756_v1  ;;  %v3743_v12 = vmul.f32 %v3735_v41, %v10598_v35  ;;  %v3736_v58 = vmul.f32 0.044715, %v3718_v29 }
0x1208   : > { %v3741_v62 = vmul.f32 %v3733_v50, %v10601_v42  ;;  %v3734_v25 = vmul.f32 0.044715, %v3710_v23  ;;  %v3762_v51 = vmul.f32 0.7978846, %v3754_v38  ;;  %9312 = vtanh.f32 %v3761_v59 }
0x1209   : > { %9314 = vtanh.f32 %v3764_v17  ;;  %v3751_v15 = vmul.f32 %v3743_v12, %v10598_v35  ;;  %v3744_v30 = vmul.f32 %v3736_v58, %v3718_v29  ;;  %v3721_v39 = vmul.f32 0.5, %v10580_v24 }
0x120a   : > { %v3749_v60 = vmul.f32 %v3741_v62, %v10601_v42  ;;  %v3742_v53 = vmul.f32 %v3734_v25, %v3710_v23  ;;  %9316 = vtanh.f32 %v3762_v51  ;;  %v3722_v45 = vmul.f32 0.5, %v10586_v20 }
0x120b   : > { %v3752_v0 = vmul.f32 %v3744_v30, %v3718_v29  ;;  %v3759_v37 = vadd.f32 %v3751_v15, %v10598_v35  ;;  %v3727_v21 = vmul.f32 0.5, %v10598_v35  ;;  %v3728_v24 = vmul.f32 0.5, %v3718_v29  ;;  %v7649_v35 = vld [vmem:[%s11676_s17] ss:$0 sm:$0xff] }
0x120c   : > { %v3750_v52 = vmul.f32 %v3742_v53, %v3710_v23  ;;  %v3757_v18 = vadd.f32 %v3749_v60, %v10601_v42  ;;  %v3725_v20 = vmul.f32 0.5, %v10601_v42  ;;  %v3726_v17 = vmul.f32 0.5, %v3710_v23 }
0x120d   : > { %v3760_v14 = vadd.f32 %v3752_v0, %v3718_v29  ;;  %v3767_v46 = vmul.f32 0.7978846, %v3759_v37  ;;  %v3935_v60 = vsub.s32 5, %v9646_v2 }
0x120e   : > { %v3758_v19 = vadd.f32 %v3750_v52, %v3710_v23  ;;  %v3765_v31 = vmul.f32 0.7978846, %v3757_v18 }
0x120f   : > { %v3768_v3 = vmul.f32 0.7978846, %v3760_v14  ;;  %9318 = vtanh.f32 %v3767_v46  ;;  %v3936_v53 = vrot.slane %v10435_v61, %v3935_v60 }
0x1210   : > { %v3766_v13 = vmul.f32 0.7978846, %v3758_v19  ;;  %9320 = vtanh.f32 %v3765_v31 }
0x1211   : > { %v9311_v11 = vpop.eup %9310  ;;  %9322 = vtanh.f32 %v3768_v3 }
0x1212   : > { %v9313_v49 = vpop.eup %9312  ;;  %v3779_v54 = vadd.f32 1.0, %v9311_v11  ;;  %9324 = vtanh.f32 %v3766_v13 }
0x1213   : > { %v9315_v55 = vpop.eup %9314  ;;  %v3777_v56 = vadd.f32 1.0, %v9313_v49 }
0x1214   : > { %v9317_v16 = vpop.eup %9316  ;;  %v3780_v40 = vadd.f32 1.0, %v9315_v55  ;;  %v3787_v10 = vmul.f32 %v3779_v54, %v3723_v34 }
0x1215   : > { %v3778_v32 = vadd.f32 1.0, %v9317_v16  ;;  %v3785_v43 = vmul.f32 %v3777_v56, %v3721_v39 }
0x1216   : > { %v3788_v7 = vmul.f32 %v3780_v40, %v3724_v4 }
0x1217   : > { %v3786_v36 = vmul.f32 %v3778_v32, %v3722_v45 }
0x1218   : > { %v3794_v8 = vpack.c.bf16 %v3788_v7, %v3787_v10 }
0x1219   : > { %v9319_v48 = vpop.eup %9318  ;;  %v3793_v1 = vpack.c.bf16 %v3786_v36, %v3785_v43 }
0x121a   : > { %v9321_v41 = vpop.eup %9320  ;;  %v3783_v9 = vadd.f32 1.0, %v9319_v48 }
0x121b   : > { %v9323_v50 = vpop.eup %9322  ;;  %8615 = vmatprep.mubr.bf16.mxu0 %v3793_v1  ;;  %v3781_v26 = vadd.f32 1.0, %v9321_v41 }
0x121c   : > { %v9325_v38 = vpop.eup %9324  ;;  %8616 = vmatmul.mubr.bf16.vlgmr.msra.gmra.mrb[96].mxu0 %v3794_v8  ;;  %v3784_v59 = vadd.f32 1.0, %v9323_v50  ;;  %v3791_v58 = vmul.f32 %v3783_v9, %v3727_v21 }
0x121d   : > { %v3782_v12 = vadd.f32 1.0, %v9325_v38  ;;  %v3789_v25 = vmul.f32 %v3781_v26, %v3725_v20 }
0x121e   : > { %v3792_v62 = vmul.f32 %v3784_v59, %v3728_v24 }
0x121f   : > { %v3790_v51 = vmul.f32 %v3782_v12, %v3726_v17 }
0x1220   : > { %v3796_v15 = vpack.c.bf16 %v3792_v62, %v3791_v58 }
0x1221   : > { %v3795_v30 = vpack.c.bf16 %v3790_v51, %v3789_v25 }
0x1223   : > { %8619 = vmatprep.mubr.bf16.mxu0 %v3795_v30 }
0x1224   : > { %8620 = vmatmul.mubr.bf16.gmra.mrb[100].mxu0 %v3796_v15 }
0x12ef   : > { %v8617_v29 = vpop.f32.mrb[96].mxu0 }
0x12f0   : > { %v3911_v42 = vadd.f32 %v8617_v29, %v7649_v35  ;;  %v3902_v23 = vpop.f32.mrb[97].mxu0 }
0x12f1   : > { %v3903_v0 = vadd.f32 %v7649_v35, %v3902_v23  ;;  %v8618_v37 = vpop.f32.mrb[98].mxu0 }
0x12f2   : > { %v3914_v52 = vadd.f32 %v8618_v37, %v7649_v35  ;;  %v3905_v18 = vpop.f32.mrb[99].mxu0  ;;  %v3939_v14 = vmul.f32 %v3936_v53, %v3911_v42 }
0x12f3   : > { %v3937_v46 = vmul.f32 %v3936_v53, %v3903_v0  ;;  %v3906_v19 = vadd.f32 %v7649_v35, %v3905_v18 }
0x12f4   : > { %v3940_v3 = vmul.f32 %v3936_v53, %v3914_v52  ;;  %v10629_v11 = vadd.f32 %v3939_v14, %v10444_v28 }
0x12f5   : > { %v10626_v31 = vadd.f32 %v3937_v46, %v10441_v5  ;;  %v3938_v13 = vmul.f32 %v3936_v53, %v3906_v19 }
0x12f6   : > { %v10637_v34 = vadd.f32 %v3940_v3, %v10452_v33  ;;  %v3959_v10 = vsel %vm791_vm1, %v10629_v11, 0.0 }
0x12f7   : > { %v10632_v49 = vadd.f32 %v3938_v13, %v10447_v6  ;;  %v8621_v54 = vpop.f32.mrb[100].mxu0  ;;  %v3953_v55 = vsel %vm791_vm1, %v10626_v31, 0.0 }
0x12f8   : > { %v3927_v56 = vadd.f32 %v8621_v54, %v7649_v35  ;;  %3954 = vadd.xlane.f32.xlu0 %v3953_v55  ;;  %v3918_v16 = vpop.f32.mrb[101].mxu0  ;;  %v3962_v36 = vsel %vm791_vm1, %v10637_v34, 0.0 }
0x12f9   : > { %v3919_v5 = vadd.f32 %v7649_v35, %v3918_v16  ;;  %v8622_v4 = vpop.f32.mrb[102].mxu0  ;;  %v3956_v40 = vsel %vm791_vm1, %v10632_v49, 0.0 }
0x12fa   : > { %v3930_v28 = vadd.f32 %v8622_v4, %v7649_v35  ;;  %3957 = vadd.xlane.f32.xlu1 %v3956_v40  ;;  %v3921_v39 = vpop.f32.mrb[103].mxu0  ;;  %v3943_v6 = vmul.f32 %v3936_v53, %v3927_v56 }
0x12fb   : > { %v3941_v45 = vmul.f32 %v3936_v53, %v3919_v5  ;;  %v3922_v32 = vadd.f32 %v7649_v35, %v3921_v39  ;;  %v9114_v39 = vld [vmem:[%s11665_s6 + $0x40] sm:$0xff]  }
0x12fc   : > { %3960 = vadd.xlane.f32.xlu0 %v3959_v10  ;;  %v3944_v33 = vmul.f32 %v3936_v53, %v3930_v28  ;;  %v10649_v8 = vadd.f32 %v3943_v6, %v10464_v44  ;;  %v9116_v6 = vld [vmem:[%s11669_s10 + $0x40] sm:$0xff]   ;;  %8623 = vmatprep.subr.bf16.mxu1 %v9114_v39 }
0x12fd   : > { %v10644_v7 = vadd.f32 %v3941_v45, %v10459_v57  ;;  %v3942_v43 = vmul.f32 %v3936_v53, %v3922_v32  ;;  %8647 = vmatprep.subr.bf16.mxu0 %v9116_v6  ;;  %8624 = vmatpush3.bf16.msra.mxu1 %v9114_v39  ;;  %v9115_v45 = vld [vmem:[%s11665_s6 + $0x48] sm:$0xff]   ;;  %v10728_v10 = vld [vmem:[%s11667_s8 + $0x40] sm:$0xff]  }
0x12fe   : > { %3963 = vadd.xlane.f32.xlu1 %v3962_v36  ;;  %v10657_v41 = vadd.f32 %v3944_v33, %v10472_v63  ;;  %v3971_v9 = vsel %vm791_vm1, %v10649_v8, 0.0  ;;  %8648 = vmatpush3.bf16.msra.mxu0 %v9116_v6  ;;  %v9117_v32 = vld [vmem:[%s11669_s10 + $0x48] sm:$0xff]  }
0x12ff   : > { %v10652_v48 = vadd.f32 %v3942_v43, %v10467_v47  ;;  %v3965_v1 = vsel %vm791_vm1, %v10644_v7, 0.0  ;;  %8625 = vmatprep.subr.bf16.mxu1 %v9115_v45  ;;  %8649 = vmatprep.subr.bf16.mxu0 %v9117_v32 }
0x1300   : > { %3966 = vadd.xlane.f32.xlu0 %v3965_v1  ;;  %v3974_v44 = vsel %vm791_vm1, %v10657_v41, 0.0 }
0x1301   : > { %v3968_v57 = vsel %vm791_vm1, %v10652_v48, 0.0  ;;  %8626 = vmatpush3.bf16.msra.mxu1 %v9115_v45 }
0x1302   : > { %3969 = vadd.xlane.f32.xlu1 %v3968_v57  ;;  %8650 = vmatpush3.bf16.msra.mxu0 %v9117_v32 }
0x1303   : > { %8635 = vmatprep.subr.bf16.mxu1 %v10728_v10 }
0x1304   : > { %3972 = vadd.xlane.f32.xlu0 %v3971_v9 }
0x1306   : > { %3975 = vadd.xlane.f32.xlu1 %v3974_v44 }
0x1385   : > { %v3955_v47 = vpop.xlane.xlu0 %3954 }
0x1386   : > { %v3977_v50 = vmul.f32 0.03125, %v3955_v47 }
0x1387   : > { %v3958_v26 = vpop.xlane.xlu1 %3957 }
0x1388   : > { %v10666_v38 = vsub.f32 %v10626_v31, %v3977_v50  ;;  %v3978_v63 = vmul.f32 0.03125, %v3958_v26 }
0x1389   : > { %v3961_v21 = vpop.xlane.xlu0 %3960 }
0x138a   : > { %v10669_v24 = vsub.f32 %v10632_v49, %v3978_v63  ;;  %v3979_v59 = vmul.f32 0.03125, %v3961_v21  ;;  %v3993_v20 = vmul.f32 %v10666_v38, %v10666_v38 }
0x138b   : > { %v3964_v17 = vpop.xlane.xlu1 %3963 }
0x138c   : > { %v10674_v12 = vsub.f32 %v10629_v11, %v3979_v59  ;;  %v3980_v58 = vmul.f32 0.03125, %v3964_v17  ;;  %v4001_v62 = vsel %vm791_vm1, %v3993_v20, 0.0  ;;  %v3994_v25 = vmul.f32 %v10669_v24, %v10669_v24 }
0x138d   : > { %4002 = vadd.xlane.f32.xlu0 %v4001_v62  ;;  %v3967_v51 = vpop.xlane.xlu0 %3966  ;;  %v4059_v17 = vsub.s32 7, %v9646_v2 }
0x138e   : > { %v10680_v15 = vsub.f32 %v10637_v34, %v3980_v58  ;;  %v3981_v30 = vmul.f32 0.03125, %v3967_v51  ;;  %v4004_v60 = vsel %vm791_vm1, %v3994_v25, 0.0  ;;  %v3995_v35 = vmul.f32 %v10674_v12, %v10674_v12 }
0x138f   : > { %4005 = vadd.xlane.f32.xlu1 %v4004_v60  ;;  %v3970_v29 = vpop.xlane.xlu1 %3969 }
0x1390   : > { %v10686_v53 = vsub.f32 %v10644_v7, %v3981_v30  ;;  %v3982_v42 = vmul.f32 0.03125, %v3970_v29  ;;  %v4007_v23 = vsel %vm791_vm1, %v3995_v35, 0.0  ;;  %v3996_v0 = vmul.f32 %v10680_v15, %v10680_v15 }
0x1391   : > { %4008 = vadd.xlane.f32.xlu0 %v4007_v23  ;;  %v3973_v37 = vpop.xlane.xlu0 %3972  ;;  %v4060_v35 = vrot.slane %v11719_v22, %v4059_v17  ;;  %v4071_v29 = vsub.s32 6, %v9646_v2  ;;  %v7687_v17 = vld [vmem:[%s11670_s11 + $0x4] ss:$0 sm:$0xff] }
0x1392   : > { %v10692_v52 = vsub.f32 %v10652_v48, %v3982_v42  ;;  %v3983_v18 = vmul.f32 0.03125, %v3973_v37  ;;  %v4010_v14 = vsel %vm791_vm1, %v3996_v0, 0.0  ;;  %v3997_v46 = vmul.f32 %v10686_v53, %v10686_v53 }
0x1393   : > { %4011 = vadd.xlane.f32.xlu1 %v4010_v14  ;;  %v3976_v19 = vpop.xlane.xlu1 %3975 }
0x1394   : > { %v10698_v3 = vsub.f32 %v10649_v8, %v3983_v18  ;;  %v3984_v13 = vmul.f32 0.03125, %v3976_v19  ;;  %v4013_v54 = vsel %vm791_vm1, %v3997_v46, 0.0  ;;  %v3998_v55 = vmul.f32 %v10692_v52, %v10692_v52 }
0x1395   : > { %4014 = vadd.xlane.f32.xlu0 %v4013_v54  ;;  %v4072_v19 = vrot.slane %v10435_v61, %v4071_v29 }
0x1396   : > { %v10704_v56 = vsub.f32 %v10657_v41, %v3984_v13  ;;  %v4016_v16 = vsel %vm791_vm1, %v3998_v55, 0.0  ;;  %v3999_v5 = vmul.f32 %v10698_v3, %v10698_v3 }
0x1397   : > { %4017 = vadd.xlane.f32.xlu1 %v4016_v16 }
0x1398   : > { %v4019_v4 = vsel %vm791_vm1, %v3999_v5, 0.0  ;;  %v4000_v40 = vmul.f32 %v10704_v56, %v10704_v56 }
0x1399   : > { %4020 = vadd.xlane.f32.xlu0 %v4019_v4 }
0x139a   : > { %v4022_v28 = vsel %vm791_vm1, %v4000_v40, 0.0 }
0x139b   : > { %4023 = vadd.xlane.f32.xlu1 %v4022_v28 }
0x141a   : > { %v4003_v33 = vpop.xlane.xlu0 %4002 }
0x141b   : > { %v4025_v43 = vmul.f32 0.03125, %v4003_v33 }
0x141c   : > { %v4006_v36 = vpop.xlane.xlu1 %4005 }
0x141d   : > { %v4033_v1 = vadd.f32 1e-06, %v4025_v43  ;;  %v4026_v57 = vmul.f32 0.03125, %v4006_v36 }
0x141e   : > { %v4009_v9 = vpop.xlane.xlu0 %4008 }
0x141f   : > { %9326 = vrsqrt.f32 %v4033_v1  ;;  %v4034_v44 = vadd.f32 1e-06, %v4026_v57  ;;  %v4027_v47 = vmul.f32 0.03125, %v4009_v9 }
0x1420   : > { %v4012_v50 = vpop.xlane.xlu1 %4011 }
0x1421   : > { %9328 = vrsqrt.f32 %v4034_v44  ;;  %v4035_v26 = vadd.f32 1e-06, %v4027_v47  ;;  %v4028_v63 = vmul.f32 0.03125, %v4012_v50 }
0x1422   : > { %v4015_v21 = vpop.xlane.xlu0 %4014 }
0x1423   : > { %9330 = vrsqrt.f32 %v4035_v26  ;;  %v4036_v59 = vadd.f32 1e-06, %v4028_v63  ;;  %v4029_v20 = vmul.f32 0.03125, %v4015_v21 }
0x1424   : > { %v4018_v58 = vpop.xlane.xlu1 %4017 }
0x1425   : > { %9332 = vrsqrt.f32 %v4036_v59  ;;  %v4037_v62 = vadd.f32 1e-06, %v4029_v20  ;;  %v4030_v25 = vmul.f32 0.03125, %v4018_v58  ;;  %v7663_v59 = vld [vmem:[%s11666_s7 + $0x4] ss:$0 sm:$0xff] }
0x1426   : > { %v4021_v51 = vpop.xlane.xlu0 %4020 }
0x1427   : > { %9334 = vrsqrt.f32 %v4037_v62  ;;  %v4038_v30 = vadd.f32 1e-06, %v4030_v25  ;;  %v4031_v60 = vmul.f32 0.03125, %v4021_v51 }
0x1428   : > { %v4024_v42 = vpop.xlane.xlu1 %4023 }
0x1429   : > { %v9327_v23 = vpop.eup %9326  ;;  %9336 = vrsqrt.f32 %v4038_v30  ;;  %v4039_v0 = vadd.f32 1e-06, %v4031_v60  ;;  %v4032_v37 = vmul.f32 0.03125, %v4024_v42 }
0x142a   : > { %v4049_v18 = vmul.f32 %v9327_v23, %v10666_v38 }
0x142b   : > { %v9329_v14 = vpop.eup %9328  ;;  %9338 = vrsqrt.f32 %v4039_v0  ;;  %v4040_v46 = vadd.f32 1e-06, %v4032_v37 }
0x142c   : > { %v4061_v13 = vmul.f32 %v4060_v35, %v4049_v18  ;;  %v4050_v54 = vmul.f32 %v9329_v14, %v10669_v24 }
0x142d   : > { %v9331_v55 = vpop.eup %9330  ;;  %9340 = vrsqrt.f32 %v4040_v46 }
0x142e   : > { %v4062_v22 = vmul.f32 %v4060_v35, %v4050_v54  ;;  %v4051_v16 = vmul.f32 %v9331_v55, %v10674_v12  ;;  %v4073_v4 = vadd.f32 %v4072_v19, %v4061_v13 }
0x142f   : > { %v9333_v5 = vpop.eup %9332 }
0x1430   : > { %v4074_v40 = vadd.f32 %v4072_v19, %v4062_v22  ;;  %v4063_v28 = vmul.f32 %v4060_v35, %v4051_v16  ;;  %v4052_v39 = vmul.f32 %v9333_v5, %v10680_v15 }
0x1431   : > { %v9335_v38 = vpop.eup %9334 }
0x1432   : > { %v10739_v6 = vpack.c.bf16 %v4074_v40, %v4073_v4  ;;  %v4064_v45 = vmul.f32 %v4060_v35, %v4052_v39  ;;  %v4053_v61 = vmul.f32 %v9335_v38, %v10686_v53  ;;  %v4075_v33 = vadd.f32 %v4072_v19, %v4063_v28  ;;  %v9119_v53 = vld [vmem:[%s11667_s8 + $0x48] sm:$0xff]  }
0x1433   : > { %v9337_v32 = vpop.eup %9336 }
0x1434   : > { %v4076_v24 = vadd.f32 %v4072_v19, %v4064_v45  ;;  %v4065_v43 = vmul.f32 %v4060_v35, %v4053_v61  ;;  %v4054_v36 = vmul.f32 %v9337_v32, %v10692_v52  ;;  %8627 = vmatprep.mubr.msk.bf16.mxu1 %vm791_vm1, %v10739_v6  ;;  %8651 = vmatprep.mubr.msk.bf16.mxu0 %vm791_vm1, %v10739_v6 }
0x1435   : > { %v9339_v12 = vpop.eup %9338 }
0x1436   : > { %v10747_v15 = vpack.c.bf16 %v4076_v24, %v4075_v33  ;;  %v4066_v1 = vmul.f32 %v4060_v35, %v4054_v36  ;;  %v4055_v57 = vmul.f32 %v9339_v12, %v10698_v3  ;;  %v4077_v44 = vadd.f32 %v4072_v19, %v4065_v43 }
0x1437   : > { %v9341_v9 = vpop.eup %9340 }
0x1438   : > { %v4078_v47 = vadd.f32 %v4072_v19, %v4066_v1  ;;  %v4067_v52 = vmul.f32 %v4060_v35, %v4055_v57  ;;  %v4056_v50 = vmul.f32 %v9341_v9, %v10704_v56  ;;  %8628 = vmatmul.mubr.msk.bf16.vlgmr.msra.gmra.mrb[88].mxu1 %vm791_vm1, %v10747_v15  ;;  %8652 = vmatmul.mubr.msk.bf16.vlgmr.msra.gmra.mrb[104].mxu0 %vm791_vm1, %v10747_v15 }
0x1439   : > { %8636 = vmatpush3.bf16.msra.mxu1 %v10728_v10 }
0x143a   : > { %v10759_v26 = vpack.c.bf16 %v4078_v47, %v4077_v44  ;;  %v4068_v3 = vmul.f32 %v4060_v35, %v4056_v50  ;;  %8637 = vmatprep.subr.bf16.mxu1 %v9119_v53  ;;  %v4079_v63 = vadd.f32 %v4072_v19, %v4067_v52  ;;  %v7675_v44 = vld [vmem:[%s11668_s9 + $0x4] ss:$0 sm:$0xff] }
0x143c   : > { %v4080_v21 = vadd.f32 %v4072_v19, %v4068_v3  ;;  %8631 = vmatprep.mubr.msk.bf16.mxu1 %vm791_vm1, %v10759_v26  ;;  %8655 = vmatprep.mubr.msk.bf16.mxu0 %vm791_vm1, %v10759_v26 }
0x143d   : > { %8638 = vmatpush3.bf16.msra.mxu1 %v9119_v53 }
0x143e   : > { %v10765_v56 = vpack.c.bf16 %v4080_v21, %v4079_v63 }
0x1440   : > { %8632 = vmatmul.mubr.msk.bf16.gmra.mrb[92].mxu1 %vm791_vm1, %v10765_v56  ;;  %8656 = vmatmul.mubr.msk.bf16.gmra.mrb[108].mxu0 %vm791_vm1, %v10765_v56 }
0x1441   : > { %8639 = vmatprep.mubr.msk.bf16.mxu1 %vm791_vm1, %v10739_v6 }
0x1448   : > { %8640 = vmatmul.mubr.msk.bf16.vlgmr.msra.gmra.mrb[96].mxu1 %vm791_vm1, %v10747_v15 }
0x1449   : > { %8643 = vmatprep.mubr.msk.bf16.mxu1 %vm791_vm1, %v10759_v26 }
0x1450   : > { %8644 = vmatmul.mubr.msk.bf16.gmra.mrb[100].mxu1 %vm791_vm1, %v10765_v56 }
0x150b   : > { %v8629_v10 = vpop.f32.mrb[88].mxu1  ;;  %v8653_v20 = vpop.f32.mrb[104].mxu0 }
0x150c   : > { %v4156_v58 = vpop.f32.mrb[89].mxu1  ;;  %v4336_v62 = vpop.f32.mrb[105].mxu0  ;;  %v10785_v30 = vadd.f32 %v8629_v10, %v7663_v59  ;;  %v4345_v60 = vadd.f32 %v8653_v20, %v7687_v17 }
0x150d   : > { %v8630_v25 = vpop.f32.mrb[90].mxu1  ;;  %v8654_v51 = vpop.f32.mrb[106].mxu0  ;;  %v4157_v0 = vadd.f32 %v7663_v59, %v4156_v58  ;;  %v4337_v37 = vadd.f32 %v7687_v17, %v4336_v62 }
0x150e   : > { %v10787_v35 = vadd.f32 %v8630_v25, %v7663_v59  ;;  %v4348_v29 = vadd.f32 %v8654_v51, %v7687_v17  ;;  %v4159_v42 = vpop.f32.mrb[91].mxu1  ;;  %v4339_v23 = vpop.f32.mrb[107].mxu0 }
0x150f   : > { %v4160_v18 = vadd.f32 %v7663_v59, %v4159_v42  ;;  %v4340_v14 = vadd.f32 %v7687_v17, %v4339_v23 }
0x1510   : > { %v4368_v46 = vpack.c.bf16 %v10787_v35, %v10785_v30  ;;  %v4557_v19 = vpack.c.bf16 %v4348_v29, %v4345_v60 }
0x1511   : > { %v4367_v13 = vpack.c.bf16 %v4160_v18, %v4157_v0  ;;  %v4556_v54 = vpack.c.bf16 %v4340_v14, %v4337_v37 }
0x1513   : > { %v8633_v55 = vpop.f32.mrb[92].mxu1  ;;  %v8657_v22 = vpop.f32.mrb[108].mxu0  ;;  %8667 = vmatprep.mubr.msk.bf16.mxu1 %vm1210_vm2, %v4367_v13  ;;  %8675 = vmatprep.subr.bf16.mxu0 %v4556_v54 }
0x1514   : > { %v4172_v16 = vpop.f32.mrb[93].mxu1  ;;  %v4352_v5 = vpop.f32.mrb[109].mxu0  ;;  %8676 = vmatpush3.bf16.msra.mxu0 %v4556_v54  ;;  %v4181_v28 = vadd.f32 %v8633_v55, %v7663_v59  ;;  %v4361_v39 = vadd.f32 %v8657_v22, %v7687_v17  ;;  %v9121_v54 = vld [vmem:[%s11667_s8 + $0x58] sm:$0xff]  }
0x1515   : > { %v8634_v4 = vpop.f32.mrb[94].mxu1  ;;  %v8658_v40 = vpop.f32.mrb[110].mxu0  ;;  %8677 = vmatprep.subr.bf16.mxu0 %v4557_v19  ;;  %v4173_v33 = vadd.f32 %v7663_v59, %v4172_v16  ;;  %v4353_v24 = vadd.f32 %v7687_v17, %v4352_v5 }
0x1516   : > { %v4184_v38 = vadd.f32 %v8634_v4, %v7663_v59  ;;  %v4364_v45 = vadd.f32 %v8658_v40, %v7687_v17  ;;  %v4175_v61 = vpop.f32.mrb[95].mxu1  ;;  %v4355_v32 = vpop.f32.mrb[111].mxu0 }
0x1517   : > { %v4176_v43 = vadd.f32 %v7663_v59, %v4175_v61  ;;  %v4356_v36 = vadd.f32 %v7687_v17, %v4355_v32 }
0x1518   : > { %v4370_v12 = vpack.c.bf16 %v4184_v38, %v4181_v28  ;;  %v4559_v1 = vpack.c.bf16 %v4364_v45, %v4361_v39  ;;  %8678 = vmatpush3.bf16.msra.mxu0 %v4557_v19  ;;  %v9120_v19 = vld [vmem:[%s11667_s8 + $0x50] sm:$0xff]  }
0x1519   : > { %v4369_v57 = vpack.c.bf16 %v4176_v43, %v4173_v33  ;;  %v4558_v53 = vpack.c.bf16 %v4356_v36, %v4353_v24  ;;  %v7720_v24 = vld [vmem:[%s11668_s9 + $0x5] ss:$0 sm:$0xff] }
0x151b   : > { %v8641_v9 = vpop.f32.mrb[96].mxu1  ;;  %8679 = vmatprep.subr.bf16.mxu0 %v4558_v53 }
0x151c   : > { %v4246_v47 = vpop.f32.mrb[97].mxu1  ;;  %8680 = vmatpush3.bf16.msra.mxu0 %v4558_v53  ;;  %v4255_v50 = vadd.f32 %v8641_v9, %v7675_v44 }
0x151d   : > { %v8642_v52 = vpop.f32.mrb[98].mxu1  ;;  %8681 = vmatprep.subr.bf16.mxu0 %v4559_v1  ;;  %v4247_v21 = vadd.f32 %v7675_v44, %v4246_v47 }
0x151e   : > { %v4258_v3 = vadd.f32 %v8642_v52, %v7675_v44  ;;  %v4249_v63 = vpop.f32.mrb[99].mxu1 }
0x151f   : > { %v4250_v10 = vadd.f32 %v7675_v44, %v4249_v63 }
0x1520   : > { %v4372_v59 = vpack.c.bf16 %v4258_v3, %v4255_v50  ;;  %8682 = vmatpush3.bf16.msra.mxu0 %v4559_v1 }
0x1521   : > { %v4371_v20 = vpack.c.bf16 %v4250_v10, %v4247_v21 }
0x1522   : > { %v4391_v18 = vsel %vm1210_vm2, %v4372_v59, 0 }
0x1523   : > { %v8645_v17 = vpop.f32.mrb[100].mxu1  ;;  %9051 = vmatprep.subr.msk.bf16.mxu1 %vm1210_vm2, %v4371_v20  ;;  %v4388_v58 = vsel %vm1210_vm2, %v4371_v20, 0 }
0x1524   : > { %v4262_v62 = vpop.f32.mrb[101].mxu1  ;;  %8660 = vmatpush3.bf16.xpose.msra.mxu1 %v4388_v58  ;;  %v4271_v51 = vadd.f32 %v8645_v17, %v7675_v44 }
0x1525   : > { %v8646_v25 = vpop.f32.mrb[102].mxu1  ;;  %9052 = vmatprep.subr.msk.bf16.mxu1 %vm1210_vm2, %v4372_v59  ;;  %v4263_v42 = vadd.f32 %v7675_v44, %v4262_v62 }
0x1526   : > { %v4274_v60 = vadd.f32 %v8646_v25, %v7675_v44  ;;  %v4265_v29 = vpop.f32.mrb[103].mxu1 }
0x1527   : > { %v4266_v23 = vadd.f32 %v7675_v44, %v4265_v29 }
0x1528   : > { %v4374_v0 = vpack.c.bf16 %v4274_v60, %v4271_v51 }
0x1529   : > { %v4373_v37 = vpack.c.bf16 %v4266_v23, %v4263_v42 }
0x152a   : > { %v4397_v13 = vsel %vm1210_vm2, %v4374_v0, 0 }
0x152b   : > { %v4394_v14 = vsel %vm1210_vm2, %v4373_v37, 0 }
0x152c   : > { %8662 = vmatpush3.bf16.xpose.msra.mxu1 %v4391_v18 }
0x152d   : > { %9053 = vmatprep.subr.msk.bf16.mxu1 %vm1210_vm2, %v4373_v37 }
0x1534   : > { %8664 = vmatpush3.bf16.xpose.msra.mxu1 %v4394_v14 }
0x1535   : > { %9054 = vmatprep.subr.msk.bf16.mxu1 %vm1210_vm2, %v4374_v0 }
0x153c   : > { %8666 = vmatpush3.bf16.xpose.msra.mxu1 %v4397_v13 }
0x153d   : > { %8703 = vmatprep.subr.bf16.mxu1 %v9120_v19 }
0x1543   : > { %8668 = vmatmul.mubr.msk.bf16.vlgmr.msra.gmra.mrb[104].mxu1 %vm1210_vm2, %v4368_v46 }
0x1544   : > { %8671 = vmatprep.mubr.msk.bf16.mxu1 %vm1210_vm2, %v4369_v57  ;;  %8704 = vmatpush3.bf16.msra.mxu1 %v9120_v19 }
0x1545   : > { %8705 = vmatprep.subr.bf16.mxu1 %v9121_v54 }
0x1548   : > { %8706 = vmatpush3.bf16.msra.mxu1 %v9121_v54 }
0x154b   : > { %8672 = vmatmul.mubr.msk.bf16.gmra.mrb[108].mxu1 %vm1210_vm2, %v4370_v12 }
0x154c   : > { %8707 = vmatprep.mubr.msk.bf16.mxu1 %vm791_vm1, %v10739_v6 }
0x1553   : > { %8708 = vmatmul.mubr.msk.bf16.vlgmr.msra.gmra.mrb[112].mxu1 %vm791_vm1, %v10747_v15 }
0x1554   : > { %8711 = vmatprep.mubr.msk.bf16.mxu1 %vm791_vm1, %v10759_v26 }
0x155b   : > { %8712 = vmatmul.mubr.msk.bf16.gmra.mrb[116].mxu1 %vm791_vm1, %v10765_v56 }
0x1616   : > { %v10823_v30 = vpop.f32.mrb[104].mxu1 }
0x1617   : > { %v4433_v35 = vpop.f32.mrb[105].mxu1  ;;  %v4470_v5 = vsel %vm1300_vm3, %v10823_v30, -inf }
0x1618   : > { %v10825_v46 = vpop.f32.mrb[106].mxu1  ;;  %v4464_v55 = vsel %vm1300_vm3, %v4433_v35, -inf }
0x1619   : > { %4465 = vmax.xlane.f32.xlu0 %v4464_v55  ;;  %v4436_v22 = vpop.f32.mrb[107].mxu1  ;;  %v4473_v40 = vsel %vm1300_vm3, %v10825_v46, -inf }
0x161a   : > { %v4467_v16 = vsel %vm1300_vm3, %v4436_v22, -inf }
0x161b   : > { %4468 = vmax.xlane.f32.xlu1 %v4467_v16 }
0x161d   : > { %4471 = vmax.xlane.f32.xlu0 %v4470_v5 }
0x161e   : > { %v10831_v4 = vpop.f32.mrb[108].mxu1 }
0x161f   : > { %4474 = vmax.xlane.f32.xlu1 %v4473_v40  ;;  %v10835_v28 = vpop.f32.mrb[109].mxu1  ;;  %v4482_v32 = vsel %vm1300_vm3, %v10831_v4, -inf }
0x1620   : > { %v10837_v39 = vpop.f32.mrb[110].mxu1  ;;  %v4476_v38 = vsel %vm1300_vm3, %v10835_v28, -inf }
0x1621   : > { %4477 = vmax.xlane.f32.xlu0 %v4476_v38  ;;  %v10841_v45 = vpop.f32.mrb[111].mxu1  ;;  %v4485_v43 = vsel %vm1300_vm3, %v10837_v39, -inf }
0x1622   : > { %v4479_v61 = vsel %vm1300_vm3, %v10841_v45, -inf }
0x1623   : > { %4480 = vmax.xlane.f32.xlu1 %v4479_v61 }
0x1625   : > { %4483 = vmax.xlane.f32.xlu0 %v4482_v32 }
0x1626   : > { %v8709_v33 = vpop.f32.mrb[112].mxu1 }
0x1627   : > { %v4792_v36 = vpop.f32.mrb[113].mxu1  ;;  %4486 = vmax.xlane.f32.xlu1 %v4485_v43  ;;  %v4801_v1 = vadd.f32 %v8709_v33, %v7720_v24 }
0x1628   : > { %v8710_v12 = vpop.f32.mrb[114].mxu1  ;;  %v4793_v9 = vadd.f32 %v7720_v24, %v4792_v36 }
0x1629   : > { %v4804_v57 = vadd.f32 %v8710_v12, %v7720_v24  ;;  %v4795_v53 = vpop.f32.mrb[115].mxu1 }
0x162a   : > { %v4796_v44 = vadd.f32 %v7720_v24, %v4795_v53 }
0x162b   : > { %v4918_v47 = vpack.c.bf16 %v4804_v57, %v4801_v1 }
0x162c   : > { %v4917_v52 = vpack.c.bf16 %v4796_v44, %v4793_v9 }
0x162d   : > { %v4937_v51 = vsel %vm1210_vm2, %v4918_v47, 0 }
0x162e   : > { %v8713_v50 = vpop.f32.mrb[116].mxu1  ;;  %9055 = vmatprep.subr.msk.bf16.mxu1 %vm1210_vm2, %v4917_v52  ;;  %v4934_v3 = vsel %vm1210_vm2, %v4917_v52, 0 }
0x162f   : > { %v4808_v63 = vpop.f32.mrb[117].mxu1  ;;  %8728 = vmatpush3.bf16.xpose.msra.mxu1 %v4934_v3  ;;  %v4817_v10 = vadd.f32 %v8713_v50, %v7720_v24 }
0x1630   : > { %v8714_v21 = vpop.f32.mrb[118].mxu1  ;;  %9056 = vmatprep.subr.msk.bf16.mxu1 %vm1210_vm2, %v4918_v47  ;;  %v4809_v17 = vadd.f32 %v7720_v24, %v4808_v63 }
0x1631   : > { %v4820_v59 = vadd.f32 %v8714_v21, %v7720_v24  ;;  %v4811_v20 = vpop.f32.mrb[119].mxu1 }
0x1632   : > { %v4812_v58 = vadd.f32 %v7720_v24, %v4811_v20 }
0x1633   : > { %v4920_v62 = vpack.c.bf16 %v4820_v59, %v4817_v10  ;;  %v9122_v10 = vld [vmem:[%s11665_s6 + $0x50] sm:$0xff]  }
0x1634   : > { %v4919_v25 = vpack.c.bf16 %v4812_v58, %v4809_v17  ;;  %8691 = vmatprep.subr.bf16.mxu0 %v9122_v10 }
0x1635   : > { %v4943_v29 = vsel %vm1210_vm2, %v4920_v62, 0 }
0x1636   : > { %v4940_v60 = vsel %vm1210_vm2, %v4919_v25, 0 }
0x1637   : > { %8730 = vmatpush3.bf16.xpose.msra.mxu1 %v4937_v51 }
0x1638   : > { %9057 = vmatprep.subr.msk.bf16.mxu1 %vm1210_vm2, %v4919_v25 }
0x163f   : > { %8732 = vmatpush3.bf16.xpose.msra.mxu1 %v4940_v60 }
0x1640   : > { %9058 = vmatprep.subr.msk.bf16.mxu1 %vm1210_vm2, %v4920_v62 }
0x1647   : > { %8734 = vmatpush3.bf16.xpose.msra.mxu1 %v4943_v29 }
0x16a6   : > { %v4466_v42 = vpop.xlane.xlu0 %4465 }
0x16a7   : > { %v4488_v23 = vsub.f32 %v4433_v35, %v4466_v42 }
0x16a8   : > { %v4469_v0 = vpop.xlane.xlu1 %4468 }
0x16a9   : > { %v4496_v37 = vmul.f32 1.442695, %v4488_v23  ;;  %v4489_v18 = vsub.f32 %v4436_v22, %v4469_v0 }
0x16aa   : > { %v4472_v14 = vpop.xlane.xlu0 %4471 }
0x16ab   : > { %9342 = vpow2.f32 %v4496_v37  ;;  %v4498_v19 = vmul.f32 1.442695, %v4489_v18  ;;  %v4490_v13 = vsub.f32 %v10823_v30, %v4472_v14 }
0x16ac   : > { %v4475_v54 = vpop.xlane.xlu1 %4474 }
0x16ad   : > { %9344 = vpow2.f32 %v4498_v19  ;;  %v4500_v55 = vmul.f32 1.442695, %v4490_v13  ;;  %v4491_v16 = vsub.f32 %v10825_v46, %v4475_v54 }
0x16ae   : > { %v4478_v5 = vpop.xlane.xlu0 %4477 }
0x16af   : > { %9346 = vpow2.f32 %v4500_v55  ;;  %v4502_v40 = vmul.f32 1.442695, %v4491_v16  ;;  %v4492_v38 = vsub.f32 %v10835_v28, %v4478_v5  ;;  %v9123_v16 = vld [vmem:[%s11665_s6 + $0x58] sm:$0xff]  }
0x16b0   : > { %v4481_v61 = vpop.xlane.xlu1 %4480 }
0x16b1   : > { %9348 = vpow2.f32 %v4502_v40  ;;  %v4504_v35 = vmul.f32 1.442695, %v4492_v38  ;;  %v4493_v22 = vsub.f32 %v10841_v45, %v4481_v61 }
0x16b2   : > { %v4484_v32 = vpop.xlane.xlu0 %4483 }
0x16b3   : > { %9350 = vpow2.f32 %v4504_v35  ;;  %v4506_v33 = vmul.f32 1.442695, %v4493_v22  ;;  %v4494_v30 = vsub.f32 %v10831_v4, %v4484_v32  ;;  %v9124_v22 = vld [vmem:[%s11669_s10 + $0x50] sm:$0xff]  }
0x16b4   : > { %v4487_v24 = vpop.xlane.xlu1 %4486 }
0x16b5   : > { %v9343_v43 = vpop.eup %9342  ;;  %9352 = vpow2.f32 %v4506_v33  ;;  %v4508_v36 = vmul.f32 1.442695, %v4494_v30  ;;  %v4495_v46 = vsub.f32 %v10837_v39, %v4487_v24 }
0x16b6   : > { %v4512_v12 = vsel %vm1300_vm3, %v9343_v43, 0.0 }
0x16b7   : > { %v9345_v1 = vpop.eup %9344  ;;  %9354 = vpow2.f32 %v4508_v36  ;;  %v4510_v28 = vmul.f32 1.442695, %v4495_v46  ;;  %4513 = vadd.xlane.f32.xlu0 %v4512_v12  ;;  %v9126_v36 = vld [vmem:[%s11665_s6 + $0x60] sm:$0xff]  }
0x16b8   : > { %v4515_v57 = vsel %vm1300_vm3, %v9345_v1, 0.0  ;;  %8779 = vmatprep.subr.bf16.mxu1 %v9126_v36 }
0x16b9   : > { %v9347_v45 = vpop.eup %9346  ;;  %9356 = vpow2.f32 %v4510_v28  ;;  %4516 = vadd.xlane.f32.xlu1 %v4515_v57 }
0x16ba   : > { %v4518_v53 = vsel %vm1300_vm3, %v9347_v45, 0.0 }
0x16bb   : > { %v9349_v4 = vpop.eup %9348  ;;  %4519 = vadd.xlane.f32.xlu0 %v4518_v53 }
0x16bc   : > { %v4521_v9 = vsel %vm1300_vm3, %v9349_v4, 0.0 }
0x16bd   : > { %v9351_v44 = vpop.eup %9350  ;;  %4522 = vadd.xlane.f32.xlu1 %v4521_v9 }
0x16be   : > { %v4524_v39 = vsel %vm1300_vm3, %v9351_v44, 0.0 }
0x16bf   : > { %v9353_v47 = vpop.eup %9352  ;;  %4525 = vadd.xlane.f32.xlu0 %v4524_v39 }
0x16c0   : > { %v4527_v52 = vsel %vm1300_vm3, %v9353_v47, 0.0 }
0x16c1   : > { %v9355_v50 = vpop.eup %9354  ;;  %4528 = vadd.xlane.f32.xlu1 %v4527_v52 }
0x16c2   : > { %v4530_v3 = vsel %vm1300_vm3, %v9355_v50, 0.0 }
0x16c3   : > { %v9357_v63 = vpop.eup %9356  ;;  %4531 = vadd.xlane.f32.xlu0 %v4530_v3 }
0x16c4   : > { %v4533_v21 = vsel %vm1300_vm3, %v9357_v63, 0.0 }
0x16c5   : > { %4534 = vadd.xlane.f32.xlu1 %v4533_v21 }
0x1744   : > { %v4514_v59 = vpop.xlane.xlu0 %4513 }
0x1745   : > { %9358 = vrcp.f32 %v4514_v59 }
0x1746   : > { %v4517_v20 = vpop.xlane.xlu1 %4516 }
0x1747   : > { %9360 = vrcp.f32 %v4517_v20 }
0x1748   : > { %v4520_v17 = vpop.xlane.xlu0 %4519 }
0x1749   : > { %9362 = vrcp.f32 %v4520_v17 }
0x174a   : > { %v4523_v58 = vpop.xlane.xlu1 %4522 }
0x174b   : > { %9364 = vrcp.f32 %v4523_v58 }
0x174c   : > { %v4526_v62 = vpop.xlane.xlu0 %4525 }
0x174d   : > { %9366 = vrcp.f32 %v4526_v62 }
0x174e   : > { %v4529_v25 = vpop.xlane.xlu1 %4528 }
0x174f   : > { %v9359_v51 = vpop.eup %9358  ;;  %9368 = vrcp.f32 %v4529_v25  ;;  %v9127_v25 = vld [vmem:[%s11665_s6 + $0x68] sm:$0xff]  }
0x1750   : > { %v4532_v60 = vpop.xlane.xlu0 %4531  ;;  %v4544_v23 = vmul.f32 %v9359_v51, %v9343_v43  ;;  %v9125_v43 = vld [vmem:[%s11669_s10 + $0x58] sm:$0xff]  }
0x1751   : > { %v9361_v29 = vpop.eup %9360  ;;  %9370 = vrcp.f32 %v4532_v60 }
0x1752   : > { %v4535_v42 = vpop.xlane.xlu1 %4534  ;;  %v4545_v0 = vmul.f32 %v9361_v29, %v9345_v1 }
0x1753   : > { %v9363_v37 = vpop.eup %9362  ;;  %9372 = vrcp.f32 %v4535_v42 }
0x1754   : > { %v4552_v18 = vpack.c.bf16 %v4545_v0, %v4544_v23  ;;  %v4546_v19 = vmul.f32 %v9363_v37, %v9347_v45  ;;  %v9128_v37 = vld [vmem:[%s11667_s8 + $0x60] sm:$0xff]  }
0x1755   : > { %v9365_v14 = vpop.eup %9364 }
0x1756   : > { %v4547_v13 = vmul.f32 %v9365_v14, %v9349_v4  ;;  %8683 = vmatprep.mubr.msk.bf16.mxu0 %vm1300_vm3, %v4552_v18 }
0x1757   : > { %v9367_v54 = vpop.eup %9366 }
0x1758   : > { %v4553_v55 = vpack.c.bf16 %v4547_v13, %v4546_v19  ;;  %v4548_v40 = vmul.f32 %v9367_v54, %v9351_v44 }
0x1759   : > { %v9369_v5 = vpop.eup %9368 }
0x175a   : > { %8684 = vmatmul.mubr.msk.bf16.vlgmr.msra.gmra.mrb[112].mxu0 %vm1300_vm3, %v4553_v55  ;;  %v4549_v38 = vmul.f32 %v9369_v5, %v9353_v47  ;;  %v7732_v55 = vld [vmem:[%s11670_s11 + $0x5] ss:$0 sm:$0xff] }
0x175b   : > { %v9371_v61 = vpop.eup %9370  ;;  %8692 = vmatpush3.bf16.msra.mxu0 %v9122_v10 }
0x175c   : > { %v4554_v35 = vpack.c.bf16 %v4549_v38, %v4548_v40  ;;  %8693 = vmatprep.subr.bf16.mxu0 %v9123_v16  ;;  %v4550_v33 = vmul.f32 %v9371_v61, %v9355_v50  ;;  %v7708_v50 = vld [vmem:[%s11666_s7 + $0x5] ss:$0 sm:$0xff] }
0x175d   : > { %v9373_v32 = vpop.eup %9372 }
0x175e   : > { %8687 = vmatprep.mubr.msk.bf16.mxu0 %vm1300_vm3, %v4554_v35  ;;  %v4551_v30 = vmul.f32 %v9373_v32, %v9357_v63 }
0x175f   : > { %8694 = vmatpush3.bf16.msra.mxu0 %v9123_v16 }
0x1760   : > { %v4555_v24 = vpack.c.bf16 %v4551_v30, %v4550_v33  ;;  %8715 = vmatprep.subr.bf16.mxu0 %v9124_v22 }
0x1762   : > { %8688 = vmatmul.mubr.msk.bf16.gmra.mrb[116].mxu0 %vm1300_vm3, %v4555_v24  ;;  %v9129_v24 = vld [vmem:[%s11667_s8 + $0x68] sm:$0xff]  }
0x1763   : > { %8695 = vmatprep.mubr.msk.bf16.mxu0 %vm791_vm1, %v10739_v6 }
0x176a   : > { %8696 = vmatmul.mubr.msk.bf16.vlgmr.msra.gmra.mrb[120].mxu0 %vm791_vm1, %v10747_v15 }
0x176b   : > { %8699 = vmatprep.mubr.msk.bf16.mxu0 %vm791_vm1, %v10759_v26  ;;  %8716 = vmatpush3.bf16.msra.mxu0 %v9124_v22 }
0x176c   : > { %8717 = vmatprep.subr.bf16.mxu0 %v9125_v43 }
0x176f   : > { %8718 = vmatpush3.bf16.msra.mxu0 %v9125_v43 }
0x1772   : > { %8700 = vmatmul.mubr.msk.bf16.gmra.mrb[124].mxu0 %vm791_vm1, %v10765_v56 }
0x1773   : > { %8719 = vmatprep.mubr.msk.bf16.mxu0 %vm791_vm1, %v10739_v6 }
0x177a   : > { %8720 = vmatmul.mubr.msk.bf16.vlgmr.msra.gmra.mrb[128].mxu0 %vm791_vm1, %v10747_v15 }
0x177b   : > { %8723 = vmatprep.mubr.msk.bf16.mxu0 %vm791_vm1, %v10759_v26 }
0x1782   : > { %8724 = vmatmul.mubr.msk.bf16.gmra.mrb[132].mxu0 %vm791_vm1, %v10765_v56 }
0x182d   : > { %v10909_v46 = vpop.f32.mrb[112].mxu0 }
0x182e   : > { %v10911_v12 = vpop.f32.mrb[113].mxu0 }
0x182f   : > { %v10913_v1 = vpop.f32.mrb[114].mxu0 }
0x1830   : > { %v10917_v57 = vpop.f32.mrb[115].mxu0 }
0x1835   : > { %v10921_v53 = vpop.f32.mrb[116].mxu0 }
0x1836   : > { %v10923_v4 = vpop.f32.mrb[117].mxu0 }
0x1837   : > { %v10925_v9 = vpop.f32.mrb[118].mxu0 }
0x1838   : > { %v10929_v39 = vpop.f32.mrb[119].mxu0 }
0x183d   : > { %v8697_v52 = vpop.f32.mrb[120].mxu0 }
0x183e   : > { %v4702_v3 = vpop.f32.mrb[121].mxu0  ;;  %v4711_v21 = vadd.f32 %v8697_v52, %v7708_v50 }
0x183f   : > { %v8698_v63 = vpop.f32.mrb[122].mxu0  ;;  %v4703_v20 = vadd.f32 %v7708_v50, %v4702_v3 }
0x1840   : > { %v4714_v10 = vadd.f32 %v8698_v63, %v7708_v50  ;;  %v4705_v59 = vpop.f32.mrb[123].mxu0 }
0x1841   : > { %v4706_v17 = vadd.f32 %v7708_v50, %v4705_v59 }
0x1842   : > { %v4914_v58 = vpack.c.bf16 %v4714_v10, %v4711_v21 }
0x1843   : > { %v4913_v62 = vpack.c.bf16 %v4706_v17, %v4703_v20 }
0x1845   : > { %v8701_v51 = vpop.f32.mrb[124].mxu0  ;;  %8735 = vmatprep.mubr.msk.bf16.mxu1 %vm1210_vm2, %v4913_v62 }
0x1846   : > { %v4718_v60 = vpop.f32.mrb[125].mxu0  ;;  %8736 = vmatmul.mubr.msk.bf16.vlgmr.msra.gmra.mrb[120].mxu1 %vm1210_vm2, %v4914_v58  ;;  %v4727_v42 = vadd.f32 %v8701_v51, %v7708_v50 }
0x1847   : > { %v8702_v29 = vpop.f32.mrb[126].mxu0  ;;  %8780 = vmatpush3.bf16.msra.mxu1 %v9126_v36  ;;  %v4719_v18 = vadd.f32 %v7708_v50, %v4718_v60 }
0x1848   : > { %v4730_v23 = vadd.f32 %v8702_v29, %v7708_v50  ;;  %v4721_v0 = vpop.f32.mrb[127].mxu0  ;;  %8781 = vmatprep.subr.bf16.mxu1 %v9127_v25 }
0x1849   : > { %v4722_v14 = vadd.f32 %v7708_v50, %v4721_v0 }
0x184a   : > { %v4916_v19 = vpack.c.bf16 %v4730_v23, %v4727_v42 }
0x184b   : > { %v4915_v13 = vpack.c.bf16 %v4722_v14, %v4719_v18  ;;  %8782 = vmatpush3.bf16.msra.mxu1 %v9127_v25 }
0x184c   : > { %8791 = vmatprep.subr.bf16.mxu1 %v9128_v37 }
0x184d   : > { %v8721_v54 = vpop.f32.mrb[128].mxu0  ;;  %8739 = vmatprep.mubr.msk.bf16.mxu1 %vm1210_vm2, %v4915_v13 }
0x184e   : > { %v4882_v16 = vpop.f32.mrb[129].mxu0  ;;  %8740 = vmatmul.mubr.msk.bf16.gmra.mrb[124].mxu1 %vm1210_vm2, %v4916_v19  ;;  %v4891_v40 = vadd.f32 %v8721_v54, %v7732_v55  ;;  %v7761_v54 = vld [vmem:[%s11666_s7 + $0x6] ss:$0 sm:$0xff] }
0x184f   : > { %v8722_v5 = vpop.f32.mrb[130].mxu0  ;;  %8783 = vmatprep.mubr.msk.bf16.mxu1 %vm791_vm1, %v10739_v6  ;;  %v4883_v35 = vadd.f32 %v7732_v55, %v4882_v16 }
0x1850   : > { %v4894_v38 = vadd.f32 %v8722_v5, %v7732_v55  ;;  %v4885_v61 = vpop.f32.mrb[131].mxu0 }
0x1851   : > { %v4886_v22 = vadd.f32 %v7732_v55, %v4885_v61 }
0x1852   : > { %v5103_v32 = vpack.c.bf16 %v4894_v38, %v4891_v40 }
0x1853   : > { %v5102_v33 = vpack.c.bf16 %v4886_v22, %v4883_v35 }
0x1855   : > { %v8725_v30 = vpop.f32.mrb[132].mxu0  ;;  %8743 = vmatprep.subr.bf16.mxu0 %v5102_v33 }
0x1856   : > { %v4898_v43 = vpop.f32.mrb[133].mxu0  ;;  %8744 = vmatpush3.bf16.msra.mxu0 %v5102_v33  ;;  %8784 = vmatmul.mubr.msk.bf16.vlgmr.msra.gmra.mrb[128].mxu1 %vm791_vm1, %v10747_v15  ;;  %v4907_v52 = vadd.f32 %v8725_v30, %v7732_v55 }
0x1857   : > { %v8726_v36 = vpop.f32.mrb[134].mxu0  ;;  %8745 = vmatprep.subr.bf16.mxu0 %v5103_v32  ;;  %8787 = vmatprep.mubr.msk.bf16.mxu1 %vm791_vm1, %v10759_v26  ;;  %v4899_v63 = vadd.f32 %v7732_v55, %v4898_v43 }
0x1858   : > { %v4910_v50 = vadd.f32 %v8726_v36, %v7732_v55  ;;  %v4901_v3 = vpop.f32.mrb[135].mxu0  ;;  %8792 = vmatpush3.bf16.msra.mxu1 %v9128_v37 }
0x1859   : > { %v4902_v21 = vadd.f32 %v7732_v55, %v4901_v3  ;;  %8793 = vmatprep.subr.bf16.mxu1 %v9129_v24 }
0x185a   : > { %v5105_v10 = vpack.c.bf16 %v4910_v50, %v4907_v52  ;;  %8746 = vmatpush3.bf16.msra.mxu0 %v5103_v32 }
0x185b   : > { %v5104_v59 = vpack.c.bf16 %v4902_v21, %v4899_v63 }
0x185c   : > { %8794 = vmatpush3.bf16.msra.mxu1 %v9129_v24 }
0x185d   : > { %8747 = vmatprep.subr.bf16.mxu0 %v5104_v59 }
0x185e   : > { %8748 = vmatpush3.bf16.msra.mxu0 %v5104_v59  ;;  %8788 = vmatmul.mubr.msk.bf16.gmra.mrb[132].mxu1 %vm791_vm1, %v10765_v56 }
0x185f   : > { %8749 = vmatprep.subr.bf16.mxu0 %v5105_v10  ;;  %8795 = vmatprep.mubr.msk.bf16.mxu1 %vm791_vm1, %v10739_v6 }
0x1862   : > { %8750 = vmatpush3.bf16.msra.mxu0 %v5105_v10 }
0x1866   : > { %8796 = vmatmul.mubr.msk.bf16.vlgmr.msra.gmra.mrb[136].mxu1 %vm791_vm1, %v10747_v15 }
0x1867   : > { %8799 = vmatprep.mubr.msk.bf16.mxu1 %vm791_vm1, %v10759_v26 }
0x186e   : > { %8800 = vmatmul.mubr.msk.bf16.gmra.mrb[140].mxu1 %vm791_vm1, %v10765_v56 }
0x1919   : > { %v10968_v20 = vpop.f32.mrb[120].mxu1 }
0x191a   : > { %v10970_v17 = vpop.f32.mrb[121].mxu1  ;;  %v5016_v60 = vsel %vm1300_vm3, %v10968_v20, -inf }
0x191b   : > { %v10972_v58 = vpop.f32.mrb[122].mxu1  ;;  %v5010_v62 = vsel %vm1300_vm3, %v10970_v17, -inf }
0x191c   : > { %5011 = vmax.xlane.f32.xlu0 %v5010_v62  ;;  %v10976_v25 = vpop.f32.mrb[123].mxu1  ;;  %v5019_v42 = vsel %vm1300_vm3, %v10972_v58, -inf  ;;  %v7773_v62 = vld [vmem:[%s11668_s9 + $0x6] ss:$0 sm:$0xff] }
0x191d   : > { %v5013_v51 = vsel %vm1300_vm3, %v10976_v25, -inf }
0x191e   : > { %5014 = vmax.xlane.f32.xlu1 %v5013_v51 }
0x1920   : > { %5017 = vmax.xlane.f32.xlu0 %v5016_v60 }
0x1921   : > { %v10982_v29 = vpop.f32.mrb[124].mxu1 }
0x1922   : > { %5020 = vmax.xlane.f32.xlu1 %v5019_v42  ;;  %v10986_v23 = vpop.f32.mrb[125].mxu1  ;;  %v5028_v19 = vsel %vm1300_vm3, %v10982_v29, -inf }
0x1923   : > { %v10988_v0 = vpop.f32.mrb[126].mxu1  ;;  %v5022_v37 = vsel %vm1300_vm3, %v10986_v23, -inf }
0x1924   : > { %5023 = vmax.xlane.f32.xlu0 %v5022_v37  ;;  %v10992_v18 = vpop.f32.mrb[127].mxu1  ;;  %v5031_v55 = vsel %vm1300_vm3, %v10988_v0, -inf }
0x1925   : > { %v5025_v14 = vsel %vm1300_vm3, %v10992_v18, -inf }
0x1926   : > { %5026 = vmax.xlane.f32.xlu1 %v5025_v14 }
0x1928   : > { %5029 = vmax.xlane.f32.xlu0 %v5028_v19 }
0x1929   : > { %v8785_v13 = vpop.f32.mrb[128].mxu1 }
0x192a   : > { %v5408_v16 = vpop.f32.mrb[129].mxu1  ;;  %5032 = vmax.xlane.f32.xlu1 %v5031_v55  ;;  %v5417_v40 = vadd.f32 %v8785_v13, %v7761_v54 }
0x192b   : > { %v8786_v5 = vpop.f32.mrb[130].mxu1  ;;  %v5409_v35 = vadd.f32 %v7761_v54, %v5408_v16 }
0x192c   : > { %v5420_v38 = vadd.f32 %v8786_v5, %v7761_v54  ;;  %v5411_v61 = vpop.f32.mrb[131].mxu1 }
0x192d   : > { %v5412_v22 = vadd.f32 %v7761_v54, %v5411_v61 }
0x192e   : > { %v5620_v32 = vpack.c.bf16 %v5420_v38, %v5417_v40 }
0x192f   : > { %v5619_v33 = vpack.c.bf16 %v5412_v22, %v5409_v35 }
0x1931   : > { %v8789_v30 = vpop.f32.mrb[132].mxu1  ;;  %8823 = vmatprep.mubr.msk.bf16.mxu1 %vm1210_vm2, %v5619_v33 }
0x1932   : > { %v5424_v24 = vpop.f32.mrb[133].mxu1  ;;  %v5433_v36 = vadd.f32 %v8789_v30, %v7761_v54 }
0x1933   : > { %v8790_v43 = vpop.f32.mrb[134].mxu1  ;;  %v5425_v3 = vadd.f32 %v7761_v54, %v5424_v24 }
0x1934   : > { %v5436_v52 = vadd.f32 %v8790_v43, %v7761_v54  ;;  %v5427_v50 = vpop.f32.mrb[135].mxu1 }
0x1935   : > { %v5428_v63 = vadd.f32 %v7761_v54, %v5427_v50  ;;  %v9130_v50 = vld [vmem:[%s11665_s6 + $0x70] sm:$0xff]  }
0x1936   : > { %v5622_v21 = vpack.c.bf16 %v5436_v52, %v5433_v36 }
0x1937   : > { %v5621_v10 = vpack.c.bf16 %v5428_v63, %v5425_v3  ;;  %v9131_v63 = vld [vmem:[%s11665_s6 + $0x78] sm:$0xff]  }
0x1939   : > { %v8797_v59 = vpop.f32.mrb[136].mxu1 }
0x193a   : > { %v5498_v51 = vpop.f32.mrb[137].mxu1  ;;  %v5507_v42 = vadd.f32 %v8797_v59, %v7773_v62  ;;  %v9132_v59 = vld [vmem:[%s11669_s10 + $0x70] sm:$0xff]  }
0x193b   : > { %v8798_v60 = vpop.f32.mrb[138].mxu1  ;;  %v5499_v19 = vadd.f32 %v7773_v62, %v5498_v51 }
0x193c   : > { %v5510_v37 = vadd.f32 %v8798_v60, %v7773_v62  ;;  %v5501_v14 = vpop.f32.mrb[139].mxu1 }
0x193d   : > { %v5502_v13 = vadd.f32 %v7773_v62, %v5501_v14 }
0x193e   : > { %v5624_v55 = vpack.c.bf16 %v5510_v37, %v5507_v42 }
0x193f   : > { %v5623_v16 = vpack.c.bf16 %v5502_v13, %v5499_v19 }
0x1940   : > { %v5643_v36 = vsel %vm1210_vm2, %v5624_v55, 0 }
0x1941   : > { %v8801_v5 = vpop.f32.mrb[140].mxu1  ;;  %9061 = vmatprep.subr.msk.bf16.mxu1 %vm1210_vm2, %v5623_v16  ;;  %v5640_v54 = vsel %vm1210_vm2, %v5623_v16, 0 }
0x1942   : > { %v5514_v40 = vpop.f32.mrb[141].mxu1  ;;  %8816 = vmatpush3.bf16.xpose.msra.mxu1 %v5640_v54  ;;  %v5523_v61 = vadd.f32 %v8801_v5, %v7773_v62 }
0x1943   : > { %v8802_v38 = vpop.f32.mrb[142].mxu1  ;;  %9062 = vmatprep.subr.msk.bf16.mxu1 %vm1210_vm2, %v5624_v55  ;;  %v5515_v33 = vadd.f32 %v7773_v62, %v5514_v40 }
0x1944   : > { %v5526_v35 = vadd.f32 %v8802_v38, %v7773_v62  ;;  %v5517_v22 = vpop.f32.mrb[143].mxu1 }
0x1945   : > { %v5518_v30 = vadd.f32 %v7773_v62, %v5517_v22  ;;  %v9133_v62 = vld [vmem:[%s11669_s10 + $0x78] sm:$0xff]  }
0x1946   : > { %v5626_v24 = vpack.c.bf16 %v5526_v35, %v5523_v61 }
0x1947   : > { %v5625_v43 = vpack.c.bf16 %v5518_v30, %v5515_v33 }
0x1948   : > { %v5649_v3 = vsel %vm1210_vm2, %v5626_v24, 0 }
0x1949   : > { %v5646_v52 = vsel %vm1210_vm2, %v5625_v43, 0 }
0x194a   : > { %8818 = vmatpush3.bf16.xpose.msra.mxu1 %v5643_v36 }
0x194b   : > { %9063 = vmatprep.subr.msk.bf16.mxu1 %vm1210_vm2, %v5625_v43 }
0x1952   : > { %8820 = vmatpush3.bf16.xpose.msra.mxu1 %v5646_v52 }
0x1953   : > { %9064 = vmatprep.subr.msk.bf16.mxu1 %vm1210_vm2, %v5626_v24 }
0x195a   : > { %8822 = vmatpush3.bf16.xpose.msra.mxu1 %v5649_v3 }
0x195b   : > { %8857 = vmatprep.subr.bf16.mxu1 %v9130_v50 }
0x1961   : > { %8824 = vmatmul.mubr.msk.bf16.vlgmr.msra.gmra.mrb[144].mxu1 %vm1210_vm2, %v5620_v32 }
0x1962   : > { %8827 = vmatprep.mubr.msk.bf16.mxu1 %vm1210_vm2, %v5621_v10  ;;  %8858 = vmatpush3.bf16.msra.mxu1 %v9130_v50 }
0x1963   : > { %8859 = vmatprep.subr.bf16.mxu1 %v9131_v63 }
0x1966   : > { %8860 = vmatpush3.bf16.msra.mxu1 %v9131_v63 }
0x1967   : > { %8881 = vmatprep.subr.bf16.mxu1 %v9132_v59 }
0x1969   : > { %8828 = vmatmul.mubr.msk.bf16.gmra.mrb[148].mxu1 %vm1210_vm2, %v5622_v21 }
0x196a   : > { %8861 = vmatprep.mubr.msk.bf16.mxu1 %vm791_vm1, %v10739_v6 }
0x1971   : > { %8862 = vmatmul.mubr.msk.bf16.vlgmr.msra.gmra.mrb[152].mxu1 %vm791_vm1, %v10747_v15 }
0x1972   : > { %8865 = vmatprep.mubr.msk.bf16.mxu1 %vm791_vm1, %v10759_v26  ;;  %8882 = vmatpush3.bf16.msra.mxu1 %v9132_v59 }
0x1973   : > { %8883 = vmatprep.subr.bf16.mxu1 %v9133_v62 }
0x1976   : > { %8884 = vmatpush3.bf16.msra.mxu1 %v9133_v62 }
0x1979   : > { %8866 = vmatmul.mubr.msk.bf16.gmra.mrb[156].mxu1 %vm791_vm1, %v10765_v56 }
0x197a   : > { %8885 = vmatprep.mubr.msk.bf16.mxu1 %vm791_vm1, %v10739_v6 }
0x1981   : > { %8886 = vmatmul.mubr.msk.bf16.vlgmr.msra.gmra.mrb[160].mxu1 %vm791_vm1, %v10747_v15 }
0x1982   : > { %8889 = vmatprep.mubr.msk.bf16.mxu1 %vm791_vm1, %v10759_v26 }
0x1989   : > { %8890 = vmatmul.mubr.msk.bf16.gmra.mrb[164].mxu1 %vm791_vm1, %v10765_v56 }
0x19a9   : > { %v5012_v32 = vpop.xlane.xlu0 %5011 }
0x19aa   : > { %v5034_v21 = vsub.f32 %v10970_v17, %v5012_v32 }
0x19ab   : > { %v5015_v10 = vpop.xlane.xlu1 %5014 }
0x19ac   : > { %v5042_v51 = vmul.f32 1.442695, %v5034_v21  ;;  %v5035_v60 = vsub.f32 %v10976_v25, %v5015_v10 }
0x19ad   : > { %v5018_v42 = vpop.xlane.xlu0 %5017 }
0x19ae   : > { %9374 = vpow2.f32 %v5042_v51  ;;  %v5044_v37 = vmul.f32 1.442695, %v5035_v60  ;;  %v5036_v14 = vsub.f32 %v10968_v20, %v5018_v42 }
0x19af   : > { %v5021_v19 = vpop.xlane.xlu1 %5020 }
0x19b0   : > { %9376 = vpow2.f32 %v5044_v37  ;;  %v5046_v13 = vmul.f32 1.442695, %v5036_v14  ;;  %v5037_v55 = vsub.f32 %v10972_v58, %v5021_v19 }
0x19b1   : > { %v5024_v16 = vpop.xlane.xlu0 %5023 }
0x19b2   : > { %9378 = vpow2.f32 %v5046_v13  ;;  %v5048_v5 = vmul.f32 1.442695, %v5037_v55  ;;  %v5038_v54 = vsub.f32 %v10986_v23, %v5024_v16 }
0x19b3   : > { %v5027_v17 = vpop.xlane.xlu1 %5026 }
0x19b4   : > { %9380 = vpow2.f32 %v5048_v5  ;;  %v5050_v40 = vmul.f32 1.442695, %v5038_v54  ;;  %v5039_v25 = vsub.f32 %v10992_v18, %v5027_v17 }
0x19b5   : > { %v5030_v38 = vpop.xlane.xlu0 %5029 }
0x19b6   : > { %9382 = vpow2.f32 %v5050_v40  ;;  %v5052_v61 = vmul.f32 1.442695, %v5039_v25  ;;  %v5040_v20 = vsub.f32 %v10982_v29, %v5030_v38  ;;  %v7810_v38 = vld [vmem:[%s11666_s7 + $0x7] ss:$0 sm:$0xff] }
0x19b7   : > { %v5033_v35 = vpop.xlane.xlu1 %5032 }
0x19b8   : > { %v11053_v22 = vpop.eup %9374  ;;  %9384 = vpow2.f32 %v5052_v61  ;;  %v5054_v58 = vmul.f32 1.442695, %v5040_v20  ;;  %v5041_v33 = vsub.f32 %v10988_v0, %v5033_v35 }
0x19b9   : > { %v5058_v23 = vsel %vm1300_vm3, %v11053_v22, 0.0 }
0x19ba   : > { %v11058_v30 = vpop.eup %9376  ;;  %9386 = vpow2.f32 %v5054_v58  ;;  %v5056_v24 = vmul.f32 1.442695, %v5041_v33  ;;  %5059 = vadd.xlane.f32.xlu0 %v5058_v23 }
0x19bb   : > { %v5061_v18 = vsel %vm1300_vm3, %v11058_v30, 0.0 }
0x19bc   : > { %v11062_v43 = vpop.eup %9378  ;;  %9388 = vpow2.f32 %v5056_v24  ;;  %5062 = vadd.xlane.f32.xlu1 %v5061_v18 }
0x19bd   : > { %v5064_v29 = vsel %vm1300_vm3, %v11062_v43, 0.0 }
0x19be   : > { %v11066_v36 = vpop.eup %9380  ;;  %5065 = vadd.xlane.f32.xlu0 %v5064_v29 }
0x19bf   : > { %v5067_v0 = vsel %vm1300_vm3, %v11066_v36, 0.0 }
0x19c0   : > { %v11070_v52 = vpop.eup %9382  ;;  %5068 = vadd.xlane.f32.xlu1 %v5067_v0 }
0x19c1   : > { %v5070_v50 = vsel %vm1300_vm3, %v11070_v52, 0.0 }
0x19c2   : > { %v11074_v3 = vpop.eup %9384  ;;  %5071 = vadd.xlane.f32.xlu0 %v5070_v50 }
0x19c3   : > { %v5073_v63 = vsel %vm1300_vm3, %v11074_v3, 0.0 }
0x19c4   : > { %v11078_v59 = vpop.eup %9386  ;;  %5074 = vadd.xlane.f32.xlu1 %v5073_v63 }
0x19c5   : > { %v5076_v62 = vsel %vm1300_vm3, %v11078_v59, 0.0 }
0x19c6   : > { %v11082_v32 = vpop.eup %9388  ;;  %5077 = vadd.xlane.f32.xlu0 %v5076_v62 }
0x19c7   : > { %v5079_v21 = vsel %vm1300_vm3, %v11082_v32, 0.0 }
0x19c8   : > { %5080 = vadd.xlane.f32.xlu1 %v5079_v21 }
0x1a34   : > { %v11086_v10 = vpop.f32.mrb[144].mxu1 }
0x1a35   : > { %v11088_v51 = vpop.f32.mrb[145].mxu1  ;;  %v5722_v19 = vsel %vm1300_vm3, %v11086_v10, -inf }
0x1a36   : > { %v11090_v60 = vpop.f32.mrb[146].mxu1  ;;  %v5716_v42 = vsel %vm1300_vm3, %v11088_v51, -inf }
0x1a37   : > { %5717 = vmax.xlane.f32.xlu0 %v5716_v42  ;;  %v11094_v37 = vpop.f32.mrb[147].mxu1  ;;  %v5725_v55 = vsel %vm1300_vm3, %v11090_v60, -inf }
0x1a38   : > { %v5719_v14 = vsel %vm1300_vm3, %v11094_v37, -inf }
0x1a39   : > { %5720 = vmax.xlane.f32.xlu1 %v5719_v14 }
0x1a3b   : > { %5723 = vmax.xlane.f32.xlu0 %v5722_v19 }
0x1a3c   : > { %v11100_v13 = vpop.f32.mrb[148].mxu1 }
0x1a3d   : > { %v11104_v16 = vpop.f32.mrb[149].mxu1  ;;  %5726 = vmax.xlane.f32.xlu1 %v5725_v55  ;;  %v5734_v25 = vsel %vm1300_vm3, %v11100_v13, -inf }
0x1a3e   : > { %v11106_v5 = vpop.f32.mrb[150].mxu1  ;;  %v5728_v54 = vsel %vm1300_vm3, %v11104_v16, -inf }
0x1a3f   : > { %5729 = vmax.xlane.f32.xlu0 %v5728_v54  ;;  %v11110_v17 = vpop.f32.mrb[151].mxu1  ;;  %v5737_v20 = vsel %vm1300_vm3, %v11106_v5, -inf }
0x1a40   : > { %v5731_v40 = vsel %vm1300_vm3, %v11110_v17, -inf }
0x1a41   : > { %5732 = vmax.xlane.f32.xlu1 %v5731_v40 }
0x1a43   : > { %5735 = vmax.xlane.f32.xlu0 %v5734_v25 }
0x1a44   : > { %v8863_v61 = vpop.f32.mrb[152].mxu1 }
0x1a45   : > { %v11121_v35 = vadd.f32 %v8863_v61, %v7810_v38  ;;  %v6042_v58 = vpop.f32.mrb[153].mxu1  ;;  %5738 = vmax.xlane.f32.xlu1 %v5737_v20 }
0x1a46   : > { %v8864_v33 = vpop.f32.mrb[154].mxu1  ;;  %v11125_v29 = vadd.f32 %v7810_v38, %v6042_v58 }
0x1a47   : > { %v11123_v23 = vadd.f32 %v8864_v33, %v7810_v38  ;;  %v5060_v24 = vpop.xlane.xlu0 %5059  ;;  %v6045_v18 = vpop.f32.mrb[155].mxu1 }
0x1a48   : > { %9390 = vrcp.f32 %v5060_v24  ;;  %v11127_v0 = vadd.f32 %v7810_v38, %v6045_v18 }
0x1a49   : > { %v5063_v63 = vpop.xlane.xlu1 %5062 }
0x1a4a   : > { %9392 = vrcp.f32 %v5063_v63 }
0x1a4b   : > { %v5066_v21 = vpop.xlane.xlu0 %5065 }
0x1a4c   : > { %9394 = vrcp.f32 %v5066_v21  ;;  %v8867_v42 = vpop.f32.mrb[156].mxu1 }
0x1a4d   : > { %v11133_v14 = vadd.f32 %v8867_v42, %v7810_v38  ;;  %v6058_v19 = vpop.f32.mrb[157].mxu1  ;;  %v5069_v55 = vpop.xlane.xlu1 %5068 }
0x1a4e   : > { %v11135_v54 = vadd.f32 %v7810_v38, %v6058_v19  ;;  %9396 = vrcp.f32 %v5069_v55  ;;  %v8868_v40 = vpop.f32.mrb[158].mxu1  ;;  %v7834_v55 = vld [vmem:[%s11670_s11 + $0x7] ss:$0 sm:$0xff] }
0x1a4f   : > { %v11137_v25 = vadd.f32 %v8868_v40, %v7810_v38  ;;  %v5072_v61 = vpop.xlane.xlu0 %5071  ;;  %v6061_v20 = vpop.f32.mrb[159].mxu1 }
0x1a50   : > { %9398 = vrcp.f32 %v5072_v61  ;;  %v11139_v58 = vadd.f32 %v7810_v38, %v6061_v20 }
0x1a51   : > { %v5075_v24 = vpop.xlane.xlu1 %5074 }
0x1a52   : > { %v9391_v18 = vpop.eup %9390  ;;  %9400 = vrcp.f32 %v5075_v24 }
0x1a53   : > { %v5078_v21 = vpop.xlane.xlu0 %5077  ;;  %v5090_v61 = vmul.f32 %v9391_v18, %v11053_v22 }
0x1a54   : > { %v9393_v42 = vpop.eup %9392  ;;  %9402 = vrcp.f32 %v5078_v21  ;;  %v8887_v19 = vpop.f32.mrb[160].mxu1 }
0x1a55   : > { %v6222_v40 = vpop.f32.mrb[161].mxu1  ;;  %v5081_v38 = vpop.xlane.xlu1 %5080  ;;  %v5091_v20 = vmul.f32 %v9393_v42, %v11058_v30  ;;  %v6231_v50 = vadd.f32 %v8887_v19, %v7834_v55 }
0x1a56   : > { %v9395_v27 = vpop.eup %9394  ;;  %9404 = vrcp.f32 %v5081_v38  ;;  %v8888_v33 = vpop.f32.mrb[162].mxu1  ;;  %v6223_v21 = vadd.f32 %v7834_v55, %v6222_v40 }
0x1a57   : > { %v6234_v63 = vadd.f32 %v8888_v33, %v7834_v55  ;;  %v6225_v24 = vpop.f32.mrb[163].mxu1  ;;  %v5098_v62 = vpack.c.bf16 %v5091_v20, %v5090_v61  ;;  %v5092_v28 = vmul.f32 %v9395_v27, %v11062_v43 }
0x1a58   : > { %v9397_v44 = vpop.eup %9396  ;;  %v6226_v47 = vadd.f32 %v7834_v55, %v6225_v24  ;;  %v7747_v24 = vld [vmem:[%s11671_s12 + $0x14] sm:$0xf] }
0x1a59   : > { %v5093_v45 = vmul.f32 %v9397_v44, %v11066_v36  ;;  %v6443_v2 = vpack.c.bf16 %v6234_v63, %v6231_v50  ;;  %8751 = vmatprep.mubr.msk.bf16.mxu0 %vm1300_vm3, %v5098_v62  ;;  %9059 = vmatprep.subr.msk.bf16.mxu0 %vm2037_vm4, %v7747_v24 }
0x1a5a   : > { %v9399_v22 = vpop.eup %9398  ;;  %v6442_v18 = vpack.c.bf16 %v6226_v47, %v6223_v21  ;;  %v5202_v21 = vsel %vm2037_vm4, %v7747_v24, 0 }
0x1a5b   : > { %v5099_v30 = vpack.c.bf16 %v5093_v45, %v5092_v28  ;;  %v5094_v19 = vmul.f32 %v9399_v22, %v11070_v52 }
0x1a5c   : > { %v9401_v42 = vpop.eup %9400  ;;  %v8891_v38 = vpop.f32.mrb[164].mxu1  ;;  %8909 = vmatprep.subr.bf16.mxu1 %v6442_v18 }
0x1a5d   : > { %8752 = vmatmul.mubr.msk.bf16.vlgmr.msra.gmra.mrb[136].mxu0 %vm1300_vm3, %v5099_v30  ;;  %v6238_v33 = vpop.f32.mrb[165].mxu1  ;;  %8910 = vmatpush3.bf16.msra.mxu1 %v6442_v18  ;;  %v5095_v40 = vmul.f32 %v9401_v42, %v11074_v3  ;;  %v6247_v44 = vadd.f32 %v8891_v38, %v7834_v55 }
0x1a5e   : > { %v9403_v27 = vpop.eup %9402  ;;  %v8892_v43 = vpop.f32.mrb[166].mxu1  ;;  %8911 = vmatprep.subr.bf16.mxu1 %v6443_v2  ;;  %v6239_v28 = vadd.f32 %v7834_v55, %v6238_v33  ;;  %8760 = vmatpush3.bf16.msra.mxu0 %v5202_v21 }
0x1a5f   : > { %v6250_v36 = vadd.f32 %v8892_v43, %v7834_v55  ;;  %v6241_v50 = vpop.f32.mrb[167].mxu1  ;;  %v5100_v62 = vpack.c.bf16 %v5095_v40, %v5094_v19  ;;  %v5096_v61 = vmul.f32 %v9403_v27, %v11078_v59 }
0x1a60   : > { %v9405_v47 = vpop.eup %9404  ;;  %v6242_v45 = vadd.f32 %v7834_v55, %v6241_v50 }
0x1a61   : > { %v6445_v63 = vpack.c.bf16 %v6250_v36, %v6247_v44  ;;  %8755 = vmatprep.mubr.msk.bf16.mxu0 %vm1300_vm3, %v5100_v62  ;;  %8912 = vmatpush3.bf16.msra.mxu1 %v6443_v2  ;;  %v5097_v52 = vmul.f32 %v9405_v47, %v11082_v32  ;;  %v11168_v2 = vld [vmem:[%s11671_s12 + $0x10] sm:$0xf] }
0x1a62   : > { %v6444_v20 = vpack.c.bf16 %v6242_v45, %v6239_v28  ;;  %9060 = vmatprep.subr.msk.bf16.mxu0 %vm2037_vm4, %v11168_v2 }
0x1a63   : > { %v5101_v3 = vpack.c.bf16 %v5097_v52, %v5096_v61 }
0x1a64   : > { %8913 = vmatprep.subr.bf16.mxu1 %v6444_v20 }
0x1a65   : > { %8756 = vmatmul.mubr.msk.bf16.gmra.mrb[140].mxu0 %vm1300_vm3, %v5101_v3  ;;  %8914 = vmatpush3.bf16.msra.mxu1 %v6444_v20 }
0x1a66   : > { %8915 = vmatprep.subr.bf16.mxu1 %v6445_v63 }
0x1a69   : > { %8916 = vmatpush3.bf16.msra.mxu1 %v6445_v63 }
0x1ac4   : > { %v5718_v59 = vpop.xlane.xlu0 %5717 }
0x1ac5   : > { %v5740_v32 = vsub.f32 %v11088_v51, %v5718_v59 }
0x1ac6   : > { %v5721_v55 = vpop.xlane.xlu1 %5720 }
0x1ac7   : > { %v5748_v22 = vmul.f32 1.442695, %v5740_v32  ;;  %v5741_v18 = vsub.f32 %v11094_v37, %v5721_v55 }
0x1ac8   : > { %v5724_v30 = vpop.xlane.xlu0 %5723 }
0x1ac9   : > { %9406 = vpow2.f32 %v5748_v22  ;;  %v5750_v42 = vmul.f32 1.442695, %v5741_v18  ;;  %v5742_v38 = vsub.f32 %v11086_v10, %v5724_v30 }
0x1aca   : > { %v5727_v33 = vpop.xlane.xlu1 %5726 }
0x1acb   : > { %9408 = vpow2.f32 %v5750_v42  ;;  %v5752_v19 = vmul.f32 1.442695, %v5742_v38  ;;  %v5743_v40 = vsub.f32 %v11090_v60, %v5727_v33 }
0x1acc   : > { %v5730_v27 = vpop.xlane.xlu0 %5729 }
0x1acd   : > { %9410 = vpow2.f32 %v5752_v19  ;;  %v5754_v43 = vmul.f32 1.442695, %v5743_v40  ;;  %v5744_v44 = vsub.f32 %v11104_v16, %v5730_v27  ;;  %v5282_v27 = vsel %vm2037_vm4, %v11168_v2, 0 }
0x1ace   : > { %v5733_v51 = vpop.xlane.xlu1 %5732  ;;  %v11721_v2 = vpack.c.bf16 %v10917_v57, %v10911_v12  ;;  %v11724_v12 = vpack.c.bf16 %v10925_v9, %v10921_v53 }
0x1acf   : > { %9412 = vpow2.f32 %v5754_v43  ;;  %v5756_v36 = vmul.f32 1.442695, %v5744_v44  ;;  %v5745_v37 = vsub.f32 %v11110_v17, %v5733_v51  ;;  %v9134_v43 = vld [vmem:[%s11669_s10 + $0x60] sm:$0xff]  }
0x1ad0   : > { %v5736_v50 = vpop.xlane.xlu0 %5735 }
0x1ad1   : > { %9414 = vpow2.f32 %v5756_v36  ;;  %v5758_v62 = vmul.f32 1.442695, %v5745_v37  ;;  %v5746_v10 = vsub.f32 %v11100_v13, %v5736_v50 }
0x1ad2   : > { %v5739_v47 = vpop.xlane.xlu1 %5738 }
0x1ad3   : > { %v11179_v28 = vpop.eup %9406  ;;  %9416 = vpow2.f32 %v5758_v62  ;;  %v5760_v60 = vmul.f32 1.442695, %v5746_v10  ;;  %v5747_v45 = vsub.f32 %v11106_v5, %v5739_v47  ;;  %v9135_v10 = vld [vmem:[%s11669_s10 + $0x68] sm:$0xff]   ;;  %v11722_v47 = vpack.c.bf16 %v10913_v1, %v10909_v46 }
0x1ad4   : > { %v5764_v16 = vsel %vm1300_vm3, %v11179_v28, 0.0 }
0x1ad5   : > { %v11184_v63 = vpop.eup %9408  ;;  %9418 = vpow2.f32 %v5760_v60  ;;  %v5762_v61 = vmul.f32 1.442695, %v5747_v45  ;;  %5765 = vadd.xlane.f32.xlu0 %v5764_v16  ;;  %v11723_v60 = vpack.c.bf16 %v10929_v39, %v10923_v4 }
0x1ad6   : > { %v5767_v17 = vsel %vm1300_vm3, %v11184_v63, 0.0 }
0x1ad7   : > { %v11188_v52 = vpop.eup %9410  ;;  %9420 = vpow2.f32 %v5762_v61  ;;  %5768 = vadd.xlane.f32.xlu1 %v5767_v17  ;;  %v7785_v17 = vld [vmem:[%s11670_s11 + $0x6] ss:$0 sm:$0xff] }
0x1ad8   : > { %v5770_v13 = vsel %vm1300_vm3, %v11188_v52, 0.0 }
0x1ad9   : > { %v11192_v20 = vpop.eup %9412  ;;  %5771 = vadd.xlane.f32.xlu0 %v5770_v13 }
0x1ada   : > { %v5773_v5 = vsel %vm1300_vm3, %v11192_v20, 0.0 }
0x1adb   : > { %v11196_v3 = vpop.eup %9414  ;;  %5774 = vadd.xlane.f32.xlu1 %v5773_v5 }
0x1adc   : > { %v5776_v24 = vsel %vm1300_vm3, %v11196_v3, 0.0 }
0x1add   : > { %v11200_v21 = vpop.eup %9416  ;;  %5777 = vadd.xlane.f32.xlu0 %v5776_v24 }
0x1ade   : > { %v5779_v59 = vsel %vm1300_vm3, %v11200_v21, 0.0 }
0x1adf   : > { %v11204_v32 = vpop.eup %9418  ;;  %5780 = vadd.xlane.f32.xlu1 %v5779_v59 }
0x1ae0   : > { %v5782_v55 = vsel %vm1300_vm3, %v11204_v32, 0.0 }
0x1ae1   : > { %v11208_v22 = vpop.eup %9420  ;;  %5783 = vadd.xlane.f32.xlu0 %v5782_v55 }
0x1ae2   : > { %v5785_v18 = vsel %vm1300_vm3, %v11208_v22, 0.0 }
0x1ae3   : > { %5786 = vadd.xlane.f32.xlu1 %v5785_v18 }
0x1b30   : > { %v8753_v30 = vpop.f32.mrb[136].mxu0 }
0x1b31   : > { %v5152_v42 = vpop.f32.mrb[137].mxu0 }
0x1b32   : > { %v8754_v38 = vpop.f32.mrb[138].mxu0 }
0x1b33   : > { %v5184_v33 = vpack.c.bf16 %v8754_v38, %v8753_v30  ;;  %v5155_v19 = vpop.f32.mrb[139].mxu0 }
0x1b34   : > { %v5183_v40 = vpack.c.bf16 %v5155_v19, %v5152_v42 }
0x1b36   : > { %8761 = vmatprep.mubr.msk.bf16.mxu0 %vm1210_vm2, %v5183_v40 }
0x1b37   : > { %8762 = vmatmul.mubr.msk.bf16.vlgmr.msra.gmra.mrb[144].mxu0 %vm1210_vm2, %v5184_v33 }
0x1b38   : > { %v8757_v44 = vpop.f32.mrb[140].mxu0  ;;  %8770 = vmatpush3.bf16.msra.mxu0 %v5282_v27 }
0x1b39   : > { %v5168_v51 = vpop.f32.mrb[141].mxu0  ;;  %8803 = vmatprep.subr.bf16.mxu0 %v9134_v43 }
0x1b3a   : > { %v8758_v36 = vpop.f32.mrb[142].mxu0 }
0x1b3b   : > { %v5186_v37 = vpack.c.bf16 %v8758_v36, %v8757_v44  ;;  %v5171_v50 = vpop.f32.mrb[143].mxu0 }
0x1b3c   : > { %v5185_v62 = vpack.c.bf16 %v5171_v50, %v5168_v51 }
0x1b3e   : > { %8765 = vmatprep.mubr.msk.bf16.mxu0 %vm1210_vm2, %v5185_v62 }
0x1b3f   : > { %8766 = vmatmul.mubr.msk.bf16.gmra.mrb[148].mxu0 %vm1210_vm2, %v5186_v37 }
0x1b40   : > { %8771 = vmatprep.mubr.msk.bf16.mxu0 %vm1210_vm2, %v11721_v2 }
0x1b47   : > { %8772 = vmatmul.mubr.msk.bf16.vlgmr.msra.gmra.mrb[144].mxu0 %vm1210_vm2, %v11722_v47 }
0x1b48   : > { %8775 = vmatprep.mubr.msk.bf16.mxu0 %vm1210_vm2, %v11723_v60  ;;  %8804 = vmatpush3.bf16.msra.mxu0 %v9134_v43 }
0x1b49   : > { %8805 = vmatprep.subr.bf16.mxu0 %v9135_v10 }
0x1b4c   : > { %8806 = vmatpush3.bf16.msra.mxu0 %v9135_v10 }
0x1b4f   : > { %8776 = vmatmul.mubr.msk.bf16.gmra.mrb[148].mxu0 %vm1210_vm2, %v11724_v12 }
0x1b50   : > { %8807 = vmatprep.mubr.msk.bf16.mxu0 %vm791_vm1, %v10739_v6 }
0x1b57   : > { %8808 = vmatmul.mubr.msk.bf16.vlgmr.msra.gmra.mrb[152].mxu0 %vm791_vm1, %v10747_v15 }
0x1b58   : > { %8811 = vmatprep.mubr.msk.bf16.mxu0 %vm791_vm1, %v10759_v26 }
0x1b5f   : > { %8812 = vmatmul.mubr.msk.bf16.gmra.mrb[156].mxu0 %vm791_vm1, %v10765_v56 }
0x1b62   : > { %v5766_v46 = vpop.xlane.xlu0 %5765 }
0x1b63   : > { %9422 = vrcp.f32 %v5766_v46 }
0x1b64   : > { %v5769_v1 = vpop.xlane.xlu1 %5768 }
0x1b65   : > { %9424 = vrcp.f32 %v5769_v1 }
0x1b66   : > { %v5772_v16 = vpop.xlane.xlu0 %5771 }
0x1b68   : > { %v5775_v45 = vpop.xlane.xlu1 %5774 }
0x1b69   : > { %9426 = vrcp.f32 %v5775_v45 }
0x1b6c   : > { %v5781_v24 = vpop.xlane.xlu1 %5780 }
0x1b6d   : > { %v9423_v57 = vpop.eup %9422  ;;  %9428 = vrcp.f32 %v5781_v24 }
0x1b6e   : > { %v5796_v4 = vmul.f32 %v9423_v57, %v11179_v28  ;;  %9430 = vrcp.f32 %v5772_v16  ;;  %v7800_v57 = vld [vmem:[%s11671_s12 + $0x18] sm:$0xf] }
0x1b6f   : > { %v9425_v53 = vpop.eup %9424 }
0x1b70   : > { %v5797_v9 = vmul.f32 %v9425_v53, %v11184_v63  ;;  %v5778_v63 = vpop.xlane.xlu0 %5777  ;;  %v5787_v40 = vpop.xlane.xlu1 %5786 }
0x1b71   : > { %9432 = vrcp.f32 %v5778_v63 }
0x1b72   : > { %v5804_v39 = vpack.c.bf16 %v5797_v9, %v5796_v4  ;;  %9434 = vrcp.f32 %v5787_v40 }
0x1b73   : > { %v9427_v10 = vpop.eup %9426 }
0x1b74   : > { %8839 = vmatprep.mubr.msk.bf16.mxu0 %vm1300_vm3, %v5804_v39  ;;  %v5784_v36 = vpop.xlane.xlu0 %5783  ;;  %v5799_v46 = vmul.f32 %v9427_v10, %v11192_v20  ;;  %v5908_v39 = vsel %vm2037_vm4, %v7800_v57, 0 }
0x1b75   : > { %9436 = vrcp.f32 %v5784_v36 }
0x1b77   : > { %v9429_v47 = vpop.eup %9428 }
0x1b78   : > { %v9431_v60 = vpop.eup %9430  ;;  %v5801_v1 = vmul.f32 %v9429_v47, %v11200_v21 }
0x1b79   : > { %v5798_v53 = vmul.f32 %v9431_v60, %v11188_v52 }
0x1b7b   : > { %v9433_v12 = vpop.eup %9432  ;;  %v5805_v9 = vpack.c.bf16 %v5799_v46, %v5798_v53  ;;  %v11726_v53 = vpack.c.bf16 %v11123_v23, %v11121_v35 }
0x1b7c   : > { %v5800_v4 = vmul.f32 %v9433_v12, %v11196_v3  ;;  %v9435_v45 = vpop.eup %9434  ;;  %v9136_v3 = vld [vmem:[%s11667_s8 + $0x70] sm:$0xff]  }
0x1b7d   : > { %v5803_v21 = vmul.f32 %v9435_v45, %v11208_v22  ;;  %v9137_v22 = vld [vmem:[%s11667_s8 + $0x78] sm:$0xff]  }
0x1b7e   : > { %v5806_v16 = vpack.c.bf16 %v5801_v1, %v5800_v4  ;;  %v11727_v4 = vpack.c.bf16 %v11139_v58, %v11135_v54 }
0x1b7f   : > { %v9437_v20 = vpop.eup %9436 }
0x1b80   : > { %v5802_v52 = vmul.f32 %v9437_v20, %v11204_v32 }
0x1c2a   : > { %v8809_v61 = vpop.f32.mrb[152].mxu0 }
0x1c2b   : > { %v5588_v13 = vpop.f32.mrb[153].mxu0  ;;  %v5597_v59 = vadd.f32 %v8809_v61, %v7785_v17  ;;  %v5807_v61 = vpack.c.bf16 %v5803_v21, %v5802_v52 }
0x1c2c   : > { %v8810_v5 = vpop.f32.mrb[154].mxu0  ;;  %v5589_v30 = vadd.f32 %v7785_v17, %v5588_v13 }
0x1c2d   : > { %v5600_v55 = vadd.f32 %v8810_v5, %v7785_v17  ;;  %v5591_v18 = vpop.f32.mrb[155].mxu0 }
0x1c2e   : > { %v5592_v28 = vadd.f32 %v7785_v17, %v5591_v18 }
0x1c2f   : > { %v5809_v42 = vpack.c.bf16 %v5600_v55, %v5597_v59 }
0x1c30   : > { %v5808_v38 = vpack.c.bf16 %v5592_v28, %v5589_v30 }
0x1c32   : > { %v8813_v33 = vpop.f32.mrb[156].mxu0  ;;  %8831 = vmatprep.subr.bf16.mxu0 %v5808_v38 }
0x1c33   : > { %v5604_v19 = vpop.f32.mrb[157].mxu0  ;;  %8832 = vmatpush3.bf16.msra.mxu0 %v5808_v38  ;;  %v5613_v43 = vadd.f32 %v8813_v33, %v7785_v17  ;;  %v11725_v38 = vpack.c.bf16 %v11127_v0, %v11125_v29 }
0x1c34   : > { %v8814_v27 = vpop.f32.mrb[158].mxu0  ;;  %8833 = vmatprep.subr.bf16.mxu0 %v5809_v42  ;;  %v5605_v37 = vadd.f32 %v7785_v17, %v5604_v19  ;;  %v7822_v19 = vld [vmem:[%s11668_s9 + $0x7] ss:$0 sm:$0xff] }
0x1c35   : > { %v5616_v44 = vadd.f32 %v8814_v27, %v7785_v17  ;;  %v5607_v51 = vpop.f32.mrb[159].mxu0 }
0x1c36   : > { %v5608_v50 = vadd.f32 %v7785_v17, %v5607_v51 }
0x1c37   : > { %v5811_v62 = vpack.c.bf16 %v5616_v44, %v5613_v43  ;;  %8834 = vmatpush3.bf16.msra.mxu0 %v5809_v42 }
0x1c38   : > { %v5810_v2 = vpack.c.bf16 %v5608_v50, %v5605_v37 }
0x1c3a   : > { %8835 = vmatprep.subr.bf16.mxu0 %v5810_v2 }
0x1c3b   : > { %8836 = vmatpush3.bf16.msra.mxu0 %v5810_v2 }
0x1c3c   : > { %8837 = vmatprep.subr.bf16.mxu0 %v5811_v62 }
0x1c3f   : > { %8838 = vmatpush3.bf16.msra.mxu0 %v5811_v62 }
0x1c40   : > { %9065 = vmatprep.subr.msk.bf16.mxu0 %vm2037_vm4, %v7800_v57 }
0x1c42   : > { %8840 = vmatmul.mubr.msk.bf16.vlgmr.msra.gmra.mrb[160].mxu0 %vm1300_vm3, %v5805_v9  ;;  %v11728_v9 = vpack.c.bf16 %v11137_v25, %v11133_v14 }
0x1c43   : > { %8843 = vmatprep.mubr.msk.bf16.mxu0 %vm1300_vm3, %v5806_v16  ;;  %8848 = vmatpush3.bf16.msra.mxu0 %v5908_v39 }
0x1c44   : > { %8869 = vmatprep.subr.bf16.mxu0 %v9136_v3 }
0x1c4a   : > { %8844 = vmatmul.mubr.msk.bf16.gmra.mrb[164].mxu0 %vm1300_vm3, %v5807_v61 }
0x1d15   : > { %v8841_v17 = vpop.f32.mrb[160].mxu0 }
0x1d16   : > { %v5858_v13 = vpop.f32.mrb[161].mxu0 }
0x1d17   : > { %v8842_v5 = vpop.f32.mrb[162].mxu0 }
0x1d18   : > { %v5890_v24 = vpack.c.bf16 %v8842_v5, %v8841_v17  ;;  %v5861_v59 = vpop.f32.mrb[163].mxu0 }
0x1d19   : > { %v5889_v55 = vpack.c.bf16 %v5861_v59, %v5858_v13 }
0x1d1b   : > { %8849 = vmatprep.mubr.msk.bf16.mxu0 %vm1210_vm2, %v5889_v55 }
0x1d1c   : > { %8850 = vmatmul.mubr.msk.bf16.vlgmr.msra.gmra.mrb[144].mxu0 %vm1210_vm2, %v5890_v24 }
0x1d1d   : > { %v8845_v32 = vpop.f32.mrb[164].mxu0  ;;  %8870 = vmatpush3.bf16.msra.mxu0 %v9136_v3 }
0x1d1e   : > { %v5874_v18 = vpop.f32.mrb[165].mxu0  ;;  %8871 = vmatprep.subr.bf16.mxu0 %v9137_v22 }
0x1d1f   : > { %v8846_v30 = vpop.f32.mrb[166].mxu0 }
0x1d20   : > { %v5892_v28 = vpack.c.bf16 %v8846_v30, %v8845_v32  ;;  %v5877_v63 = vpop.f32.mrb[167].mxu0 }
0x1d21   : > { %v5891_v42 = vpack.c.bf16 %v5877_v63, %v5874_v18  ;;  %8872 = vmatpush3.bf16.msra.mxu0 %v9137_v22 }
0x1d23   : > { %8853 = vmatprep.mubr.msk.bf16.mxu0 %vm1210_vm2, %v5891_v42 }
0x1d24   : > { %8854 = vmatmul.mubr.msk.bf16.gmra.mrb[148].mxu0 %vm1210_vm2, %v5892_v28 }
0x1d25   : > { %8873 = vmatprep.mubr.msk.bf16.mxu0 %vm791_vm1, %v10739_v6 }
0x1d2c   : > { %8874 = vmatmul.mubr.msk.bf16.vlgmr.msra.gmra.mrb[168].mxu0 %vm791_vm1, %v10747_v15 }
0x1d2d   : > { %8877 = vmatprep.mubr.msk.bf16.mxu0 %vm791_vm1, %v10759_v26 }
0x1d34   : > { %8878 = vmatmul.mubr.msk.bf16.gmra.mrb[172].mxu0 %vm791_vm1, %v10765_v56 }
0x1d35   : > { %8901 = vmatprep.mubr.msk.bf16.mxu0 %vm1210_vm2, %v11725_v38 }
0x1dff   : > { %v8875_v33 = vpop.f32.mrb[168].mxu0 }
0x1e00   : > { %v6132_v6 = vpop.f32.mrb[169].mxu0  ;;  %v6141_v27 = vadd.f32 %v8875_v33, %v7822_v19 }
0x1e01   : > { %v8876_v40 = vpop.f32.mrb[170].mxu0  ;;  %v6133_v44 = vadd.f32 %v7822_v19, %v6132_v6 }
0x1e02   : > { %v6144_v15 = vadd.f32 %v8876_v40, %v7822_v19  ;;  %v6135_v43 = vpop.f32.mrb[171].mxu0 }
0x1e03   : > { %v6136_v26 = vadd.f32 %v7822_v19, %v6135_v43 }
0x1e04   : > { %v6258_v51 = vpack.c.bf16 %v6144_v15, %v6141_v27 }
0x1e05   : > { %v6257_v36 = vpack.c.bf16 %v6136_v26, %v6133_v44 }
0x1e06   : > { %v6277_v46 = vsel %vm1210_vm2, %v6258_v51, 0 }
0x1e07   : > { %v8879_v56 = vpop.f32.mrb[172].mxu0  ;;  %9066 = vmatprep.subr.msk.bf16.mxu0 %vm1210_vm2, %v6257_v36  ;;  %v6274_v29 = vsel %vm1210_vm2, %v6257_v36, 0 }
0x1e08   : > { %v6148_v0 = vpop.f32.mrb[173].mxu0  ;;  %8894 = vmatpush3.bf16.xpose.msra.mxu0 %v6274_v29  ;;  %v6157_v50 = vadd.f32 %v8879_v56, %v7822_v19 }
0x1e09   : > { %v8880_v37 = vpop.f32.mrb[174].mxu0  ;;  %9067 = vmatprep.subr.msk.bf16.mxu0 %vm1210_vm2, %v6258_v51  ;;  %v6149_v10 = vadd.f32 %v7822_v19, %v6148_v0 }
0x1e0a   : > { %v6160_v62 = vadd.f32 %v8880_v37, %v7822_v19  ;;  %v6151_v2 = vpop.f32.mrb[175].mxu0 }
0x1e0b   : > { %v6152_v47 = vadd.f32 %v7822_v19, %v6151_v2 }
0x1e0c   : > { %v6260_v60 = vpack.c.bf16 %v6160_v62, %v6157_v50 }
0x1e0d   : > { %v6259_v12 = vpack.c.bf16 %v6152_v47, %v6149_v10 }
0x1e0e   : > { %v6283_v57 = vsel %vm1210_vm2, %v6260_v60, 0 }
0x1e0f   : > { %v6280_v1 = vsel %vm1210_vm2, %v6259_v12, 0 }
0x1e10   : > { %8896 = vmatpush3.bf16.xpose.msra.mxu0 %v6277_v46 }
0x1e11   : > { %9068 = vmatprep.subr.msk.bf16.mxu0 %vm1210_vm2, %v6259_v12 }
0x1e18   : > { %8898 = vmatpush3.bf16.xpose.msra.mxu0 %v6280_v1 }
0x1e19   : > { %9069 = vmatprep.subr.msk.bf16.mxu0 %vm1210_vm2, %v6260_v60 }
0x1e20   : > { %8900 = vmatpush3.bf16.xpose.msra.mxu0 %v6283_v57 }
0x1e27   : > { %8902 = vmatmul.mubr.msk.bf16.vlgmr.msra.gmra.mrb[176].mxu0 %vm1210_vm2, %v11726_v53 }
0x1e28   : > { %8905 = vmatprep.mubr.msk.bf16.mxu0 %vm1210_vm2, %v11727_v4 }
0x1e2f   : > { %8906 = vmatmul.mubr.msk.bf16.gmra.mrb[180].mxu0 %vm1210_vm2, %v11728_v9 }
0x1efa   : > { %v8903_v39 = vpop.f32.mrb[176].mxu0 }
0x1efb   : > { %v6319_v45 = vpop.f32.mrb[177].mxu0  ;;  %v6356_v23 = vsel %vm1300_vm3, %v8903_v39, -inf }
0x1efc   : > { %v8904_v16 = vpop.f32.mrb[178].mxu0  ;;  %v6350_v20 = vsel %vm1300_vm3, %v6319_v45, -inf }
0x1efd   : > { %6351 = vmax.xlane.f32.xlu0 %v6350_v20  ;;  %v6322_v21 = vpop.f32.mrb[179].mxu0  ;;  %v6359_v58 = vsel %vm1300_vm3, %v8904_v16, -inf }
0x1efe   : > { %v6353_v35 = vsel %vm1300_vm3, %v6322_v21, -inf }
0x1eff   : > { %6354 = vmax.xlane.f32.xlu1 %v6353_v35 }
0x1f01   : > { %6357 = vmax.xlane.f32.xlu0 %v6356_v23 }
0x1f02   : > { %v8907_v54 = vpop.f32.mrb[180].mxu0 }
0x1f03   : > { %6360 = vmax.xlane.f32.xlu1 %v6359_v58  ;;  %v6335_v14 = vpop.f32.mrb[181].mxu0  ;;  %v6368_v17 = vsel %vm1300_vm3, %v8907_v54, -inf }
0x1f04   : > { %v8908_v25 = vpop.f32.mrb[182].mxu0  ;;  %v6362_v52 = vsel %vm1300_vm3, %v6335_v14, -inf }
0x1f05   : > { %6363 = vmax.xlane.f32.xlu0 %v6362_v52  ;;  %v6338_v61 = vpop.f32.mrb[183].mxu0  ;;  %v6371_v13 = vsel %vm1300_vm3, %v8908_v25, -inf }
0x1f06   : > { %v6365_v3 = vsel %vm1300_vm3, %v6338_v61, -inf }
0x1f07   : > { %6366 = vmax.xlane.f32.xlu1 %v6365_v3 }
0x1f09   : > { %6369 = vmax.xlane.f32.xlu0 %v6368_v17 }
0x1f0b   : > { %6372 = vmax.xlane.f32.xlu1 %v6371_v13 }
0x1f8a   : > { %v6352_v5 = vpop.xlane.xlu0 %6351 }
0x1f8b   : > { %v6374_v24 = vsub.f32 %v6319_v45, %v6352_v5 }
0x1f8c   : > { %v6355_v59 = vpop.xlane.xlu1 %6354 }
0x1f8d   : > { %v6382_v55 = vmul.f32 1.442695, %v6374_v24  ;;  %v6375_v22 = vsub.f32 %v6322_v21, %v6355_v59 }
0x1f8e   : > { %v6358_v32 = vpop.xlane.xlu0 %6357 }
0x1f8f   : > { %9438 = vpow2.f32 %v6382_v55  ;;  %v6384_v18 = vmul.f32 1.442695, %v6375_v22  ;;  %v6376_v30 = vsub.f32 %v8903_v39, %v6358_v32  ;;  %v7849_v39 = vld [vmem:[%s11671_s12 + $0x1c] sm:$0xf] }
0x1f90   : > { %v6361_v28 = vpop.xlane.xlu1 %6360  ;;  %9070 = vmatprep.subr.msk.bf16.mxu0 %vm2037_vm4, %v7849_v39  ;;  %v6542_v45 = vsel %vm2037_vm4, %v7849_v39, 0 }
0x1f91   : > { %9440 = vpow2.f32 %v6384_v18  ;;  %v6386_v63 = vmul.f32 1.442695, %v6376_v30  ;;  %v6377_v42 = vsub.f32 %v8904_v16, %v6361_v28  ;;  %8926 = vmatpush3.bf16.msra.mxu0 %v6542_v45 }
0x1f92   : > { %v6364_v38 = vpop.xlane.xlu0 %6363 }
0x1f93   : > { %9442 = vpow2.f32 %v6386_v63  ;;  %v6388_v33 = vmul.f32 1.442695, %v6377_v42  ;;  %v6378_v19 = vsub.f32 %v6335_v14, %v6364_v38 }
0x1f94   : > { %v6367_v6 = vpop.xlane.xlu1 %6366 }
0x1f95   : > { %9444 = vpow2.f32 %v6388_v33  ;;  %v6390_v40 = vmul.f32 1.442695, %v6378_v19  ;;  %v6379_v27 = vsub.f32 %v6338_v61, %v6367_v6 }
0x1f96   : > { %v6370_v15 = vpop.xlane.xlu0 %6369 }
0x1f97   : > { %9446 = vpow2.f32 %v6390_v40  ;;  %v6392_v43 = vmul.f32 1.442695, %v6379_v27  ;;  %v6380_v44 = vsub.f32 %v8907_v54, %v6370_v15 }
0x1f98   : > { %v6373_v26 = vpop.xlane.xlu1 %6372 }
0x1f99   : > { %v9439_v51 = vpop.eup %9438  ;;  %9448 = vpow2.f32 %v6392_v43  ;;  %v6394_v36 = vmul.f32 1.442695, %v6380_v44  ;;  %v6381_v56 = vsub.f32 %v8908_v25, %v6373_v26 }
0x1f9a   : > { %v6398_v29 = vsel %vm1300_vm3, %v9439_v51, 0.0 }
0x1f9b   : > { %v9441_v0 = vpop.eup %9440  ;;  %9450 = vpow2.f32 %v6394_v36  ;;  %v6396_v37 = vmul.f32 1.442695, %v6381_v56  ;;  %6399 = vadd.xlane.f32.xlu0 %v6398_v29 }
0x1f9c   : > { %v6401_v50 = vsel %vm1300_vm3, %v9441_v0, 0.0 }
0x1f9d   : > { %v9443_v62 = vpop.eup %9442  ;;  %9452 = vpow2.f32 %v6396_v37  ;;  %6402 = vadd.xlane.f32.xlu1 %v6401_v50  ;;  %v7855_v37 = vld [vmem:[%s11672_s13 + $0x1] ss:$0 sm:$0xff] }
0x1f9e   : > { %v6404_v2 = vsel %vm1300_vm3, %v9443_v62, 0.0 }
0x1f9f   : > { %v9445_v10 = vpop.eup %9444  ;;  %6405 = vadd.xlane.f32.xlu0 %v6404_v2 }
0x1fa0   : > { %v6407_v47 = vsel %vm1300_vm3, %v9445_v10, 0.0 }
0x1fa1   : > { %v9447_v60 = vpop.eup %9446  ;;  %6408 = vadd.xlane.f32.xlu1 %v6407_v47 }
0x1fa2   : > { %v6410_v12 = vsel %vm1300_vm3, %v9447_v60, 0.0 }
0x1fa3   : > { %v9449_v46 = vpop.eup %9448  ;;  %6411 = vadd.xlane.f32.xlu0 %v6410_v12 }
0x1fa4   : > { %v6413_v1 = vsel %vm1300_vm3, %v9449_v46, 0.0 }
0x1fa5   : > { %v9451_v57 = vpop.eup %9450  ;;  %6414 = vadd.xlane.f32.xlu1 %v6413_v1 }
0x1fa6   : > { %v6416_v53 = vsel %vm1300_vm3, %v9451_v57, 0.0 }
0x1fa7   : > { %v9453_v4 = vpop.eup %9452  ;;  %6417 = vadd.xlane.f32.xlu0 %v6416_v53 }
0x1fa8   : > { %v6419_v9 = vsel %vm1300_vm3, %v9453_v4, 0.0 }
0x1fa9   : > { %6420 = vadd.xlane.f32.xlu1 %v6419_v9 }
0x2028   : > { %v6400_v16 = vpop.xlane.xlu0 %6399 }
0x2029   : > { %9454 = vrcp.f32 %v6400_v16 }
0x202a   : > { %v6403_v20 = vpop.xlane.xlu1 %6402 }
0x202b   : > { %9456 = vrcp.f32 %v6403_v20 }
0x202c   : > { %v6406_v21 = vpop.xlane.xlu0 %6405 }
0x202d   : > { %9458 = vrcp.f32 %v6406_v21 }
0x202e   : > { %v6409_v35 = vpop.xlane.xlu1 %6408 }
0x202f   : > { %9460 = vrcp.f32 %v6409_v35 }
0x2030   : > { %v6412_v23 = vpop.xlane.xlu0 %6411 }
0x2031   : > { %9462 = vrcp.f32 %v6412_v23 }
0x2032   : > { %v6415_v54 = vpop.xlane.xlu1 %6414 }
0x2033   : > { %v9455_v58 = vpop.eup %9454  ;;  %9464 = vrcp.f32 %v6415_v54 }
0x2034   : > { %v6418_v14 = vpop.xlane.xlu0 %6417  ;;  %v6430_v61 = vmul.f32 %v9455_v58, %v9439_v51 }
0x2035   : > { %v9457_v25 = vpop.eup %9456  ;;  %9466 = vrcp.f32 %v6418_v14 }
0x2036   : > { %v6421_v52 = vpop.xlane.xlu1 %6420  ;;  %v6431_v3 = vmul.f32 %v9457_v25, %v9441_v0 }
0x2037   : > { %v9459_v17 = vpop.eup %9458  ;;  %9468 = vrcp.f32 %v6421_v52 }
0x2038   : > { %v6438_v13 = vpack.c.bf16 %v6431_v3, %v6430_v61  ;;  %v6432_v24 = vmul.f32 %v9459_v17, %v9443_v62 }
0x2039   : > { %v9461_v5 = vpop.eup %9460 }
0x203a   : > { %v6433_v59 = vmul.f32 %v9461_v5, %v9445_v10  ;;  %8917 = vmatprep.mubr.msk.bf16.mxu1 %vm1300_vm3, %v6438_v13 }
0x203b   : > { %v9463_v55 = vpop.eup %9462 }
0x203c   : > { %v6439_v22 = vpack.c.bf16 %v6433_v59, %v6432_v24  ;;  %v6434_v18 = vmul.f32 %v9463_v55, %v9447_v60  ;;  %v11729_v60 = vld [vmem:[#allocation3_spill] sm:$0xff] }
0x203d   : > { %v9465_v32 = vpop.eup %9464 }
0x203e   : > { %8918 = vmatmul.mubr.msk.bf16.vlgmr.msra.gmra.mrb[168].mxu1 %vm1300_vm3, %v6439_v22  ;;  %v6435_v30 = vmul.f32 %v9465_v32, %v9449_v46 }
0x203f   : > { %v9467_v28 = vpop.eup %9466 }
0x2040   : > { %v6440_v63 = vpack.c.bf16 %v6435_v30, %v6434_v18  ;;  %v6436_v38 = vmul.f32 %v9467_v28, %v9451_v57 }
0x2041   : > { %v9469_v42 = vpop.eup %9468 }
0x2042   : > { %8921 = vmatprep.mubr.msk.bf16.mxu1 %vm1300_vm3, %v6440_v63  ;;  %v6437_v33 = vmul.f32 %v9469_v42, %v9453_v4 }
0x2044   : > { %v6441_v19 = vpack.c.bf16 %v6437_v33, %v6436_v38 }
0x2046   : > { %8922 = vmatmul.mubr.msk.bf16.gmra.mrb[172].mxu1 %vm1300_vm3, %v6441_v19 }
0x2111   : > { %v8919_v6 = vpop.f32.mrb[168].mxu1 }
0x2112   : > { %v6492_v40 = vpop.f32.mrb[169].mxu1 }
0x2113   : > { %v8920_v27 = vpop.f32.mrb[170].mxu1 }
0x2114   : > { %v6524_v15 = vpack.c.bf16 %v8920_v27, %v8919_v6  ;;  %v6495_v43 = vpop.f32.mrb[171].mxu1 }
0x2115   : > { %v6523_v44 = vpack.c.bf16 %v6495_v43, %v6492_v40 }
0x2117   : > { %8927 = vmatprep.mubr.msk.bf16.mxu0 %vm1210_vm2, %v6523_v44 }
0x2118   : > { %8928 = vmatmul.mubr.msk.bf16.vlgmr.msra.gmra.mrb[144].mxu0 %vm1210_vm2, %v6524_v15 }
0x2119   : > { %v8923_v26 = vpop.f32.mrb[172].mxu1 }
0x211a   : > { %v6508_v51 = vpop.f32.mrb[173].mxu1 }
0x211b   : > { %v8924_v36 = vpop.f32.mrb[174].mxu1 }
0x211c   : > { %v6526_v56 = vpack.c.bf16 %v8924_v36, %v8923_v26  ;;  %v6511_v29 = vpop.f32.mrb[175].mxu1 }
0x211d   : > { %v6525_v0 = vpack.c.bf16 %v6511_v29, %v6508_v51 }
0x211f   : > { %8931 = vmatprep.mubr.msk.bf16.mxu0 %vm1210_vm2, %v6525_v0 }
0x2120   : > { %8932 = vmatmul.mubr.msk.bf16.gmra.mrb[148].mxu0 %vm1210_vm2, %v6526_v56 }
0x21eb   : > { %v8929_v50 = vpop.f32.mrb[144].mxu0 }
0x21ec   : > { %v6627_v62 = vadd.f32 %v8929_v50, %v7855_v37  ;;  %v6578_v2 = vpop.f32.mrb[145].mxu0 }
0x21ed   : > { %v6625_v10 = vadd.f32 %v7855_v37, %v6578_v2  ;;  %v8930_v47 = vpop.f32.mrb[146].mxu0 }
0x21ee   : > { %v6639_v12 = vmul.f32 %v11729_v60, %v6627_v62  ;;  %v6628_v46 = vadd.f32 %v8930_v47, %v7855_v37  ;;  %v6581_v1 = vpop.f32.mrb[147].mxu0 }
0x21ef   : > { %v6637_v57 = vmul.f32 %v11729_v60, %v6625_v10  ;;  %v6626_v53 = vadd.f32 %v7855_v37, %v6581_v1 }
0x21f0   : > { %v6640_v4 = vmul.f32 %v11729_v60, %v6628_v46  ;;  %v11353_v45 = vadd.f32 %v6639_v12, %v10629_v11 }
0x21f1   : > { %v11349_v9 = vadd.f32 %v6637_v57, %v10626_v31  ;;  %v6638_v39 = vmul.f32 %v11729_v60, %v6626_v53 }
0x21f2   : > { %v11361_v54 = vadd.f32 %v6640_v4, %v10637_v34  ;;  %v6659_v3 = vsel %vm791_vm1, %v11353_v45, 0.0 }
0x21f3   : > { %v11356_v16 = vadd.f32 %v6638_v39, %v10632_v49  ;;  %v8933_v20 = vpop.f32.mrb[148].mxu0  ;;  %v6653_v21 = vsel %vm791_vm1, %v11349_v9, 0.0 }
0x21f4   : > { %v6631_v35 = vadd.f32 %v8933_v20, %v7855_v37  ;;  %6654 = vadd.xlane.f32.xlu0 %v6653_v21  ;;  %v6594_v23 = vpop.f32.mrb[149].mxu0  ;;  %v6662_v5 = vsel %vm791_vm1, %v11361_v54, 0.0 }
0x21f5   : > { %v6629_v31 = vadd.f32 %v7855_v37, %v6594_v23  ;;  %v8934_v58 = vpop.f32.mrb[150].mxu0  ;;  %v6656_v14 = vsel %vm791_vm1, %v11356_v16, 0.0 }
0x21f6   : > { %v6643_v11 = vmul.f32 %v11729_v60, %v6631_v35  ;;  %v6632_v25 = vadd.f32 %v8934_v58, %v7855_v37  ;;  %6657 = vadd.xlane.f32.xlu1 %v6656_v14  ;;  %v6597_v49 = vpop.f32.mrb[151].mxu0  ;;  %v9139_v58 = vld [vmem:[%s11673_s14 + $0x18] sm:$0xff]  }
0x21f7   : > { %v6641_v52 = vmul.f32 %v11729_v60, %v6629_v31  ;;  %v6630_v61 = vadd.f32 %v7855_v37, %v6597_v49  ;;  %v9138_v31 = vld [vmem:[%s11673_s14 + $0x10] sm:$0xff]  }
0x21f8   : > { %v6644_v17 = vmul.f32 %v11729_v60, %v6632_v25  ;;  %6660 = vadd.xlane.f32.xlu0 %v6659_v3  ;;  %v11377_v24 = vadd.f32 %v6643_v11, %v10649_v8  ;;  %8935 = vmatprep.subr.bf16.mxu1 %v9138_v31 }
0x21f9   : > { %v11371_v34 = vadd.f32 %v6641_v52, %v10644_v7  ;;  %v6642_v13 = vmul.f32 %v11729_v60, %v6630_v61  ;;  %8936 = vmatpush3.bf16.msra.mxu1 %v9138_v31 }
0x21fa   : > { %6663 = vadd.xlane.f32.xlu1 %v6662_v5  ;;  %v11385_v22 = vadd.f32 %v6644_v17, %v10657_v41  ;;  %v6671_v32 = vsel %vm791_vm1, %v11377_v24, 0.0  ;;  %8937 = vmatprep.subr.bf16.mxu1 %v9139_v58 }
0x21fb   : > { %v11380_v59 = vadd.f32 %v6642_v13, %v10652_v48  ;;  %v6665_v55 = vsel %vm791_vm1, %v11371_v34, 0.0 }
0x21fc   : > { %6666 = vadd.xlane.f32.xlu0 %v6665_v55  ;;  %v6674_v8 = vsel %vm791_vm1, %v11385_v22, 0.0 }
0x21fd   : > { %v6668_v7 = vsel %vm791_vm1, %v11380_v59, 0.0  ;;  %8938 = vmatpush3.bf16.msra.mxu1 %v9139_v58 }
0x21fe   : > { %6669 = vadd.xlane.f32.xlu1 %v6668_v7 }
0x2200   : > { %6672 = vadd.xlane.f32.xlu0 %v6671_v32 }
0x2202   : > { %6675 = vadd.xlane.f32.xlu1 %v6674_v8 }
0x2281   : > { %v6655_v48 = vpop.xlane.xlu0 %6654 }
0x2282   : > { %v6677_v18 = vmul.f32 0.03125, %v6655_v48  ;;  %v9519_v48 = vld [vmem:[%s9658_s21 + $0x8] sm:$0xf] }
0x2283   : > { %v6658_v30 = vpop.xlane.xlu1 %6657 }
0x2284   : > { %v11394_v28 = vsub.f32 %v11349_v9, %v6677_v18  ;;  %v6678_v41 = vmul.f32 0.03125, %v6658_v30  ;;  %v6757_v18 = vadd.f32 1.0, %v9519_v48  ;;  %v9144_v48 = vld [vmem:[%s11675_s16 + $0x60] sm:$0xff]  }
0x2285   : > { %v6661_v63 = vpop.xlane.xlu0 %6660 }
0x2286   : > { %v11397_v42 = vsub.f32 %v11356_v16, %v6678_v41  ;;  %v6679_v38 = vmul.f32 0.03125, %v6661_v63  ;;  %v6693_v33 = vmul.f32 %v11394_v28, %v11394_v28 }
0x2287   : > { %v6664_v19 = vpop.xlane.xlu1 %6663 }
0x2288   : > { %v11402_v6 = vsub.f32 %v11353_v45, %v6679_v38  ;;  %v6680_v40 = vmul.f32 0.03125, %v6664_v19  ;;  %v6701_v27 = vsel %vm791_vm1, %v6693_v33, 0.0  ;;  %v6694_v15 = vmul.f32 %v11397_v42, %v11397_v42 }
0x2289   : > { %6702 = vadd.xlane.f32.xlu0 %v6701_v27  ;;  %v6667_v43 = vpop.xlane.xlu0 %6666 }
0x228a   : > { %v11408_v44 = vsub.f32 %v11361_v54, %v6680_v40  ;;  %v6681_v26 = vmul.f32 0.03125, %v6667_v43  ;;  %v6704_v51 = vsel %vm791_vm1, %v6694_v15, 0.0  ;;  %v6695_v36 = vmul.f32 %v11402_v6, %v11402_v6  ;;  %v11730_v40 = vld [vmem:[#allocation2_spill] sm:$0xff] }
0x228b   : > { %6705 = vadd.xlane.f32.xlu1 %v6704_v51  ;;  %v6670_v56 = vpop.xlane.xlu1 %6669  ;;  %v11731_v27 = vsub.s32 2, %v11730_v40 }
0x228c   : > { %v11414_v29 = vsub.f32 %v11371_v34, %v6681_v26  ;;  %v6682_v0 = vmul.f32 0.03125, %v6670_v56  ;;  %v6707_v37 = vsel %vm791_vm1, %v6695_v36, 0.0  ;;  %v6696_v50 = vmul.f32 %v11408_v44, %v11408_v44 }
0x228d   : > { %6708 = vadd.xlane.f32.xlu0 %v6707_v37  ;;  %v6673_v62 = vpop.xlane.xlu0 %6672  ;;  %v6761_v15 = vrot.slane %v6757_v18, %v11731_v27  ;;  %v9145_v18 = vld [vmem:[%s11675_s16 + $0x68] sm:$0xff]  }
0x228e   : > { %v11420_v2 = vsub.f32 %v11380_v59, %v6682_v0  ;;  %v6683_v10 = vmul.f32 0.03125, %v6673_v62  ;;  %v6710_v47 = vsel %vm791_vm1, %v6696_v50, 0.0  ;;  %v6697_v60 = vmul.f32 %v11414_v29, %v11414_v29 }
0x228f   : > { %6711 = vadd.xlane.f32.xlu1 %v6710_v47  ;;  %v6676_v12 = vpop.xlane.xlu1 %6675 }
0x2290   : > { %v11426_v46 = vsub.f32 %v11377_v24, %v6683_v10  ;;  %v6684_v1 = vmul.f32 0.03125, %v6676_v12  ;;  %v6713_v57 = vsel %vm791_vm1, %v6697_v60, 0.0  ;;  %v6698_v53 = vmul.f32 %v11420_v2, %v11420_v2  ;;  %v11732_v12 = vld [vmem:[#allocation4_spill] sm:$0xff] }
0x2291   : > { %6714 = vadd.xlane.f32.xlu0 %v6713_v57 }
0x2292   : > { %v11432_v4 = vsub.f32 %v11385_v22, %v6684_v1  ;;  %v6716_v39 = vsel %vm791_vm1, %v6698_v53, 0.0  ;;  %v6699_v20 = vmul.f32 %v11426_v46, %v11426_v46 }
0x2293   : > { %6717 = vadd.xlane.f32.xlu1 %v6716_v39 }
0x2294   : > { %v6719_v21 = vsel %vm791_vm1, %v6699_v20, 0.0  ;;  %v6700_v35 = vmul.f32 %v11432_v4, %v11432_v4 }
0x2295   : > { %6720 = vadd.xlane.f32.xlu0 %v6719_v21 }
0x2296   : > { %v6722_v23 = vsel %vm791_vm1, %v6700_v35, 0.0 }
0x2297   : > { %6723 = vadd.xlane.f32.xlu1 %v6722_v23 }
0x2316   : > { %v6703_v14 = vpop.xlane.xlu0 %6702 }
0x2317   : > { %v6725_v11 = vmul.f32 0.03125, %v6703_v14 }
0x2318   : > { %v6706_v25 = vpop.xlane.xlu1 %6705 }
0x2319   : > { %v6733_v49 = vadd.f32 1e-06, %v6725_v11  ;;  %v6726_v52 = vmul.f32 0.03125, %v6706_v25 }
0x231a   : > { %v6709_v61 = vpop.xlane.xlu0 %6708 }
0x231b   : > { %9470 = vrsqrt.f32 %v6733_v49  ;;  %v6734_v3 = vadd.f32 1e-06, %v6726_v52  ;;  %v6727_v17 = vmul.f32 0.03125, %v6709_v61 }
0x231c   : > { %v6712_v13 = vpop.xlane.xlu1 %6711 }
0x231d   : > { %9472 = vrsqrt.f32 %v6734_v3  ;;  %v6735_v5 = vadd.f32 1e-06, %v6727_v17  ;;  %v6728_v55 = vmul.f32 0.03125, %v6712_v13 }
0x231e   : > { %v6715_v7 = vpop.xlane.xlu0 %6714 }
0x231f   : > { %9474 = vrsqrt.f32 %v6735_v5  ;;  %v6736_v32 = vadd.f32 1e-06, %v6728_v55  ;;  %v6729_v8 = vmul.f32 0.03125, %v6715_v7  ;;  %v9141_v7 = vld [vmem:[%s11675_s16 + $0x48] sm:$0xff]  }
0x2320   : > { %v6718_v30 = vpop.xlane.xlu1 %6717 }
0x2321   : > { %9476 = vrsqrt.f32 %v6736_v32  ;;  %v6737_v41 = vadd.f32 1e-06, %v6729_v8  ;;  %v6730_v63 = vmul.f32 0.03125, %v6718_v30  ;;  %v9142_v32 = vld [vmem:[%s11675_s16 + $0x50] sm:$0xff]   ;;  %v9143_v8 = vld [vmem:[%s11675_s16 + $0x58] sm:$0xff]  }
0x2322   : > { %v6721_v38 = vpop.xlane.xlu0 %6720  ;;  %v9146_v30 = vld [vmem:[%s11675_s16 + $0x70] sm:$0xff]  }
0x2323   : > { %9478 = vrsqrt.f32 %v6737_v41  ;;  %v6738_v33 = vadd.f32 1e-06, %v6730_v63  ;;  %v6731_v19 = vmul.f32 0.03125, %v6721_v38  ;;  %v9147_v41 = vld [vmem:[%s11675_s16 + $0x78] sm:$0xff]   ;;  %v7861_v63 = vld [vmem:[%s11674_s15 + $0x1] ss:$0 sm:$0xff] }
0x2324   : > { %v6724_v43 = vpop.xlane.xlu1 %6723 }
0x2325   : > { %v9471_v26 = vpop.eup %9470  ;;  %9480 = vrsqrt.f32 %v6738_v33  ;;  %v6739_v51 = vadd.f32 1e-06, %v6731_v19  ;;  %v6732_v36 = vmul.f32 0.03125, %v6724_v43 }
0x2326   : > { %v6749_v56 = vmul.f32 %v9471_v26, %v11394_v28 }
0x2327   : > { %v9473_v0 = vpop.eup %9472  ;;  %9482 = vrsqrt.f32 %v6739_v51  ;;  %v6740_v37 = vadd.f32 1e-06, %v6732_v36 }
0x2328   : > { %v6750_v50 = vmul.f32 %v9473_v0, %v11397_v42  ;;  %v6762_v62 = vmul.f32 %v6761_v15, %v6749_v56 }
0x2329   : > { %v9475_v10 = vpop.eup %9474  ;;  %9484 = vrsqrt.f32 %v6740_v37 }
0x232a   : > { %v6751_v47 = vmul.f32 %v9475_v10, %v11402_v6  ;;  %v6763_v60 = vmul.f32 %v6761_v15, %v6750_v50  ;;  %v6774_v1 = vadd.f32 %v11732_v12, %v6762_v62 }
0x232b   : > { %v9477_v57 = vpop.eup %9476 }
0x232c   : > { %v6764_v53 = vmul.f32 %v6761_v15, %v6751_v47  ;;  %v6752_v39 = vmul.f32 %v9477_v57, %v11408_v44  ;;  %v6775_v20 = vadd.f32 %v11732_v12, %v6763_v60 }
0x232d   : > { %v9479_v28 = vpop.eup %9478 }
0x232e   : > { %v6776_v21 = vadd.f32 %v11732_v12, %v6764_v53  ;;  %v6765_v35 = vmul.f32 %v6761_v15, %v6752_v39  ;;  %v6753_v42 = vmul.f32 %v9479_v28, %v11414_v29  ;;  %v6782_v23 = vpack.c.bf16 %v6775_v20, %v6774_v1 }
0x232f   : > { %v9481_v31 = vpop.eup %9480 }
0x2330   : > { %v6777_v58 = vadd.f32 %v11732_v12, %v6765_v35  ;;  %v6754_v6 = vmul.f32 %v9481_v31, %v11420_v2  ;;  %8939 = vmatprep.mubr.msk.bf16.mxu1 %vm791_vm1, %v6782_v23  ;;  %v6766_v14 = vmul.f32 %v6761_v15, %v6753_v42 }
0x2331   : > { %v9483_v11 = vpop.eup %9482 }
0x2332   : > { %v6755_v44 = vmul.f32 %v9483_v11, %v11426_v46  ;;  %v6783_v25 = vpack.c.bf16 %v6777_v58, %v6776_v21  ;;  %v6767_v49 = vmul.f32 %v6761_v15, %v6754_v6  ;;  %v6778_v52 = vadd.f32 %v11732_v12, %v6766_v14 }
0x2333   : > { %v9485_v61 = vpop.eup %9484 }
0x2334   : > { %v6756_v3 = vmul.f32 %v9485_v61, %v11432_v4  ;;  %8940 = vmatmul.mubr.msk.bf16.vlgmr.msra.gmra.mrb[176].mxu1 %vm791_vm1, %v6783_v25  ;;  %v6779_v29 = vadd.f32 %v11732_v12, %v6767_v49  ;;  %v6768_v17 = vmul.f32 %v6761_v15, %v6755_v44  ;;  %v9140_v4 = vld [vmem:[%s11675_s16 + $0x40] sm:$0xff]  }
0x2335   : > { %8947 = vmatprep.subr.bf16.mxu1 %v9140_v4 }
0x2336   : > { %v6784_v13 = vpack.c.bf16 %v6779_v29, %v6778_v52  ;;  %v6769_v2 = vmul.f32 %v6761_v15, %v6756_v3  ;;  %v6780_v5 = vadd.f32 %v11732_v12, %v6768_v17  ;;  %8948 = vmatpush3.bf16.msra.mxu1 %v9140_v4 }
0x2337   : > { %8949 = vmatprep.subr.bf16.mxu1 %v9141_v7 }
0x2338   : > { %8943 = vmatprep.mubr.msk.bf16.mxu1 %vm791_vm1, %v6784_v13  ;;  %v6781_v46 = vadd.f32 %v11732_v12, %v6769_v2 }
0x233a   : > { %v6785_v55 = vpack.c.bf16 %v6781_v46, %v6780_v5  ;;  %8950 = vmatpush3.bf16.msra.mxu1 %v9141_v7 }
0x233b   : > { %8951 = vmatprep.subr.bf16.mxu1 %v9142_v32 }
0x233c   : > { %8944 = vmatmul.mubr.msk.bf16.gmra.mrb[180].mxu1 %vm791_vm1, %v6785_v55 }
0x233e   : > { %8952 = vmatpush3.bf16.msra.mxu1 %v9142_v32 }
0x233f   : > { %8953 = vmatprep.subr.bf16.mxu1 %v9143_v8 }
0x2342   : > { %8954 = vmatpush3.bf16.msra.mxu1 %v9143_v8 }
0x2343   : > { %8955 = vmatprep.subr.bf16.mxu1 %v9144_v48 }
0x2346   : > { %8956 = vmatpush3.bf16.msra.mxu1 %v9144_v48 }
0x2347   : > { %8957 = vmatprep.subr.bf16.mxu1 %v9145_v18 }
0x234a   : > { %8958 = vmatpush3.bf16.msra.mxu1 %v9145_v18 }
0x234b   : > { %8959 = vmatprep.subr.bf16.mxu1 %v9146_v30 }
0x234e   : > { %8960 = vmatpush3.bf16.msra.mxu1 %v9146_v30 }
0x234f   : > { %8961 = vmatprep.subr.bf16.mxu1 %v9147_v41 }
0x2352   : > { %8962 = vmatpush3.bf16.msra.mxu1 %v9147_v41 }
0x2407   : > { %v8941_v38 = vpop.f32.mrb[176].mxu1 }
0x2408   : > { %v11497_v33 = vadd.f32 %v8941_v38, %v7861_v63  ;;  %v6857_v19 = vpop.f32.mrb[177].mxu1 }
0x2409   : > { %v11499_v40 = vadd.f32 %v7861_v63, %v6857_v19  ;;  %v8942_v27 = vpop.f32.mrb[178].mxu1 }
0x240a   : > { %v6898_v15 = vmul.f32 0.044715, %v11497_v33  ;;  %v11502_v43 = vadd.f32 %v8942_v27, %v7861_v63  ;;  %v6860_v26 = vpop.f32.mrb[179].mxu1 }
0x240b   : > { %v6896_v51 = vmul.f32 0.044715, %v11499_v40  ;;  %v11505_v36 = vadd.f32 %v7861_v63, %v6860_v26 }
0x240c   : > { %v6906_v56 = vmul.f32 %v6898_v15, %v11497_v33  ;;  %v6899_v0 = vmul.f32 0.044715, %v11502_v43 }
0x240d   : > { %v6904_v37 = vmul.f32 %v6896_v51, %v11499_v40  ;;  %v6897_v50 = vmul.f32 0.044715, %v11505_v36 }
0x240e   : > { %v6914_v62 = vmul.f32 %v6906_v56, %v11497_v33  ;;  %v6907_v10 = vmul.f32 %v6899_v0, %v11502_v43  ;;  %v6890_v56 = vmul.f32 0.5, %v11497_v33  ;;  %v6891_v0 = vmul.f32 0.5, %v11502_v43 }
0x240f   : > { %v6912_v47 = vmul.f32 %v6904_v37, %v11499_v40  ;;  %v6905_v60 = vmul.f32 %v6897_v50, %v11505_v36  ;;  %v8945_v12 = vpop.f32.mrb[180].mxu1  ;;  %v6888_v50 = vmul.f32 0.5, %v11499_v40 }
0x2410   : > { %v6922_v1 = vadd.f32 %v6914_v62, %v11497_v33  ;;  %v6915_v57 = vmul.f32 %v6907_v10, %v11502_v43  ;;  %v11517_v53 = vadd.f32 %v8945_v12, %v7861_v63  ;;  %v6873_v39 = vpop.f32.mrb[181].mxu1  ;;  %v6889_v62 = vmul.f32 0.5, %v11505_v36 }
0x2411   : > { %v6913_v20 = vmul.f32 %v6905_v60, %v11505_v36  ;;  %v11520_v28 = vadd.f32 %v7861_v63, %v6873_v39  ;;  %v8946_v21 = vpop.f32.mrb[182].mxu1  ;;  %v6920_v35 = vadd.f32 %v6912_v47, %v11499_v40 }
0x2412   : > { %v6930_v42 = vmul.f32 0.7978846, %v6922_v1  ;;  %v6923_v23 = vadd.f32 %v6915_v57, %v11502_v43  ;;  %v6902_v31 = vmul.f32 0.044715, %v11517_v53  ;;  %v6885_v58 = vadd.f32 %v8946_v21, %v7861_v63  ;;  %v6876_v6 = vpop.f32.mrb[183].mxu1 }
0x2413   : > { %v6900_v14 = vmul.f32 0.044715, %v11520_v28  ;;  %v6877_v11 = vadd.f32 %v7861_v63, %v6876_v6  ;;  %v6921_v44 = vadd.f32 %v6913_v20, %v11505_v36  ;;  %v6928_v25 = vmul.f32 0.7978846, %v6920_v35 }
0x2414   : > { %9486 = vtanh.f32 %v6930_v42  ;;  %v6931_v49 = vmul.f32 0.7978846, %v6923_v23  ;;  %v6910_v52 = vmul.f32 %v6902_v31, %v11517_v53  ;;  %v6903_v61 = vmul.f32 0.044715, %v6885_v58 }
0x2415   : > { %v6908_v3 = vmul.f32 %v6900_v14, %v11520_v28  ;;  %v6901_v29 = vmul.f32 0.044715, %v6877_v11  ;;  %v6929_v17 = vmul.f32 0.7978846, %v6921_v44  ;;  %9488 = vtanh.f32 %v6928_v25 }
0x2416   : > { %9490 = vtanh.f32 %v6931_v49  ;;  %v6918_v13 = vmul.f32 %v6910_v52, %v11517_v53  ;;  %v6911_v2 = vmul.f32 %v6903_v61, %v6885_v58  ;;  %v6894_v43 = vmul.f32 0.5, %v11517_v53 }
0x2417   : > { %v6916_v5 = vmul.f32 %v6908_v3, %v11520_v28  ;;  %v6909_v46 = vmul.f32 %v6901_v29, %v6877_v11  ;;  %9492 = vtanh.f32 %v6929_v17  ;;  %v6895_v40 = vmul.f32 0.5, %v6885_v58  ;;  %v7885_v29 = vld [vmem:[%s11676_s17 + $0x1] ss:$0 sm:$0xff] }
0x2418   : > { %v6919_v55 = vmul.f32 %v6911_v2, %v6885_v58  ;;  %v6926_v4 = vadd.f32 %v6918_v13, %v11517_v53  ;;  %v6892_v36 = vmul.f32 0.5, %v11520_v28  ;;  %v6893_v6 = vmul.f32 0.5, %v6877_v11 }
0x2419   : > { %v6917_v7 = vmul.f32 %v6909_v46, %v6877_v11  ;;  %v6924_v32 = vadd.f32 %v6916_v5, %v11520_v28  ;;  %v11733_v28 = vld [vmem:[#allocation5_spill] sm:$0xff] }
0x241a   : > { %v6927_v8 = vadd.f32 %v6919_v55, %v6885_v58  ;;  %v6934_v48 = vmul.f32 0.7978846, %v6926_v4 }
0x241b   : > { %v6925_v18 = vadd.f32 %v6917_v7, %v6877_v11  ;;  %v6932_v30 = vmul.f32 0.7978846, %v6924_v32 }
0x241c   : > { %v6935_v41 = vmul.f32 0.7978846, %v6927_v8  ;;  %9494 = vtanh.f32 %v6934_v48 }
0x241d   : > { %v6933_v63 = vmul.f32 0.7978846, %v6925_v18  ;;  %9496 = vtanh.f32 %v6932_v30 }
0x241e   : > { %v9487_v38 = vpop.eup %9486  ;;  %9498 = vtanh.f32 %v6935_v41 }
0x241f   : > { %v9489_v19 = vpop.eup %9488  ;;  %v6946_v27 = vadd.f32 1.0, %v9487_v38  ;;  %9500 = vtanh.f32 %v6933_v63 }
0x2420   : > { %v9491_v15 = vpop.eup %9490  ;;  %v6944_v26 = vadd.f32 1.0, %v9489_v19 }
0x2421   : > { %v9493_v51 = vpop.eup %9492  ;;  %v6947_v37 = vadd.f32 1.0, %v9491_v15  ;;  %v6954_v47 = vmul.f32 %v6946_v27, %v6890_v56 }
0x2422   : > { %v6945_v10 = vadd.f32 1.0, %v9493_v51  ;;  %v6952_v12 = vmul.f32 %v6944_v26, %v6888_v50 }
0x2423   : > { %v6955_v60 = vmul.f32 %v6947_v37, %v6891_v0 }
0x2424   : > { %v6953_v1 = vmul.f32 %v6945_v10, %v6889_v62 }
0x2425   : > { %v6961_v57 = vpack.c.bf16 %v6955_v60, %v6954_v47 }
0x2426   : > { %v9495_v39 = vpop.eup %9494  ;;  %v6960_v20 = vpack.c.bf16 %v6953_v1, %v6952_v12 }
0x2427   : > { %v9497_v21 = vpop.eup %9496  ;;  %v6950_v35 = vadd.f32 1.0, %v9495_v39 }
0x2428   : > { %v9499_v42 = vpop.eup %9498  ;;  %8963 = vmatprep.mubr.bf16.mxu1 %v6960_v20  ;;  %v6948_v33 = vadd.f32 1.0, %v9497_v21 }
0x2429   : > { %v9501_v23 = vpop.eup %9500  ;;  %8964 = vmatmul.mubr.bf16.vlgmr.msra.gmra.mrb[184].mxu1 %v6961_v57  ;;  %v6951_v31 = vadd.f32 1.0, %v9499_v42  ;;  %v6958_v44 = vmul.f32 %v6950_v35, %v6894_v43 }
0x242a   : > { %v6949_v14 = vadd.f32 1.0, %v9501_v23  ;;  %v6956_v49 = vmul.f32 %v6948_v33, %v6892_v36 }
0x242b   : > { %v6959_v25 = vmul.f32 %v6951_v31, %v6895_v40 }
0x242c   : > { %v6957_v52 = vmul.f32 %v6949_v14, %v6893_v6 }
0x242d   : > { %v6963_v61 = vpack.c.bf16 %v6959_v25, %v6958_v44 }
0x242e   : > { %v6962_v3 = vpack.c.bf16 %v6957_v52, %v6956_v49 }
0x2430   : > { %8967 = vmatprep.mubr.bf16.mxu1 %v6962_v3 }
0x2431   : > { %8968 = vmatmul.mubr.bf16.gmra.mrb[188].mxu1 %v6963_v61 }
0x24fc   : > { %v8965_v17 = vpop.f32.mrb[184].mxu1 }
0x24fd   : > { %v7080_v53 = vadd.f32 %v8965_v17, %v7885_v29  ;;  %v7071_v58 = vpop.f32.mrb[185].mxu1 }
0x24fe   : > { %v7072_v13 = vadd.f32 %v7885_v29, %v7071_v58  ;;  %v8966_v2 = vpop.f32.mrb[186].mxu1 }
0x24ff   : > { %v7108_v11 = vmul.f32 %v11733_v28, %v7080_v53  ;;  %v7083_v5 = vadd.f32 %v8966_v2, %v7885_v29  ;;  %v7074_v46 = vpop.f32.mrb[187].mxu1 }
0x2500   : > { %v7106_v55 = vmul.f32 %v11733_v28, %v7072_v13  ;;  %v7075_v4 = vadd.f32 %v7885_v29, %v7074_v46 }
0x2501   : > { %v7109_v7 = vmul.f32 %v11733_v28, %v7083_v5  ;;  %v7116_v41 = vadd.f32 %v7108_v11, %v11353_v45 }
0x2502   : > { %v7107_v32 = vmul.f32 %v11733_v28, %v7075_v4  ;;  %v7114_v8 = vadd.f32 %v7106_v55, %v11349_v9 }
0x2503   : > { %v7117_v26 = vadd.f32 %v7109_v7, %v11361_v54 }
0x2504   : > { %v8969_v48 = vpop.f32.mrb[188].mxu1  ;;  %v7123_v18 = vsel %vm791_vm1, %v7114_v8, 0.0  ;;  %v7115_v30 = vadd.f32 %v7107_v32, %v11356_v16  ;;  %v7129_v16 = vsel %vm791_vm1, %v7116_v41, 0.0 }
0x2505   : > { %v7096_v63 = vadd.f32 %v8969_v48, %v7885_v29  ;;  %7124 = vadd.xlane.f32.xlu0 %v7123_v18  ;;  %v7087_v38 = vpop.f32.mrb[189].mxu1  ;;  %v7132_v62 = vsel %vm791_vm1, %v7117_v26, 0.0 }
0x2506   : > { %v7088_v19 = vadd.f32 %v7885_v29, %v7087_v38  ;;  %v8970_v27 = vpop.f32.mrb[190].mxu1  ;;  %v7126_v15 = vsel %vm791_vm1, %v7115_v30, 0.0 }
0x2507   : > { %v7112_v51 = vmul.f32 %v11733_v28, %v7096_v63  ;;  %v7099_v56 = vadd.f32 %v8970_v27, %v7885_v29  ;;  %7127 = vadd.xlane.f32.xlu1 %v7126_v15  ;;  %v7090_v9 = vpop.f32.mrb[191].mxu1  ;;  %v9149_v63 = vld [vmem:[%s11677_s18 + $0x8] sm:$0xff]  }
0x2508   : > { %v7110_v0 = vmul.f32 %v11733_v28, %v7088_v19  ;;  %v7091_v37 = vadd.f32 %v7885_v29, %v7090_v9 }
0x2509   : > { %v7113_v45 = vmul.f32 %v11733_v28, %v7099_v56  ;;  %7130 = vadd.xlane.f32.xlu0 %v7129_v16  ;;  %v7120_v60 = vadd.f32 %v7112_v51, %v11377_v24 }
0x250a   : > { %v7111_v50 = vmul.f32 %v11733_v28, %v7091_v37  ;;  %v7118_v10 = vadd.f32 %v7110_v0, %v11371_v34 }
0x250b   : > { %7133 = vadd.xlane.f32.xlu1 %v7132_v62  ;;  %v7121_v1 = vadd.f32 %v7113_v45, %v11385_v22  ;;  %v7141_v57 = vsel %vm791_vm1, %v7120_v60, 0.0 }
0x250c   : > { %v7135_v54 = vsel %vm791_vm1, %v7118_v10, 0.0  ;;  %v7119_v47 = vadd.f32 %v7111_v50, %v11380_v59 }
0x250d   : > { %7136 = vadd.xlane.f32.xlu0 %v7135_v54  ;;  %v7144_v39 = vsel %vm791_vm1, %v7121_v1, 0.0 }
0x250e   : > { %v7138_v12 = vsel %vm791_vm1, %v7119_v47, 0.0 }
0x250f   : > { %7139 = vadd.xlane.f32.xlu1 %v7138_v12 }
0x2511   : > { %7142 = vadd.xlane.f32.xlu0 %v7141_v57 }
0x2513   : > { %7145 = vadd.xlane.f32.xlu1 %v7144_v39 }
0x2592   : > { %v7125_v34 = vpop.xlane.xlu0 %7124 }
0x2593   : > { %v7147_v20 = vmul.f32 0.03125, %v7125_v34 }
0x2594   : > { %v7128_v21 = vpop.xlane.xlu1 %7127 }
0x2595   : > { %v11566_v35 = vsub.f32 %v7114_v8, %v7147_v20  ;;  %v7148_v59 = vmul.f32 0.03125, %v7128_v21 }
0x2596   : > { %v7131_v42 = vpop.xlane.xlu0 %7130 }
0x2597   : > { %v11568_v24 = vsub.f32 %v7115_v30, %v7148_v59  ;;  %v7149_v33 = vmul.f32 0.03125, %v7131_v42  ;;  %v7163_v22 = vmul.f32 %v11566_v35, %v11566_v35 }
0x2598   : > { %v7134_v23 = vpop.xlane.xlu1 %7133 }
0x2599   : > { %v11572_v43 = vsub.f32 %v7116_v41, %v7149_v33  ;;  %v7150_v40 = vmul.f32 0.03125, %v7134_v23  ;;  %v7171_v31 = vsel %vm791_vm1, %v7163_v22, 0.0  ;;  %v7164_v36 = vmul.f32 %v11568_v24, %v11568_v24  ;;  %v9148_v41 = vld [vmem:[%s11677_s18] sm:$0xff]   ;;  %v11734_v22 = vld [vmem:[#allocation7_spill] sm:$0xff] }
0x259a   : > { %7172 = vadd.xlane.f32.xlu0 %v7171_v31  ;;  %v7137_v6 = vpop.xlane.xlu0 %7136  ;;  %8971 = vmatprep.subr.bf16.mxu0 %v9148_v41 }
0x259b   : > { %v11577_v14 = vsub.f32 %v7117_v26, %v7150_v40  ;;  %v7151_v44 = vmul.f32 0.03125, %v7137_v6  ;;  %v7174_v25 = vsel %vm791_vm1, %v7164_v36, 0.0  ;;  %v7165_v49 = vmul.f32 %v11572_v43, %v11572_v43  ;;  %8972 = vmatpush3.bf16.msra.mxu0 %v9148_v41  ;;  %v11735_v6 = vld [vmem:[#allocation6_spill] sm:$0xff] }
0x259c   : > { %7175 = vadd.xlane.f32.xlu1 %v7174_v25  ;;  %v7140_v52 = vpop.xlane.xlu1 %7139  ;;  %8973 = vmatprep.subr.bf16.mxu0 %v9149_v63 }
0x259d   : > { %v11582_v61 = vsub.f32 %v7118_v10, %v7151_v44  ;;  %v7152_v3 = vmul.f32 0.03125, %v7140_v52  ;;  %v7177_v29 = vsel %vm791_vm1, %v7165_v49, 0.0  ;;  %v7166_v17 = vmul.f32 %v11577_v14, %v11577_v14 }
0x259e   : > { %7178 = vadd.xlane.f32.xlu0 %v7177_v29  ;;  %v7143_v53 = vpop.xlane.xlu0 %7142 }
0x259f   : > { %v11587_v58 = vsub.f32 %v7119_v47, %v7152_v3  ;;  %v7153_v13 = vmul.f32 0.03125, %v7143_v53  ;;  %v7180_v2 = vsel %vm791_vm1, %v7166_v17, 0.0  ;;  %v7167_v28 = vmul.f32 %v11582_v61, %v11582_v61  ;;  %8974 = vmatpush3.bf16.msra.mxu0 %v9149_v63 }
0x25a0   : > { %7181 = vadd.xlane.f32.xlu1 %v7180_v2  ;;  %v7146_v11 = vpop.xlane.xlu1 %7145 }
0x25a1   : > { %v11592_v5 = vsub.f32 %v7120_v60, %v7153_v13  ;;  %v7154_v46 = vmul.f32 0.03125, %v7146_v11  ;;  %v7183_v55 = vsel %vm791_vm1, %v7167_v28, 0.0  ;;  %v7168_v4 = vmul.f32 %v11587_v58, %v11587_v58 }
0x25a2   : > { %7184 = vadd.xlane.f32.xlu0 %v7183_v55 }
0x25a3   : > { %v11597_v7 = vsub.f32 %v7121_v1, %v7154_v46  ;;  %v7186_v32 = vsel %vm791_vm1, %v7168_v4, 0.0  ;;  %v7169_v8 = vmul.f32 %v11592_v5, %v11592_v5 }
0x25a4   : > { %7187 = vadd.xlane.f32.xlu1 %v7186_v32 }
0x25a5   : > { %v7189_v48 = vsel %vm791_vm1, %v7169_v8, 0.0  ;;  %v7170_v18 = vmul.f32 %v11597_v7, %v11597_v7 }
0x25a6   : > { %7190 = vadd.xlane.f32.xlu0 %v7189_v48 }
0x25a7   : > { %v7192_v30 = vsel %vm791_vm1, %v7170_v18, 0.0 }
0x25a8   : > { %7193 = vadd.xlane.f32.xlu1 %v7192_v30 }
0x2627   : > { %v7173_v38 = vpop.xlane.xlu0 %7172 }
0x2628   : > { %v7195_v19 = vmul.f32 0.03125, %v7173_v38 }
0x2629   : > { %v7176_v27 = vpop.xlane.xlu1 %7175 }
0x262a   : > { %v7203_v15 = vadd.f32 1e-06, %v7195_v19  ;;  %v7196_v26 = vmul.f32 0.03125, %v7176_v27 }
0x262b   : > { %v7179_v51 = vpop.xlane.xlu0 %7178 }
0x262c   : > { %9502 = vrsqrt.f32 %v7203_v15  ;;  %v7204_v56 = vadd.f32 1e-06, %v7196_v26  ;;  %v7197_v9 = vmul.f32 0.03125, %v7179_v51 }
0x262d   : > { %v7182_v0 = vpop.xlane.xlu1 %7181 }
0x262e   : > { %9504 = vrsqrt.f32 %v7204_v56  ;;  %v7205_v37 = vadd.f32 1e-06, %v7197_v9  ;;  %v7198_v16 = vmul.f32 0.03125, %v7182_v0 }
0x262f   : > { %v7185_v45 = vpop.xlane.xlu0 %7184 }
0x2630   : > { %9506 = vrsqrt.f32 %v7205_v37  ;;  %v7206_v50 = vadd.f32 1e-06, %v7198_v16  ;;  %v7199_v62 = vmul.f32 0.03125, %v7185_v45 }
0x2631   : > { %v7188_v10 = vpop.xlane.xlu1 %7187 }
0x2632   : > { %9508 = vrsqrt.f32 %v7206_v50  ;;  %v7207_v54 = vadd.f32 1e-06, %v7199_v62  ;;  %v7200_v47 = vmul.f32 0.03125, %v7188_v10 }
0x2633   : > { %v7191_v60 = vpop.xlane.xlu0 %7190 }
0x2634   : > { %9510 = vrsqrt.f32 %v7207_v54  ;;  %v7208_v12 = vadd.f32 1e-06, %v7200_v47  ;;  %v7201_v1 = vmul.f32 0.03125, %v7191_v60 }
0x2635   : > { %v7194_v57 = vpop.xlane.xlu1 %7193 }
0x2636   : > { %v9503_v39 = vpop.eup %9502  ;;  %9512 = vrsqrt.f32 %v7208_v12  ;;  %v7209_v34 = vadd.f32 1e-06, %v7201_v1  ;;  %v7202_v20 = vmul.f32 0.03125, %v7194_v57 }
0x2637   : > { %v7219_v21 = vmul.f32 %v9503_v39, %v11566_v35 }
0x2638   : > { %v9505_v59 = vpop.eup %9504  ;;  %9514 = vrsqrt.f32 %v7209_v34  ;;  %v7210_v42 = vadd.f32 1e-06, %v7202_v20 }
0x2639   : > { %v7220_v33 = vmul.f32 %v9505_v59, %v11568_v24  ;;  %v7232_v23 = vmul.f32 %v11734_v22, %v7219_v21 }
0x263a   : > { %v9507_v40 = vpop.eup %9506  ;;  %9516 = vrsqrt.f32 %v7210_v42 }
0x263b   : > { %v7221_v31 = vmul.f32 %v9507_v40, %v11572_v43  ;;  %v7233_v36 = vmul.f32 %v11734_v22, %v7220_v33  ;;  %v7244_v44 = vadd.f32 %v11735_v6, %v7232_v23 }
0x263c   : > { %v9509_v25 = vpop.eup %9508 }
0x263d   : > { %v7234_v49 = vmul.f32 %v11734_v22, %v7221_v31  ;;  %v7222_v35 = vmul.f32 %v9509_v25, %v11577_v14  ;;  %v7245_v52 = vadd.f32 %v11735_v6, %v7233_v36 }
0x263e   : > { %v9511_v3 = vpop.eup %9510 }
0x263f   : > { %v7246_v24 = vadd.f32 %v11735_v6, %v7234_v49  ;;  %v7235_v29 = vmul.f32 %v11734_v22, %v7222_v35  ;;  %v7223_v17 = vmul.f32 %v9511_v3, %v11582_v61  ;;  %v7252_v53 = vpack.c.bf16 %v7245_v52, %v7244_v44 }
0x2640   : > { %v9513_v43 = vpop.eup %9512 }
0x2641   : > { %v7247_v13 = vadd.f32 %v11735_v6, %v7235_v29  ;;  %v7224_v2 = vmul.f32 %v9513_v43, %v11587_v58  ;;  %8975 = vmatprep.mubr.msk.bf16.mxu0 %vm791_vm1, %v7252_v53  ;;  %v7236_v28 = vmul.f32 %v11734_v22, %v7223_v17 }
0x2642   : > { %v9515_v14 = vpop.eup %9514 }
0x2643   : > { %v7225_v11 = vmul.f32 %v9515_v14, %v11592_v5  ;;  %v7253_v46 = vpack.c.bf16 %v7247_v13, %v7246_v24  ;;  %v7237_v55 = vmul.f32 %v11734_v22, %v7224_v2  ;;  %v7248_v4 = vadd.f32 %v11735_v6, %v7236_v28 }
0x2644   : > { %v9517_v61 = vpop.eup %9516 }
0x2645   : > { %v7226_v32 = vmul.f32 %v9517_v61, %v11597_v7  ;;  %8976 = vmatmul.mubr.msk.bf16.vlgmr.msra.gmra.mrb[184].mxu0 %vm791_vm1, %v7253_v46  ;;  %v7249_v58 = vadd.f32 %v11735_v6, %v7237_v55  ;;  %v7238_v8 = vmul.f32 %v11734_v22, %v7225_v11  ;;  %v7894_v7 = vld [vmem:[%s11678_s19] ss:$0 sm:$0xff] }
0x2647   : > { %v7254_v48 = vpack.c.bf16 %v7249_v58, %v7248_v4  ;;  %v7239_v18 = vmul.f32 %v11734_v22, %v7226_v32  ;;  %v7250_v5 = vadd.f32 %v11735_v6, %v7238_v8 }
0x2649   : > { %8979 = vmatprep.mubr.msk.bf16.mxu0 %vm791_vm1, %v7254_v48  ;;  %v7251_v30 = vadd.f32 %v11735_v6, %v7239_v18 }
0x264b   : > { %v7255_v41 = vpack.c.bf16 %v7251_v30, %v7250_v5 }
0x264d   : > { %8980 = vmatmul.mubr.msk.bf16.gmra.mrb[188].mxu0 %vm791_vm1, %v7255_v41 }
0x2718   : > { %v8977_v63 = vpop.f32.mrb[184].mxu0 }
0x2719   : > { %v7334_v38 = vadd.f32 %v8977_v63, %v7894_v7  ;;  %v7325_v19 = vpop.f32.mrb[185].mxu0 }
0x271a   : > { %v7326_v27 = vadd.f32 %v7894_v7, %v7325_v19  ;;  %v8978_v15 = vpop.f32.mrb[186].mxu0 }
0x271b   : > { %7358 = vst.msk [vmem:[%s666_s23 + $0x10] sm:$0xff] %vm791_vm1, %v7334_v38  ;;  %v7337_v26 = vadd.f32 %v8978_v15, %v7894_v7  ;;  %v7328_v51 = vpop.f32.mrb[187].mxu0 }
0x271c   : > { %7356 = vst.msk [vmem:[%s666_s23] sm:$0xff] %vm791_vm1, %v7326_v27  ;;  %v7329_v56 = vadd.f32 %v7894_v7, %v7328_v51 }
0x271d   : > { %7359 = vst.msk [vmem:[%s666_s23 + $0x18] sm:$0xff] %vm791_vm1, %v7337_v26 }
0x271e   : > { %7357 = vst.msk [vmem:[%s666_s23 + $0x8] sm:$0xff] %vm791_vm1, %v7329_v56 }
0x2720   : > { %v8981_v9 = vpop.f32.mrb[188].mxu0 }
0x2721   : > { %v7350_v0 = vadd.f32 %v8981_v9, %v7894_v7  ;;  %v7341_v37 = vpop.f32.mrb[189].mxu0 }
0x2722   : > { %v7342_v16 = vadd.f32 %v7894_v7, %v7341_v37  ;;  %v8982_v45 = vpop.f32.mrb[190].mxu0 }
0x2723   : > { %7362 = vst.msk [vmem:[%s666_s23 + $0x30] sm:$0xff] %vm791_vm1, %v7350_v0  ;;  %v7353_v50 = vadd.f32 %v8982_v45, %v7894_v7  ;;  %v7344_v62 = vpop.f32.mrb[191].mxu0 }
0x2724   : > { %7360 = vst.msk [vmem:[%s666_s23 + $0x20] sm:$0xff] %vm791_vm1, %v7342_v16  ;;  %v7345_v10 = vadd.f32 %v7894_v7, %v7344_v62 }
0x2725   : > { %7363 = vst.msk [vmem:[%s666_s23 + $0x38] sm:$0xff] %vm791_vm1, %v7353_v50 }
0x2726   : > { %7361 = vst.msk [vmem:[%s666_s23 + $0x28] sm:$0xff] %vm791_vm1, %v7345_v10 }
0x2727 PF: > { %s30_s1 = sadd.s32 1, %s9526_s1  }
0x2728   : > { %p27_p4 = scmp.ge.s32.totalorder %s30_s1, 4  }
0x272a   :  { %29 = sbr.rel (!%p27_p4) target bundleno = 6 (0x6), region = 190 }

</bundles_post_ra>
